<compile_context>
chip_gen: v5e
topology: v5e:2x2
jax: 0.10.0
libtpu: 0.0.40
codegen_flags: <defaults>
</compile_context>

<pallas_src>
import math
from functools import partial

import jax
import jax.numpy as jnp
from jax.experimental import pallas as pl
from jax.experimental.pallas import tpu as pltpu

# ----------------------------- model hyper-parameters (small) -----------------------------
D_MODEL = 32
SSM_RATIO = 2.0
D_INNER = int(SSM_RATIO * D_MODEL)          # 64
D_STATE = 16
DT_RANK = int(math.ceil(D_MODEL / 16))      # 2
K_GROUP = 4
LN_EPS = 1e-5
DBC_W = ((D_INNER + 2 * D_STATE + 127) // 128) * 128   # 128: lane-dense [dt | B | C | pad]


def _silu(x):
    # x * sigmoid(x); the reciprocal goes to the EUP slot.
    return x * pl.reciprocal(1.0 + jnp.exp(-x), approx=True)


# ---------------------------------- Pallas kernels ----------------------------------------
def _matmul_kernel(a_ref, b_ref, o_ref):
    o_ref[...] = jnp.dot(a_ref[...], b_ref[...], preferred_element_type=jnp.float32)


def pallas_matmul(a, b):
    """(M, K) @ (K, N) -> (M, N) in float32, M tiled up to 512 rows per grid step."""
    M, Kd = a.shape
    _, Nd = b.shape
    tm = M
    for cand in (512, 256, 128):
        if M % cand == 0:
            tm = cand
            break
    return pl.pallas_call(
        _matmul_kernel,
        out_shape=jax.ShapeDtypeStruct((M, Nd), jnp.float32),
        grid=(M // tm,),
        in_specs=[pl.BlockSpec((tm, Kd), lambda i: (i, 0)),
                  pl.BlockSpec((Kd, Nd), lambda i: (0, 0))],
        out_specs=pl.BlockSpec((tm, Nd), lambda i: (i, 0)),
        compiler_params=pltpu.CompilerParams(dimension_semantics=("parallel",)),
    )(a, b)


def _dwconv_silu_kernel(x_ref, w_ref, b_ref, o_ref):
    # x_ref: (1, H+2, W+2, C), w_ref: (3, 3, C), b_ref: (1, 1, C), o_ref: (1, H, W, C)
    H, W, C = o_ref.shape[1], o_ref.shape[2], o_ref.shape[3]
    acc = jnp.zeros((H, W, C), jnp.float32)
    for dy in range(3):
        for dx in range(3):
            acc = acc + x_ref[0, dy:dy + H, dx:dx + W, :] * w_ref[dy:dy + 1, dx:dx + 1, :]
    acc = acc + b_ref[...]
    o_ref[0, :, :, :] = _silu(acc)


def dwconv_silu(x_pad, w, bias):
    B, Hp, Wp, C = x_pad.shape
    H, W = Hp - 2, Wp - 2
    return pl.pallas_call(
        _dwconv_silu_kernel,
        out_shape=jax.ShapeDtypeStruct((B, H, W, C), jnp.float32),
        grid=(B,),
        in_specs=[pl.BlockSpec((1, Hp, Wp, C), lambda b: (b, 0, 0, 0)),
                  pl.BlockSpec((3, 3, C), lambda b: (0, 0, 0)),
                  pl.BlockSpec((1, 1, C), lambda b: (0, 0, 0))],
        out_specs=pl.BlockSpec((1, H, W, C), lambda b: (b, 0, 0, 0)),
        compiler_params=pltpu.CompilerParams(dimension_semantics=("parallel",)),
    )(x_pad, w, bias)


def _xproj_kernel(u_ref, w_ref, o_ref):
    # u_ref: (B, 1, L, D) -- direction k % 2;  w_ref: (1, D, 128);  o_ref: (B, 1, L, 128)
    Bb, _, L, D = u_ref.shape
    a = u_ref[...].reshape(Bb * L, D)
    res = jnp.dot(a, w_ref[0], preferred_element_type=jnp.float32)
    o_ref[...] = res.reshape(Bb, 1, L, res.shape[-1])


def xproj_fused(u, w_fused):
    """Fused x_proj + dt_proj for all 4 scan directions in one pallas_call (grid over k)."""
    B, _, L, D = u.shape
    K, _, W_out = w_fused.shape
    return pl.pallas_call(
        _xproj_kernel,
        out_shape=jax.ShapeDtypeStruct((B, K, L, W_out), jnp.float32),
        grid=(K,),
        in_specs=[pl.BlockSpec((B, 1, L, D), lambda k: (0, k % 2, 0, 0)),
                  pl.BlockSpec((1, D, W_out), lambda k: (k, 0, 0))],
        out_specs=pl.BlockSpec((B, 1, L, W_out), lambda k: (0, k, 0, 0)),
        compiler_params=pltpu.CompilerParams(dimension_semantics=("parallel",)),
    )(u, w_fused)


def _ssm_kernel(u_ref, dbc_ref, a_ref, d_ref, dtb_ref, y_ref,
                daf_ref, hbf_ref, dab_ref, hbb_ref, *, ch):
    # u_ref   : (1, 2, L, D)   two un-flipped scan orders (row-major / col-major)
    # dbc_ref : (1, 4, L, 128) fused [dt_raw | B | C | pad] per direction
    # a_ref   : (K, N, D), d_ref / dtb_ref : (K, D)
    # y_ref   : (1, 2, L, D)   merged output (k and its flipped counterpart share a slot)
    # scratch : daf/hbf for k=0,1 and dab/hbb for k=2,3, each (ch, 2N, D)
    L = u_ref.shape[2]
    K, N, D = a_ref.shape
    n_chunks = L // ch

    y_ref[...] = jnp.zeros(y_ref.shape, y_ref.dtype)

    def chunk_body(c, carry):
        h_f, h_b = carry                                  # each (2N, D): rows [0:N]=dir0, [N:2N]=dir1
        s_f = pl.multiple_of(c * ch, ch)                  # forward ks (k=0,1) chunk start
        s_b = pl.multiple_of(L - (c + 1) * ch, ch)        # backward ks (k=2,3) chunk start

        # ---- phase 1: exp(dt*A) and dt*B*u for this chunk (vectorised over ch) ----------
        for k in range(K):
            d_idx = k % 2
            fwd = k < 2
            s_k = s_f if fwd else s_b
            da_t = daf_ref if fwd else dab_ref
            hb_t = hbf_ref if fwd else hbb_ref
            off = d_idx * N
            dbc_k = dbc_ref[0, k, pl.ds(s_k, ch), :]                  # (ch, 128)
            u_k = u_ref[0, d_idx, pl.ds(s_k, ch), :]                  # (ch, D)
            xdt = dbc_k[:, 0:D] + dtb_ref[k:k + 1, :]                 # (ch, D)
            # numerically stable softplus (delta_softplus=True)
            dt_k = jnp.maximum(xdt, 0.0) + jnp.log(1.0 + jnp.exp(-jnp.abs(xdt)))
            b_k = dbc_k[:, D:D + N]                                   # (ch, N)
            da_t[:, off:off + N, :] = jnp.exp(dt_k[:, None, :] * a_ref[k][None, :, :])
            hb_t[:, off:off + N, :] = b_k[:, :, None] * (dt_k * u_k)[:, None, :]

        # ---- phase 2: sequential recurrence, fully unrolled; flipped dirs run backwards --
        for j in range(ch):
            jb = ch - 1 - j
            h_f = daf_ref[j, :, :] * h_f + hbf_ref[j, :, :]
            hbf_ref[j, :, :] = h_f                                    # keep h history
            h_b = dab_ref[jb, :, :] * h_b + hbb_ref[jb, :, :]
            hbb_ref[jb, :, :] = h_b

        # ---- phase 3: y = C.h + D*u, accumulated straight into the merged output --------
        for k in range(K):
            d_idx = k % 2
            fwd = k < 2
            s_k = s_f if fwd else s_b
            hist = hbf_ref if fwd else hbb_ref
            off = d_idx * N
            dbc_k = dbc_ref[0, k, pl.ds(s_k, ch), :]
            u_k = u_ref[0, d_idx, pl.ds(s_k, ch), :]
            c_k = dbc_k[:, D + N:D + 2 * N]                           # (ch, N)
            h_hist = hist[:, off:off + N, :]                          # (ch, N, D)
            y_k = jnp.sum(c_k[:, :, None] * h_hist, axis=1) + d_ref[k:k + 1, :] * u_k
            y_ref[0, d_idx, pl.ds(s_k, ch), :] += y_k

        return (h_f, h_b)

    h0 = jnp.zeros((2 * N, D), jnp.float32)
    jax.lax.fori_loop(0, n_chunks, chunk_body, (h0, h0))


def selective_scan(u, dbc, A, Ds, dt_bias):
    """u: (B,2,L,D), dbc: (B,4,L,128) -> merged ys: (B,2,L,D)."""
    B, _, L, D = u.shape
    K, N, _ = A.shape
    if L % 16 == 0:
        ch = 16
    elif L % 8 == 0:
        ch = 8
    else:
        ch = L
    return pl.pallas_call(
        partial(_ssm_kernel, ch=ch),
        out_shape=jax.ShapeDtypeStruct((B, 2, L, D), jnp.float32),
        grid=(B,),
        in_specs=[
            pl.BlockSpec((1, 2, L, D), lambda b: (b, 0, 0, 0)),              # u (2 scan orders)
            pl.BlockSpec((1, K, L, dbc.shape[3]), lambda b: (b, 0, 0, 0)),   # [dt|B|C] per k
            pl.BlockSpec((K, N, D), lambda b: (0, 0, 0)),                    # A
            pl.BlockSpec((K, D), lambda b: (0, 0)),                          # D skip
            pl.BlockSpec((K, D), lambda b: (0, 0)),                          # dt bias
        ],
        out_specs=pl.BlockSpec((1, 2, L, D), lambda b: (b, 0, 0, 0)),
        scratch_shapes=[pltpu.VMEM((ch, 2 * N, D), jnp.float32) for _ in range(4)],
        compiler_params=pltpu.CompilerParams(dimension_semantics=("parallel",)),
    )(u, dbc, A, Ds, dt_bias)


def _gate_out_kernel(y_ref, z_ref, g_ref, b_ref, w_ref, o_ref):
    # LayerNorm(y) * SiLU(z) fused with out_proj.
    y = y_ref[...]
    mu = jnp.mean(y, axis=-1, keepdims=True)
    yc = y - mu
    var = jnp.mean(yc * yc, axis=-1, keepdims=True)
    y_n = yc * jax.lax.rsqrt(var + LN_EPS) * g_ref[...] + b_ref[...]
    gated = y_n * _silu(z_ref[...])
    o_ref[...] = jnp.dot(gated, w_ref[...], preferred_element_type=jnp.float32)


def gate_norm_out_proj(y, z, gamma, beta, w_out_t):
    M, D = y.shape
    Nd = w_out_t.shape[1]
    tm = M
    for cand in (512, 256, 128):
        if M % cand == 0:
            tm = cand
            break
    return pl.pallas_call(
        _gate_out_kernel,
        out_shape=jax.ShapeDtypeStruct((M, Nd), jnp.float32),
        grid=(M // tm,),
        in_specs=[pl.BlockSpec((tm, D), lambda i: (i, 0)),
                  pl.BlockSpec((tm, D), lambda i: (i, 0)),
                  pl.BlockSpec((1, D), lambda i: (0, 0)),
                  pl.BlockSpec((1, D), lambda i: (0, 0)),
                  pl.BlockSpec((D, Nd), lambda i: (0, 0))],
        out_specs=pl.BlockSpec((tm, Nd), lambda i: (i, 0)),
        compiler_params=pltpu.CompilerParams(dimension_semantics=("parallel",)),
    )(y, z, gamma, beta, w_out_t)


# ---------------------------------- parameter init ----------------------------------------
def init_params(key):
    ks = jax.random.split(key, 8)
    dt_init_std = DT_RANK ** (-0.5)
    dt_min, dt_max, dt_floor = 1e-3, 0.1, 1e-4
    R, N, D, K = DT_RANK, D_STATE, D_INNER, K_GROUP

    in_proj_w = jax.random.normal(ks[0], (2 * D, D_MODEL), jnp.float32) * 0.02
    conv_w = jax.random.normal(ks[1], (3, 3, D), jnp.float32) * (1.0 / 3.0)
    conv_b = jax.random.normal(ks[2], (D,), jnp.float32) * 0.02
    x_proj_w = jax.random.normal(ks[3], (K, R + 2 * N, D), jnp.float32) * (D ** -0.5)
    dt_w = jax.random.uniform(ks[4], (K, D, R), jnp.float32, -dt_init_std, dt_init_std)
    # mamba_init.dt_init bias: inverse-softplus of sampled dt
    rnd = jax.random.uniform(ks[5], (K, D), jnp.float32)
    dt = jnp.exp(rnd * (math.log(dt_max) - math.log(dt_min)) + math.log(dt_min))
    dt = jnp.maximum(dt, dt_floor)
    dt_bias = dt + jnp.log(-jnp.expm1(-dt))                         # (K, D)
    # A_log_init: log(1..N) per channel, k_group copies
    A_logs = jnp.tile(jnp.log(jnp.arange(1, N + 1, dtype=jnp.float32))[None, :], (K * D, 1))
    Ds = jnp.ones((K, D), jnp.float32)
    ln_g = jnp.ones((1, D), jnp.float32)
    ln_b = jnp.zeros((1, D), jnp.float32)
    out_proj_w = jax.random.normal(ks[6], (D_MODEL, D), jnp.float32) * 0.02

    A = (-jnp.exp(A_logs)).reshape(K, D, N).transpose(0, 2, 1)      # (K, N, D)

    # Algebraically fuse dt_proj into x_proj: a single matmul per direction produces
    # [dt | B | C]; transposed for (rows, D)@(D, out) use and zero-padded to 128 lanes.
    w_dt_t = jnp.einsum('kdr,krm->kmd', dt_w, x_proj_w[:, :R, :])   # (K, D, D)
    w_bc_t = jnp.transpose(x_proj_w[:, R:, :], (0, 2, 1))           # (K, D, 2N)
    pad = jnp.zeros((K, D, DBC_W - (D + 2 * N)), jnp.float32)
    xdbc_w = jnp.concatenate([w_dt_t, w_bc_t, pad], axis=-1)        # (K, D, 128)

    return dict(
        in_proj_w_t=in_proj_w.T,                 # (D_MODEL, 2D)
        conv_w=conv_w, conv_b=conv_b.reshape(1, 1, D),
        xdbc_w=xdbc_w,
        A=A, Ds=Ds, dt_bias=dt_bias,
        ln_g=ln_g, ln_b=ln_b,
        out_proj_w_t=out_proj_w.T,               # (D, D_MODEL)
    )


# ---------------------------------- forward pass -------------------------------------------
def ss2d_forward(x, p):
    """x: (B, H, W, D_MODEL) float32 -> (B, H, W, D_MODEL)."""
    B, H, W, _ = x.shape
    L = H * W
    D = D_INNER

    # in_proj (no bias), chunk into x / z
    xz = pallas_matmul(x.reshape(B * L, D_MODEL), p["in_proj_w_t"])   # (BL, 2D)
    x1, z = xz[:, :D], xz[:, D:]

    # depthwise 3x3 conv (padding=1, bias) + SiLU, NHWC
    x_pad = jnp.pad(x1.reshape(B, H, W, D), ((0, 0), (1, 1), (1, 1), (0, 0)))
    xc = dwconv_silu(x_pad, p["conv_w"], p["conv_b"])                 # (B, H, W, D)

    # cross_scan (cross2d): only the 2 un-flipped scan orders are materialised;
    # the flipped directions are handled by reversed iteration inside the scan kernel.
    u0 = xc.reshape(B, L, D)                                          # row-major (l = h*W + w)
    u1 = jnp.transpose(xc, (0, 2, 1, 3)).reshape(B, L, D)             # col-major (l = w*H + h)
    u = jnp.stack([u0, u1], axis=1)                                   # (B, 2, L, D)

    # fused x_proj + dt_proj for all 4 directions (one kernel, lane-dense output)
    dbc = xproj_fused(u, p["xdbc_w"])                                 # (B, 4, L, 128)

    # selective scan (force_fp32 path); output already cross-merged over (k, k+2) pairs
    ys = selective_scan(u, dbc, p["A"], p["Ds"], p["dt_bias"])        # (B, 2, L, D)

    # merge the two scan orders back into row-major layout
    y = ys[:, 0] + jnp.transpose(ys[:, 1].reshape(B, W, H, D), (0, 2, 1, 3)).reshape(B, L, D)

    # out_norm (LayerNorm) fused with SiLU(z) gate and out_proj (dropout = identity)
    out = gate_norm_out_proj(y.reshape(B * L, D), z, p["ln_g"], p["ln_b"], p["out_proj_w_t"])
    return out.reshape(B, H, W, D_MODEL)


# --------------------------------------- main ----------------------------------------------
if __name__ == "__main__":
    key = jax.random.PRNGKey(0)
    pkey, xkey = jax.random.split(key)
    params = init_params(pkey)

    B, H, W = 2, 8, 8
    x = jax.random.normal(xkey, (B, H, W, D_MODEL), jnp.float32)

    out = jax.jit(ss2d_forward)(x, params)
    out = jax.block_until_ready(out)

    assert out.shape == (B, H, W, D_MODEL)
    assert bool(jnp.all(jnp.isfinite(out)))
    print("KERNEL_OK")
</pallas_src>

<mosaic_0001>
module attributes {stable_mosaic.version = 11 : i64} {
  func.func @_matmul_kernel(%arg0: i32, %arg1: memref<128x32xf32, #tpu.memory_space<vmem>>, %arg2: memref<32x128xf32, #tpu.memory_space<vmem>>, %arg3: memref<128x128xf32, #tpu.memory_space<vmem>>) attributes {dimension_semantics = [#tpu.dimension_semantics<parallel>], iteration_bounds = array<i64: 1>, scalar_prefetch = 0 : i64, scratch_operands = 0 : i64, tpu.core_type = #tpu.core_type<tc>, window_params = [{transform_indices = @transform_0, window_bounds = array<i64: 128, 32>}, {pipeline_mode = #tpu.pipeline_mode<synchronous>, transform_indices = @transform_1, window_bounds = array<i64: 32, 128>}, {transform_indices = @transform_2, window_bounds = array<i64: 128, 128>}]} {
    %c0 = arith.constant 0 : index
    %c0_0 = arith.constant 0 : index
    %0 = vector.load %arg1[%c0, %c0_0] : memref<128x32xf32, #tpu.memory_space<vmem>>, vector<128x32xf32>
    %c0_1 = arith.constant 0 : index
    %c0_2 = arith.constant 0 : index
    %1 = vector.load %arg2[%c0_1, %c0_2] : memref<32x128xf32, #tpu.memory_space<vmem>>, vector<32x128xf32>
    %cst = arith.constant dense<0.000000e+00> : vector<128x128xf32>
    %2 = tpu.matmul %0, %1, %cst {dimension_numbers = #tpu.dot_dimension_numbers<[1], [0], [0], [1], [0, 0, 1, 1], [], []>} : vector<128x32xf32>, vector<32x128xf32>, vector<128x128xf32> -> vector<128x128xf32>
    %c0_3 = arith.constant 0 : index
    %c0_4 = arith.constant 0 : index
    %3 = vector.load %arg3[%c0_3, %c0_4] : memref<128x128xf32, #tpu.memory_space<vmem>>, vector<128x128xf32>
    tpu.vector_store %arg3[%c0_3, %c0_4], %2 {strides = array<i32>} : memref<128x128xf32, #tpu.memory_space<vmem>>, vector<128x128xf32>,
    return
  }
  func.func @transform_0(%arg0: i32) -> (i32, i32) {
    %c0_i32 = arith.constant 0 : i32
    %c0_i32_0 = arith.constant 0 : i32
    return %arg0, %c0_i32 : i32, i32
  }
  func.func @transform_1(%arg0: i32) -> (i32, i32) {
    %c0_i32 = arith.constant 0 : i32
    %c0_i32_0 = arith.constant 0 : i32
    %c0_i32_1 = arith.constant 0 : i32
    return %c0_i32, %c0_i32_0 : i32, i32
  }
  func.func @transform_2(%arg0: i32) -> (i32, i32) {
    %c0_i32 = arith.constant 0 : i32
    %c0_i32_0 = arith.constant 0 : i32
    return %arg0, %c0_i32 : i32, i32
  }
}

module attributes {stable_mosaic.version = 11 : i64} {
  func.func @_dwconv_silu_kernel(%arg0: i32, %arg1: memref<1x10x10x64xf32, #tpu.memory_space<vmem>>, %arg2: memref<3x3x64xf32, #tpu.memory_space<vmem>>, %arg3: memref<1x1x64xf32, #tpu.memory_space<vmem>>, %arg4: memref<1x8x8x64xf32, #tpu.memory_space<vmem>>) attributes {dimension_semantics = [#tpu.dimension_semantics<parallel>], iteration_bounds = array<i64: 2>, scalar_prefetch = 0 : i64, scratch_operands = 0 : i64, tpu.core_type = #tpu.core_type<tc>, window_params = [{transform_indices = @transform_0, window_bounds = array<i64: 1, 10, 10, 64>}, {pipeline_mode = #tpu.pipeline_mode<synchronous>, transform_indices = @transform_1, window_bounds = array<i64: 3, 3, 64>}, {pipeline_mode = #tpu.pipeline_mode<synchronous>, transform_indices = @transform_2, window_bounds = array<i64: 1, 1, 64>}, {transform_indices = @transform_3, window_bounds = array<i64: 1, 8, 8, 64>}]} {
    %cst = arith.constant 0.000000e+00 : f32
    %0 = vector.broadcast %cst : f32 to vector<8x8x64xf32>
    %c0 = arith.constant 0 : index
    %c0_0 = arith.constant 0 : index
    %c0_1 = arith.constant 0 : index
    %c0_2 = arith.constant 0 : index
    %1 = vector.load %arg1[%c0, %c0_0, %c0_1, %c0_2] : memref<1x10x10x64xf32, #tpu.memory_space<vmem>>, vector<1x8x8x64xf32>
    %2 = vector.shape_cast %1 : vector<1x8x8x64xf32> to vector<8x8x64xf32>
    %c0_3 = arith.constant 0 : index
    %c0_4 = arith.constant 0 : index
    %c0_5 = arith.constant 0 : index
    %3 = vector.load %arg2[%c0_3, %c0_4, %c0_5] : memref<3x3x64xf32, #tpu.memory_space<vmem>>, vector<1x1x64xf32>
    %4 = vector.broadcast %3 : vector<1x1x64xf32> to vector<8x8x64xf32>
    %5 = arith.mulf %2, %4 : vector<8x8x64xf32>
    %6 = arith.addf %0, %5 : vector<8x8x64xf32>
    %c0_6 = arith.constant 0 : index
    %c0_7 = arith.constant 0 : index
    %c1 = arith.constant 1 : index
    %c0_8 = arith.constant 0 : index
    %7 = vector.load %arg1[%c0_6, %c0_7, %c1, %c0_8] : memref<1x10x10x64xf32, #tpu.memory_space<vmem>>, vector<1x8x8x64xf32>
    %8 = vector.shape_cast %7 : vector<1x8x8x64xf32> to vector<8x8x64xf32>
    %c0_9 = arith.constant 0 : index
    %c1_10 = arith.constant 1 : index
    %c0_11 = arith.constant 0 : index
    %9 = vector.load %arg2[%c0_9, %c1_10, %c0_11] : memref<3x3x64xf32, #tpu.memory_space<vmem>>, vector<1x1x64xf32>
    %10 = vector.broadcast %9 : vector<1x1x64xf32> to vector<8x8x64xf32>
    %11 = arith.mulf %8, %10 : vector<8x8x64xf32>
    %12 = arith.addf %6, %11 : vector<8x8x64xf32>
    %c0_12 = arith.constant 0 : index
    %c0_13 = arith.constant 0 : index
    %c2 = arith.constant 2 : index
    %c0_14 = arith.constant 0 : index
    %13 = vector.load %arg1[%c0_12, %c0_13, %c2, %c0_14] : memref<1x10x10x64xf32, #tpu.memory_space<vmem>>, vector<1x8x8x64xf32>
    %14 = vector.shape_cast %13 : vector<1x8x8x64xf32> to vector<8x8x64xf32>
    %c0_15 = arith.constant 0 : index
    %c2_16 = arith.constant 2 : index
    %c0_17 = arith.constant 0 : index
    %15 = vector.load %arg2[%c0_15, %c2_16, %c0_17] : memref<3x3x64xf32, #tpu.memory_space<vmem>>, vector<1x1x64xf32>
    %16 = vector.broadcast %15 : vector<1x1x64xf32> to vector<8x8x64xf32>
    %17 = arith.mulf %14, %16 : vector<8x8x64xf32>
    %18 = arith.addf %12, %17 : vector<8x8x64xf32>
    %c0_18 = arith.constant 0 : index
    %c1_19 = arith.constant 1 : index
    %c0_20 = arith.constant 0 : index
    %c0_21 = arith.constant 0 : index
    %19 = vector.load %arg1[%c0_18, %c1_19, %c0_20, %c0_21] : memref<1x10x10x64xf32, #tpu.memory_space<vmem>>, vector<1x8x8x64xf32>
    %20 = vector.shape_cast %19 : vector<1x8x8x64xf32> to vector<8x8x64xf32>
    %c1_22 = arith.constant 1 : index
    %c0_23 = arith.constant 0 : index
    %c0_24 = arith.constant 0 : index
    %21 = vector.load %arg2[%c1_22, %c0_23, %c0_24] : memref<3x3x64xf32, #tpu.memory_space<vmem>>, vector<1x1x64xf32>
    %22 = vector.broadcast %21 : vector<1x1x64xf32> to vector<8x8x64xf32>
    %23 = arith.mulf %20, %22 : vector<8x8x64xf32>
    %24 = arith.addf %18, %23 : vector<8x8x64xf32>
    %c0_25 = arith.constant 0 : index
    %c1_26 = arith.constant 1 : index
    %c1_27 = arith.constant 1 : index
    %c0_28 = arith.constant 0 : index
    %25 = vector.load %arg1[%c0_25, %c1_26, %c1_27, %c0_28] : memref<1x10x10x64xf32, #tpu.memory_space<vmem>>, vector<1x8x8x64xf32>
    %26 = vector.shape_cast %25 : vector<1x8x8x64xf32> to vector<8x8x64xf32>
    %c1_29 = arith.constant 1 : index
    %c1_30 = arith.constant 1 : index
    %c0_31 = arith.constant 0 : index
    %27 = vector.load %arg2[%c1_29, %c1_30, %c0_31] : memref<3x3x64xf32, #tpu.memory_space<vmem>>, vector<1x1x64xf32>
    %28 = vector.broadcast %27 : vector<1x1x64xf32> to vector<8x8x64xf32>
    %29 = arith.mulf %26, %28 : vector<8x8x64xf32>
    %30 = arith.addf %24, %29 : vector<8x8x64xf32>
    %c0_32 = arith.constant 0 : index
    %c1_33 = arith.constant 1 : index
    %c2_34 = arith.constant 2 : index
    %c0_35 = arith.constant 0 : index
    %31 = vector.load %arg1[%c0_32, %c1_33, %c2_34, %c0_35] : memref<1x10x10x64xf32, #tpu.memory_space<vmem>>, vector<1x8x8x64xf32>
    %32 = vector.shape_cast %31 : vector<1x8x8x64xf32> to vector<8x8x64xf32>
    %c1_36 = arith.constant 1 : index
    %c2_37 = arith.constant 2 : index
    %c0_38 = arith.constant 0 : index
    %33 = vector.load %arg2[%c1_36, %c2_37, %c0_38] : memref<3x3x64xf32, #tpu.memory_space<vmem>>, vector<1x1x64xf32>
    %34 = vector.broadcast %33 : vector<1x1x64xf32> to vector<8x8x64xf32>
    %35 = arith.mulf %32, %34 : vector<8x8x64xf32>
    %36 = arith.addf %30, %35 : vector<8x8x64xf32>
    %c0_39 = arith.constant 0 : index
    %c2_40 = arith.constant 2 : index
    %c0_41 = arith.constant 0 : index
    %c0_42 = arith.constant 0 : index
    %37 = vector.load %arg1[%c0_39, %c2_40, %c0_41, %c0_42] : memref<1x10x10x64xf32, #tpu.memory_space<vmem>>, vector<1x8x8x64xf32>
    %38 = vector.shape_cast %37 : vector<1x8x8x64xf32> to vector<8x8x64xf32>
    %c2_43 = arith.constant 2 : index
    %c0_44 = arith.constant 0 : index
    %c0_45 = arith.constant 0 : index
    %39 = vector.load %arg2[%c2_43, %c0_44, %c0_45] : memref<3x3x64xf32, #tpu.memory_space<vmem>>, vector<1x1x64xf32>
    %40 = vector.broadcast %39 : vector<1x1x64xf32> to vector<8x8x64xf32>
    %41 = arith.mulf %38, %40 : vector<8x8x64xf32>
    %42 = arith.addf %36, %41 : vector<8x8x64xf32>
    %c0_46 = arith.constant 0 : index
    %c2_47 = arith.constant 2 : index
    %c1_48 = arith.constant 1 : index
    %c0_49 = arith.constant 0 : index
    %43 = vector.load %arg1[%c0_46, %c2_47, %c1_48, %c0_49] : memref<1x10x10x64xf32, #tpu.memory_space<vmem>>, vector<1x8x8x64xf32>
    %44 = vector.shape_cast %43 : vector<1x8x8x64xf32> to vector<8x8x64xf32>
    %c2_50 = arith.constant 2 : index
    %c1_51 = arith.constant 1 : index
    %c0_52 = arith.constant 0 : index
    %45 = vector.load %arg2[%c2_50, %c1_51, %c0_52] : memref<3x3x64xf32, #tpu.memory_space<vmem>>, vector<1x1x64xf32>
    %46 = vector.broadcast %45 : vector<1x1x64xf32> to vector<8x8x64xf32>
    %47 = arith.mulf %44, %46 : vector<8x8x64xf32>
    %48 = arith.addf %42, %47 : vector<8x8x64xf32>
    %c0_53 = arith.constant 0 : index
    %c2_54 = arith.constant 2 : index
    %c2_55 = arith.constant 2 : index
    %c0_56 = arith.constant 0 : index
    %49 = vector.load %arg1[%c0_53, %c2_54, %c2_55, %c0_56] : memref<1x10x10x64xf32, #tpu.memory_space<vmem>>, vector<1x8x8x64xf32>
    %50 = vector.shape_cast %49 : vector<1x8x8x64xf32> to vector<8x8x64xf32>
    %c2_57 = arith.constant 2 : index
    %c2_58 = arith.constant 2 : index
    %c0_59 = arith.constant 0 : index
    %51 = vector.load %arg2[%c2_57, %c2_58, %c0_59] : memref<3x3x64xf32, #tpu.memory_space<vmem>>, vector<1x1x64xf32>
    %52 = vector.broadcast %51 : vector<1x1x64xf32> to vector<8x8x64xf32>
    %53 = arith.mulf %50, %52 : vector<8x8x64xf32>
    %54 = arith.addf %48, %53 : vector<8x8x64xf32>
    %c0_60 = arith.constant 0 : index
    %c0_61 = arith.constant 0 : index
    %c0_62 = arith.constant 0 : index
    %55 = vector.load %arg3[%c0_60, %c0_61, %c0_62] : memref<1x1x64xf32, #tpu.memory_space<vmem>>, vector<1x1x64xf32>
    %56 = vector.broadcast %55 : vector<1x1x64xf32> to vector<8x8x64xf32>
    %57 = arith.addf %54, %56 : vector<8x8x64xf32>
    %cst_63 = arith.constant 0.000000e+00 : f32
    %58 = vector.broadcast %cst_63 : f32 to vector<8x8x64xf32>
    %59 = arith.subf %58, %57 : vector<8x8x64xf32>
    %60 = math.exp %59 : vector<8x8x64xf32>
    %cst_64 = arith.constant 1.000000e+00 : f32
    %61 = vector.broadcast %cst_64 : f32 to vector<8x8x64xf32>
    %62 = arith.addf %61, %60 : vector<8x8x64xf32>
    %63 = tpu.reciprocal %62 {approx = true} : vector<8x8x64xf32> -> vector<8x8x64xf32>
    %64 = arith.mulf %57, %63 : vector<8x8x64xf32>
    %c0_65 = arith.constant 0 : index
    %c0_66 = arith.constant 0 : index
    %c0_67 = arith.constant 0 : index
    %c0_68 = arith.constant 0 : index
    %65 = vector.load %arg4[%c0_65, %c0_66, %c0_67, %c0_68] : memref<1x8x8x64xf32, #tpu.memory_space<vmem>>, vector<1x8x8x64xf32>
    %66 = vector.shape_cast %65 : vector<1x8x8x64xf32> to vector<8x8x64xf32>
    %67 = vector.shape_cast %64 : vector<8x8x64xf32> to vector<1x8x8x64xf32>
    tpu.vector_store %arg4[%c0_65, %c0_66, %c0_67, %c0_68], %67 {strides = array<i32>} : memref<1x8x8x64xf32, #tpu.memory_space<vmem>>, vector<1x8x8x64xf32>,
    return
  }
  func.func @transform_0(%arg0: i32) -> (i32, i32, i32, i32) {
    %c0_i32 = arith.constant 0 : i32
    %c0_i32_0 = arith.constant 0 : i32
    %c0_i32_1 = arith.constant 0 : i32
    %c0_i32_2 = arith.constant 0 : i32
    return %arg0, %c0_i32, %c0_i32_0, %c0_i32_1 : i32, i32, i32, i32
  }
  func.func @transform_1(%arg0: i32) -> (i32, i32, i32) {
    %c0_i32 = arith.constant 0 : i32
    %c0_i32_0 = arith.constant 0 : i32
    %c0_i32_1 = arith.constant 0 : i32
    %c0_i32_2 = arith.constant 0 : i32
    return %c0_i32, %c0_i32_0, %c0_i32_1 : i32, i32, i32
  }
  func.func @transform_2(%arg0: i32) -> (i32, i32, i32) {
    %c0_i32 = arith.constant 0 : i32
    %c0_i32_0 = arith.constant 0 : i32
    %c0_i32_1 = arith.constant 0 : i32
    %c0_i32_2 = arith.constant 0 : i32
    return %c0_i32, %c0_i32_0, %c0_i32_1 : i32, i32, i32
  }
  func.func @transform_3(%arg0: i32) -> (i32, i32, i32, i32) {
    %c0_i32 = arith.constant 0 : i32
    %c0_i32_0 = arith.constant 0 : i32
    %c0_i32_1 = arith.constant 0 : i32
    %c0_i32_2 = arith.constant 0 : i32
    return %arg0, %c0_i32, %c0_i32_0, %c0_i32_1 : i32, i32, i32, i32
  }
}

module attributes {stable_mosaic.version = 11 : i64} {
  func.func @_xproj_kernel(%arg0: i32, %arg1: memref<2x1x64x64xf32, #tpu.memory_space<vmem>>, %arg2: memref<1x64x128xf32, #tpu.memory_space<vmem>>, %arg3: memref<2x1x64x128xf32, #tpu.memory_space<vmem>>) attributes {dimension_semantics = [#tpu.dimension_semantics<parallel>], iteration_bounds = array<i64: 4>, scalar_prefetch = 0 : i64, scratch_operands = 0 : i64, tpu.core_type = #tpu.core_type<tc>, window_params = [{transform_indices = @transform_0, window_bounds = array<i64: 2, 1, 64, 64>}, {transform_indices = @transform_1, window_bounds = array<i64: 1, 64, 128>}, {transform_indices = @transform_2, window_bounds = array<i64: 2, 1, 64, 128>}]} {
    %c0 = arith.constant 0 : index
    %c0_0 = arith.constant 0 : index
    %c0_1 = arith.constant 0 : index
    %c0_2 = arith.constant 0 : index
    %0 = vector.load %arg1[%c0, %c0_0, %c0_1, %c0_2] : memref<2x1x64x64xf32, #tpu.memory_space<vmem>>, vector<2x1x64x64xf32>
    %1 = vector.shape_cast %0 : vector<2x1x64x64xf32> to vector<128x64xf32>
    %c0_3 = arith.constant 0 : index
    %c0_4 = arith.constant 0 : index
    %c0_5 = arith.constant 0 : index
    %2 = vector.load %arg2[%c0_3, %c0_4, %c0_5] : memref<1x64x128xf32, #tpu.memory_space<vmem>>, vector<1x64x128xf32>
    %3 = vector.shape_cast %2 : vector<1x64x128xf32> to vector<64x128xf32>
    %cst = arith.constant dense<0.000000e+00> : vector<128x128xf32>
    %4 = tpu.matmul %1, %3, %cst {dimension_numbers = #tpu.dot_dimension_numbers<[1], [0], [0], [1], [0, 0, 1, 1], [], []>} : vector<128x64xf32>, vector<64x128xf32>, vector<128x128xf32> -> vector<128x128xf32>
    %5 = vector.shape_cast %4 : vector<128x128xf32> to vector<2x1x64x128xf32>
    %c0_6 = arith.constant 0 : index
    %c0_7 = arith.constant 0 : index
    %c0_8 = arith.constant 0 : index
    %c0_9 = arith.constant 0 : index
    %6 = vector.load %arg3[%c0_6, %c0_7, %c0_8, %c0_9] : memref<2x1x64x128xf32, #tpu.memory_space<vmem>>, vector<2x1x64x128xf32>
    tpu.vector_store %arg3[%c0_6, %c0_7, %c0_8, %c0_9], %5 {strides = array<i32>} : memref<2x1x64x128xf32, #tpu.memory_space<vmem>>, vector<2x1x64x128xf32>,
    return
  }
  func.func @transform_0(%arg0: i32) -> (i32, i32, i32, i32) {
    %c2_i32 = arith.constant 2 : i32
    %c0_i32 = arith.constant 0 : i32
    %0 = arith.cmpi eq, %c2_i32, %c0_i32 : i32
    %c1_i32 = arith.constant 1 : i32
    %1 = arith.select %0, %c1_i32, %c2_i32 : i32
    %2 = arith.remsi %arg0, %1 : i32
    %c0_i32_0 = arith.constant 0 : i32
    %3 = arith.cmpi ne, %2, %c0_i32_0 : i32
    %c0_i32_1 = arith.constant 0 : i32
    %4 = arith.cmpi slt, %2, %c0_i32_1 : i32
    %c0_i32_2 = arith.constant 0 : i32
    %5 = arith.cmpi slt, %1, %c0_i32_2 : i32
    %6 = arith.xori %4, %5 : i1
    %7 = arith.andi %6, %3 : i1
    %8 = arith.addi %2, %1 : i32
    %9 = arith.select %7, %8, %2 : i32
    %c0_i32_3 = arith.constant 0 : i32
    %c0_i32_4 = arith.constant 0 : i32
    %c0_i32_5 = arith.constant 0 : i32
    %c0_i32_6 = arith.constant 0 : i32
    return %c0_i32_3, %9, %c0_i32_4, %c0_i32_5 : i32, i32, i32, i32
  }
  func.func @transform_1(%arg0: i32) -> (i32, i32, i32) {
    %c0_i32 = arith.constant 0 : i32
    %c0_i32_0 = arith.constant 0 : i32
    %c0_i32_1 = arith.constant 0 : i32
    return %arg0, %c0_i32, %c0_i32_0 : i32, i32, i32
  }
  func.func @transform_2(%arg0: i32) -> (i32, i32, i32, i32) {
    %c0_i32 = arith.constant 0 : i32
    %c0_i32_0 = arith.constant 0 : i32
    %c0_i32_1 = arith.constant 0 : i32
    %c0_i32_2 = arith.constant 0 : i32
    return %c0_i32, %arg0, %c0_i32_0, %c0_i32_1 : i32, i32, i32, i32
  }
}

module attributes {stable_mosaic.version = 11 : i64} {
  func.func @_ssm_kernel(%arg0: i32, %arg1: memref<1x2x64x64xf32, #tpu.memory_space<vmem>>, %arg2: memref<1x4x64x128xf32, #tpu.memory_space<vmem>>, %arg3: memref<4x16x64xf32, #tpu.memory_space<vmem>>, %arg4: memref<4x64xf32, #tpu.memory_space<vmem>>, %arg5: memref<4x64xf32, #tpu.memory_space<vmem>>, %arg6: memref<1x2x64x64xf32, #tpu.memory_space<vmem>>, %arg7: memref<16x32x64xf32, #tpu.memory_space<vmem>>, %arg8: memref<16x32x64xf32, #tpu.memory_space<vmem>>, %arg9: memref<16x32x64xf32, #tpu.memory_space<vmem>>, %arg10: memref<16x32x64xf32, #tpu.memory_space<vmem>>) attributes {dimension_semantics = [#tpu.dimension_semantics<parallel>], iteration_bounds = array<i64: 2>, scalar_prefetch = 0 : i64, scratch_operands = 4 : i64, tpu.core_type = #tpu.core_type<tc>, window_params = [{transform_indices = @transform_0, window_bounds = array<i64: 1, 2, 64, 64>}, {transform_indices = @transform_1, window_bounds = array<i64: 1, 4, 64, 128>}, {pipeline_mode = #tpu.pipeline_mode<synchronous>, transform_indices = @transform_2, window_bounds = array<i64: 4, 16, 64>}, {pipeline_mode = #tpu.pipeline_mode<synchronous>, transform_indices = @transform_3, window_bounds = array<i64: 4, 64>}, {pipeline_mode = #tpu.pipeline_mode<synchronous>, transform_indices = @transform_4, window_bounds = array<i64: 4, 64>}, {transform_indices = @transform_5, window_bounds = array<i64: 1, 2, 64, 64>}]} {
    %cst = arith.constant 0.000000e+00 : f32
    %0 = vector.broadcast %cst : f32 to vector<1x2x64x64xf32>
    %c0 = arith.constant 0 : index
    %c0_0 = arith.constant 0 : index
    %c0_1 = arith.constant 0 : index
    %c0_2 = arith.constant 0 : index
    %1 = vector.load %arg6[%c0, %c0_0, %c0_1, %c0_2] : memref<1x2x64x64xf32, #tpu.memory_space<vmem>>, vector<1x2x64x64xf32>
    tpu.vector_store %arg6[%c0, %c0_0, %c0_1, %c0_2], %0 {strides = array<i32>} : memref<1x2x64x64xf32, #tpu.memory_space<vmem>>, vector<1x2x64x64xf32>,
    %cst_3 = arith.constant 0.000000e+00 : f32
    %2 = vector.broadcast %cst_3 : f32 to vector<32x64xf32>
    %c0_i32 = arith.constant 0 : i32
    %c4_i32 = arith.constant 4 : i32
    %3 = arith.addi %c0_i32, %c4_i32 : i32
    %c1_i32 = arith.constant 1 : i32
    %4:2 = scf.for %arg11 = %c0_i32 to %3 step %c1_i32 iter_args(%arg12 = %2, %arg13 = %2) -> (vector<32x64xf32>, vector<32x64xf32>)  : i32 {
      %c16_i32 = arith.constant 16 : i32
      %5 = arith.muli %arg11, %c16_i32 : i32
      %6 = tpu.assume_multiple %5, 16 : i32
      %c1_i32_5 = arith.constant 1 : i32
      %7 = arith.addi %arg11, %c1_i32_5 : i32
      %c16_i32_6 = arith.constant 16 : i32
      %8 = arith.muli %7, %c16_i32_6 : i32
      %c64_i32 = arith.constant 64 : i32
      %9 = arith.subi %c64_i32, %8 : i32
      %10 = tpu.assume_multiple %9, 16 : i32
      %c0_7 = arith.constant 0 : index
      %c0_8 = arith.constant 0 : index
      %11 = arith.index_cast %6 : i32 to index
      %c0_9 = arith.constant 0 : index
      %12 = vector.load %arg2[%c0_7, %c0_8, %11, %c0_9] : memref<1x4x64x128xf32, #tpu.memory_space<vmem>>, vector<1x1x16x128xf32>
      %13 = vector.shape_cast %12 : vector<1x1x16x128xf32> to vector<16x128xf32>
      %c0_10 = arith.constant 0 : index
      %c0_11 = arith.constant 0 : index
      %14 = arith.index_cast %6 : i32 to index
      %c0_12 = arith.constant 0 : index
      %15 = vector.load %arg1[%c0_10, %c0_11, %14, %c0_12] : memref<1x2x64x64xf32, #tpu.memory_space<vmem>>, vector<1x1x16x64xf32>
      %16 = vector.shape_cast %15 : vector<1x1x16x64xf32> to vector<16x64xf32>
      %17 = vector.extract_strided_slice %13 {offsets = [0, 0], sizes = [16, 64], strides = [1, 1]} : vector<16x128xf32> to vector<16x64xf32>
      %c0_13 = arith.constant 0 : index
      %c0_14 = arith.constant 0 : index
      %18 = vector.load %arg5[%c0_13, %c0_14] : memref<4x64xf32, #tpu.memory_space<vmem>>, vector<1x64xf32>
      %19 = vector.broadcast %18 : vector<1x64xf32> to vector<16x64xf32>
      %20 = arith.addf %17, %19 : vector<16x64xf32>
      %cst_15 = arith.constant 0.000000e+00 : f32
      %21 = vector.broadcast %cst_15 : f32 to vector<16x64xf32>
      %22 = arith.maximumf %20, %21 : vector<16x64xf32>
      %23 = math.absf %20 : vector<16x64xf32>
      %cst_16 = arith.constant 0.000000e+00 : f32
      %24 = vector.broadcast %cst_16 : f32 to vector<16x64xf32>
      %25 = arith.subf %24, %23 : vector<16x64xf32>
      %26 = math.exp %25 : vector<16x64xf32>
      %cst_17 = arith.constant 1.000000e+00 : f32
      %27 = vector.broadcast %cst_17 : f32 to vector<16x64xf32>
      %28 = arith.addf %27, %26 : vector<16x64xf32>
      %29 = math.log %28 : vector<16x64xf32>
      %30 = arith.addf %22, %29 : vector<16x64xf32>
      %31 = vector.extract_strided_slice %13 {offsets = [0, 64], sizes = [16, 16], strides = [1, 1]} : vector<16x128xf32> to vector<16x16xf32>
      %32 = vector.shape_cast %30 : vector<16x64xf32> to vector<16x1x64xf32>
      %c0_18 = arith.constant 0 : index
      %c0_19 = arith.constant 0 : index
      %c0_20 = arith.constant 0 : index
      %33 = vector.load %arg3[%c0_18, %c0_19, %c0_20] : memref<4x16x64xf32, #tpu.memory_space<vmem>>, vector<1x16x64xf32>
      %34 = vector.shape_cast %33 : vector<1x16x64xf32> to vector<16x64xf32>
      %35 = vector.shape_cast %34 : vector<16x64xf32> to vector<1x16x64xf32>
      %36 = vector.broadcast %32 : vector<16x1x64xf32> to vector<16x16x64xf32>
      %37 = vector.broadcast %35 : vector<1x16x64xf32> to vector<16x16x64xf32>
      %38 = arith.mulf %36, %37 : vector<16x16x64xf32>
      %39 = math.exp %38 : vector<16x16x64xf32>
      %c0_21 = arith.constant 0 : index
      %c0_22 = arith.constant 0 : index
      %c0_23 = arith.constant 0 : index
      %40 = vector.load %arg7[%c0_21, %c0_22, %c0_23] : memref<16x32x64xf32, #tpu.memory_space<vmem>>, vector<16x16x64xf32>
      tpu.vector_store %arg7[%c0_21, %c0_22, %c0_23], %39 {strides = array<i32>} : memref<16x32x64xf32, #tpu.memory_space<vmem>>, vector<16x16x64xf32>,
      %41 = vector.shape_cast %31 : vector<16x16xf32> to vector<16x16x1xf32>
      %42 = arith.mulf %30, %16 : vector<16x64xf32>
      %43 = vector.shape_cast %42 : vector<16x64xf32> to vector<16x1x64xf32>
      %44 = vector.broadcast %41 : vector<16x16x1xf32> to vector<16x16x64xf32>
      %45 = vector.broadcast %43 : vector<16x1x64xf32> to vector<16x16x64xf32>
      %46 = arith.mulf %44, %45 : vector<16x16x64xf32>
      %c0_24 = arith.constant 0 : index
      %c0_25 = arith.constant 0 : index
      %c0_26 = arith.constant 0 : index
      %47 = vector.load %arg8[%c0_24, %c0_25, %c0_26] : memref<16x32x64xf32, #tpu.memory_space<vmem>>, vector<16x16x64xf32>
      tpu.vector_store %arg8[%c0_24, %c0_25, %c0_26], %46 {strides = array<i32>} : memref<16x32x64xf32, #tpu.memory_space<vmem>>, vector<16x16x64xf32>,
      %c0_27 = arith.constant 0 : index
      %c1 = arith.constant 1 : index
      %48 = arith.index_cast %6 : i32 to index
      %c0_28 = arith.constant 0 : index
      %49 = vector.load %arg2[%c0_27, %c1, %48, %c0_28] : memref<1x4x64x128xf32, #tpu.memory_space<vmem>>, vector<1x1x16x128xf32>
      %50 = vector.shape_cast %49 : vector<1x1x16x128xf32> to vector<16x128xf32>
      %c0_29 = arith.constant 0 : index
      %c1_30 = arith.constant 1 : index
      %51 = arith.index_cast %6 : i32 to index
      %c0_31 = arith.constant 0 : index
      %52 = vector.load %arg1[%c0_29, %c1_30, %51, %c0_31] : memref<1x2x64x64xf32, #tpu.memory_space<vmem>>, vector<1x1x16x64xf32>
      %53 = vector.shape_cast %52 : vector<1x1x16x64xf32> to vector<16x64xf32>
      %54 = vector.extract_strided_slice %50 {offsets = [0, 0], sizes = [16, 64], strides = [1, 1]} : vector<16x128xf32> to vector<16x64xf32>
      %c1_32 = arith.constant 1 : index
      %c0_33 = arith.constant 0 : index
      %55 = vector.load %arg5[%c1_32, %c0_33] : memref<4x64xf32, #tpu.memory_space<vmem>>, vector<1x64xf32>
      %56 = vector.broadcast %55 : vector<1x64xf32> to vector<16x64xf32>
      %57 = arith.addf %54, %56 : vector<16x64xf32>
      %cst_34 = arith.constant 0.000000e+00 : f32
      %58 = vector.broadcast %cst_34 : f32 to vector<16x64xf32>
      %59 = arith.maximumf %57, %58 : vector<16x64xf32>
      %60 = math.absf %57 : vector<16x64xf32>
      %cst_35 = arith.constant 0.000000e+00 : f32
      %61 = vector.broadcast %cst_35 : f32 to vector<16x64xf32>
      %62 = arith.subf %61, %60 : vector<16x64xf32>
      %63 = math.exp %62 : vector<16x64xf32>
      %cst_36 = arith.constant 1.000000e+00 : f32
      %64 = vector.broadcast %cst_36 : f32 to vector<16x64xf32>
      %65 = arith.addf %64, %63 : vector<16x64xf32>
      %66 = math.log %65 : vector<16x64xf32>
      %67 = arith.addf %59, %66 : vector<16x64xf32>
      %68 = vector.extract_strided_slice %50 {offsets = [0, 64], sizes = [16, 16], strides = [1, 1]} : vector<16x128xf32> to vector<16x16xf32>
      %69 = vector.shape_cast %67 : vector<16x64xf32> to vector<16x1x64xf32>
      %c1_37 = arith.constant 1 : index
      %c0_38 = arith.constant 0 : index
      %c0_39 = arith.constant 0 : index
      %70 = vector.load %arg3[%c1_37, %c0_38, %c0_39] : memref<4x16x64xf32, #tpu.memory_space<vmem>>, vector<1x16x64xf32>
      %71 = vector.shape_cast %70 : vector<1x16x64xf32> to vector<16x64xf32>
      %72 = vector.shape_cast %71 : vector<16x64xf32> to vector<1x16x64xf32>
      %73 = vector.broadcast %69 : vector<16x1x64xf32> to vector<16x16x64xf32>
      %74 = vector.broadcast %72 : vector<1x16x64xf32> to vector<16x16x64xf32>
      %75 = arith.mulf %73, %74 : vector<16x16x64xf32>
      %76 = math.exp %75 : vector<16x16x64xf32>
      %c0_40 = arith.constant 0 : index
      %c16 = arith.constant 16 : index
      %c0_41 = arith.constant 0 : index
      %77 = vector.load %arg7[%c0_40, %c16, %c0_41] : memref<16x32x64xf32, #tpu.memory_space<vmem>>, vector<16x16x64xf32>
      tpu.vector_store %arg7[%c0_40, %c16, %c0_41], %76 {strides = array<i32>} : memref<16x32x64xf32, #tpu.memory_space<vmem>>, vector<16x16x64xf32>,
      %78 = vector.shape_cast %68 : vector<16x16xf32> to vector<16x16x1xf32>
      %79 = arith.mulf %67, %53 : vector<16x64xf32>
      %80 = vector.shape_cast %79 : vector<16x64xf32> to vector<16x1x64xf32>
      %81 = vector.broadcast %78 : vector<16x16x1xf32> to vector<16x16x64xf32>
      %82 = vector.broadcast %80 : vector<16x1x64xf32> to vector<16x16x64xf32>
      %83 = arith.mulf %81, %82 : vector<16x16x64xf32>
      %c0_42 = arith.constant 0 : index
      %c16_43 = arith.constant 16 : index
      %c0_44 = arith.constant 0 : index
      %84 = vector.load %arg8[%c0_42, %c16_43, %c0_44] : memref<16x32x64xf32, #tpu.memory_space<vmem>>, vector<16x16x64xf32>
      tpu.vector_store %arg8[%c0_42, %c16_43, %c0_44], %83 {strides = array<i32>} : memref<16x32x64xf32, #tpu.memory_space<vmem>>, vector<16x16x64xf32>,
      %c0_45 = arith.constant 0 : index
      %c2 = arith.constant 2 : index
      %85 = arith.index_cast %10 : i32 to index
      %c0_46 = arith.constant 0 : index
      %86 = vector.load %arg2[%c0_45, %c2, %85, %c0_46] : memref<1x4x64x128xf32, #tpu.memory_space<vmem>>, vector<1x1x16x128xf32>
      %87 = vector.shape_cast %86 : vector<1x1x16x128xf32> to vector<16x128xf32>
      %c0_47 = arith.constant 0 : index
      %c0_48 = arith.constant 0 : index
      %88 = arith.index_cast %10 : i32 to index
      %c0_49 = arith.constant 0 : index
      %89 = vector.load %arg1[%c0_47, %c0_48, %88, %c0_49] : memref<1x2x64x64xf32, #tpu.memory_space<vmem>>, vector<1x1x16x64xf32>
      %90 = vector.shape_cast %89 : vector<1x1x16x64xf32> to vector<16x64xf32>
      %91 = vector.extract_strided_slice %87 {offsets = [0, 0], sizes = [16, 64], strides = [1, 1]} : vector<16x128xf32> to vector<16x64xf32>
      %c2_50 = arith.constant 2 : index
      %c0_51 = arith.constant 0 : index
      %92 = vector.load %arg5[%c2_50, %c0_51] : memref<4x64xf32, #tpu.memory_space<vmem>>, vector<1x64xf32>
      %93 = vector.broadcast %92 : vector<1x64xf32> to vector<16x64xf32>
      %94 = arith.addf %91, %93 : vector<16x64xf32>
      %cst_52 = arith.constant 0.000000e+00 : f32
      %95 = vector.broadcast %cst_52 : f32 to vector<16x64xf32>
      %96 = arith.maximumf %94, %95 : vector<16x64xf32>
      %97 = math.absf %94 : vector<16x64xf32>
      %cst_53 = arith.constant 0.000000e+00 : f32
      %98 = vector.broadcast %cst_53 : f32 to vector<16x64xf32>
      %99 = arith.subf %98, %97 : vector<16x64xf32>
      %100 = math.exp %99 : vector<16x64xf32>
      %cst_54 = arith.constant 1.000000e+00 : f32
      %101 = vector.broadcast %cst_54 : f32 to vector<16x64xf32>
      %102 = arith.addf %101, %100 : vector<16x64xf32>
      %103 = math.log %102 : vector<16x64xf32>
      %104 = arith.addf %96, %103 : vector<16x64xf32>
      %105 = vector.extract_strided_slice %87 {offsets = [0, 64], sizes = [16, 16], strides = [1, 1]} : vector<16x128xf32> to vector<16x16xf32>
      %106 = vector.shape_cast %104 : vector<16x64xf32> to vector<16x1x64xf32>
      %c2_55 = arith.constant 2 : index
      %c0_56 = arith.constant 0 : index
      %c0_57 = arith.constant 0 : index
      %107 = vector.load %arg3[%c2_55, %c0_56, %c0_57] : memref<4x16x64xf32, #tpu.memory_space<vmem>>, vector<1x16x64xf32>
      %108 = vector.shape_cast %107 : vector<1x16x64xf32> to vector<16x64xf32>
      %109 = vector.shape_cast %108 : vector<16x64xf32> to vector<1x16x64xf32>
      %110 = vector.broadcast %106 : vector<16x1x64xf32> to vector<16x16x64xf32>
      %111 = vector.broadcast %109 : vector<1x16x64xf32> to vector<16x16x64xf32>
      %112 = arith.mulf %110, %111 : vector<16x16x64xf32>
      %113 = math.exp %112 : vector<16x16x64xf32>
      %c0_58 = arith.constant 0 : index
      %c0_59 = arith.constant 0 : index
      %c0_60 = arith.constant 0 : index
      %114 = vector.load %arg9[%c0_58, %c0_59, %c0_60] : memref<16x32x64xf32, #tpu.memory_space<vmem>>, vector<16x16x64xf32>
      tpu.vector_store %arg9[%c0_58, %c0_59, %c0_60], %113 {strides = array<i32>} : memref<16x32x64xf32, #tpu.memory_space<vmem>>, vector<16x16x64xf32>,
      %115 = vector.shape_cast %105 : vector<16x16xf32> to vector<16x16x1xf32>
      %116 = arith.mulf %104, %90 : vector<16x64xf32>
      %117 = vector.shape_cast %116 : vector<16x64xf32> to vector<16x1x64xf32>
      %118 = vector.broadcast %115 : vector<16x16x1xf32> to vector<16x16x64xf32>
      %119 = vector.broadcast %117 : vector<16x1x64xf32> to vector<16x16x64xf32>
      %120 = arith.mulf %118, %119 : vector<16x16x64xf32>
      %c0_61 = arith.constant 0 : index
      %c0_62 = arith.constant 0 : index
      %c0_63 = arith.constant 0 : index
      %121 = vector.load %arg10[%c0_61, %c0_62, %c0_63] : memref<16x32x64xf32, #tpu.memory_space<vmem>>, vector<16x16x64xf32>
      tpu.vector_store %arg10[%c0_61, %c0_62, %c0_63], %120 {strides = array<i32>} : memref<16x32x64xf32, #tpu.memory_space<vmem>>, vector<16x16x64xf32>,
      %c0_64 = arith.constant 0 : index
      %c3 = arith.constant 3 : index
      %122 = arith.index_cast %10 : i32 to index
      %c0_65 = arith.constant 0 : index
      %123 = vector.load %arg2[%c0_64, %c3, %122, %c0_65] : memref<1x4x64x128xf32, #tpu.memory_space<vmem>>, vector<1x1x16x128xf32>
      %124 = vector.shape_cast %123 : vector<1x1x16x128xf32> to vector<16x128xf32>
      %c0_66 = arith.constant 0 : index
      %c1_67 = arith.constant 1 : index
      %125 = arith.index_cast %10 : i32 to index
      %c0_68 = arith.constant 0 : index
      %126 = vector.load %arg1[%c0_66, %c1_67, %125, %c0_68] : memref<1x2x64x64xf32, #tpu.memory_space<vmem>>, vector<1x1x16x64xf32>
      %127 = vector.shape_cast %126 : vector<1x1x16x64xf32> to vector<16x64xf32>
      %128 = vector.extract_strided_slice %124 {offsets = [0, 0], sizes = [16, 64], strides = [1, 1]} : vector<16x128xf32> to vector<16x64xf32>
      %c3_69 = arith.constant 3 : index
      %c0_70 = arith.constant 0 : index
      %129 = vector.load %arg5[%c3_69, %c0_70] : memref<4x64xf32, #tpu.memory_space<vmem>>, vector<1x64xf32>
      %130 = vector.broadcast %129 : vector<1x64xf32> to vector<16x64xf32>
      %131 = arith.addf %128, %130 : vector<16x64xf32>
      %cst_71 = arith.constant 0.000000e+00 : f32
      %132 = vector.broadcast %cst_71 : f32 to vector<16x64xf32>
      %133 = arith.maximumf %131, %132 : vector<16x64xf32>
      %134 = math.absf %131 : vector<16x64xf32>
      %cst_72 = arith.constant 0.000000e+00 : f32
      %135 = vector.broadcast %cst_72 : f32 to vector<16x64xf32>
      %136 = arith.subf %135, %134 : vector<16x64xf32>
      %137 = math.exp %136 : vector<16x64xf32>
      %cst_73 = arith.constant 1.000000e+00 : f32
      %138 = vector.broadcast %cst_73 : f32 to vector<16x64xf32>
      %139 = arith.addf %138, %137 : vector<16x64xf32>
      %140 = math.log %139 : vector<16x64xf32>
      %141 = arith.addf %133, %140 : vector<16x64xf32>
      %142 = vector.extract_strided_slice %124 {offsets = [0, 64], sizes = [16, 16], strides = [1, 1]} : vector<16x128xf32> to vector<16x16xf32>
      %143 = vector.shape_cast %141 : vector<16x64xf32> to vector<16x1x64xf32>
      %c3_74 = arith.constant 3 : index
      %c0_75 = arith.constant 0 : index
      %c0_76 = arith.constant 0 : index
      %144 = vector.load %arg3[%c3_74, %c0_75, %c0_76] : memref<4x16x64xf32, #tpu.memory_space<vmem>>, vector<1x16x64xf32>
      %145 = vector.shape_cast %144 : vector<1x16x64xf32> to vector<16x64xf32>
      %146 = vector.shape_cast %145 : vector<16x64xf32> to vector<1x16x64xf32>
      %147 = vector.broadcast %143 : vector<16x1x64xf32> to vector<16x16x64xf32>
      %148 = vector.broadcast %146 : vector<1x16x64xf32> to vector<16x16x64xf32>
      %149 = arith.mulf %147, %148 : vector<16x16x64xf32>
      %150 = math.exp %149 : vector<16x16x64xf32>
      %c0_77 = arith.constant 0 : index
      %c16_78 = arith.constant 16 : index
      %c0_79 = arith.constant 0 : index
      %151 = vector.load %arg9[%c0_77, %c16_78, %c0_79] : memref<16x32x64xf32, #tpu.memory_space<vmem>>, vector<16x16x64xf32>
      tpu.vector_store %arg9[%c0_77, %c16_78, %c0_79], %150 {strides = array<i32>} : memref<16x32x64xf32, #tpu.memory_space<vmem>>, vector<16x16x64xf32>,
      %152 = vector.shape_cast %142 : vector<16x16xf32> to vector<16x16x1xf32>
      %153 = arith.mulf %141, %127 : vector<16x64xf32>
      %154 = vector.shape_cast %153 : vector<16x64xf32> to vector<16x1x64xf32>
      %155 = vector.broadcast %152 : vector<16x16x1xf32> to vector<16x16x64xf32>
      %156 = vector.broadcast %154 : vector<16x1x64xf32> to vector<16x16x64xf32>
      %157 = arith.mulf %155, %156 : vector<16x16x64xf32>
      %c0_80 = arith.constant 0 : index
      %c16_81 = arith.constant 16 : index
      %c0_82 = arith.constant 0 : index
      %158 = vector.load %arg10[%c0_80, %c16_81, %c0_82] : memref<16x32x64xf32, #tpu.memory_space<vmem>>, vector<16x16x64xf32>
      tpu.vector_store %arg10[%c0_80, %c16_81, %c0_82], %157 {strides = array<i32>} : memref<16x32x64xf32, #tpu.memory_space<vmem>>, vector<16x16x64xf32>,
      %c0_83 = arith.constant 0 : index
      %c0_84 = arith.constant 0 : index
      %c0_85 = arith.constant 0 : index
      %159 = vector.load %arg7[%c0_83, %c0_84, %c0_85] : memref<16x32x64xf32, #tpu.memory_space<vmem>>, vector<1x32x64xf32>
      %160 = vector.shape_cast %159 : vector<1x32x64xf32> to vector<32x64xf32>
      %161 = arith.mulf %160, %arg12 : vector<32x64xf32>
      %c0_86 = arith.constant 0 : index
      %c0_87 = arith.constant 0 : index
      %c0_88 = arith.constant 0 : index
      %162 = vector.load %arg8[%c0_86, %c0_87, %c0_88] : memref<16x32x64xf32, #tpu.memory_space<vmem>>, vector<1x32x64xf32>
      %163 = vector.shape_cast %162 : vector<1x32x64xf32> to vector<32x64xf32>
      %164 = arith.addf %161, %163 : vector<32x64xf32>
      %c0_89 = arith.constant 0 : index
      %c0_90 = arith.constant 0 : index
      %c0_91 = arith.constant 0 : index
      %165 = vector.load %arg8[%c0_89, %c0_90, %c0_91] : memref<16x32x64xf32, #tpu.memory_space<vmem>>, vector<1x32x64xf32>
      %166 = vector.shape_cast %165 : vector<1x32x64xf32> to vector<32x64xf32>
      %167 = vector.shape_cast %164 : vector<32x64xf32> to vector<1x32x64xf32>
      tpu.vector_store %arg8[%c0_89, %c0_90, %c0_91], %167 {strides = array<i32>} : memref<16x32x64xf32, #tpu.memory_space<vmem>>, vector<1x32x64xf32>,
      %c15 = arith.constant 15 : index
      %c0_92 = arith.constant 0 : index
      %c0_93 = arith.constant 0 : index
      %168 = vector.load %arg9[%c15, %c0_92, %c0_93] : memref<16x32x64xf32, #tpu.memory_space<vmem>>, vector<1x32x64xf32>
      %169 = vector.shape_cast %168 : vector<1x32x64xf32> to vector<32x64xf32>
      %170 = arith.mulf %169, %arg13 : vector<32x64xf32>
      %c15_94 = arith.constant 15 : index
      %c0_95 = arith.constant 0 : index
      %c0_96 = arith.constant 0 : index
      %171 = vector.load %arg10[%c15_94, %c0_95, %c0_96] : memref<16x32x64xf32, #tpu.memory_space<vmem>>, vector<1x32x64xf32>
      %172 = vector.shape_cast %171 : vector<1x32x64xf32> to vector<32x64xf32>
      %173 = arith.addf %170, %172 : vector<32x64xf32>
      %c15_97 = arith.constant 15 : index
      %c0_98 = arith.constant 0 : index
      %c0_99 = arith.constant 0 : index
      %174 = vector.load %arg10[%c15_97, %c0_98, %c0_99] : memref<16x32x64xf32, #tpu.memory_space<vmem>>, vector<1x32x64xf32>
      %175 = vector.shape_cast %174 : vector<1x32x64xf32> to vector<32x64xf32>
      %176 = vector.shape_cast %173 : vector<32x64xf32> to vector<1x32x64xf32>
      tpu.vector_store %arg10[%c15_97, %c0_98, %c0_99], %176 {strides = array<i32>} : memref<16x32x64xf32, #tpu.memory_space<vmem>>, vector<1x32x64xf32>,
      %c1_100 = arith.constant 1 : index
      %c0_101 = arith.constant 0 : index
      %c0_102 = arith.constant 0 : index
      %177 = vector.load %arg7[%c1_100, %c0_101, %c0_102] : memref<16x32x64xf32, #tpu.memory_space<vmem>>, vector<1x32x64xf32>
      %178 = vector.shape_cast %177 : vector<1x32x64xf32> to vector<32x64xf32>
      %179 = arith.mulf %178, %164 : vector<32x64xf32>
      %c1_103 = arith.constant 1 : index
      %c0_104 = arith.constant 0 : index
      %c0_105 = arith.constant 0 : index
      %180 = vector.load %arg8[%c1_103, %c0_104, %c0_105] : memref<16x32x64xf32, #tpu.memory_space<vmem>>, vector<1x32x64xf32>
      %181 = vector.shape_cast %180 : vector<1x32x64xf32> to vector<32x64xf32>
      %182 = arith.addf %179, %181 : vector<32x64xf32>
      %c1_106 = arith.constant 1 : index
      %c0_107 = arith.constant 0 : index
      %c0_108 = arith.constant 0 : index
      %183 = vector.load %arg8[%c1_106, %c0_107, %c0_108] : memref<16x32x64xf32, #tpu.memory_space<vmem>>, vector<1x32x64xf32>
      %184 = vector.shape_cast %183 : vector<1x32x64xf32> to vector<32x64xf32>
      %185 = vector.shape_cast %182 : vector<32x64xf32> to vector<1x32x64xf32>
      tpu.vector_store %arg8[%c1_106, %c0_107, %c0_108], %185 {strides = array<i32>} : memref<16x32x64xf32, #tpu.memory_space<vmem>>, vector<1x32x64xf32>,
      %c14 = arith.constant 14 : index
      %c0_109 = arith.constant 0 : index
      %c0_110 = arith.constant 0 : index
      %186 = vector.load %arg9[%c14, %c0_109, %c0_110] : memref<16x32x64xf32, #tpu.memory_space<vmem>>, vector<1x32x64xf32>
      %187 = vector.shape_cast %186 : vector<1x32x64xf32> to vector<32x64xf32>
      %188 = arith.mulf %187, %173 : vector<32x64xf32>
      %c14_111 = arith.constant 14 : index
      %c0_112 = arith.constant 0 : index
      %c0_113 = arith.constant 0 : index
      %189 = vector.load %arg10[%c14_111, %c0_112, %c0_113] : memref<16x32x64xf32, #tpu.memory_space<vmem>>, vector<1x32x64xf32>
      %190 = vector.shape_cast %189 : vector<1x32x64xf32> to vector<32x64xf32>
      %191 = arith.addf %188, %190 : vector<32x64xf32>
      %c14_114 = arith.constant 14 : index
      %c0_115 = arith.constant 0 : index
      %c0_116 = arith.constant 0 : index
      %192 = vector.load %arg10[%c14_114, %c0_115, %c0_116] : memref<16x32x64xf32, #tpu.memory_space<vmem>>, vector<1x32x64xf32>
      %193 = vector.shape_cast %192 : vector<1x32x64xf32> to vector<32x64xf32>
      %194 = vector.shape_cast %191 : vector<32x64xf32> to vector<1x32x64xf32>
      tpu.vector_store %arg10[%c14_114, %c0_115, %c0_116], %194 {strides = array<i32>} : memref<16x32x64xf32, #tpu.memory_space<vmem>>, vector<1x32x64xf32>,
      %c2_117 = arith.constant 2 : index
      %c0_118 = arith.constant 0 : index
      %c0_119 = arith.constant 0 : index
      %195 = vector.load %arg7[%c2_117, %c0_118, %c0_119] : memref<16x32x64xf32, #tpu.memory_space<vmem>>, vector<1x32x64xf32>
      %196 = vector.shape_cast %195 : vector<1x32x64xf32> to vector<32x64xf32>
      %197 = arith.mulf %196, %182 : vector<32x64xf32>
      %c2_120 = arith.constant 2 : index
      %c0_121 = arith.constant 0 : index
      %c0_122 = arith.constant 0 : index
      %198 = vector.load %arg8[%c2_120, %c0_121, %c0_122] : memref<16x32x64xf32, #tpu.memory_space<vmem>>, vector<1x32x64xf32>
      %199 = vector.shape_cast %198 : vector<1x32x64xf32> to vector<32x64xf32>
      %200 = arith.addf %197, %199 : vector<32x64xf32>
      %c2_123 = arith.constant 2 : index
      %c0_124 = arith.constant 0 : index
      %c0_125 = arith.constant 0 : index
      %201 = vector.load %arg8[%c2_123, %c0_124, %c0_125] : memref<16x32x64xf32, #tpu.memory_space<vmem>>, vector<1x32x64xf32>
      %202 = vector.shape_cast %201 : vector<1x32x64xf32> to vector<32x64xf32>
      %203 = vector.shape_cast %200 : vector<32x64xf32> to vector<1x32x64xf32>
      tpu.vector_store %arg8[%c2_123, %c0_124, %c0_125], %203 {strides = array<i32>} : memref<16x32x64xf32, #tpu.memory_space<vmem>>, vector<1x32x64xf32>,
      %c13 = arith.constant 13 : index
      %c0_126 = arith.constant 0 : index
      %c0_127 = arith.constant 0 : index
      %204 = vector.load %arg9[%c13, %c0_126, %c0_127] : memref<16x32x64xf32, #tpu.memory_space<vmem>>, vector<1x32x64xf32>
      %205 = vector.shape_cast %204 : vector<1x32x64xf32> to vector<32x64xf32>
      %206 = arith.mulf %205, %191 : vector<32x64xf32>
      %c13_128 = arith.constant 13 : index
      %c0_129 = arith.constant 0 : index
      %c0_130 = arith.constant 0 : index
      %207 = vector.load %arg10[%c13_128, %c0_129, %c0_130] : memref<16x32x64xf32, #tpu.memory_space<vmem>>, vector<1x32x64xf32>
      %208 = vector.shape_cast %207 : vector<1x32x64xf32> to vector<32x64xf32>
      %209 = arith.addf %206, %208 : vector<32x64xf32>
      %c13_131 = arith.constant 13 : index
      %c0_132 = arith.constant 0 : index
      %c0_133 = arith.constant 0 : index
      %210 = vector.load %arg10[%c13_131, %c0_132, %c0_133] : memref<16x32x64xf32, #tpu.memory_space<vmem>>, vector<1x32x64xf32>
      %211 = vector.shape_cast %210 : vector<1x32x64xf32> to vector<32x64xf32>
      %212 = vector.shape_cast %209 : vector<32x64xf32> to vector<1x32x64xf32>
      tpu.vector_store %arg10[%c13_131, %c0_132, %c0_133], %212 {strides = array<i32>} : memref<16x32x64xf32, #tpu.memory_space<vmem>>, vector<1x32x64xf32>,
      %c3_134 = arith.constant 3 : index
      %c0_135 = arith.constant 0 : index
      %c0_136 = arith.constant 0 : index
      %213 = vector.load %arg7[%c3_134, %c0_135, %c0_136] : memref<16x32x64xf32, #tpu.memory_space<vmem>>, vector<1x32x64xf32>
      %214 = vector.shape_cast %213 : vector<1x32x64xf32> to vector<32x64xf32>
      %215 = arith.mulf %214, %200 : vector<32x64xf32>
      %c3_137 = arith.constant 3 : index
      %c0_138 = arith.constant 0 : index
      %c0_139 = arith.constant 0 : index
      %216 = vector.load %arg8[%c3_137, %c0_138, %c0_139] : memref<16x32x64xf32, #tpu.memory_space<vmem>>, vector<1x32x64xf32>
      %217 = vector.shape_cast %216 : vector<1x32x64xf32> to vector<32x64xf32>
      %218 = arith.addf %215, %217 : vector<32x64xf32>
      %c3_140 = arith.constant 3 : index
      %c0_141 = arith.constant 0 : index
      %c0_142 = arith.constant 0 : index
      %219 = vector.load %arg8[%c3_140, %c0_141, %c0_142] : memref<16x32x64xf32, #tpu.memory_space<vmem>>, vector<1x32x64xf32>
      %220 = vector.shape_cast %219 : vector<1x32x64xf32> to vector<32x64xf32>
      %221 = vector.shape_cast %218 : vector<32x64xf32> to vector<1x32x64xf32>
      tpu.vector_store %arg8[%c3_140, %c0_141, %c0_142], %221 {strides = array<i32>} : memref<16x32x64xf32, #tpu.memory_space<vmem>>, vector<1x32x64xf32>,
      %c12 = arith.constant 12 : index
      %c0_143 = arith.constant 0 : index
      %c0_144 = arith.constant 0 : index
      %222 = vector.load %arg9[%c12, %c0_143, %c0_144] : memref<16x32x64xf32, #tpu.memory_space<vmem>>, vector<1x32x64xf32>
      %223 = vector.shape_cast %222 : vector<1x32x64xf32> to vector<32x64xf32>
      %224 = arith.mulf %223, %209 : vector<32x64xf32>
      %c12_145 = arith.constant 12 : index
      %c0_146 = arith.constant 0 : index
      %c0_147 = arith.constant 0 : index
      %225 = vector.load %arg10[%c12_145, %c0_146, %c0_147] : memref<16x32x64xf32, #tpu.memory_space<vmem>>, vector<1x32x64xf32>
      %226 = vector.shape_cast %225 : vector<1x32x64xf32> to vector<32x64xf32>
      %227 = arith.addf %224, %226 : vector<32x64xf32>
      %c12_148 = arith.constant 12 : index
      %c0_149 = arith.constant 0 : index
      %c0_150 = arith.constant 0 : index
      %228 = vector.load %arg10[%c12_148, %c0_149, %c0_150] : memref<16x32x64xf32, #tpu.memory_space<vmem>>, vector<1x32x64xf32>
      %229 = vector.shape_cast %228 : vector<1x32x64xf32> to vector<32x64xf32>
      %230 = vector.shape_cast %227 : vector<32x64xf32> to vector<1x32x64xf32>
      tpu.vector_store %arg10[%c12_148, %c0_149, %c0_150], %230 {strides = array<i32>} : memref<16x32x64xf32, #tpu.memory_space<vmem>>, vector<1x32x64xf32>,
      %c4 = arith.constant 4 : index
      %c0_151 = arith.constant 0 : index
      %c0_152 = arith.constant 0 : index
      %231 = vector.load %arg7[%c4, %c0_151, %c0_152] : memref<16x32x64xf32, #tpu.memory_space<vmem>>, vector<1x32x64xf32>
      %232 = vector.shape_cast %231 : vector<1x32x64xf32> to vector<32x64xf32>
      %233 = arith.mulf %232, %218 : vector<32x64xf32>
      %c4_153 = arith.constant 4 : index
      %c0_154 = arith.constant 0 : index
      %c0_155 = arith.constant 0 : index
      %234 = vector.load %arg8[%c4_153, %c0_154, %c0_155] : memref<16x32x64xf32, #tpu.memory_space<vmem>>, vector<1x32x64xf32>
      %235 = vector.shape_cast %234 : vector<1x32x64xf32> to vector<32x64xf32>
      %236 = arith.addf %233, %235 : vector<32x64xf32>
      %c4_156 = arith.constant 4 : index
      %c0_157 = arith.constant 0 : index
      %c0_158 = arith.constant 0 : index
      %237 = vector.load %arg8[%c4_156, %c0_157, %c0_158] : memref<16x32x64xf32, #tpu.memory_space<vmem>>, vector<1x32x64xf32>
      %238 = vector.shape_cast %237 : vector<1x32x64xf32> to vector<32x64xf32>
      %239 = vector.shape_cast %236 : vector<32x64xf32> to vector<1x32x64xf32>
      tpu.vector_store %arg8[%c4_156, %c0_157, %c0_158], %239 {strides = array<i32>} : memref<16x32x64xf32, #tpu.memory_space<vmem>>, vector<1x32x64xf32>,
      %c11 = arith.constant 11 : index
      %c0_159 = arith.constant 0 : index
      %c0_160 = arith.constant 0 : index
      %240 = vector.load %arg9[%c11, %c0_159, %c0_160] : memref<16x32x64xf32, #tpu.memory_space<vmem>>, vector<1x32x64xf32>
      %241 = vector.shape_cast %240 : vector<1x32x64xf32> to vector<32x64xf32>
      %242 = arith.mulf %241, %227 : vector<32x64xf32>
      %c11_161 = arith.constant 11 : index
      %c0_162 = arith.constant 0 : index
      %c0_163 = arith.constant 0 : index
      %243 = vector.load %arg10[%c11_161, %c0_162, %c0_163] : memref<16x32x64xf32, #tpu.memory_space<vmem>>, vector<1x32x64xf32>
      %244 = vector.shape_cast %243 : vector<1x32x64xf32> to vector<32x64xf32>
      %245 = arith.addf %242, %244 : vector<32x64xf32>
      %c11_164 = arith.constant 11 : index
      %c0_165 = arith.constant 0 : index
      %c0_166 = arith.constant 0 : index
      %246 = vector.load %arg10[%c11_164, %c0_165, %c0_166] : memref<16x32x64xf32, #tpu.memory_space<vmem>>, vector<1x32x64xf32>
      %247 = vector.shape_cast %246 : vector<1x32x64xf32> to vector<32x64xf32>
      %248 = vector.shape_cast %245 : vector<32x64xf32> to vector<1x32x64xf32>
      tpu.vector_store %arg10[%c11_164, %c0_165, %c0_166], %248 {strides = array<i32>} : memref<16x32x64xf32, #tpu.memory_space<vmem>>, vector<1x32x64xf32>,
      %c5 = arith.constant 5 : index
      %c0_167 = arith.constant 0 : index
      %c0_168 = arith.constant 0 : index
      %249 = vector.load %arg7[%c5, %c0_167, %c0_168] : memref<16x32x64xf32, #tpu.memory_space<vmem>>, vector<1x32x64xf32>
      %250 = vector.shape_cast %249 : vector<1x32x64xf32> to vector<32x64xf32>
      %251 = arith.mulf %250, %236 : vector<32x64xf32>
      %c5_169 = arith.constant 5 : index
      %c0_170 = arith.constant 0 : index
      %c0_171 = arith.constant 0 : index
      %252 = vector.load %arg8[%c5_169, %c0_170, %c0_171] : memref<16x32x64xf32, #tpu.memory_space<vmem>>, vector<1x32x64xf32>
      %253 = vector.shape_cast %252 : vector<1x32x64xf32> to vector<32x64xf32>
      %254 = arith.addf %251, %253 : vector<32x64xf32>
      %c5_172 = arith.constant 5 : index
      %c0_173 = arith.constant 0 : index
      %c0_174 = arith.constant 0 : index
      %255 = vector.load %arg8[%c5_172, %c0_173, %c0_174] : memref<16x32x64xf32, #tpu.memory_space<vmem>>, vector<1x32x64xf32>
      %256 = vector.shape_cast %255 : vector<1x32x64xf32> to vector<32x64xf32>
      %257 = vector.shape_cast %254 : vector<32x64xf32> to vector<1x32x64xf32>
      tpu.vector_store %arg8[%c5_172, %c0_173, %c0_174], %257 {strides = array<i32>} : memref<16x32x64xf32, #tpu.memory_space<vmem>>, vector<1x32x64xf32>,
      %c10 = arith.constant 10 : index
      %c0_175 = arith.constant 0 : index
      %c0_176 = arith.constant 0 : index
      %258 = vector.load %arg9[%c10, %c0_175, %c0_176] : memref<16x32x64xf32, #tpu.memory_space<vmem>>, vector<1x32x64xf32>
      %259 = vector.shape_cast %258 : vector<1x32x64xf32> to vector<32x64xf32>
      %260 = arith.mulf %259, %245 : vector<32x64xf32>
      %c10_177 = arith.constant 10 : index
      %c0_178 = arith.constant 0 : index
      %c0_179 = arith.constant 0 : index
      %261 = vector.load %arg10[%c10_177, %c0_178, %c0_179] : memref<16x32x64xf32, #tpu.memory_space<vmem>>, vector<1x32x64xf32>
      %262 = vector.shape_cast %261 : vector<1x32x64xf32> to vector<32x64xf32>
      %263 = arith.addf %260, %262 : vector<32x64xf32>
      %c10_180 = arith.constant 10 : index
      %c0_181 = arith.constant 0 : index
      %c0_182 = arith.constant 0 : index
      %264 = vector.load %arg10[%c10_180, %c0_181, %c0_182] : memref<16x32x64xf32, #tpu.memory_space<vmem>>, vector<1x32x64xf32>
      %265 = vector.shape_cast %264 : vector<1x32x64xf32> to vector<32x64xf32>
      %266 = vector.shape_cast %263 : vector<32x64xf32> to vector<1x32x64xf32>
      tpu.vector_store %arg10[%c10_180, %c0_181, %c0_182], %266 {strides = array<i32>} : memref<16x32x64xf32, #tpu.memory_space<vmem>>, vector<1x32x64xf32>,
      %c6 = arith.constant 6 : index
      %c0_183 = arith.constant 0 : index
      %c0_184 = arith.constant 0 : index
      %267 = vector.load %arg7[%c6, %c0_183, %c0_184] : memref<16x32x64xf32, #tpu.memory_space<vmem>>, vector<1x32x64xf32>
      %268 = vector.shape_cast %267 : vector<1x32x64xf32> to vector<32x64xf32>
      %269 = arith.mulf %268, %254 : vector<32x64xf32>
      %c6_185 = arith.constant 6 : index
      %c0_186 = arith.constant 0 : index
      %c0_187 = arith.constant 0 : index
      %270 = vector.load %arg8[%c6_185, %c0_186, %c0_187] : memref<16x32x64xf32, #tpu.memory_space<vmem>>, vector<1x32x64xf32>
      %271 = vector.shape_cast %270 : vector<1x32x64xf32> to vector<32x64xf32>
      %272 = arith.addf %269, %271 : vector<32x64xf32>
      %c6_188 = arith.constant 6 : index
      %c0_189 = arith.constant 0 : index
      %c0_190 = arith.constant 0 : index
      %273 = vector.load %arg8[%c6_188, %c0_189, %c0_190] : memref<16x32x64xf32, #tpu.memory_space<vmem>>, vector<1x32x64xf32>
      %274 = vector.shape_cast %273 : vector<1x32x64xf32> to vector<32x64xf32>
      %275 = vector.shape_cast %272 : vector<32x64xf32> to vector<1x32x64xf32>
      tpu.vector_store %arg8[%c6_188, %c0_189, %c0_190], %275 {strides = array<i32>} : memref<16x32x64xf32, #tpu.memory_space<vmem>>, vector<1x32x64xf32>,
      %c9 = arith.constant 9 : index
      %c0_191 = arith.constant 0 : index
      %c0_192 = arith.constant 0 : index
      %276 = vector.load %arg9[%c9, %c0_191, %c0_192] : memref<16x32x64xf32, #tpu.memory_space<vmem>>, vector<1x32x64xf32>
      %277 = vector.shape_cast %276 : vector<1x32x64xf32> to vector<32x64xf32>
      %278 = arith.mulf %277, %263 : vector<32x64xf32>
      %c9_193 = arith.constant 9 : index
      %c0_194 = arith.constant 0 : index
      %c0_195 = arith.constant 0 : index
      %279 = vector.load %arg10[%c9_193, %c0_194, %c0_195] : memref<16x32x64xf32, #tpu.memory_space<vmem>>, vector<1x32x64xf32>
      %280 = vector.shape_cast %279 : vector<1x32x64xf32> to vector<32x64xf32>
      %281 = arith.addf %278, %280 : vector<32x64xf32>
      %c9_196 = arith.constant 9 : index
      %c0_197 = arith.constant 0 : index
      %c0_198 = arith.constant 0 : index
      %282 = vector.load %arg10[%c9_196, %c0_197, %c0_198] : memref<16x32x64xf32, #tpu.memory_space<vmem>>, vector<1x32x64xf32>
      %283 = vector.shape_cast %282 : vector<1x32x64xf32> to vector<32x64xf32>
      %284 = vector.shape_cast %281 : vector<32x64xf32> to vector<1x32x64xf32>
      tpu.vector_store %arg10[%c9_196, %c0_197, %c0_198], %284 {strides = array<i32>} : memref<16x32x64xf32, #tpu.memory_space<vmem>>, vector<1x32x64xf32>,
      %c7 = arith.constant 7 : index
      %c0_199 = arith.constant 0 : index
      %c0_200 = arith.constant 0 : index
      %285 = vector.load %arg7[%c7, %c0_199, %c0_200] : memref<16x32x64xf32, #tpu.memory_space<vmem>>, vector<1x32x64xf32>
      %286 = vector.shape_cast %285 : vector<1x32x64xf32> to vector<32x64xf32>
      %287 = arith.mulf %286, %272 : vector<32x64xf32>
      %c7_201 = arith.constant 7 : index
      %c0_202 = arith.constant 0 : index
      %c0_203 = arith.constant 0 : index
      %288 = vector.load %arg8[%c7_201, %c0_202, %c0_203] : memref<16x32x64xf32, #tpu.memory_space<vmem>>, vector<1x32x64xf32>
      %289 = vector.shape_cast %288 : vector<1x32x64xf32> to vector<32x64xf32>
      %290 = arith.addf %287, %289 : vector<32x64xf32>
      %c7_204 = arith.constant 7 : index
      %c0_205 = arith.constant 0 : index
      %c0_206 = arith.constant 0 : index
      %291 = vector.load %arg8[%c7_204, %c0_205, %c0_206] : memref<16x32x64xf32, #tpu.memory_space<vmem>>, vector<1x32x64xf32>
      %292 = vector.shape_cast %291 : vector<1x32x64xf32> to vector<32x64xf32>
      %293 = vector.shape_cast %290 : vector<32x64xf32> to vector<1x32x64xf32>
      tpu.vector_store %arg8[%c7_204, %c0_205, %c0_206], %293 {strides = array<i32>} : memref<16x32x64xf32, #tpu.memory_space<vmem>>, vector<1x32x64xf32>,
      %c8 = arith.constant 8 : index
      %c0_207 = arith.constant 0 : index
      %c0_208 = arith.constant 0 : index
      %294 = vector.load %arg9[%c8, %c0_207, %c0_208] : memref<16x32x64xf32, #tpu.memory_space<vmem>>, vector<1x32x64xf32>
      %295 = vector.shape_cast %294 : vector<1x32x64xf32> to vector<32x64xf32>
      %296 = arith.mulf %295, %281 : vector<32x64xf32>
      %c8_209 = arith.constant 8 : index
      %c0_210 = arith.constant 0 : index
      %c0_211 = arith.constant 0 : index
      %297 = vector.load %arg10[%c8_209, %c0_210, %c0_211] : memref<16x32x64xf32, #tpu.memory_space<vmem>>, vector<1x32x64xf32>
      %298 = vector.shape_cast %297 : vector<1x32x64xf32> to vector<32x64xf32>
      %299 = arith.addf %296, %298 : vector<32x64xf32>
      %c8_212 = arith.constant 8 : index
      %c0_213 = arith.constant 0 : index
      %c0_214 = arith.constant 0 : index
      %300 = vector.load %arg10[%c8_212, %c0_213, %c0_214] : memref<16x32x64xf32, #tpu.memory_space<vmem>>, vector<1x32x64xf32>
      %301 = vector.shape_cast %300 : vector<1x32x64xf32> to vector<32x64xf32>
      %302 = vector.shape_cast %299 : vector<32x64xf32> to vector<1x32x64xf32>
      tpu.vector_store %arg10[%c8_212, %c0_213, %c0_214], %302 {strides = array<i32>} : memref<16x32x64xf32, #tpu.memory_space<vmem>>, vector<1x32x64xf32>,
      %c8_215 = arith.constant 8 : index
      %c0_216 = arith.constant 0 : index
      %c0_217 = arith.constant 0 : index
      %303 = vector.load %arg7[%c8_215, %c0_216, %c0_217] : memref<16x32x64xf32, #tpu.memory_space<vmem>>, vector<1x32x64xf32>
      %304 = vector.shape_cast %303 : vector<1x32x64xf32> to vector<32x64xf32>
      %305 = arith.mulf %304, %290 : vector<32x64xf32>
      %c8_218 = arith.constant 8 : index
      %c0_219 = arith.constant 0 : index
      %c0_220 = arith.constant 0 : index
      %306 = vector.load %arg8[%c8_218, %c0_219, %c0_220] : memref<16x32x64xf32, #tpu.memory_space<vmem>>, vector<1x32x64xf32>
      %307 = vector.shape_cast %306 : vector<1x32x64xf32> to vector<32x64xf32>
      %308 = arith.addf %305, %307 : vector<32x64xf32>
      %c8_221 = arith.constant 8 : index
      %c0_222 = arith.constant 0 : index
      %c0_223 = arith.constant 0 : index
      %309 = vector.load %arg8[%c8_221, %c0_222, %c0_223] : memref<16x32x64xf32, #tpu.memory_space<vmem>>, vector<1x32x64xf32>
      %310 = vector.shape_cast %309 : vector<1x32x64xf32> to vector<32x64xf32>
      %311 = vector.shape_cast %308 : vector<32x64xf32> to vector<1x32x64xf32>
      tpu.vector_store %arg8[%c8_221, %c0_222, %c0_223], %311 {strides = array<i32>} : memref<16x32x64xf32, #tpu.memory_space<vmem>>, vector<1x32x64xf32>,
      %c7_224 = arith.constant 7 : index
      %c0_225 = arith.constant 0 : index
      %c0_226 = arith.constant 0 : index
      %312 = vector.load %arg9[%c7_224, %c0_225, %c0_226] : memref<16x32x64xf32, #tpu.memory_space<vmem>>, vector<1x32x64xf32>
      %313 = vector.shape_cast %312 : vector<1x32x64xf32> to vector<32x64xf32>
      %314 = arith.mulf %313, %299 : vector<32x64xf32>
      %c7_227 = arith.constant 7 : index
      %c0_228 = arith.constant 0 : index
      %c0_229 = arith.constant 0 : index
      %315 = vector.load %arg10[%c7_227, %c0_228, %c0_229] : memref<16x32x64xf32, #tpu.memory_space<vmem>>, vector<1x32x64xf32>
      %316 = vector.shape_cast %315 : vector<1x32x64xf32> to vector<32x64xf32>
      %317 = arith.addf %314, %316 : vector<32x64xf32>
      %c7_230 = arith.constant 7 : index
      %c0_231 = arith.constant 0 : index
      %c0_232 = arith.constant 0 : index
      %318 = vector.load %arg10[%c7_230, %c0_231, %c0_232] : memref<16x32x64xf32, #tpu.memory_space<vmem>>, vector<1x32x64xf32>
      %319 = vector.shape_cast %318 : vector<1x32x64xf32> to vector<32x64xf32>
      %320 = vector.shape_cast %317 : vector<32x64xf32> to vector<1x32x64xf32>
      tpu.vector_store %arg10[%c7_230, %c0_231, %c0_232], %320 {strides = array<i32>} : memref<16x32x64xf32, #tpu.memory_space<vmem>>, vector<1x32x64xf32>,
      %c9_233 = arith.constant 9 : index
      %c0_234 = arith.constant 0 : index
      %c0_235 = arith.constant 0 : index
      %321 = vector.load %arg7[%c9_233, %c0_234, %c0_235] : memref<16x32x64xf32, #tpu.memory_space<vmem>>, vector<1x32x64xf32>
      %322 = vector.shape_cast %321 : vector<1x32x64xf32> to vector<32x64xf32>
      %323 = arith.mulf %322, %308 : vector<32x64xf32>
      %c9_236 = arith.constant 9 : index
      %c0_237 = arith.constant 0 : index
      %c0_238 = arith.constant 0 : index
      %324 = vector.load %arg8[%c9_236, %c0_237, %c0_238] : memref<16x32x64xf32, #tpu.memory_space<vmem>>, vector<1x32x64xf32>
      %325 = vector.shape_cast %324 : vector<1x32x64xf32> to vector<32x64xf32>
      %326 = arith.addf %323, %325 : vector<32x64xf32>
      %c9_239 = arith.constant 9 : index
      %c0_240 = arith.constant 0 : index
      %c0_241 = arith.constant 0 : index
      %327 = vector.load %arg8[%c9_239, %c0_240, %c0_241] : memref<16x32x64xf32, #tpu.memory_space<vmem>>, vector<1x32x64xf32>
      %328 = vector.shape_cast %327 : vector<1x32x64xf32> to vector<32x64xf32>
      %329 = vector.shape_cast %326 : vector<32x64xf32> to vector<1x32x64xf32>
      tpu.vector_store %arg8[%c9_239, %c0_240, %c0_241], %329 {strides = array<i32>} : memref<16x32x64xf32, #tpu.memory_space<vmem>>, vector<1x32x64xf32>,
      %c6_242 = arith.constant 6 : index
      %c0_243 = arith.constant 0 : index
      %c0_244 = arith.constant 0 : index
      %330 = vector.load %arg9[%c6_242, %c0_243, %c0_244] : memref<16x32x64xf32, #tpu.memory_space<vmem>>, vector<1x32x64xf32>
      %331 = vector.shape_cast %330 : vector<1x32x64xf32> to vector<32x64xf32>
      %332 = arith.mulf %331, %317 : vector<32x64xf32>
      %c6_245 = arith.constant 6 : index
      %c0_246 = arith.constant 0 : index
      %c0_247 = arith.constant 0 : index
      %333 = vector.load %arg10[%c6_245, %c0_246, %c0_247] : memref<16x32x64xf32, #tpu.memory_space<vmem>>, vector<1x32x64xf32>
      %334 = vector.shape_cast %333 : vector<1x32x64xf32> to vector<32x64xf32>
      %335 = arith.addf %332, %334 : vector<32x64xf32>
      %c6_248 = arith.constant 6 : index
      %c0_249 = arith.constant 0 : index
      %c0_250 = arith.constant 0 : index
      %336 = vector.load %arg10[%c6_248, %c0_249, %c0_250] : memref<16x32x64xf32, #tpu.memory_space<vmem>>, vector<1x32x64xf32>
      %337 = vector.shape_cast %336 : vector<1x32x64xf32> to vector<32x64xf32>
      %338 = vector.shape_cast %335 : vector<32x64xf32> to vector<1x32x64xf32>
      tpu.vector_store %arg10[%c6_248, %c0_249, %c0_250], %338 {strides = array<i32>} : memref<16x32x64xf32, #tpu.memory_space<vmem>>, vector<1x32x64xf32>,
      %c10_251 = arith.constant 10 : index
      %c0_252 = arith.constant 0 : index
      %c0_253 = arith.constant 0 : index
      %339 = vector.load %arg7[%c10_251, %c0_252, %c0_253] : memref<16x32x64xf32, #tpu.memory_space<vmem>>, vector<1x32x64xf32>
      %340 = vector.shape_cast %339 : vector<1x32x64xf32> to vector<32x64xf32>
      %341 = arith.mulf %340, %326 : vector<32x64xf32>
      %c10_254 = arith.constant 10 : index
      %c0_255 = arith.constant 0 : index
      %c0_256 = arith.constant 0 : index
      %342 = vector.load %arg8[%c10_254, %c0_255, %c0_256] : memref<16x32x64xf32, #tpu.memory_space<vmem>>, vector<1x32x64xf32>
      %343 = vector.shape_cast %342 : vector<1x32x64xf32> to vector<32x64xf32>
      %344 = arith.addf %341, %343 : vector<32x64xf32>
      %c10_257 = arith.constant 10 : index
      %c0_258 = arith.constant 0 : index
      %c0_259 = arith.constant 0 : index
      %345 = vector.load %arg8[%c10_257, %c0_258, %c0_259] : memref<16x32x64xf32, #tpu.memory_space<vmem>>, vector<1x32x64xf32>
      %346 = vector.shape_cast %345 : vector<1x32x64xf32> to vector<32x64xf32>
      %347 = vector.shape_cast %344 : vector<32x64xf32> to vector<1x32x64xf32>
      tpu.vector_store %arg8[%c10_257, %c0_258, %c0_259], %347 {strides = array<i32>} : memref<16x32x64xf32, #tpu.memory_space<vmem>>, vector<1x32x64xf32>,
      %c5_260 = arith.constant 5 : index
      %c0_261 = arith.constant 0 : index
      %c0_262 = arith.constant 0 : index
      %348 = vector.load %arg9[%c5_260, %c0_261, %c0_262] : memref<16x32x64xf32, #tpu.memory_space<vmem>>, vector<1x32x64xf32>
      %349 = vector.shape_cast %348 : vector<1x32x64xf32> to vector<32x64xf32>
      %350 = arith.mulf %349, %335 : vector<32x64xf32>
      %c5_263 = arith.constant 5 : index
      %c0_264 = arith.constant 0 : index
      %c0_265 = arith.constant 0 : index
      %351 = vector.load %arg10[%c5_263, %c0_264, %c0_265] : memref<16x32x64xf32, #tpu.memory_space<vmem>>, vector<1x32x64xf32>
      %352 = vector.shape_cast %351 : vector<1x32x64xf32> to vector<32x64xf32>
      %353 = arith.addf %350, %352 : vector<32x64xf32>
      %c5_266 = arith.constant 5 : index
      %c0_267 = arith.constant 0 : index
      %c0_268 = arith.constant 0 : index
      %354 = vector.load %arg10[%c5_266, %c0_267, %c0_268] : memref<16x32x64xf32, #tpu.memory_space<vmem>>, vector<1x32x64xf32>
      %355 = vector.shape_cast %354 : vector<1x32x64xf32> to vector<32x64xf32>
      %356 = vector.shape_cast %353 : vector<32x64xf32> to vector<1x32x64xf32>
      tpu.vector_store %arg10[%c5_266, %c0_267, %c0_268], %356 {strides = array<i32>} : memref<16x32x64xf32, #tpu.memory_space<vmem>>, vector<1x32x64xf32>,
      %c11_269 = arith.constant 11 : index
      %c0_270 = arith.constant 0 : index
      %c0_271 = arith.constant 0 : index
      %357 = vector.load %arg7[%c11_269, %c0_270, %c0_271] : memref<16x32x64xf32, #tpu.memory_space<vmem>>, vector<1x32x64xf32>
      %358 = vector.shape_cast %357 : vector<1x32x64xf32> to vector<32x64xf32>
      %359 = arith.mulf %358, %344 : vector<32x64xf32>
      %c11_272 = arith.constant 11 : index
      %c0_273 = arith.constant 0 : index
      %c0_274 = arith.constant 0 : index
      %360 = vector.load %arg8[%c11_272, %c0_273, %c0_274] : memref<16x32x64xf32, #tpu.memory_space<vmem>>, vector<1x32x64xf32>
      %361 = vector.shape_cast %360 : vector<1x32x64xf32> to vector<32x64xf32>
      %362 = arith.addf %359, %361 : vector<32x64xf32>
      %c11_275 = arith.constant 11 : index
      %c0_276 = arith.constant 0 : index
      %c0_277 = arith.constant 0 : index
      %363 = vector.load %arg8[%c11_275, %c0_276, %c0_277] : memref<16x32x64xf32, #tpu.memory_space<vmem>>, vector<1x32x64xf32>
      %364 = vector.shape_cast %363 : vector<1x32x64xf32> to vector<32x64xf32>
      %365 = vector.shape_cast %362 : vector<32x64xf32> to vector<1x32x64xf32>
      tpu.vector_store %arg8[%c11_275, %c0_276, %c0_277], %365 {strides = array<i32>} : memref<16x32x64xf32, #tpu.memory_space<vmem>>, vector<1x32x64xf32>,
      %c4_278 = arith.constant 4 : index
      %c0_279 = arith.constant 0 : index
      %c0_280 = arith.constant 0 : index
      %366 = vector.load %arg9[%c4_278, %c0_279, %c0_280] : memref<16x32x64xf32, #tpu.memory_space<vmem>>, vector<1x32x64xf32>
      %367 = vector.shape_cast %366 : vector<1x32x64xf32> to vector<32x64xf32>
      %368 = arith.mulf %367, %353 : vector<32x64xf32>
      %c4_281 = arith.constant 4 : index
      %c0_282 = arith.constant 0 : index
      %c0_283 = arith.constant 0 : index
      %369 = vector.load %arg10[%c4_281, %c0_282, %c0_283] : memref<16x32x64xf32, #tpu.memory_space<vmem>>, vector<1x32x64xf32>
      %370 = vector.shape_cast %369 : vector<1x32x64xf32> to vector<32x64xf32>
      %371 = arith.addf %368, %370 : vector<32x64xf32>
      %c4_284 = arith.constant 4 : index
      %c0_285 = arith.constant 0 : index
      %c0_286 = arith.constant 0 : index
      %372 = vector.load %arg10[%c4_284, %c0_285, %c0_286] : memref<16x32x64xf32, #tpu.memory_space<vmem>>, vector<1x32x64xf32>
      %373 = vector.shape_cast %372 : vector<1x32x64xf32> to vector<32x64xf32>
      %374 = vector.shape_cast %371 : vector<32x64xf32> to vector<1x32x64xf32>
      tpu.vector_store %arg10[%c4_284, %c0_285, %c0_286], %374 {strides = array<i32>} : memref<16x32x64xf32, #tpu.memory_space<vmem>>, vector<1x32x64xf32>,
      %c12_287 = arith.constant 12 : index
      %c0_288 = arith.constant 0 : index
      %c0_289 = arith.constant 0 : index
      %375 = vector.load %arg7[%c12_287, %c0_288, %c0_289] : memref<16x32x64xf32, #tpu.memory_space<vmem>>, vector<1x32x64xf32>
      %376 = vector.shape_cast %375 : vector<1x32x64xf32> to vector<32x64xf32>
      %377 = arith.mulf %376, %362 : vector<32x64xf32>
      %c12_290 = arith.constant 12 : index
      %c0_291 = arith.constant 0 : index
      %c0_292 = arith.constant 0 : index
      %378 = vector.load %arg8[%c12_290, %c0_291, %c0_292] : memref<16x32x64xf32, #tpu.memory_space<vmem>>, vector<1x32x64xf32>
      %379 = vector.shape_cast %378 : vector<1x32x64xf32> to vector<32x64xf32>
      %380 = arith.addf %377, %379 : vector<32x64xf32>
      %c12_293 = arith.constant 12 : index
      %c0_294 = arith.constant 0 : index
      %c0_295 = arith.constant 0 : index
      %381 = vector.load %arg8[%c12_293, %c0_294, %c0_295] : memref<16x32x64xf32, #tpu.memory_space<vmem>>, vector<1x32x64xf32>
      %382 = vector.shape_cast %381 : vector<1x32x64xf32> to vector<32x64xf32>
      %383 = vector.shape_cast %380 : vector<32x64xf32> to vector<1x32x64xf32>
      tpu.vector_store %arg8[%c12_293, %c0_294, %c0_295], %383 {strides = array<i32>} : memref<16x32x64xf32, #tpu.memory_space<vmem>>, vector<1x32x64xf32>,
      %c3_296 = arith.constant 3 : index
      %c0_297 = arith.constant 0 : index
      %c0_298 = arith.constant 0 : index
      %384 = vector.load %arg9[%c3_296, %c0_297, %c0_298] : memref<16x32x64xf32, #tpu.memory_space<vmem>>, vector<1x32x64xf32>
      %385 = vector.shape_cast %384 : vector<1x32x64xf32> to vector<32x64xf32>
      %386 = arith.mulf %385, %371 : vector<32x64xf32>
      %c3_299 = arith.constant 3 : index
      %c0_300 = arith.constant 0 : index
      %c0_301 = arith.constant 0 : index
      %387 = vector.load %arg10[%c3_299, %c0_300, %c0_301] : memref<16x32x64xf32, #tpu.memory_space<vmem>>, vector<1x32x64xf32>
      %388 = vector.shape_cast %387 : vector<1x32x64xf32> to vector<32x64xf32>
      %389 = arith.addf %386, %388 : vector<32x64xf32>
      %c3_302 = arith.constant 3 : index
      %c0_303 = arith.constant 0 : index
      %c0_304 = arith.constant 0 : index
      %390 = vector.load %arg10[%c3_302, %c0_303, %c0_304] : memref<16x32x64xf32, #tpu.memory_space<vmem>>, vector<1x32x64xf32>
      %391 = vector.shape_cast %390 : vector<1x32x64xf32> to vector<32x64xf32>
      %392 = vector.shape_cast %389 : vector<32x64xf32> to vector<1x32x64xf32>
      tpu.vector_store %arg10[%c3_302, %c0_303, %c0_304], %392 {strides = array<i32>} : memref<16x32x64xf32, #tpu.memory_space<vmem>>, vector<1x32x64xf32>,
      %c13_305 = arith.constant 13 : index
      %c0_306 = arith.constant 0 : index
      %c0_307 = arith.constant 0 : index
      %393 = vector.load %arg7[%c13_305, %c0_306, %c0_307] : memref<16x32x64xf32, #tpu.memory_space<vmem>>, vector<1x32x64xf32>
      %394 = vector.shape_cast %393 : vector<1x32x64xf32> to vector<32x64xf32>
      %395 = arith.mulf %394, %380 : vector<32x64xf32>
      %c13_308 = arith.constant 13 : index
      %c0_309 = arith.constant 0 : index
      %c0_310 = arith.constant 0 : index
      %396 = vector.load %arg8[%c13_308, %c0_309, %c0_310] : memref<16x32x64xf32, #tpu.memory_space<vmem>>, vector<1x32x64xf32>
      %397 = vector.shape_cast %396 : vector<1x32x64xf32> to vector<32x64xf32>
      %398 = arith.addf %395, %397 : vector<32x64xf32>
      %c13_311 = arith.constant 13 : index
      %c0_312 = arith.constant 0 : index
      %c0_313 = arith.constant 0 : index
      %399 = vector.load %arg8[%c13_311, %c0_312, %c0_313] : memref<16x32x64xf32, #tpu.memory_space<vmem>>, vector<1x32x64xf32>
      %400 = vector.shape_cast %399 : vector<1x32x64xf32> to vector<32x64xf32>
      %401 = vector.shape_cast %398 : vector<32x64xf32> to vector<1x32x64xf32>
      tpu.vector_store %arg8[%c13_311, %c0_312, %c0_313], %401 {strides = array<i32>} : memref<16x32x64xf32, #tpu.memory_space<vmem>>, vector<1x32x64xf32>,
      %c2_314 = arith.constant 2 : index
      %c0_315 = arith.constant 0 : index
      %c0_316 = arith.constant 0 : index
      %402 = vector.load %arg9[%c2_314, %c0_315, %c0_316] : memref<16x32x64xf32, #tpu.memory_space<vmem>>, vector<1x32x64xf32>
      %403 = vector.shape_cast %402 : vector<1x32x64xf32> to vector<32x64xf32>
      %404 = arith.mulf %403, %389 : vector<32x64xf32>
      %c2_317 = arith.constant 2 : index
      %c0_318 = arith.constant 0 : index
      %c0_319 = arith.constant 0 : index
      %405 = vector.load %arg10[%c2_317, %c0_318, %c0_319] : memref<16x32x64xf32, #tpu.memory_space<vmem>>, vector<1x32x64xf32>
      %406 = vector.shape_cast %405 : vector<1x32x64xf32> to vector<32x64xf32>
      %407 = arith.addf %404, %406 : vector<32x64xf32>
      %c2_320 = arith.constant 2 : index
      %c0_321 = arith.constant 0 : index
      %c0_322 = arith.constant 0 : index
      %408 = vector.load %arg10[%c2_320, %c0_321, %c0_322] : memref<16x32x64xf32, #tpu.memory_space<vmem>>, vector<1x32x64xf32>
      %409 = vector.shape_cast %408 : vector<1x32x64xf32> to vector<32x64xf32>
      %410 = vector.shape_cast %407 : vector<32x64xf32> to vector<1x32x64xf32>
      tpu.vector_store %arg10[%c2_320, %c0_321, %c0_322], %410 {strides = array<i32>} : memref<16x32x64xf32, #tpu.memory_space<vmem>>, vector<1x32x64xf32>,
      %c14_323 = arith.constant 14 : index
      %c0_324 = arith.constant 0 : index
      %c0_325 = arith.constant 0 : index
      %411 = vector.load %arg7[%c14_323, %c0_324, %c0_325] : memref<16x32x64xf32, #tpu.memory_space<vmem>>, vector<1x32x64xf32>
      %412 = vector.shape_cast %411 : vector<1x32x64xf32> to vector<32x64xf32>
      %413 = arith.mulf %412, %398 : vector<32x64xf32>
      %c14_326 = arith.constant 14 : index
      %c0_327 = arith.constant 0 : index
      %c0_328 = arith.constant 0 : index
      %414 = vector.load %arg8[%c14_326, %c0_327, %c0_328] : memref<16x32x64xf32, #tpu.memory_space<vmem>>, vector<1x32x64xf32>
      %415 = vector.shape_cast %414 : vector<1x32x64xf32> to vector<32x64xf32>
      %416 = arith.addf %413, %415 : vector<32x64xf32>
      %c14_329 = arith.constant 14 : index
      %c0_330 = arith.constant 0 : index
      %c0_331 = arith.constant 0 : index
      %417 = vector.load %arg8[%c14_329, %c0_330, %c0_331] : memref<16x32x64xf32, #tpu.memory_space<vmem>>, vector<1x32x64xf32>
      %418 = vector.shape_cast %417 : vector<1x32x64xf32> to vector<32x64xf32>
      %419 = vector.shape_cast %416 : vector<32x64xf32> to vector<1x32x64xf32>
      tpu.vector_store %arg8[%c14_329, %c0_330, %c0_331], %419 {strides = array<i32>} : memref<16x32x64xf32, #tpu.memory_space<vmem>>, vector<1x32x64xf32>,
      %c1_332 = arith.constant 1 : index
      %c0_333 = arith.constant 0 : index
      %c0_334 = arith.constant 0 : index
      %420 = vector.load %arg9[%c1_332, %c0_333, %c0_334] : memref<16x32x64xf32, #tpu.memory_space<vmem>>, vector<1x32x64xf32>
      %421 = vector.shape_cast %420 : vector<1x32x64xf32> to vector<32x64xf32>
      %422 = arith.mulf %421, %407 : vector<32x64xf32>
      %c1_335 = arith.constant 1 : index
      %c0_336 = arith.constant 0 : index
      %c0_337 = arith.constant 0 : index
      %423 = vector.load %arg10[%c1_335, %c0_336, %c0_337] : memref<16x32x64xf32, #tpu.memory_space<vmem>>, vector<1x32x64xf32>
      %424 = vector.shape_cast %423 : vector<1x32x64xf32> to vector<32x64xf32>
      %425 = arith.addf %422, %424 : vector<32x64xf32>
      %c1_338 = arith.constant 1 : index
      %c0_339 = arith.constant 0 : index
      %c0_340 = arith.constant 0 : index
      %426 = vector.load %arg10[%c1_338, %c0_339, %c0_340] : memref<16x32x64xf32, #tpu.memory_space<vmem>>, vector<1x32x64xf32>
      %427 = vector.shape_cast %426 : vector<1x32x64xf32> to vector<32x64xf32>
      %428 = vector.shape_cast %425 : vector<32x64xf32> to vector<1x32x64xf32>
      tpu.vector_store %arg10[%c1_338, %c0_339, %c0_340], %428 {strides = array<i32>} : memref<16x32x64xf32, #tpu.memory_space<vmem>>, vector<1x32x64xf32>,
      %c15_341 = arith.constant 15 : index
      %c0_342 = arith.constant 0 : index
      %c0_343 = arith.constant 0 : index
      %429 = vector.load %arg7[%c15_341, %c0_342, %c0_343] : memref<16x32x64xf32, #tpu.memory_space<vmem>>, vector<1x32x64xf32>
      %430 = vector.shape_cast %429 : vector<1x32x64xf32> to vector<32x64xf32>
      %431 = arith.mulf %430, %416 : vector<32x64xf32>
      %c15_344 = arith.constant 15 : index
      %c0_345 = arith.constant 0 : index
      %c0_346 = arith.constant 0 : index
      %432 = vector.load %arg8[%c15_344, %c0_345, %c0_346] : memref<16x32x64xf32, #tpu.memory_space<vmem>>, vector<1x32x64xf32>
      %433 = vector.shape_cast %432 : vector<1x32x64xf32> to vector<32x64xf32>
      %434 = arith.addf %431, %433 : vector<32x64xf32>
      %c15_347 = arith.constant 15 : index
      %c0_348 = arith.constant 0 : index
      %c0_349 = arith.constant 0 : index
      %435 = vector.load %arg8[%c15_347, %c0_348, %c0_349] : memref<16x32x64xf32, #tpu.memory_space<vmem>>, vector<1x32x64xf32>
      %436 = vector.shape_cast %435 : vector<1x32x64xf32> to vector<32x64xf32>
      %437 = vector.shape_cast %434 : vector<32x64xf32> to vector<1x32x64xf32>
      tpu.vector_store %arg8[%c15_347, %c0_348, %c0_349], %437 {strides = array<i32>} : memref<16x32x64xf32, #tpu.memory_space<vmem>>, vector<1x32x64xf32>,
      %c0_350 = arith.constant 0 : index
      %c0_351 = arith.constant 0 : index
      %c0_352 = arith.constant 0 : index
      %438 = vector.load %arg9[%c0_350, %c0_351, %c0_352] : memref<16x32x64xf32, #tpu.memory_space<vmem>>, vector<1x32x64xf32>
      %439 = vector.shape_cast %438 : vector<1x32x64xf32> to vector<32x64xf32>
      %440 = arith.mulf %439, %425 : vector<32x64xf32>
      %c0_353 = arith.constant 0 : index
      %c0_354 = arith.constant 0 : index
      %c0_355 = arith.constant 0 : index
      %441 = vector.load %arg10[%c0_353, %c0_354, %c0_355] : memref<16x32x64xf32, #tpu.memory_space<vmem>>, vector<1x32x64xf32>
      %442 = vector.shape_cast %441 : vector<1x32x64xf32> to vector<32x64xf32>
      %443 = arith.addf %440, %442 : vector<32x64xf32>
      %c0_356 = arith.constant 0 : index
      %c0_357 = arith.constant 0 : index
      %c0_358 = arith.constant 0 : index
      %444 = vector.load %arg10[%c0_356, %c0_357, %c0_358] : memref<16x32x64xf32, #tpu.memory_space<vmem>>, vector<1x32x64xf32>
      %445 = vector.shape_cast %444 : vector<1x32x64xf32> to vector<32x64xf32>
      %446 = vector.shape_cast %443 : vector<32x64xf32> to vector<1x32x64xf32>
      tpu.vector_store %arg10[%c0_356, %c0_357, %c0_358], %446 {strides = array<i32>} : memref<16x32x64xf32, #tpu.memory_space<vmem>>, vector<1x32x64xf32>,
      %c0_359 = arith.constant 0 : index
      %c0_360 = arith.constant 0 : index
      %447 = arith.index_cast %6 : i32 to index
      %c0_361 = arith.constant 0 : index
      %448 = vector.load %arg2[%c0_359, %c0_360, %447, %c0_361] : memref<1x4x64x128xf32, #tpu.memory_space<vmem>>, vector<1x1x16x128xf32>
      %449 = vector.shape_cast %448 : vector<1x1x16x128xf32> to vector<16x128xf32>
      %c0_362 = arith.constant 0 : index
      %c0_363 = arith.constant 0 : index
      %450 = arith.index_cast %6 : i32 to index
      %c0_364 = arith.constant 0 : index
      %451 = vector.load %arg1[%c0_362, %c0_363, %450, %c0_364] : memref<1x2x64x64xf32, #tpu.memory_space<vmem>>, vector<1x1x16x64xf32>
      %452 = vector.shape_cast %451 : vector<1x1x16x64xf32> to vector<16x64xf32>
      %453 = vector.extract_strided_slice %449 {offsets = [0, 80], sizes = [16, 16], strides = [1, 1]} : vector<16x128xf32> to vector<16x16xf32>
      %c0_365 = arith.constant 0 : index
      %c0_366 = arith.constant 0 : index
      %c0_367 = arith.constant 0 : index
      %454 = vector.load %arg8[%c0_365, %c0_366, %c0_367] : memref<16x32x64xf32, #tpu.memory_space<vmem>>, vector<16x16x64xf32>
      %455 = vector.shape_cast %453 : vector<16x16xf32> to vector<16x16x1xf32>
      %456 = vector.broadcast %455 : vector<16x16x1xf32> to vector<16x16x64xf32>
      %457 = arith.mulf %456, %454 : vector<16x16x64xf32>
      %cst_368 = arith.constant dense<0.000000e+00> : vector<16x64xf32>
      %458 = vector.multi_reduction <add>, %457, %cst_368 [1] : vector<16x16x64xf32> to vector<16x64xf32>
      %c0_369 = arith.constant 0 : index
      %c0_370 = arith.constant 0 : index
      %459 = vector.load %arg4[%c0_369, %c0_370] : memref<4x64xf32, #tpu.memory_space<vmem>>, vector<1x64xf32>
      %460 = vector.broadcast %459 : vector<1x64xf32> to vector<16x64xf32>
      %461 = arith.mulf %460, %452 : vector<16x64xf32>
      %462 = arith.addf %458, %461 : vector<16x64xf32>
      %c0_371 = arith.constant 0 : index
      %c0_372 = arith.constant 0 : index
      %463 = arith.index_cast %6 : i32 to index
      %c0_373 = arith.constant 0 : index
      %464 = vector.load %arg6[%c0_371, %c0_372, %463, %c0_373] : memref<1x2x64x64xf32, #tpu.memory_space<vmem>>, vector<1x1x16x64xf32>
      %465 = vector.shape_cast %464 : vector<1x1x16x64xf32> to vector<16x64xf32>
      %466 = arith.addf %465, %462 : vector<16x64xf32>
      %c0_374 = arith.constant 0 : index
      %c0_375 = arith.constant 0 : index
      %467 = arith.index_cast %6 : i32 to index
      %c0_376 = arith.constant 0 : index
      %468 = vector.load %arg6[%c0_374, %c0_375, %467, %c0_376] : memref<1x2x64x64xf32, #tpu.memory_space<vmem>>, vector<1x1x16x64xf32>
      %469 = vector.shape_cast %468 : vector<1x1x16x64xf32> to vector<16x64xf32>
      %470 = vector.shape_cast %466 : vector<16x64xf32> to vector<1x1x16x64xf32>
      tpu.vector_store %arg6[%c0_374, %c0_375, %467, %c0_376], %470 {strides = array<i32>} : memref<1x2x64x64xf32, #tpu.memory_space<vmem>>, vector<1x1x16x64xf32>,
      %c0_377 = arith.constant 0 : index
      %c1_378 = arith.constant 1 : index
      %471 = arith.index_cast %6 : i32 to index
      %c0_379 = arith.constant 0 : index
      %472 = vector.load %arg2[%c0_377, %c1_378, %471, %c0_379] : memref<1x4x64x128xf32, #tpu.memory_space<vmem>>, vector<1x1x16x128xf32>
      %473 = vector.shape_cast %472 : vector<1x1x16x128xf32> to vector<16x128xf32>
      %c0_380 = arith.constant 0 : index
      %c1_381 = arith.constant 1 : index
      %474 = arith.index_cast %6 : i32 to index
      %c0_382 = arith.constant 0 : index
      %475 = vector.load %arg1[%c0_380, %c1_381, %474, %c0_382] : memref<1x2x64x64xf32, #tpu.memory_space<vmem>>, vector<1x1x16x64xf32>
      %476 = vector.shape_cast %475 : vector<1x1x16x64xf32> to vector<16x64xf32>
      %477 = vector.extract_strided_slice %473 {offsets = [0, 80], sizes = [16, 16], strides = [1, 1]} : vector<16x128xf32> to vector<16x16xf32>
      %c0_383 = arith.constant 0 : index
      %c16_384 = arith.constant 16 : index
      %c0_385 = arith.constant 0 : index
      %478 = vector.load %arg8[%c0_383, %c16_384, %c0_385] : memref<16x32x64xf32, #tpu.memory_space<vmem>>, vector<16x16x64xf32>
      %479 = vector.shape_cast %477 : vector<16x16xf32> to vector<16x16x1xf32>
      %480 = vector.broadcast %479 : vector<16x16x1xf32> to vector<16x16x64xf32>
      %481 = arith.mulf %480, %478 : vector<16x16x64xf32>
      %cst_386 = arith.constant dense<0.000000e+00> : vector<16x64xf32>
      %482 = vector.multi_reduction <add>, %481, %cst_386 [1] : vector<16x16x64xf32> to vector<16x64xf32>
      %c1_387 = arith.constant 1 : index
      %c0_388 = arith.constant 0 : index
      %483 = vector.load %arg4[%c1_387, %c0_388] : memref<4x64xf32, #tpu.memory_space<vmem>>, vector<1x64xf32>
      %484 = vector.broadcast %483 : vector<1x64xf32> to vector<16x64xf32>
      %485 = arith.mulf %484, %476 : vector<16x64xf32>
      %486 = arith.addf %482, %485 : vector<16x64xf32>
      %c0_389 = arith.constant 0 : index
      %c1_390 = arith.constant 1 : index
      %487 = arith.index_cast %6 : i32 to index
      %c0_391 = arith.constant 0 : index
      %488 = vector.load %arg6[%c0_389, %c1_390, %487, %c0_391] : memref<1x2x64x64xf32, #tpu.memory_space<vmem>>, vector<1x1x16x64xf32>
      %489 = vector.shape_cast %488 : vector<1x1x16x64xf32> to vector<16x64xf32>
      %490 = arith.addf %489, %486 : vector<16x64xf32>
      %c0_392 = arith.constant 0 : index
      %c1_393 = arith.constant 1 : index
      %491 = arith.index_cast %6 : i32 to index
      %c0_394 = arith.constant 0 : index
      %492 = vector.load %arg6[%c0_392, %c1_393, %491, %c0_394] : memref<1x2x64x64xf32, #tpu.memory_space<vmem>>, vector<1x1x16x64xf32>
      %493 = vector.shape_cast %492 : vector<1x1x16x64xf32> to vector<16x64xf32>
      %494 = vector.shape_cast %490 : vector<16x64xf32> to vector<1x1x16x64xf32>
      tpu.vector_store %arg6[%c0_392, %c1_393, %491, %c0_394], %494 {strides = array<i32>} : memref<1x2x64x64xf32, #tpu.memory_space<vmem>>, vector<1x1x16x64xf32>,
      %c0_395 = arith.constant 0 : index
      %c2_396 = arith.constant 2 : index
      %495 = arith.index_cast %10 : i32 to index
      %c0_397 = arith.constant 0 : index
      %496 = vector.load %arg2[%c0_395, %c2_396, %495, %c0_397] : memref<1x4x64x128xf32, #tpu.memory_space<vmem>>, vector<1x1x16x128xf32>
      %497 = vector.shape_cast %496 : vector<1x1x16x128xf32> to vector<16x128xf32>
      %c0_398 = arith.constant 0 : index
      %c0_399 = arith.constant 0 : index
      %498 = arith.index_cast %10 : i32 to index
      %c0_400 = arith.constant 0 : index
      %499 = vector.load %arg1[%c0_398, %c0_399, %498, %c0_400] : memref<1x2x64x64xf32, #tpu.memory_space<vmem>>, vector<1x1x16x64xf32>
      %500 = vector.shape_cast %499 : vector<1x1x16x64xf32> to vector<16x64xf32>
      %501 = vector.extract_strided_slice %497 {offsets = [0, 80], sizes = [16, 16], strides = [1, 1]} : vector<16x128xf32> to vector<16x16xf32>
      %c0_401 = arith.constant 0 : index
      %c0_402 = arith.constant 0 : index
      %c0_403 = arith.constant 0 : index
      %502 = vector.load %arg10[%c0_401, %c0_402, %c0_403] : memref<16x32x64xf32, #tpu.memory_space<vmem>>, vector<16x16x64xf32>
      %503 = vector.shape_cast %501 : vector<16x16xf32> to vector<16x16x1xf32>
      %504 = vector.broadcast %503 : vector<16x16x1xf32> to vector<16x16x64xf32>
      %505 = arith.mulf %504, %502 : vector<16x16x64xf32>
      %cst_404 = arith.constant dense<0.000000e+00> : vector<16x64xf32>
      %506 = vector.multi_reduction <add>, %505, %cst_404 [1] : vector<16x16x64xf32> to vector<16x64xf32>
      %c2_405 = arith.constant 2 : index
      %c0_406 = arith.constant 0 : index
      %507 = vector.load %arg4[%c2_405, %c0_406] : memref<4x64xf32, #tpu.memory_space<vmem>>, vector<1x64xf32>
      %508 = vector.broadcast %507 : vector<1x64xf32> to vector<16x64xf32>
      %509 = arith.mulf %508, %500 : vector<16x64xf32>
      %510 = arith.addf %506, %509 : vector<16x64xf32>
      %c0_407 = arith.constant 0 : index
      %c0_408 = arith.constant 0 : index
      %511 = arith.index_cast %10 : i32 to index
      %c0_409 = arith.constant 0 : index
      %512 = vector.load %arg6[%c0_407, %c0_408, %511, %c0_409] : memref<1x2x64x64xf32, #tpu.memory_space<vmem>>, vector<1x1x16x64xf32>
      %513 = vector.shape_cast %512 : vector<1x1x16x64xf32> to vector<16x64xf32>
      %514 = arith.addf %513, %510 : vector<16x64xf32>
      %c0_410 = arith.constant 0 : index
      %c0_411 = arith.constant 0 : index
      %515 = arith.index_cast %10 : i32 to index
      %c0_412 = arith.constant 0 : index
      %516 = vector.load %arg6[%c0_410, %c0_411, %515, %c0_412] : memref<1x2x64x64xf32, #tpu.memory_space<vmem>>, vector<1x1x16x64xf32>
      %517 = vector.shape_cast %516 : vector<1x1x16x64xf32> to vector<16x64xf32>
      %518 = vector.shape_cast %514 : vector<16x64xf32> to vector<1x1x16x64xf32>
      tpu.vector_store %arg6[%c0_410, %c0_411, %515, %c0_412], %518 {strides = array<i32>} : memref<1x2x64x64xf32, #tpu.memory_space<vmem>>, vector<1x1x16x64xf32>,
      %c0_413 = arith.constant 0 : index
      %c3_414 = arith.constant 3 : index
      %519 = arith.index_cast %10 : i32 to index
      %c0_415 = arith.constant 0 : index
      %520 = vector.load %arg2[%c0_413, %c3_414, %519, %c0_415] : memref<1x4x64x128xf32, #tpu.memory_space<vmem>>, vector<1x1x16x128xf32>
      %521 = vector.shape_cast %520 : vector<1x1x16x128xf32> to vector<16x128xf32>
      %c0_416 = arith.constant 0 : index
      %c1_417 = arith.constant 1 : index
      %522 = arith.index_cast %10 : i32 to index
      %c0_418 = arith.constant 0 : index
      %523 = vector.load %arg1[%c0_416, %c1_417, %522, %c0_418] : memref<1x2x64x64xf32, #tpu.memory_space<vmem>>, vector<1x1x16x64xf32>
      %524 = vector.shape_cast %523 : vector<1x1x16x64xf32> to vector<16x64xf32>
      %525 = vector.extract_strided_slice %521 {offsets = [0, 80], sizes = [16, 16], strides = [1, 1]} : vector<16x128xf32> to vector<16x16xf32>
      %c0_419 = arith.constant 0 : index
      %c16_420 = arith.constant 16 : index
      %c0_421 = arith.constant 0 : index
      %526 = vector.load %arg10[%c0_419, %c16_420, %c0_421] : memref<16x32x64xf32, #tpu.memory_space<vmem>>, vector<16x16x64xf32>
      %527 = vector.shape_cast %525 : vector<16x16xf32> to vector<16x16x1xf32>
      %528 = vector.broadcast %527 : vector<16x16x1xf32> to vector<16x16x64xf32>
      %529 = arith.mulf %528, %526 : vector<16x16x64xf32>
      %cst_422 = arith.constant dense<0.000000e+00> : vector<16x64xf32>
      %530 = vector.multi_reduction <add>, %529, %cst_422 [1] : vector<16x16x64xf32> to vector<16x64xf32>
      %c3_423 = arith.constant 3 : index
      %c0_424 = arith.constant 0 : index
      %531 = vector.load %arg4[%c3_423, %c0_424] : memref<4x64xf32, #tpu.memory_space<vmem>>, vector<1x64xf32>
      %532 = vector.broadcast %531 : vector<1x64xf32> to vector<16x64xf32>
      %533 = arith.mulf %532, %524 : vector<16x64xf32>
      %534 = arith.addf %530, %533 : vector<16x64xf32>
      %c0_425 = arith.constant 0 : index
      %c1_426 = arith.constant 1 : index
      %535 = arith.index_cast %10 : i32 to index
      %c0_427 = arith.constant 0 : index
      %536 = vector.load %arg6[%c0_425, %c1_426, %535, %c0_427] : memref<1x2x64x64xf32, #tpu.memory_space<vmem>>, vector<1x1x16x64xf32>
      %537 = vector.shape_cast %536 : vector<1x1x16x64xf32> to vector<16x64xf32>
      %538 = arith.addf %537, %534 : vector<16x64xf32>
      %c0_428 = arith.constant 0 : index
      %c1_429 = arith.constant 1 : index
      %539 = arith.index_cast %10 : i32 to index
      %c0_430 = arith.constant 0 : index
      %540 = vector.load %arg6[%c0_428, %c1_429, %539, %c0_430] : memref<1x2x64x64xf32, #tpu.memory_space<vmem>>, vector<1x1x16x64xf32>
      %541 = vector.shape_cast %540 : vector<1x1x16x64xf32> to vector<16x64xf32>
      %542 = vector.shape_cast %538 : vector<16x64xf32> to vector<1x1x16x64xf32>
      tpu.vector_store %arg6[%c0_428, %c1_429, %539, %c0_430], %542 {strides = array<i32>} : memref<1x2x64x64xf32, #tpu.memory_space<vmem>>, vector<1x1x16x64xf32>,
      scf.yield %434, %443 : vector<32x64xf32>, vector<32x64xf32>
    }
    %c4_i32_4 = arith.constant 4 : i32
    return
  }
  func.func @transform_0(%arg0: i32) -> (i32, i32, i32, i32) {
    %c0_i32 = arith.constant 0 : i32
    %c0_i32_0 = arith.constant 0 : i32
    %c0_i32_1 = arith.constant 0 : i32
    %c0_i32_2 = arith.constant 0 : i32
    return %arg0, %c0_i32, %c0_i32_0, %c0_i32_1 : i32, i32, i32, i32
  }
  func.func @transform_1(%arg0: i32) -> (i32, i32, i32, i32) {
    %c0_i32 = arith.constant 0 : i32
    %c0_i32_0 = arith.constant 0 : i32
    %c0_i32_1 = arith.constant 0 : i32
    %c0_i32_2 = arith.constant 0 : i32
    return %arg0, %c0_i32, %c0_i32_0, %c0_i32_1 : i32, i32, i32, i32
  }
  func.func @transform_2(%arg0: i32) -> (i32, i32, i32) {
    %c0_i32 = arith.constant 0 : i32
    %c0_i32_0 = arith.constant 0 : i32
    %c0_i32_1 = arith.constant 0 : i32
    %c0_i32_2 = arith.constant 0 : i32
    return %c0_i32, %c0_i32_0, %c0_i32_1 : i32, i32, i32
  }
  func.func @transform_3(%arg0: i32) -> (i32, i32) {
    %c0_i32 = arith.constant 0 : i32
    %c0_i32_0 = arith.constant 0 : i32
    %c0_i32_1 = arith.constant 0 : i32
    return %c0_i32, %c0_i32_0 : i32, i32
  }
  func.func @transform_4(%arg0: i32) -> (i32, i32) {
    %c0_i32 = arith.constant 0 : i32
    %c0_i32_0 = arith.constant 0 : i32
    %c0_i32_1 = arith.constant 0 : i32
    return %c0_i32, %c0_i32_0 : i32, i32
  }
  func.func @transform_5(%arg0: i32) -> (i32, i32, i32, i32) {
    %c0_i32 = arith.constant 0 : i32
    %c0_i32_0 = arith.constant 0 : i32
    %c0_i32_1 = arith.constant 0 : i32
    %c0_i32_2 = arith.constant 0 : i32
    return %arg0, %c0_i32, %c0_i32_0, %c0_i32_1 : i32, i32, i32, i32
  }
}

module attributes {stable_mosaic.version = 11 : i64} {
  func.func @_gate_out_kernel(%arg0: i32, %arg1: memref<128x64xf32, #tpu.memory_space<vmem>>, %arg2: memref<128x64xf32, #tpu.memory_space<vmem>>, %arg3: memref<1x64xf32, #tpu.memory_space<vmem>>, %arg4: memref<1x64xf32, #tpu.memory_space<vmem>>, %arg5: memref<64x32xf32, #tpu.memory_space<vmem>>, %arg6: memref<128x32xf32, #tpu.memory_space<vmem>>) attributes {dimension_semantics = [#tpu.dimension_semantics<parallel>], iteration_bounds = array<i64: 1>, scalar_prefetch = 0 : i64, scratch_operands = 0 : i64, tpu.core_type = #tpu.core_type<tc>, window_params = [{transform_indices = @transform_0, window_bounds = array<i64: 128, 64>}, {transform_indices = @transform_1, window_bounds = array<i64: 128, 64>}, {pipeline_mode = #tpu.pipeline_mode<synchronous>, transform_indices = @transform_2, window_bounds = array<i64: 1, 64>}, {pipeline_mode = #tpu.pipeline_mode<synchronous>, transform_indices = @transform_3, window_bounds = array<i64: 1, 64>}, {pipeline_mode = #tpu.pipeline_mode<synchronous>, transform_indices = @transform_4, window_bounds = array<i64: 64, 32>}, {transform_indices = @transform_5, window_bounds = array<i64: 128, 32>}]} {
    %c0 = arith.constant 0 : index
    %c0_0 = arith.constant 0 : index
    %0 = vector.load %arg1[%c0, %c0_0] : memref<128x64xf32, #tpu.memory_space<vmem>>, vector<128x64xf32>
    %cst = arith.constant dense<0.000000e+00> : vector<128xf32>
    %1 = vector.multi_reduction <add>, %0, %cst [1] : vector<128x64xf32> to vector<128xf32>
    %2 = vector.shape_cast %1 : vector<128xf32> to vector<128x1xf32>
    %cst_1 = arith.constant 6.400000e+01 : f32
    %3 = vector.broadcast %cst_1 : f32 to vector<128x1xf32>
    %4 = arith.divf %2, %3 : vector<128x1xf32>
    %5 = vector.broadcast %4 : vector<128x1xf32> to vector<128x64xf32>
    %6 = arith.subf %0, %5 : vector<128x64xf32>
    %7 = arith.mulf %6, %6 : vector<128x64xf32>
    %cst_2 = arith.constant dense<0.000000e+00> : vector<128xf32>
    %8 = vector.multi_reduction <add>, %7, %cst_2 [1] : vector<128x64xf32> to vector<128xf32>
    %9 = vector.shape_cast %8 : vector<128xf32> to vector<128x1xf32>
    %cst_3 = arith.constant 6.400000e+01 : f32
    %10 = vector.broadcast %cst_3 : f32 to vector<128x1xf32>
    %11 = arith.divf %9, %10 : vector<128x1xf32>
    %cst_4 = arith.constant 9.99999974E-6 : f32
    %12 = vector.broadcast %cst_4 : f32 to vector<128x1xf32>
    %13 = arith.addf %11, %12 : vector<128x1xf32>
    %14 = math.rsqrt %13 : vector<128x1xf32>
    %15 = vector.broadcast %14 : vector<128x1xf32> to vector<128x64xf32>
    %16 = arith.mulf %6, %15 : vector<128x64xf32>
    %c0_5 = arith.constant 0 : index
    %c0_6 = arith.constant 0 : index
    %17 = vector.load %arg3[%c0_5, %c0_6] : memref<1x64xf32, #tpu.memory_space<vmem>>, vector<1x64xf32>
    %18 = vector.broadcast %17 : vector<1x64xf32> to vector<128x64xf32>
    %19 = arith.mulf %16, %18 : vector<128x64xf32>
    %c0_7 = arith.constant 0 : index
    %c0_8 = arith.constant 0 : index
    %20 = vector.load %arg4[%c0_7, %c0_8] : memref<1x64xf32, #tpu.memory_space<vmem>>, vector<1x64xf32>
    %21 = vector.broadcast %20 : vector<1x64xf32> to vector<128x64xf32>
    %22 = arith.addf %19, %21 : vector<128x64xf32>
    %c0_9 = arith.constant 0 : index
    %c0_10 = arith.constant 0 : index
    %23 = vector.load %arg2[%c0_9, %c0_10] : memref<128x64xf32, #tpu.memory_space<vmem>>, vector<128x64xf32>
    %cst_11 = arith.constant 0.000000e+00 : f32
    %24 = vector.broadcast %cst_11 : f32 to vector<128x64xf32>
    %25 = arith.subf %24, %23 : vector<128x64xf32>
    %26 = math.exp %25 : vector<128x64xf32>
    %cst_12 = arith.constant 1.000000e+00 : f32
    %27 = vector.broadcast %cst_12 : f32 to vector<128x64xf32>
    %28 = arith.addf %27, %26 : vector<128x64xf32>
    %29 = tpu.reciprocal %28 {approx = true} : vector<128x64xf32> -> vector<128x64xf32>
    %30 = arith.mulf %23, %29 : vector<128x64xf32>
    %31 = arith.mulf %22, %30 : vector<128x64xf32>
    %c0_13 = arith.constant 0 : index
    %c0_14 = arith.constant 0 : index
    %32 = vector.load %arg5[%c0_13, %c0_14] : memref<64x32xf32, #tpu.memory_space<vmem>>, vector<64x32xf32>
    %cst_15 = arith.constant dense<0.000000e+00> : vector<128x32xf32>
    %33 = tpu.matmul %31, %32, %cst_15 {dimension_numbers = #tpu.dot_dimension_numbers<[1], [0], [0], [1], [0, 0, 1, 1], [], []>} : vector<128x64xf32>, vector<64x32xf32>, vector<128x32xf32> -> vector<128x32xf32>
    %c0_16 = arith.constant 0 : index
    %c0_17 = arith.constant 0 : index
    %34 = vector.load %arg6[%c0_16, %c0_17] : memref<128x32xf32, #tpu.memory_space<vmem>>, vector<128x32xf32>
    tpu.vector_store %arg6[%c0_16, %c0_17], %33 {strides = array<i32>} : memref<128x32xf32, #tpu.memory_space<vmem>>, vector<128x32xf32>,
    return
  }
  func.func @transform_0(%arg0: i32) -> (i32, i32) {
    %c0_i32 = arith.constant 0 : i32
    %c0_i32_0 = arith.constant 0 : i32
    return %arg0, %c0_i32 : i32, i32
  }
  func.func @transform_1(%arg0: i32) -> (i32, i32) {
    %c0_i32 = arith.constant 0 : i32
    %c0_i32_0 = arith.constant 0 : i32
    return %arg0, %c0_i32 : i32, i32
  }
  func.func @transform_2(%arg0: i32) -> (i32, i32) {
    %c0_i32 = arith.constant 0 : i32
    %c0_i32_0 = arith.constant 0 : i32
    %c0_i32_1 = arith.constant 0 : i32
    return %c0_i32, %c0_i32_0 : i32, i32
  }
  func.func @transform_3(%arg0: i32) -> (i32, i32) {
    %c0_i32 = arith.constant 0 : i32
    %c0_i32_0 = arith.constant 0 : i32
    %c0_i32_1 = arith.constant 0 : i32
    return %c0_i32, %c0_i32_0 : i32, i32
  }
  func.func @transform_4(%arg0: i32) -> (i32, i32) {
    %c0_i32 = arith.constant 0 : i32
    %c0_i32_0 = arith.constant 0 : i32
    %c0_i32_1 = arith.constant 0 : i32
    return %c0_i32, %c0_i32_0 : i32, i32
  }
  func.func @transform_5(%arg0: i32) -> (i32, i32) {
    %c0_i32 = arith.constant 0 : i32
    %c0_i32_0 = arith.constant 0 : i32
    return %arg0, %c0_i32 : i32, i32
  }
}

</mosaic_0001>

<bundles_post_ra>
// kernel: ss2d_forward.6
= control target key start
LH: loop header
LB: loop body
LE: loop exit
PB: predicated region body
PF: predicated region fallthrough
CT: control target
= control target key end

     0   :  { %s677_s12 = smov 0   ;;  %s902_s0 = inlined_call_operand.vmem [shape: f32[2,10,10,64], index: 0, kind: input, shape index: {}]   ;;  %s903_s1 = inlined_call_operand.vmem [shape: f32[3,3,64], index: 1, kind: input, shape index: {}]   ;;  %s904_s2 = inlined_call_operand.vmem [shape: f32[1,1,64], index: 2, kind: input, shape index: {}]   ;;  %s905_s3 = inlined_call_operand.vmem [shape: f32[2,8,8,64], index: 3, kind: output, shape index: {}]  }
   0x1 LB: > { %s533_s13 = sadd.s32 4294967295, %s655_s12   ;;  %p537_p0 = scmp.ge.s32.totalorder %s655_s12, 1  ;;  %s655_s12 = sphi %s677_s12, %s13_s12  }
   0x2   : > { %p137_p1 = scmp.lt.s32.totalorder %s655_s12, 3 }
   0x4   : > { %p138_p2 = pnand %p537_p0, %p137_p1 }
   0x5   : > { %p161_p3 = scmp.lt.s32.totalorder (!%p138_p2), %s533_s13, 1 }
   0x6   : > { %141 = sbr.rel (%p138_p2) target bundleno = 92 (0x5c), region = 32 }
   0xb   : > { %s907_s13 = smov (!%p161_p3, %s533_s13), 1  ;;  %v690_v0 = vld [vmem:[%s903_s1] ss:$0 sm:$0xff]  ;;  %v695_v1 = vld [vmem:[%s903_s1 + $0x1] ss:$0 sm:$0xff]  ;;  %vm469_vm0 = vcmask 523264  }
   0xc   : > { %v700_v2 = vld [vmem:[%s903_s1 + $0x2] ss:$0 sm:$0xff]  ;;  %s598_s20 = smul.u32 160, %s907_s13  ;;  %v706_v3 = vld [vmem:[%s903_s1 + $0x4] ss:$0 sm:$0xff]  ;;  %s597_s11 = sshll.u32 %s907_s13, 6 }
   0xd   : > { %v711_v4 = vld [vmem:[%s903_s1 + $0x5] ss:$0 sm:$0xff]  ;;  %v716_v5 = vld [vmem:[%s903_s1 + $0x6] ss:$0 sm:$0xff]  ;;  %v721_v6 = vld [vmem:[%s903_s1 + $0x8] ss:$0 sm:$0xff]  ;;  %s866_s15 = scalar_lea.vmem %s905_s3, %s597_s11 }
   0xe   : > { %s726_s4 = scalar_lea.vmem %s902_s0, %s598_s20  ;;  %v731_v7 = vld [vmem:[%s903_s1 + $0x9] ss:$0 sm:$0xff]  ;;  %v736_v8 = vld [vmem:[%s903_s1 + $0xa] ss:$0 sm:$0xff] }
   0xf   : > { %v171_v9 = vld [vmem:[%s726_s4] sm:$0xff]  ;;  %v541_v15 = vld [vmem:[%s726_s4 + $0x10] sm:$0xff] }
  0x10   : > { %v197_v10 = vld [vmem:[%s726_s4 + $0x1] sm:$0xff]  ;;  %v181_v12 = vmul.f32 %v690_v0, %v171_v9  ;;  %v550_v16 = vld [vmem:[%s726_s4 + $0x11] sm:$0xff]  ;;  %v182_v18 = vmul.f32 %v690_v0, %v541_v15  ;;  %v261_v20 = vmul.f32 %v706_v3, %v541_v15 }
  0x11   : > { %v223_v11 = vld [vmem:[%s726_s4 + $0x2] sm:$0xff]  ;;  %v207_v13 = vmul.f32 %v695_v1, %v197_v10  ;;  %v559_v17 = vld [vmem:[%s726_s4 + $0x12] sm:$0xff]  ;;  %v287_v21 = vmul.f32 %v711_v4, %v550_v16  ;;  %v208_v28 = vmul.f32 %v695_v1, %v550_v16 }
  0x12   : > { %v233_v14 = vmul.f32 %v700_v2, %v223_v11  ;;  %v313_v22 = vmul.f32 %v716_v5, %v559_v17  ;;  %v568_v23 = vld [vmem:[%s726_s4 + $0x20] sm:$0xff]  ;;  %v234_v29 = vmul.f32 %v700_v2, %v559_v17  ;;  %v569_v36 = vld [vmem:[%s726_s4 + $0x30] sm:$0xff] }
  0x13   : > { %v215_v19 = vadd.f32 %v207_v13, %v181_v12  ;;  %v577_v24 = vld [vmem:[%s726_s4 + $0x21] sm:$0xff]  ;;  %v341_v25 = vmul.f32 %v721_v6, %v568_v23  ;;  %v262_v32 = vmul.f32 %v706_v3, %v568_v23  ;;  %v216_v34 = vadd.f32 %v208_v28, %v182_v18  ;;  %v578_v37 = vld [vmem:[%s726_s4 + $0x31] sm:$0xff] }
  0x14   : > { %v367_v26 = vmul.f32 %v731_v7, %v577_v24  ;;  %v586_v27 = vld [vmem:[%s726_s4 + $0x22] sm:$0xff]  ;;  %v288_v33 = vmul.f32 %v711_v4, %v577_v24  ;;  %v183_v38 = vmul.f32 %v690_v0, %v568_v23  ;;  %v209_v39 = vmul.f32 %v695_v1, %v577_v24  ;;  %v587_v43 = vld [vmem:[%s726_s4 + $0x32] sm:$0xff]  ;;  %v793_v24 = vld [vmem:[%s904_s2] ss:$0 sm:$0xff] }
  0x15   : > { %v241_v30 = vadd.f32 %v233_v14, %v215_v19  ;;  %v393_v31 = vmul.f32 %v736_v8, %v586_v27  ;;  %v314_v35 = vmul.f32 %v716_v5, %v586_v27  ;;  %v342_v41 = vmul.f32 %v721_v6, %v569_v36  ;;  %v570_v49 = vld [vmem:[%s726_s4 + $0x40] sm:$0xff]  ;;  %v571_v13 = vld [vmem:[%s726_s4 + $0x50] sm:$0xff] }
  0x16   : > { %v368_v42 = vmul.f32 %v731_v7, %v578_v37  ;;  %v235_v44 = vmul.f32 %v700_v2, %v586_v27  ;;  %v242_v45 = vadd.f32 %v234_v29, %v216_v34  ;;  %v394_v46 = vmul.f32 %v736_v8, %v587_v43  ;;  %v579_v56 = vld [vmem:[%s726_s4 + $0x41] sm:$0xff]  ;;  %v589_v27 = vld [vmem:[%s726_s4 + $0x52] sm:$0xff] }
  0x17   : > { %v269_v40 = vadd.f32 %v261_v20, %v241_v30  ;;  %v217_v47 = vadd.f32 %v209_v39, %v183_v38  ;;  %v263_v48 = vmul.f32 %v706_v3, %v569_v36  ;;  %v289_v51 = vmul.f32 %v711_v4, %v578_v37  ;;  %v588_v57 = vld [vmem:[%s726_s4 + $0x42] sm:$0xff] }
  0x18   : > { %v315_v52 = vmul.f32 %v716_v5, %v587_v43  ;;  %v343_v53 = vmul.f32 %v721_v6, %v570_v49  ;;  %v270_v54 = vadd.f32 %v262_v32, %v242_v45  ;;  %v184_v58 = vmul.f32 %v690_v0, %v569_v36 }
  0x19   : > { %v295_v50 = vadd.f32 %v287_v21, %v269_v40  ;;  %v243_v55 = vadd.f32 %v235_v44, %v217_v47  ;;  %v210_v59 = vmul.f32 %v695_v1, %v578_v37  ;;  %v369_v61 = vmul.f32 %v731_v7, %v579_v56  ;;  %v580_v21 = vld [vmem:[%s726_s4 + $0x51] sm:$0xff]  ;;  %v572_v44 = vld [vmem:[%s726_s4 + $0x60] sm:$0xff] }
  0x1a   : > { %v395_v62 = vmul.f32 %v736_v8, %v588_v57  ;;  %v236_v63 = vmul.f32 %v700_v2, %v587_v43  ;;  %v296_v9 = vadd.f32 %v288_v33, %v270_v54  ;;  %v264_v12 = vmul.f32 %v706_v3, %v570_v49 }
  0x1b   : > { %v321_v60 = vadd.f32 %v313_v22, %v295_v50  ;;  %v271_v10 = vadd.f32 %v263_v48, %v243_v55  ;;  %v218_v11 = vadd.f32 %v210_v59, %v184_v58  ;;  %v290_v15 = vmul.f32 %v711_v4, %v579_v56  ;;  %v581_v58 = vld [vmem:[%s726_s4 + $0x61] sm:$0xff] }
  0x1c   : > { %v316_v16 = vmul.f32 %v716_v5, %v588_v57  ;;  %v344_v17 = vmul.f32 %v721_v6, %v571_v13  ;;  %v322_v18 = vadd.f32 %v314_v35, %v296_v9  ;;  %v185_v22 = vmul.f32 %v690_v0, %v570_v49 }
  0x1d   : > { %v349_v14 = vadd.f32 %v341_v25, %v321_v60  ;;  %v297_v19 = vadd.f32 %v289_v51, %v271_v10  ;;  %v244_v20 = vadd.f32 %v236_v63, %v218_v11  ;;  %v370_v25 = vmul.f32 %v731_v7, %v580_v21 }
  0x1e   : > { %v211_v28 = vmul.f32 %v695_v1, %v579_v56  ;;  %v237_v29 = vmul.f32 %v700_v2, %v588_v57  ;;  %v350_v30 = vadd.f32 %v342_v41, %v322_v18  ;;  %v396_v34 = vmul.f32 %v736_v8, %v589_v27 }
  0x1f   : > { %v375_v23 = vadd.f32 %v367_v26, %v349_v14  ;;  %v323_v32 = vadd.f32 %v315_v52, %v297_v19  ;;  %v272_v33 = vadd.f32 %v264_v12, %v244_v20  ;;  %v265_v36 = vmul.f32 %v706_v3, %v571_v13  ;;  %v590_v12 = vld [vmem:[%s726_s4 + $0x62] sm:$0xff]  ;;  %v573_v20 = vld [vmem:[%s726_s4 + $0x70] sm:$0xff] }
  0x20   : > { %v219_v26 = vadd.f32 %v211_v28, %v185_v22  ;;  %v291_v37 = vmul.f32 %v711_v4, %v580_v21  ;;  %v376_v38 = vadd.f32 %v368_v42, %v350_v30  ;;  %v317_v43 = vmul.f32 %v716_v5, %v589_v27 }
  0x21   : > { %v401_v35 = vadd.f32 %v393_v31, %v375_v23  ;;  %v351_v39 = vadd.f32 %v343_v53, %v323_v32  ;;  %v298_v40 = vadd.f32 %v290_v15, %v272_v33  ;;  %v345_v47 = vmul.f32 %v721_v6, %v572_v44  ;;  %v582_v32 = vld [vmem:[%s726_s4 + $0x71] sm:$0xff] }
  0x22   : > { %v245_v41 = vadd.f32 %v237_v29, %v219_v26  ;;  %v186_v31 = vmul.f32 %v690_v0, %v571_v13  ;;  %v402_v48 = vadd.f32 %v394_v46, %v376_v38  ;;  %v212_v51 = vmul.f32 %v695_v1, %v580_v21  ;;  %v591_v38 = vld [vmem:[%s726_s4 + $0x72] sm:$0xff] }
  0x23   : > { %v805_v45 = vadd.f32 %v793_v24, %v401_v35  ;;  %v377_v49 = vadd.f32 %v369_v61, %v351_v39  ;;  %v324_v50 = vadd.f32 %v316_v16, %v298_v40  ;;  %v238_v53 = vmul.f32 %v700_v2, %v589_v27 }
  0x24   : > { %v273_v52 = vadd.f32 %v265_v36, %v245_v41  ;;  %v266_v54 = vmul.f32 %v706_v3, %v572_v44  ;;  %v814_v55 = vadd.f32 %v793_v24, %v402_v48  ;;  %v220_v59 = vadd.f32 %v212_v51, %v186_v31 }
  0x25   : > { %v421_v42 = vsub.f32 0.0, %v805_v45  ;;  %v403_v56 = vadd.f32 %v395_v62, %v377_v49  ;;  %v352_v57 = vadd.f32 %v344_v17, %v324_v50  ;;  %v371_v61 = vmul.f32 %v731_v7, %v581_v58  ;;  %v574_v50 = vld [vmem:[%s726_s4 + $0x80] sm:$0xff] }
  0x26   : > { %v299_v60 = vadd.f32 %v291_v37, %v273_v52  ;;  %v292_v63 = vmul.f32 %v711_v4, %v581_v58  ;;  %v422_v9 = vsub.f32 0.0, %v814_v55  ;;  %v246_v13 = vadd.f32 %v238_v53, %v220_v59 }
  0x27   : > { %v429_v46 = vmul.f32 1.442695, %v421_v42  ;;  %v821_v10 = vadd.f32 %v793_v24, %v403_v56  ;;  %v378_v11 = vadd.f32 %v370_v25, %v352_v57  ;;  %v397_v14 = vmul.f32 %v736_v8, %v590_v12 }
  0x28   : > { %v325_v62 = vadd.f32 %v317_v43, %v299_v60  ;;  %v318_v15 = vmul.f32 %v716_v5, %v590_v12  ;;  %v431_v16 = vmul.f32 1.442695, %v422_v9  ;;  %v274_v19 = vadd.f32 %v266_v54, %v246_v13 }
  0x29   : > { %617 = vpow2.f32 %v429_v46  ;;  %v423_v17 = vsub.f32 0.0, %v821_v10  ;;  %v404_v18 = vadd.f32 %v396_v34, %v378_v11  ;;  %v346_v22 = vmul.f32 %v721_v6, %v573_v20 }
  0x2a   : > { %v353_v21 = vadd.f32 %v345_v47, %v325_v62  ;;  %v187_v23 = vmul.f32 %v690_v0, %v572_v44  ;;  %v213_v25 = vmul.f32 %v695_v1, %v581_v58  ;;  %619 = vpow2.f32 %v431_v16  ;;  %v592_v62 = vld [vmem:[%s726_s4 + $0x82] sm:$0xff] }
  0x2b   : > { %v433_v27 = vmul.f32 1.442695, %v423_v17  ;;  %v832_v28 = vadd.f32 %v793_v24, %v404_v18  ;;  %v300_v29 = vadd.f32 %v292_v63, %v274_v19  ;;  %v239_v34 = vmul.f32 %v700_v2, %v590_v12  ;;  %v575_v19 = vld [vmem:[%s726_s4 + $0x90] sm:$0xff] }
  0x2c   : > { %v379_v30 = vadd.f32 %v371_v61, %v353_v21  ;;  %v221_v33 = vadd.f32 %v213_v25, %v187_v23  ;;  %v267_v35 = vmul.f32 %v706_v3, %v573_v20  ;;  %v372_v37 = vmul.f32 %v731_v7, %v582_v32  ;;  %v583_v61 = vld [vmem:[%s726_s4 + $0x81] sm:$0xff] }
  0x2d   : > { %621 = vpow2.f32 %v433_v27  ;;  %v424_v26 = vsub.f32 0.0, %v832_v28  ;;  %v326_v36 = vadd.f32 %v318_v15, %v300_v29  ;;  %v398_v43 = vmul.f32 %v736_v8, %v591_v38  ;;  %v584_v27 = vld [vmem:[%s726_s4 + $0x91] sm:$0xff] }
  0x2e   : > { %v405_v40 = vadd.f32 %v397_v14, %v379_v30  ;;  %v247_v44 = vadd.f32 %v239_v34, %v221_v33  ;;  %v293_v41 = vmul.f32 %v711_v4, %v582_v32  ;;  %v319_v49 = vmul.f32 %v716_v5, %v591_v38 }
  0x2f   : > { %v618_v39 = vpop.eup %617  ;;  %v435_v31 = vmul.f32 1.442695, %v424_v26  ;;  %v354_v48 = vadd.f32 %v346_v22, %v326_v36  ;;  %v347_v52 = vmul.f32 %v721_v6, %v574_v50  ;;  %v188_v53 = vmul.f32 %v690_v0, %v573_v20  ;;  %v593_v26 = vld [vmem:[%s726_s4 + $0x92] sm:$0xff] }
  0x30   : > { %v445_v47 = vadd.f32 1.0, %v618_v39  ;;  %v845_v51 = vadd.f32 %v793_v24, %v405_v40  ;;  %v275_v42 = vadd.f32 %v267_v35, %v247_v44  ;;  %v620_v54 = vpop.eup %619  ;;  %v214_v57 = vmul.f32 %v695_v1, %v582_v32 }
  0x31   : > { %v380_v56 = vadd.f32 %v372_v37, %v354_v48  ;;  %v240_v58 = vmul.f32 %v700_v2, %v591_v38  ;;  %v446_v59 = vadd.f32 1.0, %v620_v54  ;;  %v373_v11 = vmul.f32 %v731_v7, %v583_v61 }
  0x32   : > { %623 = vrcp.f32 %v445_v47  ;;  %v425_v46 = vsub.f32 0.0, %v845_v51  ;;  %v301_v60 = vadd.f32 %v293_v41, %v275_v42  ;;  %v222_v0 = vadd.f32 %v214_v57, %v188_v53 }
  0x33   : > { %625 = vpow2.f32 %v435_v31  ;;  %v622_v63 = vpop.eup %621  ;;  %v406_v9 = vadd.f32 %v398_v43, %v380_v56  ;;  %v268_v12 = vmul.f32 %v706_v3, %v574_v50  ;;  %v294_v16 = vmul.f32 %v711_v4, %v583_v61 }
  0x34   : > { %627 = vrcp.f32 %v446_v59  ;;  %v447_v1 = vadd.f32 1.0, %v622_v63  ;;  %v437_v13 = vmul.f32 1.442695, %v425_v46  ;;  %v327_v2 = vadd.f32 %v319_v49, %v301_v60 }
  0x35   : > { %v858_v14 = vadd.f32 %v793_v24, %v406_v9  ;;  %v248_v15 = vadd.f32 %v240_v58, %v222_v0  ;;  %v399_v18 = vmul.f32 %v736_v8, %v592_v62  ;;  %v320_v4 = vmul.f32 %v716_v5, %v592_v62 }
  0x36   : > { %629 = vrcp.f32 %v447_v1  ;;  %v355_v17 = vadd.f32 %v347_v52, %v327_v2  ;;  %v348_v33 = vmul.f32 %v721_v6, %v575_v19  ;;  %v400_v43 = vmul.f32 %v736_v8, %v593_v26 }
  0x37   : > { %631 = vpow2.f32 %v437_v13  ;;  %v426_v20 = vsub.f32 0.0, %v858_v14  ;;  %v276_v21 = vadd.f32 %v268_v12, %v248_v15 }
  0x38   : > { %v624_v3 = vpop.eup %623  ;;  %v381_v25 = vadd.f32 %v373_v11, %v355_v17 }
  0x39   : > { %v626_v22 = vpop.eup %625  ;;  %v461_v23 = vmul.f32 %v624_v3, %v805_v45  ;;  %v439_v30 = vmul.f32 1.442695, %v426_v20  ;;  %v302_v32 = vadd.f32 %v294_v16, %v276_v21  ;;  %v374_v45 = vmul.f32 %v731_v7, %v584_v27 }
  0x3a   : > { %v448_v29 = vadd.f32 1.0, %v626_v22  ;;  %v628_v34 = vpop.eup %627  ;;  %v407_v35 = vadd.f32 %v399_v18, %v381_v25 }
  0x3b   : > { %470 = vst.msk [vmem:[%s866_s15] sm:$0xff] %vm469_vm0, %v461_v23  ;;  %v462_v36 = vmul.f32 %v628_v34, %v814_v55  ;;  %v328_v5 = vadd.f32 %v320_v4, %v302_v32 }
  0x3c   : > { %633 = vrcp.f32 %v448_v29  ;;  %v630_v37 = vpop.eup %629  ;;  %v419_v38 = vadd.f32 %v793_v24, %v407_v35 }
  0x3d   : > { %635 = vpow2.f32 %v439_v30  ;;  %v632_v39 = vpop.eup %631  ;;  %471 = vst.msk [vmem:[%s866_s15 + $0x8] sm:$0xff] %vm469_vm0, %v462_v36  ;;  %v463_v6 = vmul.f32 %v630_v37, %v821_v10  ;;  %v356_v40 = vadd.f32 %v348_v33, %v328_v5 }
  0x3e   : > { %v449_v44 = vadd.f32 1.0, %v632_v39  ;;  %v427_v41 = vsub.f32 0.0, %v419_v38 }
  0x3f   : > { %472 = vst.msk [vmem:[%s866_s15 + $0x10] sm:$0xff] %vm469_vm0, %v463_v6  ;;  %v382_v55 = vadd.f32 %v374_v45, %v356_v40 }
  0x40   : > { %637 = vrcp.f32 %v449_v44  ;;  %v441_v7 = vmul.f32 1.442695, %v427_v41 }
  0x41   : > { %v408_v31 = vadd.f32 %v400_v43, %v382_v55 }
  0x42   : > { %v634_v47 = vpop.eup %633  ;;  %639 = vpow2.f32 %v441_v7 }
  0x43   : > { %v636_v48 = vpop.eup %635  ;;  %v464_v49 = vmul.f32 %v634_v47, %v832_v28  ;;  %v420_v50 = vadd.f32 %v793_v24, %v408_v31 }
  0x44   : > { %v450_v10 = vadd.f32 1.0, %v636_v48 }
  0x45   : > { %473 = vst.msk [vmem:[%s866_s15 + $0x18] sm:$0xff] %vm469_vm0, %v464_v49  ;;  %v428_v8 = vsub.f32 0.0, %v420_v50 }
  0x46   : > { %641 = vrcp.f32 %v450_v10  ;;  %v638_v42 = vpop.eup %637 }
  0x47   : > { %v465_v52 = vmul.f32 %v638_v42, %v845_v51  ;;  %v443_v53 = vmul.f32 1.442695, %v428_v8 }
  0x48   : > { %v640_v54 = vpop.eup %639 }
  0x49   : > { %474 = vst.msk [vmem:[%s866_s15 + $0x20] sm:$0xff] %vm469_vm0, %v465_v52  ;;  %v451_v56 = vadd.f32 1.0, %v640_v54  ;;  %643 = vpow2.f32 %v443_v53 }
  0x4b   : > { %645 = vrcp.f32 %v451_v56 }
  0x4c   : > { %v642_v28 = vpop.eup %641 }
  0x4d   : > { %v466_v57 = vmul.f32 %v642_v28, %v858_v14 }
  0x4f   : > { %475 = vst.msk [vmem:[%s866_s15 + $0x28] sm:$0xff] %vm469_vm0, %v466_v57  ;;  %v644_v24 = vpop.eup %643 }
  0x50   : > { %v452_v58 = vadd.f32 1.0, %v644_v24 }
  0x51   : > { %v646_v59 = vpop.eup %645 }
  0x52   : > { %v467_v46 = vmul.f32 %v646_v59, %v419_v38  ;;  %647 = vrcp.f32 %v452_v58 }
  0x54   : > { %476 = vst.msk [vmem:[%s866_s15 + $0x30] sm:$0xff] %vm469_vm0, %v467_v46 }
  0x58   : > { %v648_v51 = vpop.eup %647 }
  0x59   : > { %v468_v60 = vmul.f32 %v648_v51, %v420_v50 }
  0x5b   : > { %477 = vst.msk [vmem:[%s866_s15 + $0x38] sm:$0xff] %vm469_vm0, %v468_v60 }
  0x5c PF: > { %s13_s12 = sadd.s32 1, %s655_s12  }
  0x5d   : > { %p10_p4 = scmp.ge.s32.totalorder %s13_s12, 4  }
  0x5f   :  { %12 = sbr.rel (!%p10_p4) target bundleno = 1 (0x1), region = 66 }

// kernel: ss2d_forward.5
= control target key start
LH: loop header
LB: loop body
LE: loop exit
PB: predicated region body
PF: predicated region fallthrough
CT: control target
= control target key end

     0   :  { %7 = vsyncpa [#allocation3], 0  ;;  %s372_s0 = inlined_call_operand.hbm [shape: f32[128,32], index: 0, kind: input, shape index: {}]   ;;  %s373_s1 = inlined_call_operand.hbm [shape: f32[32,128], index: 1, kind: input, shape index: {}]   ;;  %s374_s2 = inlined_call_operand.vmem [shape: f32[128,128], index: 2, kind: output, shape index: {}]  }
   0x1   :  { %s13_s11 = sshll.u32 %s372_s0, 4  ;;  %s14_s11 = int_to_ptr.hbm [resolvable:$true] %s13_s11 }
   0x2   :  { %8 = vsyncpa [#allocation5], 0  ;;  %s283_s12 = smov [#allocation2]   ;;  %s26_s16 = sshll.u32 %s373_s1, 4  ;;  %s27_s16 = int_to_ptr.hbm [resolvable:$true] %s26_s16 }
   0x3   :  { %s15_s13 = sshll.u32 %s283_s12, 4  ;;  %s284_s17 = smov 128   ;;  %s16_s13 = int_to_ptr.vmem [resolvable:$true] %s15_s13 }
   0x4   :  { %s285_s18 = smov 8   ;;  %s286_s19 = smov [#allocation4]  }
   0x5   :  { %21 = dma.hbm_to_vmem [thread:$0]  %s14_s11, 2048, %s16_s13, [#allocation3], %s284_s17, %s284_s17, %s285_s18  }
   0x6   :  { %s28_s20 = sshll.u32 %s286_s19, 4  ;;  %s29_s20 = int_to_ptr.vmem [resolvable:$true] %s28_s20 }
   0x7   :  { %34 = dma.hbm_to_vmem [thread:$0]  %s27_s16, 512, %s29_s20, [#allocation5], %s284_s17, %s284_s17, %s285_s18  }
   0x8   :  { %279 = dma.done.wait [#allocation3], 2048  }
   0x9   :  { %280 = vsyncadd [#allocation3], 4294965248 }
   0xa   :  { %281 = dma.done.wait [#allocation5], 512  }
   0xb   :  { %282 = vsyncadd [#allocation5], 4294966784  ;;  %v62_v0 = vld [vmem:[#allocation4 + $0x18] sm:$0xff]  ;;  %v61_v1 = vld [vmem:[#allocation4 + $0x10] sm:$0xff]  ;;  %vm63_vm0 = vcmask 261120  }
   0xc   :  { %216 = vmatpush.msra.mxu2 %v62_v0  ;;  %217 = vmatpush.msra.mxu3 %v62_v0  ;;  %v60_v2 = vld [vmem:[#allocation4 + $0x8] sm:$0xff]  ;;  %v59_v3 = vld [vmem:[#allocation4] sm:$0xff]  ;;  %v53_v12 = vld [vmem:[#allocation2 + $0x50] sm:$0xff] }
   0xd   :  { %124 = vmatpush.msra.mxu0 %v62_v0  ;;  %215 = vmatpush.msra.mxu1 %v62_v0  ;;  %v51_v4 = vld [vmem:[#allocation2 + $0x40] sm:$0xff]  ;;  %v52_v8 = vld [vmem:[#allocation2 + $0x48] sm:$0xff]  ;;  %v57_v13 = vld [vmem:[#allocation2 + $0x70] sm:$0xff] }
   0xe   :  { %219 = vmatpush.msra.mxu2 %v61_v1  ;;  %220 = vmatpush.msra.mxu3 %v61_v1  ;;  %v55_v5 = vld [vmem:[#allocation2 + $0x60] sm:$0xff]  ;;  %v56_v9 = vld [vmem:[#allocation2 + $0x68] sm:$0xff]  ;;  %v45_v14 = vld [vmem:[#allocation2 + $0x10] sm:$0xff] }
   0xf   :  { %125 = vmatpush.msra.mxu0 %v61_v1  ;;  %218 = vmatpush.msra.mxu1 %v61_v1  ;;  %v43_v6 = vld [vmem:[#allocation2] sm:$0xff]  ;;  %v44_v10 = vld [vmem:[#allocation2 + $0x8] sm:$0xff]  ;;  %v49_v15 = vld [vmem:[#allocation2 + $0x30] sm:$0xff] }
  0x10   :  { %222 = vmatpush.msra.mxu2 %v60_v2  ;;  %223 = vmatpush.msra.mxu3 %v60_v2  ;;  %v47_v7 = vld [vmem:[#allocation2 + $0x20] sm:$0xff]  ;;  %v48_v11 = vld [vmem:[#allocation2 + $0x28] sm:$0xff]  ;;  %v54_v16 = vld [vmem:[#allocation2 + $0x58] sm:$0xff] }
  0x11   :  { %126 = vmatpush.msra.mxu0 %v60_v2  ;;  %221 = vmatpush.msra.mxu1 %v60_v2  ;;  %v58_v17 = vld [vmem:[#allocation2 + $0x78] sm:$0xff] }
  0x12   :  { %225 = vmatpush.msra.mxu2 %v59_v3  ;;  %226 = vmatpush.msra.mxu3 %v59_v3  ;;  %v46_v18 = vld [vmem:[#allocation2 + $0x18] sm:$0xff] }
  0x13   :  { %207 = vmatmul.msk.f32.vlgmr.msra.gmra.mxu2 %vm63_vm0, %v51_v4  ;;  %211 = vmatmul.msk.f32.vlgmr.msra.gmra.mxu3 %vm63_vm0, %v55_v5  ;;  %v50_v19 = vld [vmem:[#allocation2 + $0x38] sm:$0xff] }
  0x14   :  { %127 = vmatpush.msra.mxu0 %v59_v3  ;;  %224 = vmatpush.msra.mxu1 %v59_v3 }
  0x15   :  { %199 = vmatmul.msk.f32.vlgmr.msra.gmra.mxu0 %vm63_vm0, %v43_v6  ;;  %203 = vmatmul.msk.f32.vlgmr.msra.gmra.mxu1 %vm63_vm0, %v47_v7 }
  0x1b   :  { %208 = vmatmul.msk.f32.gmra.mxu2 %vm63_vm0, %v52_v8  ;;  %212 = vmatmul.msk.f32.gmra.mxu3 %vm63_vm0, %v56_v9 }
  0x1d   :  { %200 = vmatmul.msk.f32.gmra.mxu0 %vm63_vm0, %v44_v10  ;;  %204 = vmatmul.msk.f32.gmra.mxu1 %vm63_vm0, %v48_v11 }
  0x23   :  { %209 = vmatmul.msk.f32.gmra.mxu2 %vm63_vm0, %v53_v12  ;;  %213 = vmatmul.msk.f32.gmra.mxu3 %vm63_vm0, %v57_v13 }
  0x25   :  { %201 = vmatmul.msk.f32.gmra.mxu0 %vm63_vm0, %v45_v14  ;;  %205 = vmatmul.msk.f32.gmra.mxu1 %vm63_vm0, %v49_v15 }
  0x2b   :  { %210 = vmatmul.msk.f32.gmra.mxu2 %vm63_vm0, %v54_v16  ;;  %214 = vmatmul.msk.f32.gmra.mxu3 %vm63_vm0, %v58_v17 }
  0x2d   :  { %202 = vmatmul.msk.f32.gmra.mxu0 %vm63_vm0, %v46_v18  ;;  %206 = vmatmul.msk.f32.gmra.mxu1 %vm63_vm0, %v50_v19 }
  0x92   :  { %v129_v20 = vpop.f32.mrf.mxu0  ;;  %v141_v21 = vpop.f32.mrf.mxu1 }
  0x93   :  { %177 = vst [vmem:[%s374_s2] sm:$0xff] %v129_v20 }
  0x94   :  { %181 = vst [vmem:[%s374_s2 + $0x20] sm:$0xff] %v141_v21 }
  0x96   :  { %v153_v22 = vpop.f32.mrf.mxu2  ;;  %v165_v23 = vpop.f32.mrf.mxu3 }
  0x97   :  { %185 = vst [vmem:[%s374_s2 + $0x40] sm:$0xff] %v153_v22 }
  0x98   :  { %189 = vst [vmem:[%s374_s2 + $0x60] sm:$0xff] %v165_v23 }
  0x9a   :  { %v132_v24 = vpop.f32.mrf.mxu0  ;;  %v144_v25 = vpop.f32.mrf.mxu1 }
  0x9b   :  { %178 = vst [vmem:[%s374_s2 + $0x8] sm:$0xff] %v132_v24 }
  0x9c   :  { %182 = vst [vmem:[%s374_s2 + $0x28] sm:$0xff] %v144_v25 }
  0x9e   :  { %v156_v26 = vpop.f32.mrf.mxu2  ;;  %v168_v27 = vpop.f32.mrf.mxu3 }
  0x9f   :  { %186 = vst [vmem:[%s374_s2 + $0x48] sm:$0xff] %v156_v26 }
  0xa0   :  { %190 = vst [vmem:[%s374_s2 + $0x68] sm:$0xff] %v168_v27 }
  0xa2   :  { %v135_v28 = vpop.f32.mrf.mxu0  ;;  %v147_v29 = vpop.f32.mrf.mxu1 }
  0xa3   :  { %179 = vst [vmem:[%s374_s2 + $0x10] sm:$0xff] %v135_v28 }
  0xa4   :  { %183 = vst [vmem:[%s374_s2 + $0x30] sm:$0xff] %v147_v29 }
  0xa6   :  { %v159_v30 = vpop.f32.mrf.mxu2  ;;  %v171_v31 = vpop.f32.mrf.mxu3 }
  0xa7   :  { %187 = vst [vmem:[%s374_s2 + $0x50] sm:$0xff] %v159_v30 }
  0xa8   :  { %191 = vst [vmem:[%s374_s2 + $0x70] sm:$0xff] %v171_v31 }
  0xaa   :  { %v138_v32 = vpop.f32.mrf.mxu0  ;;  %v150_v33 = vpop.f32.mrf.mxu1 }
  0xab   :  { %180 = vst [vmem:[%s374_s2 + $0x18] sm:$0xff] %v138_v32 }
  0xac   :  { %184 = vst [vmem:[%s374_s2 + $0x38] sm:$0xff] %v150_v33 }
  0xae   :  { %v162_v34 = vpop.f32.mrf.mxu2  ;;  %v174_v35 = vpop.f32.mrf.mxu3 }
  0xaf   :  { %188 = vst [vmem:[%s374_s2 + $0x58] sm:$0xff] %v162_v34 }
  0xb0   :  { %192 = vst [vmem:[%s374_s2 + $0x78] sm:$0xff] %v174_v35 }
  0xb1   :  { %197 = vsyncpa [#allocation3], 1 }
  0xb2   :  { %198 = vsyncpa [#allocation5], 1 }

// kernel: ss2d_forward.7
= control target key start
LH: loop header
LB: loop body
LE: loop exit
PB: predicated region body
PF: predicated region fallthrough
CT: control target
= control target key end

     0   :  { %s791_s9 = smov 0   ;;  %s793_s10 = smov 0   ;;  %s980_s0 = inlined_call_operand.vmem [shape: f32[2,2,64,64], index: 0, kind: input, shape index: {}]   ;;  %s981_s1 = inlined_call_operand.vmem [shape: f32[4,64,128], index: 1, kind: input, shape index: {}]   ;;  %s982_s2 = inlined_call_operand.vmem [shape: f32[2,4,64,128], index: 2, kind: output, shape index: {}]  }
   0x1   :  { %s795_s11 = smov 0   ;;  %s797_s12 = smov 0  }
   0x2   :  { %s799_s13 = smov 0  }
   0x3 LB: > { %s817_s14 = sadd.s32 4294967295, %s774_s13   ;;  %s820_s15 = sadd.s32 1, %s774_s13   ;;  %s774_s13 = sphi %s799_s13, %s988_s13   ;;  %s770_s12 = sphi %s797_s12, %s987_s12   ;;  %s766_s11 = sphi %s795_s11, %s986_s11   ;;  %s762_s10 = sphi %s793_s10, %s985_s10   ;;  %s758_s9 = sphi %s791_s9, %s984_s9  }
   0x4   : > { %p16_p0 = scmp.lt.s32.totalorder %s774_s13, 0  ;;  %s17_s16 = ssub.s32 0, %s774_s13 }
   0x5   : > { %s629_s17 = smin.u32 %s774_s13, %s17_s16  ;;  %p28_p1 = scmp.lt.s32.totalorder %s820_s15, 0 }
   0x6   : > { %s19_s18 = sand.u32 1, %s629_s17   ;;  %s29_s19 = ssub.s32 0, %s820_s15 }
   0x7   : > { %s20_s20 = ssub.s32 0, %s19_s18  ;;  %s632_s21 = smin.u32 %s29_s19, %s820_s15 }
   0x8   : > { %s990_s20 = smov (!%p16_p0, %s20_s20), %s19_s18  ;;  %s31_s22 = sand.u32 1, %s632_s21  }
   0x9   : > { %s43_s23 = sadd.s32 1, %s770_s12  ;;  %p631_p2 = scmp.lt.s32.totalorder %s990_s20, 0 }
   0xa   : > { %s26_s24 = sadd.s32 2, %s990_s20  ;;  %s32_s25 = ssub.s32 0, %s31_s22 }
   0xb   : > { %p50_p3 = scmp.ne.s32.totalorder %s770_s12, %s766_s11  ;;  %s992_s24 = smov (!%p631_p2, %s26_s24), %s990_s20 }
   0xc   : > { %s994_s25 = smov (!%p28_p1, %s32_s25), %s31_s22  ;;  %p51_p4 = scmp.eq.s32.totalorder %s774_s13, 0 }
   0xd   : > { %s92_s26 = ssub.s32 %s774_s13, %s820_s15  ;;  %p634_p5 = scmp.lt.s32.totalorder %s994_s25, 0 }
   0xe   : > { %s38_s27 = sadd.s32 2, %s994_s25  ;;  %p52_p6 = por %p51_p4, %p50_p3 }
   0xf   : > { %p93_p7 = scmp.eq.s32.totalorder %s92_s26, 0  ;;  %s996_s27 = smov (!%p634_p5, %s38_s27), %s994_s25 }
  0x10   : > { %s95_s28 = sadd.s32 1, %s762_s10  ;;  %p105_p8 = scmp.ne.s32.totalorder %s762_s10, %s758_s9 }
  0x11   : > { %s40_s29 = ssub.s32 %s992_s24, %s996_s27  ;;  %p106_p9 = scmp.eq.s32.totalorder %s817_s14, 3 }
  0x12   : > { %p41_p10 = scmp.eq.s32.totalorder %s40_s29, 0  ;;  %p636_p12 = scmp.ge.s32.totalorder %s774_s13, 4 }
  0x13   : > { %s839_s30 = scalar_select %p93_p7, %s762_s10, %s95_s28  }
  0x14   : > { %s842_s3 = scalar_select %p41_p10, %s770_s12, %s43_s23  }
  0x15   : > { %p844_p11 = por %p106_p9, %p105_p8  ;;  %128 = sbr.rel (%p636_p12) target bundleno = 46 (0x2e), region = 16 }
  0x1a   : > { %131 = sbr.rel (!%p52_p6) target bundleno = 46 (0x2e), region = 20  ;;  %s133_s5 = sand.u32 (%p52_p6), 1, %s770_s12  }
  0x1b   : > { %s669_s6 = sshll.u32 (%p52_p6), %s992_s24, 6  ;;  %s637_s7 = sshll.u32 (%p52_p6), %s133_s5, 7 }
  0x1c   : > { %s853_s17 = scalar_lea.vmem (%p52_p6), %s980_s0, %s669_s6  ;;  %s135_s18 = scalar_lea.vmem (%p52_p6), [#allocation2], %s637_s7 }
  0x1d   : > { %v209_v0 = vld [vmem:[%s853_s17] sm:$0xff] (%p52_p6)  ;;  %v211_v1 = vld [vmem:[%s853_s17 + $0x8] sm:$0xff] (%p52_p6)  ;;  %v213_v2 = vld [vmem:[%s853_s17 + $0x10] sm:$0xff] (%p52_p6) }
  0x1e   : > { %210 = vst [vmem:[%s135_s18] sm:$0xff] (%p52_p6), %v209_v0  ;;  %v215_v3 = vld [vmem:[%s853_s17 + $0x18] sm:$0xff] (%p52_p6)  ;;  %v217_v4 = vld [vmem:[%s853_s17 + $0x20] sm:$0xff] (%p52_p6)  ;;  %v219_v5 = vld [vmem:[%s853_s17 + $0x28] sm:$0xff] (%p52_p6) }
  0x1f   : > { %212 = vst [vmem:[%s135_s18 + $0x8] sm:$0xff] %v211_v1  ;;  %v221_v6 = vld [vmem:[%s853_s17 + $0x30] sm:$0xff]  ;;  %v223_v7 = vld [vmem:[%s853_s17 + $0x38] sm:$0xff]  ;;  %v225_v8 = vld [vmem:[%s853_s17 + $0x80] sm:$0xff] }
  0x20   : > { %214 = vst [vmem:[%s135_s18 + $0x10] sm:$0xff] %v213_v2  ;;  %v227_v9 = vld [vmem:[%s853_s17 + $0x88] sm:$0xff]  ;;  %v229_v10 = vld [vmem:[%s853_s17 + $0x90] sm:$0xff]  ;;  %v231_v11 = vld [vmem:[%s853_s17 + $0x98] sm:$0xff] }
  0x21   : > { %216 = vst [vmem:[%s135_s18 + $0x18] sm:$0xff] %v215_v3  ;;  %v233_v12 = vld [vmem:[%s853_s17 + $0xa0] sm:$0xff]  ;;  %v235_v13 = vld [vmem:[%s853_s17 + $0xa8] sm:$0xff]  ;;  %v237_v14 = vld [vmem:[%s853_s17 + $0xb0] sm:$0xff] }
  0x22   : > { %218 = vst [vmem:[%s135_s18 + $0x20] sm:$0xff] %v217_v4  ;;  %v239_v15 = vld [vmem:[%s853_s17 + $0xb8] sm:$0xff] }
  0x23   : > { %220 = vst [vmem:[%s135_s18 + $0x28] sm:$0xff] %v219_v5 }
  0x24   : > { %222 = vst [vmem:[%s135_s18 + $0x30] sm:$0xff] %v221_v6 }
  0x25   : > { %224 = vst [vmem:[%s135_s18 + $0x38] sm:$0xff] %v223_v7 }
  0x26   : > { %226 = vst [vmem:[%s135_s18 + $0x40] sm:$0xff] %v225_v8 }
  0x27   : > { %228 = vst [vmem:[%s135_s18 + $0x48] sm:$0xff] %v227_v9 }
  0x28   : > { %230 = vst [vmem:[%s135_s18 + $0x50] sm:$0xff] %v229_v10 }
  0x29   : > { %232 = vst [vmem:[%s135_s18 + $0x58] sm:$0xff] %v231_v11 }
  0x2a   : > { %234 = vst [vmem:[%s135_s18 + $0x60] sm:$0xff] %v233_v12 }
  0x2b   : > { %236 = vst [vmem:[%s135_s18 + $0x68] sm:$0xff] %v235_v13 }
  0x2c   : > { %238 = vst [vmem:[%s135_s18 + $0x70] sm:$0xff] %v237_v14 }
  0x2d   : > { %240 = vst [vmem:[%s135_s18 + $0x78] sm:$0xff] %v239_v15 }
  0x2e PF: > { %p643_p13 = scmp.ge.s32.totalorder %s774_s13, 1  ;;  %p253_p0 = scmp.lt.s32.totalorder %s774_s13, 5 }
  0x30   : > { %p254_p1 = pnand %p643_p13, %p253_p0 }
  0x31   : > { %p297_p2 = scmp.lt.s32.totalorder (!%p254_p1), %s817_s14, 3  ;;  %s260_s13 = sand.u32 (!%p254_p1), 1, %s766_s11  }
  0x32   : > { %257 = sbr.rel (%p254_p1) target bundleno = 241 (0xf1), region = 62  ;;  %s644_s24 = sshll.u32 (!%p254_p1), %s260_s13, 7 }
  0x33   : > { %s889_s11 = scalar_lea.vmem (!%p254_p1), [#allocation2], %s644_s24  ;;  %s282_s25 = sand.u32 (!%p254_p1), 1, %s758_s9  }
  0x34   : > { %s645_s26 = sshll.u32 (!%p254_p1), %s282_s25, 7 }
  0x35   : > { %s924_s27 = scalar_lea.vmem (!%p254_p1), [#allocation3], %s645_s26 }
  0x37   : > { %s298_s19 = scalar_select %p297_p2, %s817_s14, 3  ;;  %v310_v24 = vld [vmem:[%s889_s11 + $0x40] sm:$0xff]  ;;  %vm326_vm0 = vcmask 523264   ;;  %v311_v28 = vld [vmem:[%s889_s11 + $0x48] sm:$0xff]  ;;  %v312_v32 = vld [vmem:[%s889_s11 + $0x50] sm:$0xff] }
  0x38   : > { %v314_v25 = vld [vmem:[%s889_s11 + $0x60] sm:$0xff]  ;;  %v315_v29 = vld [vmem:[%s889_s11 + $0x68] sm:$0xff]  ;;  %v316_v33 = vld [vmem:[%s889_s11 + $0x70] sm:$0xff]  ;;  %s671_s9 = sshll.u32 (%p844_p11), %s817_s14, 6 }
  0x39   : > { %s670_s20 = sshll.u32 %s298_s19, 6  ;;  %v302_v26 = vld [vmem:[%s889_s11] sm:$0xff]  ;;  %v303_v30 = vld [vmem:[%s889_s11 + $0x8] sm:$0xff]  ;;  %v304_v34 = vld [vmem:[%s889_s11 + $0x10] sm:$0xff]  ;;  %s465_s5 = scalar_lea.vmem (%p844_p11), %s982_s2, %s671_s9 }
  0x3a   : > { %s878_s23 = scalar_lea.vmem %s981_s1, %s670_s20  ;;  %v306_v27 = vld [vmem:[%s889_s11 + $0x20] sm:$0xff]  ;;  %v307_v31 = vld [vmem:[%s889_s11 + $0x28] sm:$0xff]  ;;  %v308_v35 = vld [vmem:[%s889_s11 + $0x30] sm:$0xff] }
  0x3b   : > { %v325_v16 = vld [vmem:[%s878_s23 + $0x38] sm:$0xff]  ;;  %v324_v17 = vld [vmem:[%s878_s23 + $0x30] sm:$0xff]  ;;  %v323_v18 = vld [vmem:[%s878_s23 + $0x28] sm:$0xff] }
  0x3c   : > { %673 = vmatpush.msra.mxu2 %v325_v16  ;;  %674 = vmatpush.msra.mxu3 %v325_v16  ;;  %v322_v19 = vld [vmem:[%s878_s23 + $0x20] sm:$0xff]  ;;  %v321_v20 = vld [vmem:[%s878_s23 + $0x18] sm:$0xff]  ;;  %v320_v21 = vld [vmem:[%s878_s23 + $0x10] sm:$0xff] }
  0x3d   : > { %383 = vmatpush.msra.mxu0 %v325_v16  ;;  %672 = vmatpush.msra.mxu1 %v325_v16  ;;  %v319_v22 = vld [vmem:[%s878_s23 + $0x8] sm:$0xff]  ;;  %v318_v23 = vld [vmem:[%s878_s23] sm:$0xff]  ;;  %v313_v36 = vld [vmem:[%s889_s11 + $0x58] sm:$0xff] }
  0x3e   : > { %676 = vmatpush.msra.mxu2 %v324_v17  ;;  %677 = vmatpush.msra.mxu3 %v324_v17  ;;  %v317_v37 = vld [vmem:[%s889_s11 + $0x78] sm:$0xff] }
  0x3f   : > { %384 = vmatpush.msra.mxu0 %v324_v17  ;;  %675 = vmatpush.msra.mxu1 %v324_v17  ;;  %v305_v38 = vld [vmem:[%s889_s11 + $0x18] sm:$0xff] }
  0x40   : > { %679 = vmatpush.msra.mxu2 %v323_v18  ;;  %680 = vmatpush.msra.mxu3 %v323_v18  ;;  %v309_v39 = vld [vmem:[%s889_s11 + $0x38] sm:$0xff] }
  0x41   : > { %385 = vmatpush.msra.mxu0 %v323_v18  ;;  %678 = vmatpush.msra.mxu1 %v323_v18 }
  0x42   : > { %682 = vmatpush.msra.mxu2 %v322_v19  ;;  %683 = vmatpush.msra.mxu3 %v322_v19 }
  0x43   : > { %386 = vmatpush.msra.mxu0 %v322_v19  ;;  %681 = vmatpush.msra.mxu1 %v322_v19 }
  0x44   : > { %685 = vmatpush.msra.mxu2 %v321_v20  ;;  %686 = vmatpush.msra.mxu3 %v321_v20 }
  0x45   : > { %387 = vmatpush.msra.mxu0 %v321_v20  ;;  %684 = vmatpush.msra.mxu1 %v321_v20 }
  0x46   : > { %688 = vmatpush.msra.mxu2 %v320_v21  ;;  %689 = vmatpush.msra.mxu3 %v320_v21 }
  0x47   : > { %388 = vmatpush.msra.mxu0 %v320_v21  ;;  %687 = vmatpush.msra.mxu1 %v320_v21 }
  0x48   : > { %691 = vmatpush.msra.mxu2 %v319_v22  ;;  %692 = vmatpush.msra.mxu3 %v319_v22 }
  0x49   : > { %389 = vmatpush.msra.mxu0 %v319_v22  ;;  %690 = vmatpush.msra.mxu1 %v319_v22 }
  0x4a   : > { %694 = vmatpush.msra.mxu2 %v318_v23  ;;  %695 = vmatpush.msra.mxu3 %v318_v23 }
  0x4b   : > { %656 = vmatmul.msk.f32.vlgmr.msra.gmra.mxu2 %vm326_vm0, %v310_v24  ;;  %660 = vmatmul.msk.f32.vlgmr.msra.gmra.mxu3 %vm326_vm0, %v314_v25 }
  0x4c   : > { %390 = vmatpush.msra.mxu0 %v318_v23  ;;  %693 = vmatpush.msra.mxu1 %v318_v23 }
  0x4d   : > { %648 = vmatmul.msk.f32.vlgmr.msra.gmra.mxu0 %vm326_vm0, %v302_v26  ;;  %652 = vmatmul.msk.f32.vlgmr.msra.gmra.mxu1 %vm326_vm0, %v306_v27 }
  0x53   : > { %657 = vmatmul.msk.f32.gmra.mxu2 %vm326_vm0, %v311_v28  ;;  %661 = vmatmul.msk.f32.gmra.mxu3 %vm326_vm0, %v315_v29 }
  0x55   : > { %649 = vmatmul.msk.f32.gmra.mxu0 %vm326_vm0, %v303_v30  ;;  %653 = vmatmul.msk.f32.gmra.mxu1 %vm326_vm0, %v307_v31 }
  0x5b   : > { %658 = vmatmul.msk.f32.gmra.mxu2 %vm326_vm0, %v312_v32  ;;  %662 = vmatmul.msk.f32.gmra.mxu3 %vm326_vm0, %v316_v33 }
  0x5d   : > { %650 = vmatmul.msk.f32.gmra.mxu0 %vm326_vm0, %v304_v34  ;;  %654 = vmatmul.msk.f32.gmra.mxu1 %vm326_vm0, %v308_v35 }
  0x63   : > { %659 = vmatmul.msk.f32.gmra.mxu2 %vm326_vm0, %v313_v36  ;;  %663 = vmatmul.msk.f32.gmra.mxu3 %vm326_vm0, %v317_v37 }
  0x65   : > { %651 = vmatmul.msk.f32.gmra.mxu0 %vm326_vm0, %v305_v38  ;;  %655 = vmatmul.msk.f32.gmra.mxu1 %vm326_vm0, %v309_v39 }
  0xca   : > { %v392_v40 = vpop.f32.mrf.mxu0  ;;  %v404_v41 = vpop.f32.mrf.mxu1 }
  0xcb   : > { %440 = vst [vmem:[%s924_s27] sm:$0xff] %v392_v40 }
  0xcc   : > { %444 = vst [vmem:[%s924_s27 + $0x20] sm:$0xff] %v404_v41 }
  0xce   : > { %v416_v42 = vpop.f32.mrf.mxu2  ;;  %v428_v43 = vpop.f32.mrf.mxu3 }
  0xcf   : > { %448 = vst [vmem:[%s924_s27 + $0x40] sm:$0xff] %v416_v42 }
  0xd0   : > { %452 = vst [vmem:[%s924_s27 + $0x60] sm:$0xff] %v428_v43 }
  0xd2   : > { %v395_v44 = vpop.f32.mrf.mxu0  ;;  %v407_v45 = vpop.f32.mrf.mxu1  ;;  %v524_v56 = vld [vmem:[%s924_s27] sm:$0xff] (%p844_p11) }
  0xd3   : > { %441 = vst [vmem:[%s924_s27 + $0x8] sm:$0xff] %v395_v44  ;;  %v532_v60 = vld [vmem:[%s924_s27 + $0x20] sm:$0xff] (%p844_p11) }
  0xd4   : > { %445 = vst [vmem:[%s924_s27 + $0x28] sm:$0xff] %v407_v45 }
  0xd5   : > { %525 = vst [vmem:[%s465_s5] sm:$0xff] (%p844_p11), %v524_v56 }
  0xd6   : > { %v419_v46 = vpop.f32.mrf.mxu2  ;;  %v431_v47 = vpop.f32.mrf.mxu3  ;;  %533 = vst [vmem:[%s465_s5 + $0x20] sm:$0xff] (%p844_p11), %v532_v60  ;;  %v540_v0 = vld [vmem:[%s924_s27 + $0x40] sm:$0xff] (%p844_p11) }
  0xd7   : > { %449 = vst [vmem:[%s924_s27 + $0x48] sm:$0xff] %v419_v46  ;;  %v548_v4 = vld [vmem:[%s924_s27 + $0x60] sm:$0xff] (%p844_p11) }
  0xd8   : > { %453 = vst [vmem:[%s924_s27 + $0x68] sm:$0xff] %v431_v47 }
  0xd9   : > { %541 = vst [vmem:[%s465_s5 + $0x100] sm:$0xff] (%p844_p11), %v540_v0 }
  0xda   : > { %v398_v48 = vpop.f32.mrf.mxu0  ;;  %v410_v49 = vpop.f32.mrf.mxu1  ;;  %v526_v57 = vld [vmem:[%s924_s27 + $0x8] sm:$0xff] (%p844_p11)  ;;  %549 = vst [vmem:[%s465_s5 + $0x120] sm:$0xff] (%p844_p11), %v548_v4 }
  0xdb   : > { %442 = vst [vmem:[%s924_s27 + $0x10] sm:$0xff] %v398_v48  ;;  %v534_v61 = vld [vmem:[%s924_s27 + $0x28] sm:$0xff] (%p844_p11) }
  0xdc   : > { %446 = vst [vmem:[%s924_s27 + $0x30] sm:$0xff] %v410_v49 }
  0xdd   : > { %527 = vst [vmem:[%s465_s5 + $0x8] sm:$0xff] (%p844_p11), %v526_v57 }
  0xde   : > { %v422_v50 = vpop.f32.mrf.mxu2  ;;  %v434_v51 = vpop.f32.mrf.mxu3  ;;  %535 = vst [vmem:[%s465_s5 + $0x28] sm:$0xff] (%p844_p11), %v534_v61  ;;  %v542_v1 = vld [vmem:[%s924_s27 + $0x48] sm:$0xff] (%p844_p11) }
  0xdf   : > { %450 = vst [vmem:[%s924_s27 + $0x50] sm:$0xff] %v422_v50  ;;  %v550_v5 = vld [vmem:[%s924_s27 + $0x68] sm:$0xff] (%p844_p11) }
  0xe0   : > { %454 = vst [vmem:[%s924_s27 + $0x70] sm:$0xff] %v434_v51 }
  0xe1   : > { %543 = vst [vmem:[%s465_s5 + $0x108] sm:$0xff] (%p844_p11), %v542_v1 }
  0xe2   : > { %v401_v52 = vpop.f32.mrf.mxu0  ;;  %v413_v53 = vpop.f32.mrf.mxu1  ;;  %v528_v58 = vld [vmem:[%s924_s27 + $0x10] sm:$0xff] (%p844_p11)  ;;  %551 = vst [vmem:[%s465_s5 + $0x128] sm:$0xff] (%p844_p11), %v550_v5 }
  0xe3   : > { %443 = vst [vmem:[%s924_s27 + $0x18] sm:$0xff] %v401_v52  ;;  %v536_v62 = vld [vmem:[%s924_s27 + $0x30] sm:$0xff] (%p844_p11) }
  0xe4   : > { %447 = vst [vmem:[%s924_s27 + $0x38] sm:$0xff] %v413_v53  ;;  %462 = sbr.rel (!%p844_p11) target bundleno = 241 (0xf1), region = 70 }
  0xe5   : > { %529 = vst [vmem:[%s465_s5 + $0x10] sm:$0xff] (%p844_p11), %v528_v58 }
  0xe6   : > { %v425_v54 = vpop.f32.mrf.mxu2  ;;  %v437_v55 = vpop.f32.mrf.mxu3  ;;  %537 = vst [vmem:[%s465_s5 + $0x30] sm:$0xff] (%p844_p11), %v536_v62  ;;  %v544_v2 = vld [vmem:[%s924_s27 + $0x50] sm:$0xff] (%p844_p11) }
  0xe7   : > { %451 = vst [vmem:[%s924_s27 + $0x58] sm:$0xff] %v425_v54  ;;  %v552_v6 = vld [vmem:[%s924_s27 + $0x70] sm:$0xff] (%p844_p11) }
  0xe8   : > { %455 = vst [vmem:[%s924_s27 + $0x78] sm:$0xff] %v437_v55 }
  0xe9   : > { %545 = vst [vmem:[%s465_s5 + $0x110] sm:$0xff] %v544_v2 }
  0xea   : > { %v530_v59 = vld [vmem:[%s924_s27 + $0x18] sm:$0xff]  ;;  %553 = vst [vmem:[%s465_s5 + $0x130] sm:$0xff] %v552_v6 }
  0xeb   : > { %531 = vst [vmem:[%s465_s5 + $0x18] sm:$0xff] %v530_v59  ;;  %v538_v63 = vld [vmem:[%s924_s27 + $0x38] sm:$0xff] }
  0xec   : > { %539 = vst [vmem:[%s465_s5 + $0x38] sm:$0xff] %v538_v63 }
  0xee   : > { %v546_v3 = vld [vmem:[%s924_s27 + $0x58] sm:$0xff] }
  0xef   : > { %547 = vst [vmem:[%s465_s5 + $0x118] sm:$0xff] %v546_v3  ;;  %v554_v7 = vld [vmem:[%s924_s27 + $0x78] sm:$0xff] }
  0xf0   : > { %555 = vst [vmem:[%s465_s5 + $0x138] sm:$0xff] %v554_v7 }
  0xf1 PF: > { %p9_p3 = scmp.ge.s32.totalorder %s820_s15, 6   ;;  %s984_s9 = smov %s762_s10 }
  0xf2   : > { %s985_s10 = smov %s839_s30  ;;  %s986_s11 = smov %s770_s12 }
  0xf3   : > { %s987_s12 = smov %s842_s3  ;;  %s988_s13 = smov %s820_s15 }
  0xf4   :  { %11 = sbr.rel (!%p9_p3) target bundleno = 3 (0x3), region = 142 }

// kernel: ss2d_forward.9
= control target key start
LH: loop header
LB: loop body
LE: loop exit
PB: predicated region body
PF: predicated region fallthrough
CT: control target
= control target key end

     0   :  { %vm37_vm0 = vcmask 523264   ;;  %s1745_s0 = inlined_call_operand.vmem [shape: f32[128,64], index: 0, kind: input, shape index: {}]   ;;  %s1746_s1 = inlined_call_operand.vmem [shape: f32[128,64], index: 1, kind: input, shape index: {}]   ;;  %s1747_s2 = inlined_call_operand.vmem [shape: f32[1,64], index: 2, kind: input, shape index: {}]   ;;  %s1748_s3 = inlined_call_operand.vmem [shape: f32[1,64], index: 3, kind: input, shape index: {}]   ;;  %s1749_s4 = inlined_call_operand.vmem [shape: f32[64,32], index: 4, kind: input, shape index: {}]   ;;  %s1750_s5 = inlined_call_operand.hbm [shape: f32[128,32], index: 5, kind: output, shape index: {}]  }
   0x1   :  { %v928_v0 = vld [vmem:[%s1745_s0 + $0x48] sm:$0xff]  ;;  %v29_v1 = vld [vmem:[%s1745_s0 + $0x40] sm:$0xff] }
   0x2   :  { %v21_v2 = vld [vmem:[%s1745_s0] sm:$0xff]  ;;  %v65_v3 = vsel %vm37_vm0, %v928_v0, 0.0  ;;  %v62_v4 = vsel %vm37_vm0, %v29_v1, 0.0  ;;  %v943_v6 = vld [vmem:[%s1745_s0 + $0x68] sm:$0xff] }
   0x3   :  { %v38_v5 = vsel %vm37_vm0, %v21_v2, 0.0  ;;  %66 = vadd.xlane.f32.xlu2 %v65_v3  ;;  %63 = vadd.xlane.f32.xlu0 %v62_v4  ;;  %v948_v7 = vld [vmem:[%s1745_s0 + $0x60] sm:$0xff] }
   0x4   :  { %39 = vadd.xlane.f32.xlu1 %v38_v5  ;;  %v953_v8 = vld [vmem:[%s1745_s0 + $0x20] sm:$0xff] }
   0x5   :  { %10 = vsyncpa [#allocation3], 0  ;;  %v77_v9 = vsel %vm37_vm0, %v943_v6, 0.0  ;;  %v74_v10 = vsel %vm37_vm0, %v948_v7, 0.0  ;;  %v50_v11 = vsel %vm37_vm0, %v953_v8, 0.0  ;;  %v964_v12 = vld [vmem:[%s1745_s0 + $0x50] sm:$0xff] }
   0x6   :  { %v969_v13 = vld [vmem:[%s1745_s0 + $0x8] sm:$0xff]  ;;  %v68_v15 = vsel %vm37_vm0, %v964_v12, 0.0  ;;  %v985_v18 = vld [vmem:[%s1745_s0 + $0x30] sm:$0xff]  ;;  %v1006_v24 = vld [vmem:[%s1745_s0 + $0x18] sm:$0xff]  ;;  %v891_v32 = vmov 64.0   ;;  %s709_s24 = sshll.u32 %s1750_s5, 4  ;;  %s710_s24 = int_to_ptr.hbm [resolvable:$true] %s709_s24 }
   0x7   :  { %v974_v14 = vld [vmem:[%s1745_s0 + $0x28] sm:$0xff]  ;;  %v41_v16 = vsel %vm37_vm0, %v969_v13, 0.0  ;;  %v990_v19 = vld [vmem:[%s1745_s0 + $0x70] sm:$0xff]  ;;  %v56_v21 = vsel %vm37_vm0, %v985_v18, 0.0  ;;  %v1011_v25 = vld [vmem:[%s1745_s0 + $0x58] sm:$0xff]  ;;  %v47_v27 = vsel %vm37_vm0, %v1006_v24, 0.0  ;;  %767 = vrcp.f32 %v891_v32 }
   0x8   :  { %v53_v17 = vsel %vm37_vm0, %v974_v14, 0.0  ;;  %v995_v20 = vld [vmem:[%s1745_s0 + $0x10] sm:$0xff]  ;;  %v80_v22 = vsel %vm37_vm0, %v990_v19, 0.0  ;;  %v1016_v26 = vld [vmem:[%s1745_s0 + $0x78] sm:$0xff]  ;;  %v71_v28 = vsel %vm37_vm0, %v1011_v25, 0.0  ;;  %s894_s25 = smov 8  }
   0x9   :  { %v44_v23 = vsel %vm37_vm0, %v995_v20, 0.0  ;;  %v83_v29 = vsel %vm37_vm0, %v1016_v26, 0.0  ;;  %v1027_v30 = vld [vmem:[%s1745_s0 + $0x38] sm:$0xff]  ;;  %s893_s0 = smov 128  }
   0xa   :  { %v59_v31 = vsel %vm37_vm0, %v1027_v30, 0.0 }
   0xb   :  { %78 = vadd.xlane.f32.xlu2 %v77_v9  ;;  %75 = vadd.xlane.f32.xlu0 %v74_v10 }
   0xc   :  { %51 = vadd.xlane.f32.xlu1 %v50_v11 }
   0xd   :  { %v768_v33 = vpop.eup %767 }
   0xe   :  { %v87_v34 = vmul.f32 64.0, %v768_v33  ;;  %vm91_vm1 = vweird.f32 %v768_v33 }
  0x10   :  { %v88_v35 = vsub.f32 1.0, %v87_v34 }
  0x12   :  { %v89_v36 = vmul.f32 %v768_v33, %v88_v35 }
  0x13   :  { %69 = vadd.xlane.f32.xlu2 %v68_v15  ;;  %42 = vadd.xlane.f32.xlu0 %v41_v16 }
  0x14   :  { %54 = vadd.xlane.f32.xlu1 %v53_v17  ;;  %v90_v37 = vadd.f32 %v768_v33, %v89_v36 }
  0x16   :  { %v1031_v38 = vsel %vm91_vm1, %v768_v33, %v90_v37 }
  0x1b   :  { %57 = vadd.xlane.f32.xlu2 %v56_v21  ;;  %81 = vadd.xlane.f32.xlu0 %v80_v22 }
  0x1c   :  { %45 = vadd.xlane.f32.xlu1 %v44_v23 }
  0x23   :  { %48 = vadd.xlane.f32.xlu2 %v47_v27  ;;  %72 = vadd.xlane.f32.xlu0 %v71_v28 }
  0x24   :  { %84 = vadd.xlane.f32.xlu1 %v83_v29 }
  0x2b   :  { %60 = vadd.xlane.f32.xlu0 %v59_v31 }
  0x76   :  { %v67_v39 = vpop.xlane.xlu2 %66  ;;  %v64_v40 = vpop.xlane.xlu0 %63 }
  0x77   :  { %v101_v41 = vmul.f32 %v1031_v38, %v64_v40  ;;  %v40_v42 = vpop.xlane.xlu1 %39  ;;  %v102_v56 = vmul.f32 %v1031_v38, %v67_v39 }
  0x78   :  { %v93_v43 = vmul.f32 %v1031_v38, %v40_v42 }
  0x79   :  { %v1035_v44 = vsub.f32 %v29_v1, %v101_v41  ;;  %v1065_v63 = vsub.f32 %v928_v0, %v102_v56 }
  0x7a   :  { %v1037_v45 = vsub.f32 %v21_v2, %v93_v43 }
  0x7b   :  { %v133_v46 = vmul.f32 %v1035_v44, %v1035_v44  ;;  %v134_v11 = vmul.f32 %v1065_v63, %v1065_v63 }
  0x7c   :  { %v125_v47 = vmul.f32 %v1037_v45, %v1037_v45 }
  0x7d   :  { %v165_v48 = vsel %vm37_vm0, %v133_v46, 0.0  ;;  %v168_v21 = vsel %vm37_vm0, %v134_v11, 0.0 }
  0x7e   :  { %v79_v49 = vpop.xlane.xlu2 %78  ;;  %v76_v50 = vpop.xlane.xlu0 %75  ;;  %166 = vadd.xlane.f32.xlu1 %v165_v48  ;;  %v141_v51 = vsel %vm37_vm0, %v125_v47, 0.0 }
  0x7f   :  { %v106_v52 = vmul.f32 %v1031_v38, %v79_v49  ;;  %v105_v53 = vmul.f32 %v1031_v38, %v76_v50  ;;  %142 = vadd.xlane.f32.xlu0 %v141_v51  ;;  %v52_v54 = vpop.xlane.xlu1 %51 }
  0x80   :  { %v97_v55 = vmul.f32 %v1031_v38, %v52_v54 }
  0x81   :  { %v1050_v57 = vsub.f32 %v943_v6, %v106_v52  ;;  %v1053_v58 = vsub.f32 %v948_v7, %v105_v53 }
  0x82   :  { %v1056_v59 = vsub.f32 %v953_v8, %v97_v55 }
  0x83   :  { %v137_v60 = vmul.f32 %v1053_v58, %v1053_v58  ;;  %v138_v61 = vmul.f32 %v1050_v57, %v1050_v57 }
  0x84   :  { %v129_v62 = vmul.f32 %v1056_v59, %v1056_v59 }
  0x85   :  { %v177_v1 = vsel %vm37_vm0, %v137_v60, 0.0  ;;  %v180_v2 = vsel %vm37_vm0, %v138_v61, 0.0 }
  0x86   :  { %v70_v3 = vpop.xlane.xlu2 %69  ;;  %178 = vadd.xlane.f32.xlu2 %v177_v1  ;;  %v43_v4 = vpop.xlane.xlu0 %42  ;;  %v153_v5 = vsel %vm37_vm0, %v129_v62, 0.0  ;;  %v572_v62 = vld [vmem:[%s1749_s4 + $0x38] sm:$0xff]  ;;  %v570_v1 = vld [vmem:[%s1749_s4 + $0x28] sm:$0xff] }
  0x87   :  { %v103_v6 = vmul.f32 %v1031_v38, %v70_v3  ;;  %v94_v7 = vmul.f32 %v1031_v38, %v43_v4  ;;  %181 = vadd.xlane.f32.xlu0 %v180_v2  ;;  %154 = vadd.xlane.f32.xlu1 %v153_v5  ;;  %v55_v8 = vpop.xlane.xlu1 %54  ;;  %v1155_v2 = vld [vmem:[%s1746_s1] sm:$0xff] }
  0x88   :  { %v98_v9 = vmul.f32 %v1031_v38, %v55_v8  ;;  %629 = vmatpush.msra.mxu0 %v572_v62  ;;  %738 = vmatpush.msra.mxu2 %v572_v62  ;;  %v569_v3 = vld [vmem:[%s1749_s4 + $0x20] sm:$0xff]  ;;  %v453_v4 = vsub.f32 0.0, %v1155_v2 }
  0x89   :  { %v1074_v0 = vsub.f32 %v964_v12, %v103_v6  ;;  %v1077_v10 = vsub.f32 %v969_v13, %v94_v7  ;;  %737 = vmatpush.msra.mxu1 %v572_v62  ;;  %739 = vmatpush.msra.mxu3 %v572_v62  ;;  %v1164_v5 = vld [vmem:[%s1746_s1 + $0x40] sm:$0xff]  ;;  %v568_v6 = vld [vmem:[%s1749_s4 + $0x18] sm:$0xff]  ;;  %v567_v7 = vld [vmem:[%s1749_s4 + $0x10] sm:$0xff] }
  0x8a   :  { %v1086_v17 = vsub.f32 %v974_v14, %v98_v9  ;;  %v461_v8 = vsub.f32 0.0, %v1164_v5  ;;  %v469_v11 = vmul.f32 1.442695, %v453_v4  ;;  %v1223_v62 = vld [vmem:[%s1746_s1 + $0x8] sm:$0xff] }
  0x8b   :  { %v135_v15 = vmul.f32 %v1074_v0, %v1074_v0  ;;  %v126_v16 = vmul.f32 %v1077_v10, %v1077_v10 }
  0x8c   :  { %v130_v29 = vmul.f32 %v1086_v17, %v1086_v17  ;;  %769 = vpow2.f32 %v469_v11  ;;  %v454_v11 = vsub.f32 0.0, %v1223_v62 }
  0x8d   :  { %v171_v12 = vsel %vm37_vm0, %v135_v15, 0.0  ;;  %v144_v22 = vsel %vm37_vm0, %v126_v16, 0.0 }
  0x8e   :  { %v58_v13 = vpop.xlane.xlu2 %57  ;;  %169 = vadd.xlane.f32.xlu2 %v168_v21  ;;  %v82_v23 = vpop.xlane.xlu0 %81  ;;  %v156_v36 = vsel %vm37_vm0, %v130_v29, 0.0  ;;  %v566_v21 = vld [vmem:[%s1749_s4 + $0x8] sm:$0xff] }
  0x8f   :  { %v99_v27 = vmul.f32 %v1031_v38, %v58_v13  ;;  %v107_v28 = vmul.f32 %v1031_v38, %v82_v23  ;;  %172 = vadd.xlane.f32.xlu0 %v171_v12  ;;  %145 = vadd.xlane.f32.xlu1 %v144_v22  ;;  %v46_v14 = vpop.xlane.xlu1 %45  ;;  %v565_v13 = vld [vmem:[%s1749_s4] sm:$0xff]  ;;  %v485_v23 = vmul.f32 1.442695, %v461_v8 }
  0x90   :  { %v95_v31 = vmul.f32 %v1031_v38, %v46_v14 }
  0x91   :  { %v1097_v32 = vsub.f32 %v985_v18, %v99_v27  ;;  %v1100_v33 = vsub.f32 %v990_v19, %v107_v28  ;;  %v1189_v28 = vld [vmem:[%s1746_s1 + $0x20] sm:$0xff] }
  0x92   :  { %v1108_v37 = vsub.f32 %v995_v20, %v95_v31  ;;  %v457_v14 = vsub.f32 0.0, %v1189_v28  ;;  %v1196_v31 = vld [vmem:[%s1746_s1 + $0x60] sm:$0xff] }
  0x93   :  { %v131_v34 = vmul.f32 %v1097_v32, %v1097_v32  ;;  %v139_v35 = vmul.f32 %v1100_v33, %v1100_v33 }
  0x94   :  { %v127_v43 = vmul.f32 %v1108_v37, %v1108_v37 }
  0x95   :  { %v159_v39 = vsel %vm37_vm0, %v131_v34, 0.0  ;;  %v183_v40 = vsel %vm37_vm0, %v139_v35, 0.0 }
  0x96   :  { %v49_v18 = vpop.xlane.xlu2 %48  ;;  %v73_v41 = vpop.xlane.xlu0 %72  ;;  %157 = vadd.xlane.f32.xlu2 %v156_v36  ;;  %v147_v51 = vsel %vm37_vm0, %v127_v43, 0.0 }
  0x97   :  { %v96_v19 = vmul.f32 %v1031_v38, %v49_v18  ;;  %v104_v42 = vmul.f32 %v1031_v38, %v73_v41  ;;  %160 = vadd.xlane.f32.xlu0 %v159_v39  ;;  %184 = vadd.xlane.f32.xlu1 %v183_v40  ;;  %v85_v46 = vpop.xlane.xlu1 %84  ;;  %v770_v39 = vpop.eup %769 }
  0x98   :  { %v108_v20 = vmul.f32 %v1031_v38, %v85_v46 }
  0x99   :  { %v1118_v47 = vsub.f32 %v1006_v24, %v96_v19  ;;  %v1121_v48 = vsub.f32 %v1011_v25, %v104_v42  ;;  %v465_v42 = vsub.f32 0.0, %v1196_v31 }
  0x9a   :  { %v1129_v52 = vsub.f32 %v1016_v26, %v108_v20 }
  0x9b   :  { %v128_v49 = vmul.f32 %v1118_v47, %v1118_v47  ;;  %v136_v50 = vmul.f32 %v1121_v48, %v1121_v48 }
  0x9c   :  { %v140_v55 = vmul.f32 %v1129_v52, %v1129_v52 }
  0x9d   :  { %v150_v53 = vsel %vm37_vm0, %v128_v49, 0.0  ;;  %v174_v54 = vsel %vm37_vm0, %v136_v50, 0.0  ;;  %v477_v49 = vmul.f32 1.442695, %v457_v14  ;;  %v1247_v14 = vld [vmem:[%s1746_s1 + $0x48] sm:$0xff] }
  0x9e   :  { %v61_v24 = vpop.xlane.xlu0 %60  ;;  %148 = vadd.xlane.f32.xlu2 %v147_v51  ;;  %v186_v60 = vsel %vm37_vm0, %v140_v55, 0.0  ;;  %v493_v55 = vmul.f32 1.442695, %v465_v42 }
  0x9f   :  { %v100_v25 = vmul.f32 %v1031_v38, %v61_v24  ;;  %151 = vadd.xlane.f32.xlu0 %v150_v53  ;;  %175 = vadd.xlane.f32.xlu1 %v174_v54  ;;  %v501_v24 = vadd.f32 1.0, %v770_v39  ;;  %v1257_v39 = vld [vmem:[%s1746_s1 + $0x68] sm:$0xff] }
  0xa1   :  { %v1137_v56 = vsub.f32 %v1027_v30, %v100_v25  ;;  %v571_v30 = vld [vmem:[%s1749_s4 + $0x30] sm:$0xff] }
  0xa2   :  { %630 = vmatpush.msra.mxu0 %v571_v30  ;;  %741 = vmatpush.msra.mxu2 %v571_v30 }
  0xa3   :  { %v132_v26 = vmul.f32 %v1137_v56, %v1137_v56  ;;  %740 = vmatpush.msra.mxu1 %v571_v30  ;;  %742 = vmatpush.msra.mxu3 %v571_v30 }
  0xa4   :  { %631 = vmatpush.msra.mxu0 %v570_v1  ;;  %744 = vmatpush.msra.mxu2 %v570_v1 }
  0xa5   :  { %v162_v61 = vsel %vm37_vm0, %v132_v26, 0.0  ;;  %743 = vmatpush.msra.mxu1 %v570_v1  ;;  %745 = vmatpush.msra.mxu3 %v570_v1 }
  0xa6   :  { %187 = vadd.xlane.f32.xlu2 %v186_v60  ;;  %632 = vmatpush.msra.mxu0 %v569_v3 }
  0xa7   :  { %163 = vadd.xlane.f32.xlu1 %v162_v61  ;;  %747 = vmatpush.msra.mxu2 %v569_v3 }
  0xa8   :  { %746 = vmatpush.msra.mxu1 %v569_v3  ;;  %748 = vmatpush.msra.mxu3 %v569_v3 }
  0xa9   :  { %633 = vmatpush.msra.mxu0 %v568_v6  ;;  %750 = vmatpush.msra.mxu2 %v568_v6 }
  0xaa   :  { %749 = vmatpush.msra.mxu1 %v568_v6  ;;  %751 = vmatpush.msra.mxu3 %v568_v6 }
  0xab   :  { %634 = vmatpush.msra.mxu0 %v567_v7  ;;  %753 = vmatpush.msra.mxu2 %v567_v7 }
  0xac   :  { %752 = vmatpush.msra.mxu1 %v567_v7  ;;  %754 = vmatpush.msra.mxu3 %v567_v7 }
  0xad   :  { %635 = vmatpush.msra.mxu0 %v566_v21  ;;  %756 = vmatpush.msra.mxu2 %v566_v21 }
  0xae   :  { %755 = vmatpush.msra.mxu1 %v566_v21  ;;  %757 = vmatpush.msra.mxu3 %v566_v21 }
  0xaf   :  { %636 = vmatpush.msra.mxu0 %v565_v13  ;;  %759 = vmatpush.msra.mxu2 %v565_v13 }
  0xb0   :  { %758 = vmatpush.msra.mxu1 %v565_v13  ;;  %760 = vmatpush.msra.mxu3 %v565_v13 }
  0xf1   :  { %v167_v9 = vpop.xlane.xlu1 %166 }
  0xf2   :  { %v143_v15 = vpop.xlane.xlu0 %142  ;;  %v197_v16 = vmul.f32 %v167_v9, %v1031_v38 }
  0xf3   :  { %v189_v12 = vmul.f32 %v143_v15, %v1031_v38 }
  0xf4   :  { %v1178_v22 = vadd.f32 1e-05, %v197_v16 }
  0xf5   :  { %v1183_v27 = vadd.f32 1e-05, %v189_v12 }
  0xf6   :  { %771 = vrsqrt.f32 %v1178_v22  ;;  %vm307_vm2 = vweird.f32 %v1178_v22 }
  0xf7   :  { %773 = vrsqrt.f32 %v1183_v27  ;;  %vm227_vm3 = vweird.f32 %v1183_v27 }
  0xf8   :  { %775 = vpow2.f32 %v485_v23 }
  0xf9   :  { %v179_v29 = vpop.xlane.xlu2 %178 }
  0xfa   :  { %v201_v34 = vmul.f32 %v179_v29, %v1031_v38  ;;  %v182_v35 = vpop.xlane.xlu0 %181  ;;  %v155_v36 = vpop.xlane.xlu1 %154 }
  0xfb   :  { %v202_v40 = vmul.f32 %v182_v35, %v1031_v38  ;;  %v193_v18 = vmul.f32 %v155_v36, %v1031_v38  ;;  %v471_v36 = vmul.f32 1.442695, %v454_v11 }
  0xfc   :  { %v1201_v41 = vpop.eup %771  ;;  %v1203_v19 = vadd.f32 1e-05, %v201_v34 }
  0xfd   :  { %v1206_v43 = vpop.eup %773  ;;  %v302_v46 = vmul.f32 %v1201_v41, %v1178_v22  ;;  %v1210_v20 = vadd.f32 1e-05, %v193_v18  ;;  %v1215_v53 = vadd.f32 1e-05, %v202_v40  ;;  %vm308_vm4 = vweird.f32 %v1201_v41 }
  0xfe   :  { %v776_v50 = vpop.eup %775  ;;  %v222_v51 = vmul.f32 %v1206_v43, %v1183_v27  ;;  %777 = vrsqrt.f32 %v1203_v19  ;;  %vm228_vm5 = vweird.f32 %v1206_v43  ;;  %vm1271_vm6 = vmor %vm307_vm2, %vm308_vm4  ;;  %vm347_vm8 = vweird.f32 %v1203_v19 }
  0xff   :  { %v303_v54 = vmul.f32 %v1201_v41, %v302_v46  ;;  %779 = vrsqrt.f32 %v1210_v20  ;;  %v509_v61 = vadd.f32 1.0, %v776_v50  ;;  %vm1286_vm7 = vmor %vm227_vm3, %vm228_vm5  ;;  %vm357_vm9 = vweird.f32 %v1215_v53 }
 0x100   :  { %v223_v25 = vmul.f32 %v1206_v43, %v222_v51  ;;  %781 = vpow2.f32 %v477_v49  ;;  %vm267_vm10 = vweird.f32 %v1210_v20 }
 0x101   :  { %v304_v26 = vmul.f32 0.5, %v303_v54  ;;  %v170_v60 = vpop.xlane.xlu2 %169  ;;  %783 = vrsqrt.f32 %v1215_v53 }
 0x102   :  { %v224_v30 = vmul.f32 0.5, %v223_v25  ;;  %v198_v1 = vmul.f32 %v170_v60, %v1031_v38  ;;  %v173_v3 = vpop.xlane.xlu0 %172  ;;  %v146_v4 = vpop.xlane.xlu1 %145  ;;  %785 = vrcp.f32 %v501_v24 }
 0x103   :  { %v199_v6 = vmul.f32 %v173_v3, %v1031_v38  ;;  %v305_v8 = vsub.f32 1.5, %v304_v26  ;;  %787 = vpow2.f32 %v493_v55  ;;  %v190_v12 = vmul.f32 %v146_v4, %v1031_v38 }
 0x104   :  { %v1228_v7 = vpop.eup %777  ;;  %v1230_v9 = vadd.f32 1e-05, %v198_v1  ;;  %v225_v15 = vsub.f32 1.5, %v224_v30  ;;  %789 = vrcp.f32 %v509_v61  ;;  %v462_v55 = vsub.f32 0.0, %v1247_v14 }
 0x105   :  { %v342_v16 = vmul.f32 %v1228_v7, %v1203_v19  ;;  %v1235_v21 = vpop.eup %779  ;;  %v1242_v29 = vadd.f32 1e-05, %v199_v6  ;;  %v306_v35 = vmul.f32 %v1201_v41, %v305_v8  ;;  %v1263_v51 = vadd.f32 1e-05, %v190_v12 }
 0x106   :  { %791 = vrsqrt.f32 %v1230_v9  ;;  %v782_v13 = vpop.eup %781  ;;  %v262_v23 = vmul.f32 %v1235_v21, %v1210_v20  ;;  %v226_v18 = vmul.f32 %v1206_v43, %v225_v15  ;;  %v466_v3 = vsub.f32 0.0, %v1257_v39 }
 0x107   :  { %v1249_v34 = vpop.eup %783  ;;  %v343_v42 = vmul.f32 %v1228_v7, %v342_v16  ;;  %v505_v25 = vadd.f32 1.0, %v782_v13  ;;  %793 = vrsqrt.f32 %v1242_v29  ;;  %v310_v6 = vsel %vm1271_vm6, %v1201_v41, %v306_v35 }
 0x108   :  { %v786_v40 = vpop.eup %785  ;;  %v263_v46 = vmul.f32 %v1235_v21, %v262_v23  ;;  %v352_v61 = vmul.f32 %v1249_v34, %v1215_v53  ;;  %795 = vrsqrt.f32 %v1263_v51  ;;  %v230_v15 = vsel %vm1286_vm7, %v1206_v43, %v226_v18 }
 0x109   :  { %v158_v49 = vpop.xlane.xlu2 %157  ;;  %v788_v50 = vpop.eup %787  ;;  %v344_v16 = vmul.f32 0.5, %v343_v42  ;;  %797 = vpow2.f32 %v471_v36  ;;  %v487_v23 = vmul.f32 1.442695, %v462_v55  ;;  %v389_v41 = vmul.f32 %v310_v6, %v1035_v44  ;;  %v1313_v42 = vld [vmem:[%s1747_s2] ss:$0 sm:$0xff] }
 0x10a   :  { %v161_v54 = vpop.xlane.xlu0 %160  ;;  %v194_v24 = vmul.f32 %v158_v49, %v1031_v38  ;;  %v790_v26 = vpop.eup %789  ;;  %v264_v8 = vmul.f32 0.5, %v263_v46  ;;  %v513_v12 = vadd.f32 1.0, %v788_v50  ;;  %799 = vrcp.f32 %v505_v25 }
 0x10b   :  { %v195_v30 = vmul.f32 %v161_v54, %v1031_v38  ;;  %v185_v1 = vpop.xlane.xlu1 %184  ;;  %v533_v46 = vmul.f32 %v786_v40, %v1155_v2  ;;  %v541_v49 = vmul.f32 %v790_v26, %v1164_v5  ;;  %v381_v43 = vmul.f32 %v230_v15, %v1037_v45  ;;  %v1327_v54 = vld [vmem:[%s1748_s3] ss:$0 sm:$0xff] }
 0x10c   :  { %v1280_v4 = vpop.eup %791  ;;  %v1294_v11 = vadd.f32 1e-05, %v194_v24  ;;  %v203_v13 = vmul.f32 %v185_v1, %v1031_v38  ;;  %v353_v18 = vmul.f32 %v1249_v34, %v352_v61  ;;  %v265_v36 = vsub.f32 1.5, %v264_v8 }
 0x10d   :  { %v312_v27 = vmul.f32 %v1280_v4, %v1230_v9  ;;  %v1303_v35 = vadd.f32 1e-05, %v195_v30  ;;  %v1315_v50 = vpop.eup %793  ;;  %v345_v44 = vsub.f32 1.5, %v344_v16  ;;  %v495_v2 = vmul.f32 1.442695, %v466_v3 }
 0x10e   :  { %801 = vrsqrt.f32 %v1294_v11  ;;  %v1318_v5 = vpop.eup %795  ;;  %v1322_v40 = vadd.f32 1e-05, %v203_v13  ;;  %vm268_vm11 = vweird.f32 %v1235_v21  ;;  %v354_v60 = vmul.f32 0.5, %v353_v18 }
 0x10f   :  { %803 = vrcp.f32 %v513_v12  ;;  %v313_v45 = vmul.f32 %v1280_v4, %v312_v27  ;;  %v798_v24 = vpop.eup %797  ;;  %v232_v25 = vmul.f32 %v1318_v5, %v1263_v51  ;;  %v266_v61 = vmul.f32 %v1235_v21, %v265_v36  ;;  %vm1351_vm13 = vmor %vm267_vm10, %vm268_vm11 }
 0x110   :  { %805 = vpow2.f32 %v487_v23  ;;  %v800_v26 = vpop.eup %799  ;;  %v401_v30 = vmul.f32 %v1313_v42, %v381_v43  ;;  %v409_v1 = vmul.f32 %v1313_v42, %v389_v41  ;;  %v346_v3 = vmul.f32 %v1228_v7, %v345_v44 }
 0x111   :  { %807 = vrsqrt.f32 %v1303_v35  ;;  %v149_v55 = vpop.xlane.xlu2 %148  ;;  %vm348_vm12 = vweird.f32 %v1228_v7  ;;  %v322_v22 = vmul.f32 %v1315_v50, %v1242_v29  ;;  %v233_v6 = vmul.f32 %v1318_v5, %v232_v25 }
 0x112   :  { %v314_v16 = vmul.f32 0.5, %v313_v45  ;;  %809 = vrsqrt.f32 %v1322_v40  ;;  %v421_v12 = vadd.f32 %v1327_v54, %v401_v30  ;;  %v429_v27 = vadd.f32 %v1327_v54, %v409_v1  ;;  %v152_v43 = vpop.xlane.xlu0 %151  ;;  %vm1364_vm14 = vmor %vm347_vm8, %vm348_vm12 }
 0x113   :  { %v176_v8 = vpop.xlane.xlu1 %175  ;;  %v234_v41 = vmul.f32 0.5, %v233_v6  ;;  %v1356_v18 = vmul.f32 %v800_v26, %v1189_v28  ;;  %v502_v36 = vadd.f32 1.0, %v798_v24  ;;  %811 = vpow2.f32 %v495_v2 }
 0x114   :  { %v1342_v15 = vpop.eup %801  ;;  %v355_v20 = vsub.f32 1.5, %v354_v60  ;;  %vm358_vm15 = vweird.f32 %v1249_v34  ;;  %v270_v28 = vsel %vm1351_vm13, %v1235_v21, %v266_v61  ;;  %v191_v24 = vmul.f32 %v149_v55, %v1031_v38 }
 0x115   :  { %v804_v13 = vpop.eup %803  ;;  %v350_v25 = vsel %vm1364_vm14, %v1228_v7, %v346_v3  ;;  %v323_v19 = vmul.f32 %v1315_v50, %v322_v22  ;;  %v235_v26 = vsub.f32 1.5, %v234_v41  ;;  %v272_v60 = vmul.f32 %v1342_v15, %v1294_v11  ;;  %vm1402_vm3 = vmor %vm357_vm9, %vm358_vm15 }
 0x116   :  { %v1358_v44 = vpop.eup %805  ;;  %v315_v30 = vsub.f32 1.5, %v314_v16  ;;  %v549_v1 = vmul.f32 %v533_v46, %v421_v12  ;;  %v557_v6 = vmul.f32 %v541_v49, %v429_v27  ;;  %v192_v23 = vmul.f32 %v152_v43, %v1031_v38 }
 0x117   :  { %v1373_v2 = vpop.eup %807  ;;  %v385_v21 = vmul.f32 %v270_v28, %v1056_v59  ;;  %v236_v55 = vmul.f32 %v1318_v5, %v235_v26  ;;  %vm237_vm1 = vweird.f32 %v1263_v51  ;;  %vm238_vm2 = vweird.f32 %v1318_v5 }
 0x118   :  { %v1386_v7 = vpop.eup %809  ;;  %v393_v61 = vmul.f32 %v350_v25, %v1053_v58  ;;  %v282_v3 = vmul.f32 %v1373_v2, %v1303_v35  ;;  %721 = vmatmul.msk.f32.vlgmr.msra.gmra.mxu0 %vm37_vm0, %v549_v1  ;;  %729 = vmatmul.msk.f32.vlgmr.msra.gmra.mxu2 %vm37_vm0, %v557_v6  ;;  %v1393_v46 = vadd.f32 1e-05, %v191_v24  ;;  %813 = vrcp.f32 %v502_v36  ;;  %vm1414_vm5 = vmor %vm237_vm1, %vm238_vm2 }
 0x119   :  { %v1395_v59 = vpop.eup %811  ;;  %v356_v49 = vmul.f32 %v1249_v34, %v355_v20  ;;  %vm318_vm4 = vweird.f32 %v1280_v4  ;;  %v273_v22 = vmul.f32 %v1342_v15, %v272_v60  ;;  %v200_v16 = vmul.f32 %v176_v8, %v1031_v38  ;;  %v188_v12 = vpop.xlane.xlu2 %187 }
 0x11a   :  { %v316_v27 = vmul.f32 %v1280_v4, %v315_v30  ;;  %v324_v41 = vmul.f32 0.5, %v323_v19  ;;  %v1418_v43 = vadd.f32 1e-05, %v192_v23  ;;  %815 = vrsqrt.f32 %v1393_v46 }
 0x11b   :  { %v240_v8 = vsel %vm1414_vm5, %v1318_v5, %v236_v55  ;;  %v362_v36 = vmul.f32 %v1386_v7, %v1322_v40  ;;  %v1426_v45 = vadd.f32 1e-05, %v200_v16  ;;  %v405_v20 = vmul.f32 %v1313_v42, %v385_v21  ;;  %v164_v51 = vpop.xlane.xlu1 %163 }
 0x11c   :  { %v283_v28 = vmul.f32 %v1373_v2, %v282_v3  ;;  %v413_v24 = vmul.f32 %v1313_v42, %v393_v61  ;;  %v545_v25 = vmul.f32 %v804_v13, %v1196_v31  ;;  %v204_v19 = vmul.f32 %v188_v12, %v1031_v38 }
 0x11d   :  { %v360_v5 = vsel %vm1402_vm3, %v1249_v34, %v356_v49  ;;  %vm317_vm6 = vweird.f32 %v1230_v9  ;;  %v274_v26 = vmul.f32 0.5, %v273_v22  ;;  %v425_v60 = vadd.f32 %v1327_v54, %v405_v20 }
 0x11e   :  { %v814_v30 = vpop.eup %813  ;;  %vm1440_vm7 = vmor %vm317_vm6, %vm318_vm4  ;;  %v382_v31 = vmul.f32 %v240_v8, %v1077_v10  ;;  %817 = vrsqrt.f32 %v1426_v45  ;;  %v433_v13 = vadd.f32 %v1327_v54, %v413_v24  ;;  %v196_v34 = vmul.f32 %v164_v51, %v1031_v38 }
 0x11f   :  { %v320_v9 = vsel %vm1440_vm7, %v1280_v4, %v316_v27  ;;  %v325_v6 = vsub.f32 1.5, %v324_v41  ;;  %v363_v23 = vmul.f32 %v1386_v7, %v362_v36  ;;  %819 = vrsqrt.f32 %v1418_v43 }
 0x120   :  { %v1453_v21 = vpop.eup %815  ;;  %v284_v55 = vmul.f32 0.5, %v283_v28  ;;  %v553_v10 = vmul.f32 %v1356_v18, %v425_v60  ;;  %v561_v61 = vmul.f32 %v545_v25, %v433_v13  ;;  %v1456_v3 = vadd.f32 1e-05, %v204_v19 }
 0x121   :  { %vm327_vm8 = vweird.f32 %v1242_v29  ;;  %vm328_vm9 = vweird.f32 %v1315_v50  ;;  %v275_v38 = vsub.f32 1.5, %v274_v26  ;;  %v242_v4 = vmul.f32 %v1453_v21, %v1393_v46 }
 0x122   :  { %v394_v49 = vmul.f32 %v360_v5, %v1050_v57  ;;  %vm277_vm10 = vweird.f32 %v1294_v11  ;;  %725 = vmatmul.msk.f32.vlgmr.msra.gmra.mxu1 %vm37_vm0, %v553_v10  ;;  %733 = vmatmul.msk.f32.vlgmr.msra.gmra.mxu3 %vm37_vm0, %v561_v61  ;;  %v1466_v18 = vadd.f32 1e-05, %v196_v34  ;;  %v402_v58 = vmul.f32 %v1313_v42, %v382_v31  ;;  %vm1476_vm11 = vmor %vm327_vm8, %vm328_vm9 }
 0x123   :  { %v390_v22 = vmul.f32 %v320_v9, %v1065_v63  ;;  %v326_v16 = vmul.f32 %v1315_v50, %v325_v6  ;;  %v364_v12 = vmul.f32 0.5, %v363_v23  ;;  %v510_v27 = vadd.f32 1.0, %v1358_v44  ;;  %v1545_v6 = vld [vmem:[%s1746_s1 + $0x70] sm:$0xff] }
 0x124   :  { %v1472_v41 = vpop.eup %817  ;;  %v285_v53 = vsub.f32 1.5, %v284_v55  ;;  %vm278_vm12 = vweird.f32 %v1342_v15  ;;  %821 = vrsqrt.f32 %v1456_v3  ;;  %v534_v63 = vmul.f32 %v814_v30, %v1223_v62  ;;  %v1495_v62 = vld [vmem:[%s1746_s1 + $0x28] sm:$0xff] }
 0x125   :  { %v1483_v8 = vpop.eup %819  ;;  %v276_v36 = vmul.f32 %v1342_v15, %v275_v38  ;;  %v243_v44 = vmul.f32 %v1453_v21, %v242_v4  ;;  %823 = vrsqrt.f32 %v1466_v18  ;;  %v422_v29 = vadd.f32 %v1327_v54, %v402_v58  ;;  %vm1508_vm15 = vmor %vm277_vm10, %vm278_vm12 }
 0x126   :  { %vm287_vm13 = vweird.f32 %v1303_v35  ;;  %vm288_vm14 = vweird.f32 %v1373_v2  ;;  %825 = vrcp.f32 %v510_v27  ;;  %v514_v20 = vadd.f32 1.0, %v1395_v59  ;;  %v1572_v27 = vld [vmem:[%s1746_s1 + $0x10] sm:$0xff] }
 0x127   :  { %v330_v51 = vsel %vm1476_vm11, %v1315_v50, %v326_v16  ;;  %v365_v28 = vsub.f32 1.5, %v364_v12  ;;  %v332_v24 = vmul.f32 %v1472_v41, %v1426_v45  ;;  %v410_v35 = vmul.f32 %v1313_v42, %v390_v22  ;;  %vm1514_vm1 = vmor %vm287_vm13, %vm288_vm14 }
 0x128   :  { %v286_v25 = vmul.f32 %v1373_v2, %v285_v53  ;;  %v252_v19 = vmul.f32 %v1483_v8, %v1418_v43  ;;  %v550_v50 = vmul.f32 %v534_v63, %v422_v29  ;;  %827 = vrcp.f32 %v514_v20 }
 0x129   :  { %v280_v26 = vsel %vm1508_vm15, %v1342_v15, %v276_v36  ;;  %v244_v60 = vmul.f32 0.5, %v243_v44  ;;  %v414_v11 = vmul.f32 %v1313_v42, %v394_v49  ;;  %v458_v30 = vsub.f32 0.0, %v1495_v62  ;;  %v1534_v15 = vld [vmem:[%s1746_s1 + $0x50] sm:$0xff] }
 0x12a   :  { %v1523_v1 = vpop.eup %821  ;;  %v1526_v31 = vmul.f32 %v330_v51, %v1074_v0  ;;  %vm367_vm2 = vweird.f32 %v1322_v40  ;;  %vm368_vm3 = vweird.f32 %v1386_v7  ;;  %722 = vmatmul.msk.f32.gmra.mxu0 %vm37_vm0, %v550_v50  ;;  %v366_v34 = vmul.f32 %v1386_v7, %v365_v28 }
 0x12b   :  { %v1536_v13 = vpop.eup %823  ;;  %vm247_vm4 = vweird.f32 %v1393_v46  ;;  %v333_v0 = vmul.f32 %v1472_v41, %v332_v24  ;;  %v430_v9 = vadd.f32 %v1327_v54, %v410_v35  ;;  %v290_v55 = vsel %vm1514_vm1, %v1373_v2, %v286_v25  ;;  %vm1559_vm5 = vmor %vm367_vm2, %vm368_vm3  ;;  %v1620_v46 = vld [vmem:[%s1746_s1 + $0x38] sm:$0xff] }
 0x12c   :  { %v826_v23 = vpop.eup %825  ;;  %v386_v10 = vmul.f32 %v280_v26, %v1086_v17  ;;  %v253_v61 = vmul.f32 %v1483_v8, %v252_v19  ;;  %v479_v38 = vmul.f32 1.442695, %v458_v30  ;;  %v245_v4 = vsub.f32 1.5, %v244_v60 }
 0x12d   :  { %v542_v49 = vmul.f32 %v826_v23, %v1247_v14  ;;  %v434_v58 = vadd.f32 %v1327_v54, %v414_v11  ;;  %v463_v22 = vsub.f32 0.0, %v1534_v15  ;;  %vm257_vm6 = vweird.f32 %v1418_v43  ;;  %v1615_v11 = vld [vmem:[%s1746_s1 + $0x18] sm:$0xff] }
 0x12e   :  { %v828_v16 = vpop.eup %827  ;;  %v372_v17 = vmul.f32 %v1523_v1, %v1456_v3  ;;  %v292_v14 = vmul.f32 %v1536_v13, %v1466_v18  ;;  %829 = vpow2.f32 %v479_v38  ;;  %v467_v2 = vsub.f32 0.0, %v1545_v6 }
 0x12f   :  { %v1575_v40 = vmul.f32 %v290_v55, %v1097_v32  ;;  %v370_v57 = vsel %vm1559_vm5, %v1386_v7, %v366_v34  ;;  %v334_v53 = vmul.f32 0.5, %v333_v0  ;;  %vm337_vm7 = vweird.f32 %v1426_v45  ;;  %v1590_v7 = vld [vmem:[%s1746_s1 + $0x30] sm:$0xff] }
 0x130   :  { %v558_v63 = vmul.f32 %v542_v49, %v430_v9  ;;  %v254_v36 = vmul.f32 0.5, %v253_v61  ;;  %v546_v44 = vmul.f32 %v828_v16, %v1257_v39  ;;  %v489_v29 = vmul.f32 1.442695, %v463_v22  ;;  %v1595_v39 = vld [vmem:[%s1746_s1 + $0x58] sm:$0xff] }
 0x131   :  { %v497_v20 = vmul.f32 1.442695, %v467_v2  ;;  %vm258_vm8 = vweird.f32 %v1483_v8  ;;  %v246_v51 = vmul.f32 %v1453_v21, %v245_v4  ;;  %vm248_vm9 = vweird.f32 %v1453_v21  ;;  %v1629_v9 = vld [vmem:[%s1746_s1 + $0x78] sm:$0xff]  ;;  %s892_s1 = smov [#allocation2]  }
 0x132   :  { %730 = vmatmul.msk.f32.gmra.mxu2 %vm37_vm0, %v558_v63  ;;  %v455_v32 = vsub.f32 0.0, %v1572_v27  ;;  %v373_v28 = vmul.f32 %v1523_v1, %v372_v17  ;;  %v293_v24 = vmul.f32 %v1536_v13, %v292_v14  ;;  %v562_v35 = vmul.f32 %v546_v44, %v434_v58  ;;  %vm1604_vm10 = vmor %vm247_vm4, %vm248_vm9  ;;  %s707_s21 = sshll.u32 %s892_s1, 4  ;;  %s708_s21 = int_to_ptr.vmem [resolvable:$true] %s707_s21 }
 0x133   :  { %831 = vpow2.f32 %v489_v29  ;;  %v395_v25 = vmul.f32 %v370_v57, %v1100_v33  ;;  %v335_v59 = vsub.f32 1.5, %v334_v53  ;;  %v255_v5 = vsub.f32 1.5, %v254_v36  ;;  %vm1641_vm13 = vmor %vm257_vm6, %vm258_vm8 }
 0x134   :  { %833 = vpow2.f32 %v497_v20  ;;  %v473_v19 = vmul.f32 1.442695, %v455_v32  ;;  %v830_v50 = vpop.eup %829  ;;  %vm338_vm11 = vweird.f32 %v1472_v41  ;;  %734 = vmatmul.msk.f32.gmra.mxu3 %vm37_vm0, %v562_v35  ;;  %v459_v60 = vsub.f32 0.0, %v1590_v7 }
 0x135   :  { %v464_v33 = vsub.f32 0.0, %v1595_v39  ;;  %v250_v30 = vsel %vm1604_vm10, %v1453_v21, %v246_v51  ;;  %v406_v34 = vmul.f32 %v1313_v42, %v386_v10  ;;  %v506_v0 = vadd.f32 1.0, %v830_v50  ;;  %vm1651_vm15 = vmor %vm337_vm7, %vm338_vm11 }
 0x136   :  { %835 = vpow2.f32 %v473_v19  ;;  %v374_v23 = vmul.f32 0.5, %v373_v28  ;;  %v294_v55 = vmul.f32 0.5, %v293_v24  ;;  %v481_v61 = vmul.f32 1.442695, %v459_v60 }
 0x137   :  { %v491_v38 = vmul.f32 1.442695, %v464_v33  ;;  %v336_v4 = vmul.f32 %v1472_v41, %v335_v59  ;;  %837 = vrcp.f32 %v506_v0  ;;  %v456_v49 = vsub.f32 0.0, %v1615_v11 }
 0x138   :  { %v460_v21 = vsub.f32 0.0, %v1620_v46  ;;  %v256_v10 = vmul.f32 %v1483_v8, %v255_v5  ;;  %vm297_vm12 = vweird.f32 %v1466_v18  ;;  %839 = vpow2.f32 %v481_v61 }
 0x139   :  { %v832_v58 = vpop.eup %831  ;;  %v468_v22 = vsub.f32 0.0, %v1629_v9  ;;  %vm378_vm14 = vweird.f32 %v1523_v1  ;;  %841 = vpow2.f32 %v491_v38  ;;  %v475_v14 = vmul.f32 1.442695, %v456_v49 }
 0x13a   :  { %v834_v16 = vpop.eup %833  ;;  %v511_v17 = vadd.f32 1.0, %v832_v58  ;;  %v383_v2 = vmul.f32 %v250_v30, %v1108_v37  ;;  %v295_v43 = vsub.f32 1.5, %v294_v55  ;;  %v426_v53 = vadd.f32 %v1327_v54, %v406_v34 }
 0x13b   :  { %v515_v63 = vadd.f32 1.0, %v834_v16  ;;  %v340_v44 = vsel %vm1651_vm15, %v1472_v41, %v336_v4  ;;  %v375_v29 = vsub.f32 1.5, %v374_v23  ;;  %v483_v37 = vmul.f32 1.442695, %v460_v21 }
 0x13c   :  { %v836_v36 = vpop.eup %835  ;;  %843 = vrcp.f32 %v511_v17  ;;  %v411_v20 = vmul.f32 %v1313_v42, %v1526_v31  ;;  %v499_v51 = vmul.f32 1.442695, %v468_v22  ;;  %v260_v28 = vsel %vm1641_vm13, %v1483_v8, %v256_v10 }
 0x13d   :  { %845 = vrcp.f32 %v515_v63  ;;  %v503_v45 = vadd.f32 1.0, %v836_v36  ;;  %v838_v32 = vpop.eup %837  ;;  %vm298_vm1 = vweird.f32 %v1536_v13  ;;  %v415_v24 = vmul.f32 %v1313_v42, %v395_v25 }
 0x13e   :  { %847 = vpow2.f32 %v475_v14  ;;  %v840_v41 = vpop.eup %839  ;;  %v392_v35 = vmul.f32 %v340_v44, %v1121_v48  ;;  %v296_v59 = vmul.f32 %v1536_v13, %v295_v43  ;;  %v538_v31 = vmul.f32 %v838_v32, %v1495_v62  ;;  %vm1678_vm3 = vmor %vm297_vm12, %vm298_vm1 }
 0x13f   :  { %849 = vrcp.f32 %v503_v45  ;;  %v842_v19 = vpop.eup %841  ;;  %v376_v50 = vmul.f32 %v1523_v1, %v375_v29  ;;  %v403_v5 = vmul.f32 %v1313_v42, %v383_v2  ;;  %v507_v26 = vadd.f32 1.0, %v840_v41 }
 0x140   :  { %851 = vpow2.f32 %v483_v37  ;;  %v554_v8 = vmul.f32 %v538_v31, %v426_v53  ;;  %v431_v60 = vadd.f32 %v1327_v54, %v411_v20  ;;  %v512_v25 = vadd.f32 1.0, %v842_v19 }
 0x141   :  { %853 = vpow2.f32 %v499_v51  ;;  %v384_v48 = vmul.f32 %v260_v28, %v1118_v47  ;;  %vm377_vm2 = vweird.f32 %v1456_v3  ;;  %v435_v30 = vadd.f32 %v1327_v54, %v415_v24 }
 0x142   :  { %v844_v33 = vpop.eup %843  ;;  %855 = vrcp.f32 %v507_v26  ;;  %vm1685_vm4 = vmor %vm377_vm2, %vm378_vm14  ;;  %v300_v47 = vsel %vm1678_vm3, %v1536_v13, %v296_v59  ;;  %726 = vmatmul.msk.f32.gmra.mxu1 %vm37_vm0, %v554_v8  ;;  %v407_v18 = vmul.f32 %v1313_v42, %v1575_v40  ;;  %v423_v38 = vadd.f32 %v1327_v54, %v403_v5 }
 0x143   :  { %v846_v34 = vpop.eup %845  ;;  %v543_v3 = vmul.f32 %v844_v33, %v1534_v15  ;;  %857 = vrcp.f32 %v512_v25  ;;  %v380_v55 = vsel %vm1685_vm4, %v1523_v1, %v376_v50  ;;  %v412_v4 = vmul.f32 %v1313_v42, %v392_v35 }
 0x144   :  { %v848_v23 = vpop.eup %847  ;;  %v547_v61 = vmul.f32 %v846_v34, %v1545_v6  ;;  %v388_v15 = vmul.f32 %v300_v47, %v1137_v56  ;;  %v396_v16 = vmul.f32 %v380_v55, %v1129_v52  ;;  %v427_v1 = vadd.f32 %v1327_v54, %v407_v18 }
 0x145   :  { %v850_v13 = vpop.eup %849  ;;  %v559_v49 = vmul.f32 %v543_v3, %v431_v60  ;;  %v504_v21 = vadd.f32 1.0, %v848_v23  ;;  %v432_v14 = vadd.f32 %v1327_v54, %v412_v4  ;;  %v404_v56 = vmul.f32 %v1313_v42, %v384_v48 }
 0x146   :  { %v852_v58 = vpop.eup %851  ;;  %v563_v10 = vmul.f32 %v547_v61, %v435_v30  ;;  %v535_v40 = vmul.f32 %v850_v13, %v1572_v27  ;;  %v408_v43 = vmul.f32 %v1313_v42, %v388_v15  ;;  %v416_v63 = vmul.f32 %v1313_v42, %v396_v16 }
 0x147   :  { %v854_v22 = vpop.eup %853  ;;  %731 = vmatmul.msk.f32.gmra.mxu2 %vm37_vm0, %v559_v49  ;;  %859 = vrcp.f32 %v504_v21  ;;  %v508_v6 = vadd.f32 1.0, %v852_v58  ;;  %v424_v44 = vadd.f32 %v1327_v54, %v404_v56  ;;  %vm686_vm5 = vcmask 261120  }
 0x148   :  { %v856_v12 = vpop.eup %855  ;;  %735 = vmatmul.msk.f32.gmra.mxu3 %vm37_vm0, %v563_v10  ;;  %v551_v17 = vmul.f32 %v535_v40, %v423_v38  ;;  %v516_v2 = vadd.f32 1.0, %v854_v22 }
 0x149   :  { %v858_v57 = vpop.eup %857  ;;  %v539_v27 = vmul.f32 %v856_v12, %v1590_v7  ;;  %861 = vrcp.f32 %v508_v6  ;;  %v428_v7 = vadd.f32 %v1327_v54, %v408_v43 }
 0x14a   :  { %723 = vmatmul.msk.f32.gmra.mxu0 %vm37_vm0, %v551_v17  ;;  %v544_v52 = vmul.f32 %v858_v57, %v1595_v39  ;;  %863 = vrcp.f32 %v516_v2  ;;  %v436_v39 = vadd.f32 %v1327_v54, %v416_v63 }
 0x14b   :  { %v555_v53 = vmul.f32 %v539_v27, %v427_v1 }
 0x14c   :  { %v560_v36 = vmul.f32 %v544_v52, %v432_v14 }
 0x14d   :  { %v860_v29 = vpop.eup %859  ;;  %727 = vmatmul.msk.f32.gmra.mxu1 %vm37_vm0, %v555_v53 }
 0x14e   :  { %v536_v37 = vmul.f32 %v860_v29, %v1615_v11 }
 0x14f   :  { %v862_v20 = vpop.eup %861  ;;  %732 = vmatmul.msk.f32.gmra.mxu2 %vm37_vm0, %v560_v36 }
 0x150   :  { %v864_v45 = vpop.eup %863  ;;  %v552_v51 = vmul.f32 %v536_v37, %v424_v44  ;;  %v540_v32 = vmul.f32 %v862_v20, %v1620_v46 }
 0x151   :  { %v548_v42 = vmul.f32 %v864_v45, %v1629_v9 }
 0x152   :  { %724 = vmatmul.msk.f32.gmra.mxu0 %vm37_vm0, %v552_v51  ;;  %v556_v28 = vmul.f32 %v540_v32, %v428_v7 }
 0x153   :  { %v564_v24 = vmul.f32 %v548_v42, %v436_v39 }
 0x155   :  { %728 = vmatmul.msk.f32.gmra.mxu1 %vm37_vm0, %v556_v28  ;;  %736 = vmatmul.msk.f32.gmra.mxu3 %vm37_vm0, %v564_v24 }
 0x195   :  { %v638_v11 = vpop.f32.mrf.mxu0 }
 0x196   :  { %687 = vst.msk [vmem:[#allocation2] sm:$0xff] %vm686_vm5, %v638_v11 }
 0x19b   :  { %v662_v41 = vpop.f32.mrf.mxu2 }
 0x19c   :  { %695 = vst.msk [vmem:[#allocation2 + $0x40] sm:$0xff] %vm686_vm5, %v662_v41 }
 0x19f   :  { %v650_v54 = vpop.f32.mrf.mxu1 }
 0x1a0   :  { %691 = vst.msk [vmem:[#allocation2 + $0x20] sm:$0xff] %vm686_vm5, %v650_v54 }
 0x1a5   :  { %v674_v46 = vpop.f32.mrf.mxu3 }
 0x1a6   :  { %699 = vst.msk [vmem:[#allocation2 + $0x60] sm:$0xff] %vm686_vm5, %v674_v46 }
 0x1a7   :  { %v641_v9 = vpop.f32.mrf.mxu0 }
 0x1a8   :  { %688 = vst.msk [vmem:[#allocation2 + $0x8] sm:$0xff] %vm686_vm5, %v641_v9 }
 0x1b5   :  { %v665_v35 = vpop.f32.mrf.mxu2 }
 0x1b6   :  { %696 = vst.msk [vmem:[#allocation2 + $0x48] sm:$0xff] %vm686_vm5, %v665_v35 }
 0x1b7   :  { %v677_v59 = vpop.f32.mrf.mxu3 }
 0x1b8   :  { %700 = vst.msk [vmem:[#allocation2 + $0x68] sm:$0xff] %vm686_vm5, %v677_v59 }
 0x1bf   :  { %v653_v31 = vpop.f32.mrf.mxu1 }
 0x1c0   :  { %692 = vst.msk [vmem:[#allocation2 + $0x28] sm:$0xff] %vm686_vm5, %v653_v31 }
 0x1c7   :  { %v644_v19 = vpop.f32.mrf.mxu0 }
 0x1c8   :  { %689 = vst.msk [vmem:[#allocation2 + $0x10] sm:$0xff] %vm686_vm5, %v644_v19 }
 0x1ca   :  { %v668_v50 = vpop.f32.mrf.mxu2  ;;  %v656_v5 = vpop.f32.mrf.mxu1 }
 0x1cb   :  { %697 = vst.msk [vmem:[#allocation2 + $0x50] sm:$0xff] %vm686_vm5, %v668_v50  ;;  %v680_v26 = vpop.f32.mrf.mxu3 }
 0x1cc   :  { %701 = vst.msk [vmem:[#allocation2 + $0x70] sm:$0xff] %vm686_vm5, %v680_v26 }
 0x1cd   :  { %693 = vst.msk [vmem:[#allocation2 + $0x30] sm:$0xff] %vm686_vm5, %v656_v5 }
 0x1cf   :  { %v647_v8 = vpop.f32.mrf.mxu0 }
 0x1d0   :  { %690 = vst.msk [vmem:[#allocation2 + $0x18] sm:$0xff] %vm686_vm5, %v647_v8 }
 0x1d2   :  { %v671_v60 = vpop.f32.mrf.mxu2  ;;  %v659_v25 = vpop.f32.mrf.mxu1 }
 0x1d3   :  { %698 = vst.msk [vmem:[#allocation2 + $0x58] sm:$0xff] %vm686_vm5, %v671_v60 }
 0x1d4   :  { %694 = vst.msk [vmem:[#allocation2 + $0x38] sm:$0xff] %vm686_vm5, %v659_v25 }
 0x1d8   :  { %v683_v33 = vpop.f32.mrf.mxu3 }
 0x1d9   :  { %702 = vst.msk [vmem:[#allocation2 + $0x78] sm:$0xff] %vm686_vm5, %v683_v33 }
 0x1da   :  { %715 = dma.vmem_to_hbm [thread:$0]  %s708_s21, 2048, %s710_s24, [#allocation3], %s893_s0, %s893_s0, %s894_s25  }
 0x1db   :  { %889 = dma.done.wait [#allocation3], 2048  }
 0x1dc   :  { %890 = vsyncadd [#allocation3], 4294965248 }
 0x1dd   :  { %720 = vsyncpa [#allocation3], 1 }

// kernel: ss2d_forward.8
= control target key start
LH: loop header
LB: loop body
LE: loop exit
PB: predicated region body
PF: predicated region fallthrough
CT: control target
= control target key end

     0   :  { %s6004_s18 = smov 0   ;;  %s8392_s0 = inlined_call_operand.vmem [shape: f32[2,2,64,64], index: 0, kind: input, shape index: {}]   ;;  %s8393_s1 = inlined_call_operand.vmem [shape: f32[2,4,64,128], index: 1, kind: input, shape index: {}]   ;;  %s8394_s2 = inlined_call_operand.vmem [shape: f32[4,16,64], index: 2, kind: input, shape index: {}]   ;;  %s8395_s3 = inlined_call_operand.vmem [shape: f32[4,64], index: 3, kind: input, shape index: {}]   ;;  %s8396_s4 = inlined_call_operand.vmem [shape: f32[4,64], index: 4, kind: input, shape index: {}]   ;;  %s8397_s5 = inlined_call_operand.vmem [shape: f32[2,2,64,64], index: 5, kind: output, shape index: {}]  }
   0x1 LB: > { %s5327_s19 = sadd.s32 4294967295, %s5935_s18   ;;  %p5331_p0 = scmp.ge.s32.totalorder %s5935_s18, 1  ;;  %s5935_s18 = sphi %s6004_s18, %s15_s18  }
   0x2   : > { %p197_p1 = scmp.lt.s32.totalorder %s5935_s18, 3 }
   0x4   : > { %p198_p2 = pnand %p5331_p0, %p197_p1 }
   0x6   : > { %201 = sbr.rel (%p198_p2) target bundleno = 1411 (0x583), region = 40 }
   0xb   : > { %p230_p3 = scmp.lt.s32.totalorder %s5327_s19, 1  ;;  %vm245_vm0 = vcmask 523264   ;;  %v5973_v0 = vmov 0.0   ;;  %v6059_v1 = vmov 0.0   ;;  %v6061_v2 = vmov 0.0   ;;  %s6075_s6 = smov 0  }
   0xc   : > { %v6063_v3 = vmov 0.0   ;;  %v6065_v4 = vmov 0.0   ;;  %v6067_v5 = vmov 0.0   ;;  %v6069_v6 = vmov 0.0  }
   0xd   : > { %s8539_s19 = smov (!%p230_p3, %s5327_s19), 1  ;;  %v6071_v7 = vmov 0.0   ;;  %v6073_v8 = vmov 0.0  }
   0xe   : > { %s5379_s20 = sshll.u32 %s8539_s19, 7  ;;  %s5380_s21 = sshll.u32 %s8539_s19, 8 }
   0xf   : > { %s6015_s24 = scalar_lea.vmem %s8392_s0, %s5379_s20  ;;  %s6020_s27 = scalar_lea.vmem %s8393_s1, %s5380_s21 }
  0x10   : > { %s6025_s30 = scalar_lea.vmem %s8397_s5, %s5379_s20 }
  0x11   : > { %246 = vst.msk [vmem:[%s6025_s30] sm:$0xff] %vm245_vm0, %v5973_v0 }
  0x12   : > { %247 = vst.msk [vmem:[%s6025_s30 + $0x8] sm:$0xff] %vm245_vm0, %v5973_v0 }
  0x13   : > { %248 = vst.msk [vmem:[%s6025_s30 + $0x10] sm:$0xff] %vm245_vm0, %v5973_v0 }
  0x14   : > { %249 = vst.msk [vmem:[%s6025_s30 + $0x18] sm:$0xff] %vm245_vm0, %v5973_v0 }
  0x15   : > { %250 = vst.msk [vmem:[%s6025_s30 + $0x20] sm:$0xff] %vm245_vm0, %v5973_v0 }
  0x16   : > { %251 = vst.msk [vmem:[%s6025_s30 + $0x28] sm:$0xff] %vm245_vm0, %v5973_v0 }
  0x17   : > { %252 = vst.msk [vmem:[%s6025_s30 + $0x30] sm:$0xff] %vm245_vm0, %v5973_v0 }
  0x18   : > { %253 = vst.msk [vmem:[%s6025_s30 + $0x38] sm:$0xff] %vm245_vm0, %v5973_v0 }
  0x19   : > { %254 = vst.msk [vmem:[%s6025_s30 + $0x40] sm:$0xff] %vm245_vm0, %v5973_v0 }
  0x1a   : > { %255 = vst.msk [vmem:[%s6025_s30 + $0x48] sm:$0xff] %vm245_vm0, %v5973_v0 }
  0x1b   : > { %256 = vst.msk [vmem:[%s6025_s30 + $0x50] sm:$0xff] %vm245_vm0, %v5973_v0 }
  0x1c   : > { %257 = vst.msk [vmem:[%s6025_s30 + $0x58] sm:$0xff] %vm245_vm0, %v5973_v0 }
  0x1d   : > { %258 = vst.msk [vmem:[%s6025_s30 + $0x60] sm:$0xff] %vm245_vm0, %v5973_v0 }
  0x1e   : > { %259 = vst.msk [vmem:[%s6025_s30 + $0x68] sm:$0xff] %vm245_vm0, %v5973_v0 }
  0x1f   : > { %260 = vst.msk [vmem:[%s6025_s30 + $0x70] sm:$0xff] %vm245_vm0, %v5973_v0 }
  0x20   : > { %261 = vst.msk [vmem:[%s6025_s30 + $0x78] sm:$0xff] %vm245_vm0, %v5973_v0 }
  0x21 LB: >> { %8458 = vst [vmem:[#allocation6_spill] sm:$0xff] %v5939_v1  ;;  %v487_v9 = vlaneseq  ;;  %s6107_s7 = sshll.u32 %s5971_s6, 4  ;;  %v5574_v21 = vld [vmem:[%s8396_s4] ss:$0 sm:$0xff]  ;;  %vm3591_vm1 = vcmask 1041409   ;;  %vm3594_vm2 = vcmask 1042434   ;;  %s5971_s6 = sphi %s6075_s6, %s267_s6   ;;  %v5967_v8 = vphi %v6073_v8, %v8537_v8   ;;  %v5963_v7 = vphi %v6071_v7, %v8536_v7   ;;  %v5959_v6 = vphi %v6069_v6, %v8535_v6   ;;  %v5955_v5 = vphi %v6067_v5, %v8534_v5   ;;  %v5951_v4 = vphi %v6065_v4, %v7633_v4   ;;  %v5947_v3 = vphi %v6063_v3, %v7597_v3   ;;  %v5943_v2 = vphi %v6061_v2, %v8533_v2   ;;  %v5939_v1 = vphi %v6059_v1, %v7910_v1  }
  0x22   : >> { %8459 = vst [vmem:[#allocation7_spill] sm:$0xff] %v5943_v2  ;;  %s6114_s8 = scalar_lea.vmem %s6020_s27, %s6107_s7  ;;  %s5383_s11 = sadd.s32 16, %s6107_s7  ;;  %v6199_v48 = vld [vmem:[%s8394_s2] sm:$0xff]  ;;  %vm3597_vm3 = vcmask 1043459   ;;  %vm3600_vm4 = vcmask 1044484   ;;  %vm3603_vm5 = vcmask 1045509  }
  0x23   : >> { %8460 = vst [vmem:[#allocation8_spill] sm:$0xff] %v5947_v3  ;;  %v6104_v10 = vshrl.u32 %v487_v9, 7  ;;  %v6120_v12 = vld [vmem:[%s6114_s8] sm:$0xff]  ;;  %v6134_v18 = vld [vmem:[%s6114_s8 + $0x8] sm:$0xff]  ;;  %s6165_s12 = ssub.s32 64, %s5383_s11  ;;  %s6224_s16 = scalar_lea.vmem %s6015_s24, %s6107_s7  ;;  %vm3606_vm6 = vcmask 1046534  }
  0x24   : >> { %8461 = vst [vmem:[#allocation9_spill] sm:$0xff] %v5951_v4  ;;  %v512_v13 = vperm.slane %v6120_v12, 2  ;;  %v499_v14 = vperm.slane %v6120_v12, 1  ;;  %v486_v15 = vperm.slane %v6120_v12, 0  ;;  %v538_v17 = vperm.slane %v6120_v12, 4  ;;  %v6149_v24 = vld [vmem:[%s6114_s8 + $0x40] sm:$0xff]  ;;  %s6170_s13 = scalar_lea.vmem %s6020_s27, %s6165_s12  ;;  %s6467_s28 = scalar_lea.vmem %s6015_s24, %s6165_s12 }
  0x25   : >> { %v6110_v11 = vadd.s32 64, %v6104_v10  ;;  %v6128_v16 = vadd.s32 72, %v6104_v10  ;;  %v603_v19 = vperm.slane %v6134_v18, 1  ;;  %v525_v20 = vperm.slane %v6120_v12, 3  ;;  %v6156_v28 = vld [vmem:[%s6114_s8 + $0x48] sm:$0xff]  ;;  %v6177_v36 = vld [vmem:[%s6170_s13 + $0x80] sm:$0xff]  ;;  %s7975_s17 = scalar_lea.vmem %s6025_s30, %s6107_s7  ;;  %s8229_s20 = scalar_lea.vmem %s6025_s30, %s6165_s12 }
  0x26   : >> { %v668_v22 = vperm.slane %v6134_v18, 6  ;;  %v288_v23 = vadd.f32 %v5574_v21, %v6120_v12  ;;  %v8409_v26 = vperm.slane %v6149_v24, 3  ;;  %v551_v29 = vperm.slane %v6120_v12, 5  ;;  %v6189_v43 = vld [vmem:[%s6170_s13 + $0x88] sm:$0xff]  ;;  %v6208_v51 = vld [vmem:[%s6170_s13 + $0xc0] sm:$0xff]  ;;  %s267_s6 = sadd.s32 1, %s5971_s6  }
  0x27   : >> { %5468 = vset.pattern.permute.xlu2 %v6110_v11  ;;  %5466 = vset.pattern.permute.xlu1 %v6110_v11  ;;  %v8405_v31 = vperm.slane %v6156_v28, 0  ;;  %v564_v32 = vperm.slane %v6120_v12, 6  ;;  %v8404_v33 = vperm.slane %v6156_v28, 5  ;;  %v8403_v37 = vperm.slane %v6177_v36, 2  ;;  %v284_v9 = vld [vmem:[%s6224_s16] sm:$0xff]  ;;  %p264_p4 = scmp.ge.s32.totalorder %s267_s6, 4  }
  0x28   : >> { %5465 = vset.pattern.permute.xlu0 %v6110_v11  ;;  %v292_v25 = vand.u32 2147483647, %v288_v23  ;;  %v577_v39 = vperm.slane %v6120_v12, 7  ;;  %v8402_v40 = vperm.slane %v6177_v36, 7  ;;  %v290_v41 = vmax.f32 %v288_v23, 0.0 }
  0x29   : >> { %v590_v45 = vperm.slane %v6134_v18, 0  ;;  %v8401_v46 = vperm.slane %v6189_v43, 4  ;;  %v6211_v52 = vadd.f32 %v5574_v21, %v6134_v18  ;;  %v8400_v55 = vperm.slane %v6208_v51, 1 }
  0x2a   : >> { %v294_v27 = vsub.f32 0.0, %v292_v25  ;;  %vm3609_vm7 = vcmask 1047559  }
  0x2b   : >> { %v293_v58 = vand.u32 2147483647, %v6211_v52 }
  0x2c   : >> { %v296_v30 = vmul.f32 1.442695, %v294_v27 }
  0x2d   : >> { %v295_v0 = vsub.f32 0.0, %v293_v58 }
  0x2e   : >> { %5582 = vpow2.f32 %v296_v30 }
  0x2f   : >> { %517 = vperm.xlu2 %5468, %v512_v13   ;;  %504 = vperm.xlu1 %5466, %v499_v14   ;;  %v298_v25 = vmul.f32 1.442695, %v295_v0 }
  0x30   : >> { %491 = vperm.xlu0 %5465, %v486_v15  }
  0x34   : >> { %v5583_v34 = vpop.eup %5582 }
  0x35   : >> { %v300_v35 = vadd.f32 1.0, %v5583_v34  ;;  %v5575_v34 = vld [vmem:[%s8396_s4 + $0x1] ss:$0 sm:$0xff] }
  0x37   : >> { %5469 = vset.pattern.permute.xlu2 %v6128_v16  ;;  %5467 = vset.pattern.permute.xlu1 %v6128_v16  ;;  %5584 = vlog2.f32 %v300_v35  ;;  %v6252_v35 = vld [vmem:[%s6170_s13 + $0xc8] sm:$0xff] }
  0x38   : >> { %543 = vperm.xlu0 %5465, %v538_v17  }
  0x3d   : >> { %v5585_v38 = vpop.eup %5584 }
  0x3e   : >> { %v303_v42 = vmul.f32 0.6931472, %v5585_v38 }
  0x3f   : >> { %523 = vperm.xlu2 %5469, %v512_v13   ;;  %510 = vperm.xlu1 %5467, %v499_v14  }
  0x40   : >> { %608 = vperm.xlu0 %5465, %v603_v19   ;;  %v6191_v44 = vadd.f32 %v303_v42, %v290_v41  ;;  %v629_v42 = vperm.slane %v6134_v18, 3 }
  0x42   : >> { %v8412_v47 = vperm.slane %v6191_v44, 0  ;;  %v310_v49 = vrot.slane %v6191_v44, 1  ;;  %v311_v57 = vrot.slane %v6191_v44, 2  ;;  %v312_v62 = vrot.slane %v6191_v44, 3 }
  0x43   : >> { %v6241_v23 = vmul.f32 %v6191_v44, %v284_v9 }
  0x44   : >> { %v358_v50 = vmul.f32 %v8412_v47, %v6199_v48  ;;  %v6213_v53 = vperm.slane %v310_v49, 0  ;;  %v6220_v60 = vperm.slane %v311_v57, 0  ;;  %v6233_v14 = vperm.slane %v312_v62, 0 }
  0x45   : >> { %v699_v30 = vrot.slane %v6241_v23, 2  ;;  %v6257_v49 = vadd.f32 %v5575_v34, %v6149_v24  ;;  %v698_v9 = vrot.slane %v6241_v23, 1 }
  0x46   : >> { %v390_v54 = vmul.f32 1.442695, %v358_v50  ;;  %v360_v56 = vmul.f32 %v6213_v53, %v6199_v48  ;;  %v362_v61 = vmul.f32 %v6220_v60, %v6199_v48  ;;  %v364_v21 = vmul.f32 %v6233_v14, %v6199_v48 }
  0x47   : >> { %536 = vperm.xlu2 %5469, %v525_v20   ;;  %5470 = vset.pattern.permute.xlu1 %v6110_v11  ;;  %v714_v38 = vperm.slane %v699_v30, 0  ;;  %v8398_v50 = vperm.slane %v6252_v35, 3  ;;  %v821_v57 = vand.u32 2147483647, %v6257_v49  ;;  %v314_v30 = vrot.slane %v6191_v44, 5 }
  0x48   : >> { %673 = vperm.xlu0 %5465, %v668_v22   ;;  %5586 = vpow2.f32 %v390_v54  ;;  %v394_v59 = vmul.f32 1.442695, %v360_v56  ;;  %v398_v13 = vmul.f32 1.442695, %v362_v61  ;;  %v402_v27 = vmul.f32 1.442695, %v364_v21 }
  0x49   : >> { %v823_v61 = vsub.f32 0.0, %v821_v57  ;;  %v700_v21 = vrot.slane %v6241_v23, 3  ;;  %v8407_v57 = vperm.slane %v6241_v23, 0 }
  0x4a   : >> { %5588 = vpow2.f32 %v394_v59  ;;  %v6270_v59 = vadd.f32 %v5575_v34, %v6156_v28 }
  0x4b   : >> { %5590 = vpow2.f32 %v398_v13 }
  0x4c   : >> { %5592 = vpow2.f32 %v402_v27  ;;  %v822_v62 = vand.u32 2147483647, %v6270_v59 }
  0x4d   : >> { %5594 = vpow2.f32 %v298_v25 }
  0x4e   : >> { %v5587_v63 = vpop.eup %5586  ;;  %v824_v27 = vsub.f32 0.0, %v822_v62 }
  0x4f   : >> { %5472 = vset.pattern.permute.xlu2 %v6110_v11  ;;  %530 = vperm.xlu1 %5470, %v525_v20   ;;  %454 = vst.msk [vmem:[#allocation2] sm:$0xff] %vm245_vm0, %v5587_v63  ;;  %v8399_v20 = vperm.slane %v6208_v51, 6  ;;  %v313_v63 = vrot.slane %v6191_v44, 4 }
  0x50   : >> { %1060 = vperm.xlu0 %5465, %v8409_v26  }
  0x51   : >> { %v330_v25 = vperm.slane %v313_v63, 0 }
  0x57   : >> { %556 = vperm.xlu2 %5472, %v551_v29   ;;  %5471 = vset.pattern.permute.xlu1 %v6128_v16 }
  0x58   : >> { %1125 = vperm.xlu0 %5465, %v8405_v31  }
  0x5f   : >> { %569 = vperm.xlu2 %5472, %v564_v32   ;;  %549 = vperm.xlu1 %5471, %v538_v17   ;;  %v616_v17 = vperm.slane %v6134_v18, 2 }
  0x60   : >> { %1190 = vperm.xlu0 %5465, %v8404_v33  }
  0x67   : >> { %5474 = vset.pattern.permute.xlu2 %v6128_v16  ;;  %562 = vperm.xlu1 %5471, %v551_v29   ;;  %v5589_v29 = vpop.eup %5588 }
  0x68   : >> { %1577 = vperm.xlu0 %5465, %v8403_v37   ;;  %456 = vst.msk [vmem:[#allocation2 + $0x20] sm:$0xff] %vm245_vm0, %v5589_v29  ;;  %v642_v29 = vperm.slane %v6134_v18, 4 }
  0x6f   : >> { %588 = vperm.xlu2 %5474, %v577_v39   ;;  %5473 = vset.pattern.permute.xlu1 %v6110_v11 }
  0x70   : >> { %1642 = vperm.xlu0 %5465, %v8402_v40   ;;  %v8411_v40 = vperm.slane %v6149_v24, 5 }
  0x77   : >> { %601 = vperm.xlu2 %5474, %v590_v45   ;;  %582 = vperm.xlu1 %5473, %v577_v39   ;;  %v5591_v39 = vpop.eup %5590 }
  0x78   : >> { %1707 = vperm.xlu0 %5465, %v8401_v46   ;;  %458 = vst.msk [vmem:[#allocation2 + $0x40] sm:$0xff] %vm245_vm0, %v5591_v39  ;;  %v5593_v54 = vpop.eup %5592  ;;  %v6282_v39 = vperm.slane %v698_v9, 0 }
  0x79   : >> { %460 = vst.msk [vmem:[#allocation2 + $0x60] sm:$0xff] %vm245_vm0, %v5593_v54  ;;  %v5595_v56 = vpop.eup %5594  ;;  %v291_v54 = vmax.f32 %v6211_v52, 0.0  ;;  %v315_v52 = vrot.slane %v6191_v44, 6 }
  0x7a   : >> { %v301_v58 = vadd.f32 1.0, %v5595_v56  ;;  %v827_v56 = vmul.f32 1.442695, %v824_v27 }
  0x7c   : >> { %5596 = vlog2.f32 %v301_v58 }
  0x7f   : >> { %5476 = vset.pattern.permute.xlu2 %v6110_v11  ;;  %595 = vperm.xlu1 %5473, %v590_v45  }
  0x80   : >> { %2095 = vperm.xlu0 %5465, %v8400_v55  }
  0x82   : >> { %v5597_v34 = vpop.eup %5596 }
  0x83   : >> { %v305_v58 = vmul.f32 0.6931472, %v5597_v34 }
  0x87   : >> { %621 = vperm.xlu2 %5476, %v616_v17   ;;  %5475 = vset.pattern.permute.xlu1 %v6128_v16 }
  0x88   : >> { %2160 = vperm.xlu0 %5465, %v8399_v20   ;;  %v701_v20 = vrot.slane %v6241_v23, 4 }
  0x89   : >> { %v518_v41 = vpop.permute.xlu2 %517 }
  0x8a   : >> { %v748_v45 = vmul.f32 %v714_v38, %v518_v41  ;;  %v6284_v41 = vperm.slane %v700_v21, 0 }
  0x8c   : >> { %780 = vst.msk [vmem:[#allocation3 + $0x40] sm:$0xff] %vm245_vm0, %v748_v45 }
  0x8f   : >> { %634 = vperm.xlu2 %5476, %v629_v42   ;;  %614 = vperm.xlu1 %5475, %v603_v19   ;;  %v825_v19 = vmul.f32 1.442695, %v823_v61  ;;  %v6296_v61 = vld [vmem:[%s8394_s2 + $0x8] sm:$0xff] }
  0x90   : >> { %2225 = vperm.xlu0 %5465, %v8398_v50   ;;  %v365_v9 = vmul.f32 %v6233_v14, %v6296_v61 }
  0x91   : >> { %5598 = vpow2.f32 %v825_v19  ;;  %v6304_v19 = vld [vmem:[%s8396_s4 + $0x2] ss:$0 sm:$0xff] }
  0x92   : >> { %v404_v55 = vmul.f32 1.442695, %v365_v9  ;;  %v285_v9 = vld [vmem:[%s6224_s16 + $0x8] sm:$0xff] }
  0x97   : >> { %5478 = vset.pattern.permute.xlu2 %v6128_v16  ;;  %627 = vperm.xlu1 %5475, %v616_v17   ;;  %v366_v17 = vmul.f32 %v330_v25, %v6199_v48  ;;  %v5599_v21 = vpop.eup %5598 }
  0x98   : >> { %5515 = vset.pattern.permute.xlu0 %v6128_v16 }
  0x99   : >> { %v524_v0 = vpop.permute.xlu2 %523  ;;  %v406_v45 = vmul.f32 1.442695, %v366_v17 }
  0x9a   : >> { %v749_v13 = vmul.f32 %v714_v38, %v524_v0  ;;  %v6286_v38 = vperm.slane %v314_v30, 0  ;;  %v655_v0 = vperm.slane %v6134_v18, 5 }
  0x9b   : >> { %5600 = vpow2.f32 %v406_v45  ;;  %v6312_v45 = vperm.slane %v315_v52, 0 }
  0x9c   : >> { %781 = vst.msk [vmem:[#allocation3 + $0x48] sm:$0xff] %vm245_vm0, %v749_v13  ;;  %v368_v62 = vmul.f32 %v6286_v38, %v6199_v48  ;;  %v367_v13 = vmul.f32 %v330_v25, %v6296_v61  ;;  %v316_v25 = vrot.slane %v6191_v44, 7 }
  0x9d   : >> { %v370_v14 = vmul.f32 %v6312_v45, %v6199_v48 }
  0x9e   : >> { %v410_v34 = vmul.f32 1.442695, %v368_v62  ;;  %v408_v46 = vmul.f32 1.442695, %v367_v13  ;;  %v6323_v62 = vadd.f32 %v6304_v19, %v6177_v36 }
  0x9f   : >> { %653 = vperm.xlu2 %5478, %v642_v29   ;;  %5477 = vset.pattern.permute.xlu1 %v6110_v11  ;;  %v414_v13 = vmul.f32 1.442695, %v370_v14 }
  0xa0   : >> { %497 = vperm.xlu0 %5515, %v486_v15   ;;  %5602 = vpow2.f32 %v410_v34 }
  0xa1   : >> { %v505_v63 = vpop.permute.xlu1 %504  ;;  %v537_v15 = vpop.permute.xlu2 %536  ;;  %5604 = vpow2.f32 %v404_v55  ;;  %v1351_v55 = vand.u32 2147483647, %v6323_v62 }
  0xa2   : >> { %v746_v27 = vmul.f32 %v6282_v39, %v505_v63  ;;  %v492_v17 = vpop.permute.xlu0 %491  ;;  %v751_v30 = vmul.f32 %v6284_v41, %v537_v15  ;;  %v829_v63 = vadd.f32 1.0, %v5599_v21  ;;  %v5601_v52 = vpop.eup %5600  ;;  %v2399_v15 = vld [vmem:[#allocation2] sm:$0xff]  ;;  %5606 = vpow2.f32 %v408_v46 }
  0xa3   : >> { %v744_v50 = vmul.f32 %v8407_v57, %v492_v17  ;;  %v6330_v17 = vadd.f32 %v305_v58, %v291_v54  ;;  %5608 = vpow2.f32 %v827_v56  ;;  %v6334_v21 = vperm.slane %v701_v20, 0  ;;  %462 = vst.msk [vmem:[#allocation2 + $0x80] sm:$0xff] %vm245_vm0, %v5601_v52 }
  0xa4   : >> { %778 = vst.msk [vmem:[#allocation3 + $0x20] sm:$0xff] %vm245_vm0, %v746_v27  ;;  %v6328_v27 = vperm.slane %v316_v25, 0  ;;  %5610 = vpow2.f32 %v414_v13  ;;  %v702_v56 = vrot.slane %v6241_v23, 5  ;;  %v2442_v25 = vld [vmem:[#allocation2 + $0x20] sm:$0xff] }
  0xa5   : >> { %776 = vst.msk [vmem:[#allocation3] sm:$0xff] %vm245_vm0, %v744_v50  ;;  %5612 = vlog2.f32 %v829_v63  ;;  %v2403_v50 = vmul.f32 %v5967_v8, %v2399_v15  ;;  %v6344_v54 = vmul.f32 %v6330_v17, %v285_v9  ;;  %v1353_v63 = vsub.f32 0.0, %v1351_v55 }
  0xa6   : >> { %783 = vst.msk [vmem:[#allocation3 + $0x68] sm:$0xff] %vm245_vm0, %v751_v30  ;;  %v372_v46 = vmul.f32 %v6328_v27, %v6199_v48  ;;  %v6353_v9 = vperm.slane %v702_v56, 0  ;;  %v819_v56 = vmax.f32 %v6257_v49, 0.0 }
  0xa7   : >> { %666 = vperm.xlu2 %5478, %v655_v0   ;;  %647 = vperm.xlu1 %5477, %v642_v29   ;;  %v5603_v29 = vpop.eup %5602 }
  0xa8   : >> { %575 = vperm.xlu0 %5515, %v564_v32   ;;  %v5605_v58 = vpop.eup %5604  ;;  %v705_v32 = vrot.slane %v6344_v54, 1  ;;  %464 = vst.msk [vmem:[#allocation2 + $0xa0] sm:$0xff] %vm245_vm0, %v5603_v29  ;;  %v418_v30 = vmul.f32 1.442695, %v372_v46 }
  0xa9   : >> { %v5607_v34 = vpop.eup %5606  ;;  %461 = vst.msk [vmem:[#allocation2 + $0x68] sm:$0xff] %vm245_vm0, %v5605_v58  ;;  %v1355_v58 = vmul.f32 1.442695, %v1353_v63  ;;  %v681_v63 = vperm.slane %v6134_v18, 7 }
  0xaa   : >> { %v544_v20 = vpop.permute.xlu0 %543  ;;  %v5609_v8 = vpop.eup %5608  ;;  %463 = vst.msk [vmem:[#allocation2 + $0x88] sm:$0xff] %vm245_vm0, %v5607_v34  ;;  %v6359_v46 = vperm.slane %v705_v32, 0  ;;  %5614 = vpow2.f32 %v418_v30 }
  0xab   : >> { %v752_v12 = vmul.f32 %v6334_v21, %v544_v20  ;;  %v5611_v15 = vpop.eup %5610  ;;  %v830_v55 = vadd.f32 1.0, %v5609_v8  ;;  %v2486_v20 = vld [vmem:[#allocation2 + $0x40] sm:$0xff]  ;;  %v703_v8 = vrot.slane %v6241_v23, 6 }
  0xac   : >> { %v2407_v14 = vld [vmem:[#allocation3] sm:$0xff]  ;;  %v5613_v13 = vpop.eup %5612  ;;  %466 = vst.msk [vmem:[#allocation2 + $0xc0] sm:$0xff] %vm245_vm0, %v5611_v15 }
  0xad   : >> { %v2411_v52 = vadd.f32 %v2407_v14, %v2403_v50  ;;  %784 = vst.msk [vmem:[#allocation3 + $0x80] sm:$0xff] %vm245_vm0, %v752_v12  ;;  %v2451_v50 = vld [vmem:[#allocation3 + $0x20] sm:$0xff]  ;;  %5616 = vlog2.f32 %v830_v55 }
  0xae   : >> { %5618 = vpow2.f32 %v1355_v58 }
  0xaf   : >> { %2415 = vst.msk [vmem:[#allocation3] sm:$0xff] %vm245_vm0, %v2411_v52  ;;  %v2446_v29 = vmul.f32 %v2442_v25, %v2411_v52  ;;  %5480 = vset.pattern.permute.xlu2 %v6110_v11  ;;  %660 = vperm.xlu1 %5477, %v655_v0   ;;  %v832_v25 = vmul.f32 0.6931472, %v5613_v13  ;;  %v2495_v52 = vld [vmem:[#allocation3 + $0x40] sm:$0xff]  ;;  %v6379_v13 = vadd.f32 %v6304_v19, %v6189_v43 }
  0xb0   : >> { %640 = vperm.xlu0 %5515, %v629_v42   ;;  %v6371_v42 = vld [vmem:[%s8396_s4 + $0x3] ss:$0 sm:$0xff] }
  0xb1   : >> { %v2455_v12 = vadd.f32 %v2451_v50, %v2446_v29  ;;  %v511_v34 = vpop.permute.xlu1 %510  ;;  %v557_v14 = vpop.permute.xlu2 %556  ;;  %v1016_v29 = vperm.slane %v6149_v24, 0  ;;  %v6390_v55 = vadd.f32 %v832_v25, %v819_v56  ;;  %v6394_v19 = vadd.f32 %v6371_v42, %v6208_v51 }
  0xb2   : >> { %v747_v0 = vmul.f32 %v6282_v39, %v511_v34  ;;  %v609_v32 = vpop.permute.xlu0 %608  ;;  %v754_v30 = vmul.f32 %v6353_v9, %v557_v14  ;;  %v710_v39 = vrot.slane %v6344_v54, 6  ;;  %v5615_v50 = vpop.eup %5614  ;;  %v1352_v14 = vand.u32 2147483647, %v6379_v13 }
  0xb3   : >> { %2459 = vst.msk [vmem:[#allocation3 + $0x20] sm:$0xff] %vm245_vm0, %v2455_v12  ;;  %v2490_v49 = vmul.f32 %v2486_v20, %v2455_v12  ;;  %v762_v15 = vmul.f32 %v6359_v46, %v609_v32  ;;  %v5344_v20 = vld [vmem:[%s6224_s16 + $0x40] sm:$0xff]  ;;  %v6388_v12 = vperm.slane %v703_v8, 0  ;;  %v1882_v8 = vand.u32 2147483647, %v6394_v19 }
  0xb4   : >> { %779 = vst.msk [vmem:[#allocation3 + $0x28] sm:$0xff] %vm245_vm0, %v747_v0  ;;  %v6401_v58 = vperm.slane %v710_v39, 0  ;;  %v6406_v56 = vmul.f32 %v5344_v20, %v6390_v55  ;;  %v1354_v39 = vsub.f32 0.0, %v1352_v14  ;;  %v5345_v14 = vld [vmem:[%s6224_s16 + $0x48] sm:$0xff]  ;;  %v2583_v26 = vld [vmem:[#allocation3 + $0x80] sm:$0xff] }
  0xb5   : >> { %v6383_v34 = vadd.f32 %v2495_v52, %v2490_v49  ;;  %794 = vst.msk [vmem:[#allocation3 + $0x120] sm:$0xff] %vm245_vm0, %v762_v15  ;;  %v5617_v52 = vpop.eup %5616  ;;  %v2662_v47 = vld [vmem:[#allocation2 + $0xc0] sm:$0xff] }
  0xb6   : >> { %786 = vst.msk [vmem:[#allocation3 + $0xa0] sm:$0xff] %vm245_vm0, %v754_v30  ;;  %v5619_v30 = vpop.eup %5618  ;;  %v1230_v15 = vrot.slane %v6406_v56, 3  ;;  %v834_v20 = vmul.f32 0.6931472, %v5617_v52 }
  0xb7   : >> { %2503 = vst.msk [vmem:[#allocation3 + $0x40] sm:$0xff] %vm245_vm0, %v6383_v34  ;;  %686 = vperm.xlu2 %5480, %v681_v63   ;;  %5479 = vset.pattern.permute.xlu1 %v6128_v16  ;;  %v1359_v37 = vadd.f32 1.0, %v5619_v30  ;;  %v704_v30 = vrot.slane %v6241_v23, 7 }
  0xb8   : >> { %1027 = vperm.xlu0 %5515, %v1016_v29   ;;  %468 = vst.msk [vmem:[#allocation2 + $0xe0] sm:$0xff] %vm245_vm0, %v5615_v50  ;;  %v820_v50 = vmax.f32 %v6270_v59, 0.0  ;;  %v6418_v33 = vperm.slane %v1230_v15, 0  ;;  %v8406_v15 = vperm.slane %v6156_v28, 2 }
  0xb9   : >> { %v570_v25 = vpop.permute.xlu2 %569  ;;  %5620 = vlog2.f32 %v1359_v37 }
  0xba   : >> { %v674_v0 = vpop.permute.xlu0 %673  ;;  %v756_v32 = vmul.f32 %v6388_v12, %v570_v25  ;;  %v1884_v25 = vsub.f32 0.0, %v1882_v8  ;;  %v6423_v31 = vadd.f32 %v834_v20, %v820_v50  ;;  %v2530_v50 = vld [vmem:[#allocation2 + $0x60] sm:$0xff] }
  0xbb   : >> { %v772_v49 = vmul.f32 %v6401_v58, %v674_v0  ;;  %v1357_v0 = vmul.f32 1.442695, %v1354_v39  ;;  %v2534_v18 = vmul.f32 %v2530_v50, %v6383_v34  ;;  %v8414_v34 = vperm.slane %v6156_v28, 7 }
  0xbc   : >> { %788 = vst.msk [vmem:[#allocation3 + $0xc0] sm:$0xff] %vm245_vm0, %v756_v32  ;;  %v1886_v8 = vmul.f32 1.442695, %v1884_v25 }
  0xbd   : >> { %804 = vst.msk [vmem:[#allocation3 + $0x1c0] sm:$0xff] %vm245_vm0, %v772_v49  ;;  %v6430_v49 = vmul.f32 %v5345_v14, %v6423_v31  ;;  %5622 = vpow2.f32 %v1357_v0  ;;  %v317_v0 = vrot.slane %v6330_v17, 1  ;;  %v6449_v14 = vadd.f32 %v6371_v42, %v6252_v35 }
  0xbe   : >> { %5624 = vpow2.f32 %v1886_v8 }
  0xbf   : >> { %1021 = vperm.xlu2 %5480, %v1016_v29   ;;  %679 = vperm.xlu1 %5479, %v668_v22   ;;  %v8408_v29 = vperm.slane %v6330_v17, 0  ;;  %v8410_v20 = vperm.slane %v6430_v49, 0  ;;  %v5621_v25 = vpop.eup %5620  ;;  %v6454_v8 = vperm.slane %v317_v0, 0  ;;  %v1239_v57 = vrot.slane %v6430_v49, 5 }
  0xc0   : >> { %1092 = vperm.xlu0 %5515, %v8411_v40   ;;  %v318_v0 = vrot.slane %v6330_v17, 2  ;;  %v2618_v40 = vld [vmem:[#allocation2 + $0xa0] sm:$0xff] }
  0xc1   : >> { %v531_v32 = vpop.permute.xlu1 %530  ;;  %v374_v37 = vmul.f32 %v8408_v29, %v6199_v48  ;;  %v376_v50 = vmul.f32 %v6454_v8, %v6199_v48  ;;  %v1883_v29 = vand.u32 2147483647, %v6449_v14 }
  0xc2   : >> { %v750_v59 = vmul.f32 %v6284_v41, %v531_v32  ;;  %v1061_v52 = vpop.permute.xlu0 %1060  ;;  %v6438_v41 = vperm.slane %v704_v30, 0 }
  0xc3   : >> { %v1280_v22 = vmul.f32 %v6418_v33, %v1061_v52  ;;  %v422_v39 = vmul.f32 1.442695, %v374_v37  ;;  %v1349_v52 = vmax.f32 %v6323_v62, 0.0 }
  0xc4   : >> { %782 = vst.msk [vmem:[#allocation3 + $0x60] sm:$0xff] %vm245_vm0, %v750_v59  ;;  %v5623_v59 = vpop.eup %5622 }
  0xc5   : >> { %1312 = vst.msk [vmem:[#allocation3 + $0x70] sm:$0xff] %vm245_vm0, %v1280_v22  ;;  %5626 = vpow2.f32 %v422_v39  ;;  %v1362_v22 = vmul.f32 0.6931472, %v5621_v25  ;;  %v2574_v39 = vld [vmem:[#allocation2 + $0x80] sm:$0xff]  ;;  %v5625_v25 = vpop.eup %5624 }
  0xc7   : >> { %5482 = vset.pattern.permute.xlu2 %v6128_v16  ;;  %692 = vperm.xlu1 %5479, %v681_v63  }
  0xc8   : >> { %1157 = vperm.xlu0 %5515, %v8406_v15   ;;  %v8413_v15 = vperm.slane %v6149_v24, 1 }
  0xc9   : >> { %v589_v32 = vpop.permute.xlu2 %588 }
  0xca   : >> { %v1126_v63 = vpop.permute.xlu0 %1125  ;;  %v759_v30 = vmul.f32 %v6438_v41, %v589_v32  ;;  %v1360_v32 = vadd.f32 1.0, %v5623_v59  ;;  %v6479_v59 = vperm.slane %v1239_v57, 0  ;;  %v2627_v57 = vld [vmem:[#allocation3 + $0xa0] sm:$0xff] }
  0xcb   : >> { %v2539_v37 = vld [vmem:[#allocation3 + $0x60] sm:$0xff]  ;;  %v1290_v42 = vmul.f32 %v8410_v20, %v1126_v63  ;;  %v6474_v20 = vadd.f32 %v1362_v22, %v1349_v52  ;;  %v319_v22 = vrot.slane %v6330_v17, 3 }
  0xcc   : >> { %v2543_v62 = vadd.f32 %v2539_v37, %v2534_v18  ;;  %791 = vst.msk [vmem:[#allocation3 + $0xe8] sm:$0xff] %vm245_vm0, %v759_v30  ;;  %v5627_v18 = vpop.eup %5626  ;;  %v426_v30 = vmul.f32 1.442695, %v376_v50  ;;  %v6472_v37 = vperm.slane %v318_v0, 0  ;;  %v1885_v50 = vsub.f32 0.0, %v1883_v29 }
  0xcd   : >> { %1322 = vst.msk [vmem:[#allocation3 + $0x110] sm:$0xff] %vm245_vm0, %v1290_v42  ;;  %v8462_v29 = vperm.slane %v6344_v54, 0 }
  0xce   : >> { %2547 = vst.msk [vmem:[#allocation3 + $0x60] sm:$0xff] %vm245_vm0, %v2543_v62  ;;  %v2578_v63 = vmul.f32 %v2574_v39, %v2543_v62  ;;  %v1343_v39 = vld [vmem:[%s6467_s28] sm:$0xff]  ;;  %5628 = vpow2.f32 %v426_v30  ;;  %v378_v52 = vmul.f32 %v6472_v37, %v6199_v48  ;;  %v1890_v62 = vadd.f32 1.0, %v5625_v25 }
  0xcf   : >> { %1040 = vperm.xlu2 %5482, %v8413_v15   ;;  %5481 = vset.pattern.permute.xlu1 %v6110_v11  ;;  %470 = vst.msk [vmem:[#allocation2 + $0x100] sm:$0xff] %vm245_vm0, %v5627_v18  ;;  %5630 = vlog2.f32 %v1360_v32  ;;  %v6494_v1 = vmul.f32 %v6474_v20, %v1343_v39  ;;  %v6498_v32 = vperm.slane %v319_v22, 0  ;;  %v377_v22 = vmul.f32 %v6454_v8, %v6296_v61 }
  0xd0   : >> { %v2587_v42 = vadd.f32 %v2583_v26, %v2578_v63  ;;  %1222 = vperm.xlu0 %5515, %v8414_v34   ;;  %v1042_v63 = vperm.slane %v6149_v24, 2  ;;  %v430_v30 = vmul.f32 1.442695, %v378_v52 }
  0xd1   : >> { %v550_v0 = vpop.permute.xlu1 %549  ;;  %v602_v15 = vpop.permute.xlu2 %601  ;;  %v380_v39 = vmul.f32 %v6498_v32, %v6199_v48 }
  0xd2   : >> { %2591 = vst.msk [vmem:[#allocation3 + $0x80] sm:$0xff] %vm245_vm0, %v2587_v42  ;;  %v2622_v18 = vmul.f32 %v2618_v40, %v2587_v42  ;;  %v753_v26 = vmul.f32 %v6334_v21, %v550_v0  ;;  %v1191_v34 = vpop.permute.xlu0 %1190  ;;  %v761_v25 = vmul.f32 %v8462_v29, %v602_v15  ;;  %v8417_v40 = vperm.slane %v6177_v36, 4  ;;  %v2671_v42 = vld [vmem:[#allocation3 + $0xc0] sm:$0xff] }
  0xd3   : >> { %v1300_v2 = vmul.f32 %v6479_v59, %v1191_v34  ;;  %5632 = vpow2.f32 %v430_v30  ;;  %v320_v21 = vrot.slane %v6330_v17, 4  ;;  %v1759_v34 = vrot.slane %v6494_v1, 2 }
  0xd4   : >> { %v2631_v4 = vadd.f32 %v2627_v57, %v2622_v18  ;;  %785 = vst.msk [vmem:[#allocation3 + $0x88] sm:$0xff] %vm245_vm0, %v753_v26  ;;  %v5629_v52 = vpop.eup %5628  ;;  %v8463_v0 = vperm.slane %v6149_v24, 1  ;;  %5634 = vlog2.f32 %v1890_v62  ;;  %v1888_v26 = vmul.f32 1.442695, %v1885_v50 }
  0xd5   : >> { %1332 = vst.msk [vmem:[#allocation3 + $0x1b0] sm:$0xff] %vm245_vm0, %v1300_v2  ;;  %v5631_v57 = vpop.eup %5630  ;;  %v434_v2 = vmul.f32 1.442695, %v380_v39  ;;  %v6513_v18 = vperm.slane %v320_v21, 0  ;;  %v6520_v8 = vperm.slane %v1759_v34, 0  ;;  %v706_v21 = vrot.slane %v6344_v54, 2 }
  0xd6   : >> { %2635 = vst.msk [vmem:[#allocation3 + $0xa0] sm:$0xff] %vm245_vm0, %v2631_v4  ;;  %v2666_v15 = vmul.f32 %v2662_v47, %v2631_v4  ;;  %v428_v4 = vmul.f32 1.442695, %v377_v22  ;;  %v1364_v39 = vmul.f32 0.6931472, %v5631_v57 }
  0xd7   : >> { %1053 = vperm.xlu2 %5482, %v1042_v63   ;;  %1034 = vperm.xlu1 %5481, %v8463_v0   ;;  %793 = vst.msk [vmem:[#allocation3 + $0x108] sm:$0xff] %vm245_vm0, %v761_v25  ;;  %5636 = vpow2.f32 %v434_v2  ;;  %v382_v29 = vmul.f32 %v6513_v18, %v6199_v48  ;;  %v6535_v0 = vperm.slane %v706_v21, 0 }
  0xd8   : >> { %v6515_v30 = vadd.f32 %v2671_v42, %v2666_v15  ;;  %1609 = vperm.xlu0 %5515, %v8417_v40   ;;  %472 = vst.msk [vmem:[#allocation2 + $0x120] sm:$0xff] %vm245_vm0, %v5629_v52  ;;  %5638 = vpow2.f32 %v428_v4  ;;  %v1350_v42 = vmax.f32 %v6379_v13, 0.0  ;;  %v8415_v15 = vperm.slane %v6189_v43, 1 }
  0xd9   : >> { %v563_v47 = vpop.permute.xlu1 %562  ;;  %v5633_v25 = vpop.eup %5632  ;;  %v438_v52 = vmul.f32 1.442695, %v382_v29  ;;  %5640 = vpow2.f32 %v1888_v26  ;;  %v1344_v26 = vld [vmem:[%s6467_s28 + $0x8] sm:$0xff] }
  0xda   : >> { %2679 = vst.msk [vmem:[#allocation3 + $0xc0] sm:$0xff] %vm245_vm0, %v6515_v30  ;;  %v755_v62 = vmul.f32 %v6353_v9, %v563_v47  ;;  %v1578_v50 = vpop.permute.xlu0 %1577  ;;  %v1764_v9 = vrot.slane %v6494_v1, 7  ;;  %v5635_v22 = vpop.eup %5634  ;;  %v6537_v57 = vadd.f32 %v1364_v39, %v1350_v42  ;;  %v8419_v39 = vperm.slane %v6149_v24, 4 }
  0xdb   : >> { %v1808_v34 = vmul.f32 %v6520_v8, %v1578_v50  ;;  %474 = vst.msk [vmem:[#allocation2 + $0x140] sm:$0xff] %vm245_vm0, %v5633_v25  ;;  %5642 = vpow2.f32 %v438_v52  ;;  %v1880_v25 = vmax.f32 %v6394_v19, 0.0  ;;  %v1893_v42 = vmul.f32 0.6931472, %v5635_v22 }
  0xdc   : >> { %787 = vst.msk [vmem:[#allocation3 + $0xa8] sm:$0xff] %vm245_vm0, %v755_v62  ;;  %v6544_v4 = vperm.slane %v1764_v9, 0  ;;  %v6553_v52 = vmul.f32 %v6537_v57, %v1344_v26  ;;  %v8416_v9 = vperm.slane %v6189_v43, 6  ;;  %v5354_v26 = vld [vmem:[%s6467_s28 + $0x40] sm:$0xff] }
  0xdd   : >> { %1840 = vst.msk [vmem:[#allocation5 + $0x40] sm:$0xff] %vm245_vm0, %v1808_v34  ;;  %v5637_v13 = vpop.eup %5636  ;;  %v6562_v22 = vadd.f32 %v1893_v42, %v1880_v25 }
  0xde   : >> { %v5639_v2 = vpop.eup %5638  ;;  %476 = vst.msk [vmem:[#allocation2 + $0x160] sm:$0xff] %vm245_vm0, %v5637_v13  ;;  %v1768_v19 = vrot.slane %v6553_v52, 4 }
  0xdf   : >> { %5484 = vset.pattern.permute.xlu2 %v6110_v11  ;;  %1047 = vperm.xlu1 %5481, %v1042_v63   ;;  %473 = vst.msk [vmem:[#allocation2 + $0x128] sm:$0xff] %vm245_vm0, %v5639_v2  ;;  %v5641_v29 = vpop.eup %5640  ;;  %v707_v63 = vrot.slane %v6344_v54, 3 }
  0xe0   : >> { %1674 = vperm.xlu0 %5515, %v8415_v15   ;;  %v1891_v13 = vadd.f32 1.0, %v5641_v29  ;;  %8464 = vst [vmem:[#allocation10_spill] sm:$0xff] %v6562_v22 }
  0xe1   : >> { %v622_v47 = vpop.permute.xlu2 %621  ;;  %v5643_v21 = vpop.eup %5642  ;;  %v6559_v2 = vperm.slane %v707_v63, 0 }
  0xe2   : >> { %v1643_v62 = vpop.permute.xlu0 %1642  ;;  %v764_v50 = vmul.f32 %v6535_v0, %v622_v47  ;;  %478 = vst.msk [vmem:[#allocation2 + $0x180] sm:$0xff] %vm245_vm0, %v5643_v21  ;;  %v8465_v47 = vperm.slane %v6191_v44, 0  ;;  %5644 = vlog2.f32 %v1891_v13  ;;  %v8418_v44 = vperm.slane %v6208_v51, 3 }
  0xe3   : >> { %v1818_v34 = vmul.f32 %v6544_v4, %v1643_v62 }
  0xe4   : >> { %796 = vst.msk [vmem:[#allocation3 + $0x140] sm:$0xff] %vm245_vm0, %v764_v50  ;;  %v359_v62 = vmul.f32 %v8465_v47, %v6296_v61  ;;  %v6573_v50 = vperm.slane %v1768_v19, 0  ;;  %v361_v19 = vmul.f32 %v6213_v53, %v6296_v61  ;;  %v2706_v47 = vld [vmem:[#allocation2 + $0xe0] sm:$0xff]  ;;  %v363_v53 = vmul.f32 %v6220_v60, %v6296_v61 }
  0xe5   : >> { %1850 = vst.msk [vmem:[#allocation5 + $0xe0] sm:$0xff] %vm245_vm0, %v1818_v34 }
  0xe6   : >> { %8466 = vst [vmem:[#allocation11_spill] sm:$0xff] %v6573_v50  ;;  %v392_v34 = vmul.f32 1.442695, %v359_v62  ;;  %v396_v13 = vmul.f32 1.442695, %v361_v19  ;;  %v8467_v62 = vperm.slane %v6149_v24, 5 }
  0xe7   : >> { %1073 = vperm.xlu2 %5484, %v8419_v39   ;;  %5483 = vset.pattern.permute.xlu1 %v6128_v16  ;;  %v400_v40 = vmul.f32 1.442695, %v363_v53 }
  0xe8   : >> { %1739 = vperm.xlu0 %5515, %v8416_v9   ;;  %v6579_v9 = vmul.f32 %v5354_v26, %v6562_v22  ;;  %5646 = vpow2.f32 %v392_v34  ;;  %v8468_v26 = vperm.slane %v6149_v24, 3  ;;  %v8470_v34 = vperm.slane %v6344_v54, 0 }
  0xe9   : >> { %v583_v29 = vpop.permute.xlu1 %582  ;;  %v635_v63 = vpop.permute.xlu2 %634  ;;  %5648 = vpow2.f32 %v396_v13 }
  0xea   : >> { %v758_v25 = vmul.f32 %v6438_v41, %v583_v29  ;;  %v1708_v21 = vpop.permute.xlu0 %1707  ;;  %v766_v42 = vmul.f32 %v6559_v2, %v635_v63  ;;  %v2289_v41 = vrot.slane %v6579_v9, 1  ;;  %v5645_v29 = vpop.eup %5644  ;;  %5650 = vpow2.f32 %v400_v40 }
  0xeb   : >> { %v1828_v15 = vmul.f32 %v6573_v50, %v1708_v21  ;;  %v1895_v39 = vmul.f32 0.6931472, %v5645_v29  ;;  %v8472_v40 = vperm.slane %v6149_v24, 4 }
  0xec   : >> { %790 = vst.msk [vmem:[#allocation3 + $0xe0] sm:$0xff] %vm245_vm0, %v758_v25  ;;  %v6597_v25 = vperm.slane %v2289_v41, 0 }
  0xed   : >> { %1860 = vst.msk [vmem:[#allocation5 + $0x180] sm:$0xff] %vm245_vm0, %v1828_v15  ;;  %v321_v15 = vrot.slane %v6330_v17, 5 }
  0xee   : >> { %798 = vst.msk [vmem:[#allocation3 + $0x160] sm:$0xff] %vm245_vm0, %v766_v42  ;;  %v5647_v21 = vpop.eup %5646  ;;  %v2710_v42 = vmul.f32 %v2706_v47, %v6515_v30  ;;  %v8422_v30 = vperm.slane %v6252_v35, 0  ;;  %v2294_v47 = vrot.slane %v6579_v9, 6 }
  0xef   : >> { %1086 = vperm.xlu2 %5484, %v8467_v62   ;;  %1066 = vperm.xlu1 %5483, %v8468_v26   ;;  %8469 = vst [vmem:[#allocation12_spill] sm:$0xff] %v6597_v25  ;;  %v708_v26 = vrot.slane %v6344_v54, 4  ;;  %v6606_v41 = vperm.slane %v321_v15, 0  ;;  %v5649_v29 = vpop.eup %5648 }
  0xf0   : >> { %2127 = vperm.xlu0 %5515, %v8418_v44   ;;  %v1881_v44 = vmax.f32 %v6449_v14, 0.0  ;;  %455 = vst.msk [vmem:[#allocation2 + $0x8] sm:$0xff] %vm245_vm0, %v5647_v21 }
  0xf1   : >> { %v596_v63 = vpop.permute.xlu1 %595  ;;  %v384_v14 = vmul.f32 %v6606_v41, %v6199_v48  ;;  %v6615_v53 = vperm.slane %v708_v26, 0  ;;  %457 = vst.msk [vmem:[#allocation2 + $0x28] sm:$0xff] %vm245_vm0, %v5649_v29  ;;  %v6630_v26 = vld [vmem:[%s6114_s8 + $0x40] sm:$0xff] }
  0xf2   : >> { %v760_v19 = vmul.f32 %v8470_v34, %v596_v63  ;;  %v2096_v62 = vpop.permute.xlu0 %2095  ;;  %v6617_v15 = vadd.f32 %v1895_v39, %v1881_v44  ;;  %v2750_v63 = vld [vmem:[#allocation2 + $0x100] sm:$0xff]  ;;  %v322_v34 = vrot.slane %v6330_v17, 6  ;;  %v5651_v39 = vpop.eup %5650  ;;  %v8427_v24 = vperm.slane %v6630_v26, 6 }
  0xf3   : >> { %v2715_v60 = vld [vmem:[#allocation3 + $0xe0] sm:$0xff]  ;;  %v2337_v13 = vmul.f32 %v6597_v25, %v2096_v62  ;;  %v442_v21 = vmul.f32 1.442695, %v384_v14  ;;  %459 = vst.msk [vmem:[#allocation2 + $0x48] sm:$0xff] %vm245_vm0, %v5651_v39 }
  0xf4   : >> { %v2719_v22 = vadd.f32 %v2715_v60, %v2710_v42  ;;  %792 = vst.msk [vmem:[#allocation3 + $0x100] sm:$0xff] %vm245_vm0, %v760_v19  ;;  %v5355_v42 = vld [vmem:[%s6467_s28 + $0x48] sm:$0xff]  ;;  %v6627_v19 = vperm.slane %v2294_v47, 0  ;;  %v6634_v14 = vperm.slane %v322_v34, 0  ;;  %v2794_v29 = vld [vmem:[#allocation2 + $0x120] sm:$0xff]  ;;  %v369_v34 = vmul.f32 %v6286_v38, %v6296_v61 }
  0xf5   : >> { %2369 = vst.msk [vmem:[#allocation5 + $0x30] sm:$0xff] %vm245_vm0, %v2337_v13  ;;  %5652 = vpow2.f32 %v442_v21  ;;  %v6639_v25 = vmul.f32 %v5355_v42, %v6617_v15 }
  0xf6   : >> { %2723 = vst.msk [vmem:[#allocation3 + $0xe0] sm:$0xff] %vm245_vm0, %v2719_v22  ;;  %v2754_v44 = vmul.f32 %v2750_v63, %v2719_v22  ;;  %v709_v22 = vrot.slane %v6344_v54, 5  ;;  %v386_v21 = vmul.f32 %v6634_v14, %v6199_v48 }
  0xf7   : >> { %8471 = vst [vmem:[#allocation13_spill] sm:$0xff] %v6617_v15  ;;  %5486 = vset.pattern.permute.xlu2 %v6128_v16  ;;  %1079 = vperm.xlu1 %5483, %v8472_v40   ;;  %v2298_v42 = vrot.slane %v6639_v25, 3  ;;  %v412_v15 = vmul.f32 1.442695, %v369_v34 }
  0xf8   : >> { %2192 = vperm.xlu0 %5515, %v8422_v30   ;;  %8473 = vst [vmem:[#allocation14_spill] sm:$0xff] %v6627_v19  ;;  %v2803_v30 = vld [vmem:[#allocation3 + $0x120] sm:$0xff]  ;;  %v6657_v38 = vperm.slane %v709_v22, 0 }
  0xf9   : >> { %v654_v62 = vpop.permute.xlu2 %653 }
  0xfa   : >> { %v2161_v60 = vpop.permute.xlu0 %2160  ;;  %v769_v13 = vmul.f32 %v6615_v53, %v654_v62  ;;  %v323_v62 = vrot.slane %v6330_v17, 7 }
  0xfb   : >> { %v2759_v40 = vld [vmem:[#allocation3 + $0x100] sm:$0xff]  ;;  %v2347_v47 = vmul.f32 %v6627_v19, %v2161_v60  ;;  %v446_v60 = vmul.f32 1.442695, %v386_v21 }
  0xfc   : >> { %v2763_v63 = vadd.f32 %v2759_v40, %v2754_v44  ;;  %801 = vst.msk [vmem:[#allocation3 + $0x188] sm:$0xff] %vm245_vm0, %v769_v13  ;;  %v6652_v44 = vperm.slane %v323_v62, 0  ;;  %v5653_v13 = vpop.eup %5652  ;;  %v2838_v40 = vld [vmem:[#allocation2 + $0x140] sm:$0xff] }
  0xfd   : >> { %2379 = vst.msk [vmem:[#allocation5 + $0xd0] sm:$0xff] %vm245_vm0, %v2347_v47  ;;  %v8474_v47 = vperm.slane %v6252_v35, 5  ;;  %5654 = vpow2.f32 %v446_v60  ;;  %v2847_v21 = vld [vmem:[#allocation3 + $0x140] sm:$0xff] }
  0xfe   : >> { %2767 = vst.msk [vmem:[#allocation3 + $0x100] sm:$0xff] %vm245_vm0, %v2763_v63  ;;  %v2798_v39 = vmul.f32 %v2794_v29, %v2763_v63  ;;  %v371_v29 = vmul.f32 %v6312_v45, %v6296_v61  ;;  %v388_v63 = vmul.f32 %v6652_v44, %v6199_v48  ;;  %5656 = vpow2.f32 %v412_v15 }
  0xff   : >> { %1105 = vperm.xlu2 %5486, %v8427_v24   ;;  %5485 = vset.pattern.permute.xlu1 %v6110_v11  ;;  %480 = vst.msk [vmem:[#allocation2 + $0x1a0] sm:$0xff] %vm245_vm0, %v5653_v13  ;;  %v6666_v24 = vperm.slane %v2298_v42, 0  ;;  %v2882_v13 = vld [vmem:[#allocation2 + $0x160] sm:$0xff]  ;;  %v6675_v15 = vadd.s32 80, %v6104_v10 }
 0x100   : >> { %v2807_v19 = vadd.f32 %v2803_v30, %v2798_v39  ;;  %2257 = vperm.xlu0 %5515, %v8474_v47   ;;  %v416_v60 = vmul.f32 1.442695, %v371_v29  ;;  %v1107_v47 = vperm.slane %v6630_v26, 7  ;;  %v450_v50 = vmul.f32 1.442695, %v388_v63 }
 0x101   : >> { %v615_v62 = vpop.permute.xlu1 %614  ;;  %v667_v22 = vpop.permute.xlu2 %666  ;;  %v856_v63 = vperm.slane %v6390_v55, 0 }
 0x102   : >> { %2811 = vst.msk [vmem:[#allocation3 + $0x120] sm:$0xff] %vm245_vm0, %v2807_v19  ;;  %v2842_v30 = vmul.f32 %v2838_v40, %v2807_v19  ;;  %v763_v34 = vmul.f32 %v6359_v46, %v615_v62  ;;  %v2226_v39 = vpop.permute.xlu0 %2225  ;;  %v771_v48 = vmul.f32 %v6657_v38, %v667_v22  ;;  %v373_v19 = vmul.f32 %v6328_v27, %v6296_v61  ;;  %v2891_v46 = vld [vmem:[#allocation3 + $0x160] sm:$0xff]  ;;  %v6688_v27 = vld [vmem:[%s8394_s2 + $0x10] sm:$0xff] }
 0x103   : >> { %v2357_v45 = vmul.f32 %v6666_v24, %v2226_v39  ;;  %5658 = vpow2.f32 %v416_v60  ;;  %v5655_v42 = vpop.eup %5654  ;;  %v8475_v62 = vperm.slane %v6630_v26, 6  ;;  %v888_v26 = vmul.f32 %v6688_v27, %v856_v63 }
 0x104   : >> { %v2851_v3 = vadd.f32 %v2847_v21, %v2842_v30  ;;  %795 = vst.msk [vmem:[#allocation3 + $0x128] sm:$0xff] %vm245_vm0, %v763_v34  ;;  %5660 = vpow2.f32 %v450_v50  ;;  %v420_v29 = vmul.f32 1.442695, %v373_v19  ;;  %v5657_v21 = vpop.eup %5656  ;;  %v6701_v34 = vld [vmem:[%s6114_s8] sm:$0xff]  ;;  %v839_v39 = vrot.slane %v6390_v55, 1 }
 0x105   : >> { %2389 = vst.msk [vmem:[#allocation5 + $0x170] sm:$0xff] %vm245_vm0, %v2357_v45  ;;  %v711_v45 = vrot.slane %v6344_v54, 7 }
 0x106   : >> { %2855 = vst.msk [vmem:[#allocation3 + $0x140] sm:$0xff] %vm245_vm0, %v2851_v3  ;;  %v2886_v40 = vmul.f32 %v2882_v13, %v2851_v3  ;;  %v8476_v3 = vperm.slane %v6330_v17, 0  ;;  %5662 = vpow2.f32 %v420_v29 }
 0x107   : >> { %1118 = vperm.xlu2 %5486, %v1107_v47   ;;  %1099 = vperm.xlu1 %5485, %v8475_v62   ;;  %803 = vst.msk [vmem:[#allocation3 + $0x1a8] sm:$0xff] %vm245_vm0, %v771_v48  ;;  %v920_v48 = vmul.f32 1.442695, %v888_v26  ;;  %v6717_v54 = vperm.slane %v711_v45, 0  ;;  %v8432_v45 = vperm.slane %v6701_v34, 5 }
 0x108   : >> { %v6690_v50 = vadd.f32 %v2891_v46, %v2886_v40  ;;  %5520 = vset.pattern.permute.xlu0 %v6675_v15  ;;  %482 = vst.msk [vmem:[#allocation2 + $0x1c0] sm:$0xff] %vm245_vm0, %v5655_v42  ;;  %v375_v22 = vmul.f32 %v8476_v3, %v6296_v61  ;;  %v6710_v46 = vperm.slane %v839_v39, 0  ;;  %v8435_v42 = vperm.slane %v6701_v34, 0 }
 0x109   : >> { %v628_v30 = vpop.permute.xlu1 %627  ;;  %465 = vst.msk [vmem:[#allocation2 + $0xa8] sm:$0xff] %vm245_vm0, %v5657_v21  ;;  %v5659_v60 = vpop.eup %5658  ;;  %v379_v21 = vmul.f32 %v6472_v37, %v6296_v61  ;;  %v381_v37 = vmul.f32 %v6498_v32, %v6296_v61  ;;  %v383_v32 = vmul.f32 %v6513_v18, %v6296_v61 }
 0x10a   : >> { %2899 = vst.msk [vmem:[#allocation3 + $0x160] sm:$0xff] %vm245_vm0, %v6690_v50  ;;  %v765_v13 = vmul.f32 %v6535_v0, %v628_v30  ;;  %v424_v17 = vmul.f32 1.442695, %v375_v22  ;;  %v5661_v19 = vpop.eup %5660  ;;  %v890_v0 = vmul.f32 %v6688_v27, %v6710_v46 }
 0x10b   : >> { %467 = vst.msk [vmem:[#allocation2 + $0xc8] sm:$0xff] %vm245_vm0, %v5659_v60  ;;  %v432_v30 = vmul.f32 1.442695, %v379_v21  ;;  %v8477_v60 = vperm.slane %v6241_v23, 0  ;;  %v436_v23 = vmul.f32 1.442695, %v381_v37 }
 0x10c   : >> { %797 = vst.msk [vmem:[#allocation3 + $0x148] sm:$0xff] %vm245_vm0, %v765_v13  ;;  %5664 = vpow2.f32 %v424_v17  ;;  %v5663_v40 = vpop.eup %5662  ;;  %v924_v29 = vmul.f32 1.442695, %v890_v0  ;;  %v6729_v13 = vld [vmem:[%s6114_s8 + $0x48] sm:$0xff] }
 0x10d   : >> { %484 = vst.msk [vmem:[#allocation2 + $0x1e0] sm:$0xff] %vm245_vm0, %v5661_v19  ;;  %5666 = vpow2.f32 %v920_v48  ;;  %v1133_v17 = vperm.slane %v6729_v13, 1  ;;  %v2400_v48 = vld [vmem:[#allocation2 + $0x8] sm:$0xff]  ;;  %v1242_v19 = vperm.slane %v6406_v56, 0 }
 0x10e   : >> { %469 = vst.msk [vmem:[#allocation2 + $0xe8] sm:$0xff] %vm245_vm0, %v5663_v40  ;;  %5668 = vpow2.f32 %v924_v29  ;;  %v6750_v40 = vld [vmem:[%s8394_s2 + $0x18] sm:$0xff]  ;;  %v2404_v29 = vmul.f32 %v5963_v7, %v2400_v48 }
 0x10f   : >> { %5488 = vset.pattern.permute.xlu2 %v6110_v11  ;;  %1112 = vperm.xlu1 %5485, %v1107_v47   ;;  %5670 = vpow2.f32 %v432_v30  ;;  %v889_v7 = vmul.f32 %v6750_v40, %v856_v63 }
 0x110   : >> { %3140 = vperm.xlu0 %5520, %v8435_v42   ;;  %5672 = vpow2.f32 %v436_v23 }
 0x111   : >> { %v687_v62 = vpop.permute.xlu2 %686 }
 0x112   : >> { %v5665_v3 = vpop.eup %5664  ;;  %v498_v22 = vpop.permute.xlu0 %497  ;;  %v774_v26 = vmul.f32 %v6717_v54, %v687_v62  ;;  %v6755_v62 = vld [vmem:[%s6114_s8 + $0x8] sm:$0xff] }
 0x113   : >> { %v5667_v39 = vpop.eup %5666  ;;  %v745_v47 = vmul.f32 %v8477_v60, %v498_v22  ;;  %471 = vst.msk [vmem:[#allocation2 + $0x108] sm:$0xff] %vm245_vm0, %v5665_v3  ;;  %v2443_v60 = vld [vmem:[#allocation2 + $0x28] sm:$0xff]  ;;  %v8429_v37 = vperm.slane %v6755_v62, 2 }
 0x114   : >> { %806 = vst.msk [vmem:[#allocation3 + $0x1e0] sm:$0xff] %vm245_vm0, %v774_v26  ;;  %v5669_v0 = vpop.eup %5668 }
 0x115   : >> { %777 = vst.msk [vmem:[#allocation3 + $0x8] sm:$0xff] %vm245_vm0, %v745_v47  ;;  %v5671_v22 = vpop.eup %5670 }
 0x116   : >> { %984 = vst.msk [vmem:[#allocation2 + $0x10] sm:$0xff] %vm245_vm0, %v5667_v39  ;;  %v440_v39 = vmul.f32 1.442695, %v383_v32  ;;  %v5673_v23 = vpop.eup %5672  ;;  %v2926_v32 = vld [vmem:[#allocation2 + $0x180] sm:$0xff] }
 0x117   : >> { %1138 = vperm.xlu2 %5488, %v1133_v17   ;;  %5487 = vset.pattern.permute.xlu1 %v6128_v16  ;;  %986 = vst.msk [vmem:[#allocation2 + $0x30] sm:$0xff] %vm245_vm0, %v5669_v0 }
 0x118   : >> { %3205 = vperm.xlu0 %5520, %v8432_v45   ;;  %475 = vst.msk [vmem:[#allocation2 + $0x148] sm:$0xff] %vm245_vm0, %v5671_v22  ;;  %5674 = vpow2.f32 %v440_v39 }
 0x119   : >> { %v648_v21 = vpop.permute.xlu1 %647  ;;  %v1022_v3 = vpop.permute.xlu2 %1021  ;;  %477 = vst.msk [vmem:[#allocation2 + $0x168] sm:$0xff] %vm245_vm0, %v5673_v23  ;;  %v8431_v23 = vperm.slane %v6755_v62, 7 }
 0x11a   : >> { %v768_v26 = vmul.f32 %v6615_v53, %v648_v21  ;;  %v576_v30 = vpop.permute.xlu0 %575  ;;  %v1274_v61 = vmul.f32 %v1242_v19, %v1022_v3  ;;  %v5872_v53 = vld [vmem:[%s8394_s2 + $0x8] sm:$0xff]  ;;  %v8478_v21 = vperm.slane %v6156_v28, 2  ;;  %v8479_v3 = vperm.slane %v6156_v28, 0 }
 0x11b   : >> { %v757_v18 = vmul.f32 %v6388_v12, %v576_v30  ;;  %v385_v48 = vmul.f32 %v5872_v53, %v6606_v41  ;;  %v891_v41 = vmul.f32 %v6750_v40, %v6710_v46  ;;  %v2487_v30 = vld [vmem:[#allocation2 + $0x48] sm:$0xff]  ;;  %v387_v39 = vmul.f32 %v5872_v53, %v6634_v14 }
 0x11c   : >> { %v2408_v47 = vld [vmem:[#allocation3 + $0x8] sm:$0xff]  ;;  %800 = vst.msk [vmem:[#allocation3 + $0x180] sm:$0xff] %vm245_vm0, %v768_v26 }
 0x11d   : >> { %v2412_v12 = vadd.f32 %v2408_v47, %v2404_v29  ;;  %789 = vst.msk [vmem:[#allocation3 + $0xc8] sm:$0xff] %vm245_vm0, %v757_v18  ;;  %v444_v0 = vmul.f32 1.442695, %v385_v48  ;;  %v2401_v22 = vld [vmem:[#allocation2 + $0x10] sm:$0xff]  ;;  %v922_v29 = vmul.f32 1.442695, %v889_v7  ;;  %v2930_v48 = vmul.f32 %v2926_v32, %v6690_v50 }
 0x11e   : >> { %1306 = vst.msk [vmem:[#allocation3 + $0x10] sm:$0xff] %vm245_vm0, %v1274_v61  ;;  %v2452_v26 = vld [vmem:[#allocation3 + $0x28] sm:$0xff]  ;;  %v840_v61 = vrot.slane %v6390_v55, 2  ;;  %v5675_v47 = vpop.eup %5674  ;;  %v926_v14 = vmul.f32 1.442695, %v891_v41 }
 0x11f   : >> { %2416 = vst.msk [vmem:[#allocation3 + $0x8] sm:$0xff] %vm245_vm0, %v2412_v12  ;;  %v2447_v63 = vmul.f32 %v2443_v60, %v2412_v12  ;;  %1151 = vperm.xlu2 %5488, %v8478_v21   ;;  %1131 = vperm.xlu1 %5487, %v8479_v3   ;;  %5676 = vpow2.f32 %v444_v0  ;;  %v2405_v12 = vmul.f32 %v5959_v6, %v2401_v22  ;;  %v448_v21 = vmul.f32 1.442695, %v387_v39  ;;  %v2970_v39 = vld [vmem:[#allocation2 + $0x1a0] sm:$0xff] }
 0x120   : >> { %3270 = vperm.xlu0 %5520, %v8429_v37   ;;  %5678 = vpow2.f32 %v922_v29  ;;  %v2496_v37 = vld [vmem:[#allocation3 + $0x48] sm:$0xff]  ;;  %v858_v50 = vperm.slane %v840_v61, 0  ;;  %479 = vst.msk [vmem:[#allocation2 + $0x188] sm:$0xff] %vm245_vm0, %v5675_v47 }
 0x121   : >> { %v2456_v18 = vadd.f32 %v2452_v26, %v2447_v63  ;;  %v661_v60 = vpop.permute.xlu1 %660  ;;  %v2531_v63 = vld [vmem:[#allocation2 + $0x68] sm:$0xff]  ;;  %5680 = vpow2.f32 %v448_v21 }
 0x122   : >> { %v770_v46 = vmul.f32 %v6657_v38, %v661_v60  ;;  %v641_v7 = vpop.permute.xlu0 %640  ;;  %v389_v38 = vmul.f32 %v5872_v53, %v6652_v44  ;;  %5682 = vpow2.f32 %v926_v14  ;;  %v2540_v44 = vld [vmem:[#allocation3 + $0x68] sm:$0xff]  ;;  %v893_v61 = vmul.f32 %v6750_v40, %v858_v50 }
 0x123   : >> { %2460 = vst.msk [vmem:[#allocation3 + $0x28] sm:$0xff] %vm245_vm0, %v2456_v18  ;;  %v2491_v0 = vmul.f32 %v2487_v30, %v2456_v18  ;;  %v2935_v3 = vld [vmem:[#allocation3 + $0x180] sm:$0xff]  ;;  %v767_v6 = vmul.f32 %v6559_v2, %v641_v7 }
 0x124   : >> { %v2939_v26 = vadd.f32 %v2935_v3, %v2930_v48  ;;  %802 = vst.msk [vmem:[#allocation3 + $0x1a0] sm:$0xff] %vm245_vm0, %v770_v46  ;;  %v6805_v2 = vld [vmem:[%s6114_s8 + $0x40] sm:$0xff]  ;;  %v452_v53 = vmul.f32 1.442695, %v389_v38  ;;  %v1159_v3 = vperm.slane %v6729_v13, 3  ;;  %v2584_v38 = vld [vmem:[#allocation3 + $0x88] sm:$0xff] }
 0x125   : >> { %v2500_v32 = vadd.f32 %v2496_v37, %v2491_v0  ;;  %v2409_v22 = vld [vmem:[#allocation3 + $0x10] sm:$0xff]  ;;  %v5677_v30 = vpop.eup %5676  ;;  %v2575_v37 = vld [vmem:[#allocation2 + $0x88] sm:$0xff]  ;;  %799 = vst.msk [vmem:[#allocation3 + $0x168] sm:$0xff] %vm245_vm0, %v767_v6  ;;  %v8430_v14 = vperm.slane %v6805_v2, 4  ;;  %v930_v6 = vmul.f32 1.442695, %v893_v61 }
 0x126   : >> { %2943 = vst.msk [vmem:[#allocation3 + $0x180] sm:$0xff] %vm245_vm0, %v2939_v26  ;;  %v6795_v41 = vadd.f32 %v2409_v22, %v2405_v12  ;;  %v5679_v18 = vpop.eup %5678  ;;  %v2974_v46 = vmul.f32 %v2970_v39, %v2939_v26  ;;  %v3014_v12 = vld [vmem:[#allocation2 + $0x1c0] sm:$0xff]  ;;  %5684 = vpow2.f32 %v452_v53  ;;  %v1228_v26 = vrot.slane %v6406_v56, 1 }
 0x127   : >> { %2504 = vst.msk [vmem:[#allocation3 + $0x48] sm:$0xff] %vm245_vm0, %v2500_v32  ;;  %v2535_v29 = vmul.f32 %v2531_v63, %v2500_v32  ;;  %5490 = vset.pattern.permute.xlu2 %v6128_v16  ;;  %1144 = vperm.xlu1 %5487, %v1133_v17   ;;  %v841_v17 = vrot.slane %v6390_v55, 3  ;;  %v5681_v48 = vpop.eup %5680  ;;  %v2619_v32 = vld [vmem:[#allocation2 + $0xa8] sm:$0xff]  ;;  %v1229_v53 = vrot.slane %v6406_v56, 2  ;;  %5686 = vpow2.f32 %v930_v6 }
 0x128   : >> { %3335 = vperm.xlu0 %5520, %v8431_v23   ;;  %481 = vst.msk [vmem:[#allocation2 + $0x1a8] sm:$0xff] %vm245_vm0, %v5677_v30  ;;  %v5683_v22 = vpop.eup %5682  ;;  %v2707_v23 = vld [vmem:[#allocation2 + $0xe8] sm:$0xff] }
 0x129   : >> { %v2544_v60 = vadd.f32 %v2540_v44, %v2535_v29  ;;  %v6809_v47 = vpop.permute.xlu2 %1040  ;;  %2417 = vst.msk [vmem:[#allocation3 + $0x10] sm:$0xff] %vm245_vm0, %v6795_v41  ;;  %v3023_v29 = vld [vmem:[#allocation3 + $0x1c0] sm:$0xff]  ;;  %v6822_v44 = vperm.slane %v841_v17, 0  ;;  %v2663_v17 = vld [vmem:[#allocation2 + $0xc8] sm:$0xff]  ;;  %v6848_v6 = vperm.slane %v1229_v53, 0 }
 0x12a   : >> { %v1028_v7 = vpop.permute.xlu0 %1027  ;;  %483 = vst.msk [vmem:[#allocation2 + $0x1c8] sm:$0xff] %vm245_vm0, %v5681_v48  ;;  %v3058_v48 = vld [vmem:[#allocation2 + $0x1e0] sm:$0xff] }
 0x12b   : >> { %v2979_v21 = vld [vmem:[#allocation3 + $0x1a0] sm:$0xff]  ;;  %2548 = vst.msk [vmem:[#allocation3 + $0x68] sm:$0xff] %vm245_vm0, %v2544_v60  ;;  %v2579_v0 = vmul.f32 %v2575_v37, %v2544_v60  ;;  %v1275_v39 = vmul.f32 %v1242_v19, %v1028_v7  ;;  %v892_v37 = vmul.f32 %v6688_v27, %v858_v50  ;;  %v894_v19 = vmul.f32 %v6688_v27, %v6822_v44 }
 0x12c   : >> { %v2983_v63 = vadd.f32 %v2979_v21, %v2974_v46  ;;  %985 = vst.msk [vmem:[#allocation2 + $0x18] sm:$0xff] %vm245_vm0, %v5679_v18  ;;  %v842_v50 = vrot.slane %v6390_v55, 4  ;;  %v2628_v18 = vld [vmem:[#allocation3 + $0xa8] sm:$0xff]  ;;  %v6837_v7 = vperm.slane %v1228_v26, 0  ;;  %v3067_v21 = vld [vmem:[#allocation3 + $0x1e0] sm:$0xff] }
 0x12d   : >> { %v2588_v30 = vadd.f32 %v2584_v38, %v2579_v0  ;;  %987 = vst.msk [vmem:[#allocation2 + $0x38] sm:$0xff] %vm245_vm0, %v5683_v22  ;;  %v928_v38 = vmul.f32 1.442695, %v892_v37  ;;  %v932_v37 = vmul.f32 1.442695, %v894_v19 }
 0x12e   : >> { %2987 = vst.msk [vmem:[#allocation3 + $0x1a0] sm:$0xff] %vm245_vm0, %v2983_v63  ;;  %v3018_v60 = vmul.f32 %v3014_v12, %v2983_v63  ;;  %v6841_v63 = vld [vmem:[%s6114_s8 + $0x48] sm:$0xff]  ;;  %v1277_v53 = vmul.f32 %v6837_v7, %v6809_v47 }
 0x12f   : >> { %2592 = vst.msk [vmem:[#allocation3 + $0x88] sm:$0xff] %vm245_vm0, %v2588_v30  ;;  %v2623_v61 = vmul.f32 %v2619_v32, %v2588_v30  ;;  %1170 = vperm.xlu2 %5490, %v1159_v3   ;;  %5489 = vset.pattern.permute.xlu1 %v6110_v11  ;;  %v843_v32 = vrot.slane %v6390_v55, 5  ;;  %v5685_v30 = vpop.eup %5684  ;;  %5688 = vpow2.f32 %v928_v38  ;;  %v2716_v47 = vld [vmem:[#allocation3 + $0xe8] sm:$0xff] }
 0x130   : >> { %v3027_v46 = vadd.f32 %v3023_v29, %v3018_v60  ;;  %3724 = vperm.xlu0 %5520, %v8430_v14   ;;  %1307 = vst.msk [vmem:[#allocation3 + $0x18] sm:$0xff] %vm245_vm0, %v1275_v39  ;;  %v2672_v29 = vld [vmem:[#allocation3 + $0xc8] sm:$0xff]  ;;  %v1172_v39 = vperm.slane %v6729_v13, 4  ;;  %v6852_v14 = vperm.slane %v842_v50, 0  ;;  %v5687_v50 = vpop.eup %5686  ;;  %5690 = vpow2.f32 %v932_v37 }
 0x131   : >> { %v2632_v12 = vadd.f32 %v2628_v18, %v2623_v61  ;;  %v680_v0 = vpop.permute.xlu1 %679  ;;  %v1054_v18 = vpop.permute.xlu2 %1053  ;;  %485 = vst.msk [vmem:[#allocation2 + $0x1e8] sm:$0xff] %vm245_vm0, %v5685_v30  ;;  %v6862_v19 = vperm.slane %v843_v32, 0  ;;  %v1232_v37 = vrot.slane %v6406_v56, 5 }
 0x132   : >> { %3031 = vst.msk [vmem:[#allocation3 + $0x1c0] sm:$0xff] %vm245_vm0, %v3027_v46  ;;  %v3062_v60 = vmul.f32 %v3058_v48, %v3027_v46  ;;  %v773_v22 = vmul.f32 %v6401_v58, %v680_v0  ;;  %v6846_v26 = vpop.permute.xlu0 %1092  ;;  %v8434_v58 = vperm.slane %v6841_v63, 1  ;;  %v2751_v0 = vld [vmem:[#allocation2 + $0x108] sm:$0xff] }
 0x133   : >> { %2636 = vst.msk [vmem:[#allocation3 + $0xa8] sm:$0xff] %vm245_vm0, %v2632_v12  ;;  %v2667_v61 = vmul.f32 %v2663_v17, %v2632_v12  ;;  %v2402_v48 = vld [vmem:[#allocation2 + $0x18] sm:$0xff]  ;;  %v1279_v12 = vmul.f32 %v6848_v6, %v1054_v18 }
 0x134   : >> { %v6854_v45 = vadd.f32 %v3067_v21, %v3062_v60   ;;  %805 = vst.msk [vmem:[#allocation3 + $0x1c8] sm:$0xff] %vm245_vm0, %v773_v22  ;;  %v2406_v17 = vmul.f32 %v5955_v5, %v2402_v48  ;;  %v896_v5 = vmul.f32 %v6688_v27, %v6852_v14  ;;  %v1236_v48 = vrot.slane %v6430_v49, 2 }
 0x135   : >> { %v2676_v46 = vadd.f32 %v2672_v29, %v2667_v61  ;;  %1309 = vst.msk [vmem:[#allocation3 + $0x38] sm:$0xff] %vm245_vm0, %v1277_v53  ;;  %v5689_v61 = vpop.eup %5688 }
 0x136   : >> { %8480 = vst [vmem:[#allocation15_spill] sm:$0xff] %v6854_v45  ;;  %v936_v53 = vmul.f32 1.442695, %v896_v5  ;;  %v6892_v5 = vperm.slane %v1236_v48, 0 }
 0x137   : >> { %3075 = vst.msk [vmem:[#allocation3 + $0x1e0] sm:$0xff] %vm245_vm0, %v6854_v45  ;;  %v2711_v21 = vmul.f32 %v2707_v23, %v2676_v46  ;;  %1183 = vperm.xlu2 %5490, %v1172_v39   ;;  %1164 = vperm.xlu1 %5489, %v1159_v3   ;;  %v2410_v38 = vld [vmem:[#allocation3 + $0x18] sm:$0xff]  ;;  %v898_v3 = vmul.f32 %v6688_v27, %v6862_v19 }
 0x138   : >> { %2680 = vst.msk [vmem:[#allocation3 + $0xc8] sm:$0xff] %vm245_vm0, %v2676_v46  ;;  %3789 = vperm.xlu0 %5520, %v8434_v58   ;;  %v2445_v23 = vld [vmem:[#allocation2 + $0x38] sm:$0xff]  ;;  %v2414_v30 = vadd.f32 %v2410_v38, %v2406_v17  ;;  %v2760_v46 = vld [vmem:[#allocation3 + $0x108] sm:$0xff]  ;;  %v6889_v38 = vperm.slane %v1232_v37, 0  ;;  %5692 = vpow2.f32 %v936_v53  ;;  %v6907_v37 = vld [vmem:[%s6170_s13 + $0x80] sm:$0xff] }
 0x139   : >> { %v2720_v32 = vadd.f32 %v2716_v47, %v2711_v21  ;;  %v693_v29 = vpop.permute.xlu1 %692  ;;  %989 = vst.msk [vmem:[#allocation2 + $0x58] sm:$0xff] %vm245_vm0, %v5687_v50  ;;  %v2795_v17 = vld [vmem:[#allocation2 + $0x128] sm:$0xff]  ;;  %v8433_v21 = vperm.slane %v6841_v63, 6  ;;  %v5691_v47 = vpop.eup %5690 }
 0x13a   : >> { %v775_v60 = vmul.f32 %v6717_v54, %v693_v29  ;;  %v1158_v22 = vpop.permute.xlu0 %1157  ;;  %1311 = vst.msk [vmem:[#allocation3 + $0x58] sm:$0xff] %vm245_vm0, %v1279_v12  ;;  %v2449_v50 = vmul.f32 %v2445_v23, %v2414_v30  ;;  %v1231_v54 = vrot.slane %v6406_v56, 4  ;;  %v895_v23 = vmul.f32 %v6750_v40, %v6822_v44 }
 0x13b   : >> { %2724 = vst.msk [vmem:[#allocation3 + $0xe8] sm:$0xff] %vm245_vm0, %v2720_v32  ;;  %v2755_v18 = vmul.f32 %v2751_v0, %v2720_v32  ;;  %v1241_v0 = vrot.slane %v6430_v49, 7  ;;  %v940_v32 = vmul.f32 1.442695, %v898_v3  ;;  %v1295_v44 = vmul.f32 %v6892_v5, %v1158_v22 }
 0x13c   : >> { %2418 = vst.msk [vmem:[#allocation3 + $0x18] sm:$0xff] %vm245_vm0, %v2414_v30  ;;  %v2804_v30 = vld [vmem:[#allocation3 + $0x128] sm:$0xff]  ;;  %v2454_v3 = vld [vmem:[#allocation3 + $0x38] sm:$0xff]  ;;  %v1198_v22 = vperm.slane %v6729_v13, 6 }
 0x13d   : >> { %v2764_v12 = vadd.f32 %v2760_v46, %v2755_v18  ;;  %807 = vst.msk [vmem:[#allocation3 + $0x1e8] sm:$0xff] %vm245_vm0, %v775_v60  ;;  %v1285_v60 = vmul.f32 %v6889_v38, %v6846_v26  ;;  %v2839_v18 = vld [vmem:[#allocation2 + $0x148] sm:$0xff]  ;;  %v897_v26 = vmul.f32 %v6750_v40, %v6852_v14  ;;  %v844_v46 = vrot.slane %v6390_v55, 6 }
 0x13e   : >> { %988 = vst.msk [vmem:[#allocation2 + $0x50] sm:$0xff] %vm245_vm0, %v5689_v61  ;;  %v2458_v61 = vadd.f32 %v2454_v3, %v2449_v50  ;;  %5694 = vpow2.f32 %v940_v32  ;;  %v1761_v32 = vrot.slane %v6494_v1, 4 }
 0x13f   : >> { %2768 = vst.msk [vmem:[#allocation3 + $0x108] sm:$0xff] %vm245_vm0, %v2764_v12  ;;  %v2799_v29 = vmul.f32 %v2795_v17, %v2764_v12  ;;  %5492 = vset.pattern.permute.xlu2 %v6110_v11  ;;  %1177 = vperm.xlu1 %5489, %v1172_v39   ;;  %v6914_v17 = vperm.slane %v1241_v0, 0  ;;  %v6916_v12 = vperm.slane %v1231_v54, 0  ;;  %v934_v0 = vmul.f32 1.442695, %v895_v23 }
 0x140   : >> { %3854 = vperm.xlu0 %5520, %v8433_v21   ;;  %v2489_v48 = vld [vmem:[#allocation2 + $0x58] sm:$0xff]  ;;  %990 = vst.msk [vmem:[#allocation2 + $0x70] sm:$0xff] %vm245_vm0, %v5691_v47  ;;  %v2848_v21 = vld [vmem:[#allocation3 + $0x148] sm:$0xff]  ;;  %v938_v58 = vmul.f32 1.442695, %v897_v26  ;;  %v862_v42 = vperm.slane %v844_v46, 0 }
 0x141   : >> { %v2808_v39 = vadd.f32 %v2804_v30, %v2799_v29  ;;  %1317 = vst.msk [vmem:[#allocation3 + $0xb8] sm:$0xff] %vm245_vm0, %v1285_v60  ;;  %v2498_v53 = vld [vmem:[#allocation3 + $0x58] sm:$0xff]  ;;  %v1074_v50 = vpop.permute.xlu2 %1073  ;;  %v2493_v47 = vmul.f32 %v2489_v48, %v2458_v61  ;;  %v8439_v30 = vperm.slane %v6907_v37, 3  ;;  %v2883_v60 = vld [vmem:[#allocation2 + $0x168] sm:$0xff]  ;;  %5696 = vpow2.f32 %v934_v0 }
 0x142   : >> { %2462 = vst.msk [vmem:[#allocation3 + $0x38] sm:$0xff] %vm245_vm0, %v2458_v61  ;;  %v1223_v3 = vpop.permute.xlu0 %1222  ;;  %v5693_v61 = vpop.eup %5692  ;;  %v2927_v26 = vld [vmem:[#allocation2 + $0x188] sm:$0xff]  ;;  %5698 = vpow2.f32 %v938_v58  ;;  %v900_v46 = vmul.f32 %v6688_v27, %v862_v42  ;;  %v845_v0 = vrot.slane %v6390_v55, 7 }
 0x143   : >> { %2812 = vst.msk [vmem:[#allocation3 + $0x128] sm:$0xff] %vm245_vm0, %v2808_v39  ;;  %v2843_v14 = vmul.f32 %v2839_v18, %v2808_v39  ;;  %v1305_v29 = vmul.f32 %v6914_v17, %v1223_v3  ;;  %v6924_v54 = vadd.f32 %v2498_v53, %v2493_v47  ;;  %v1282_v18 = vmul.f32 %v6916_v12, %v1074_v50  ;;  %v2892_v3 = vld [vmem:[#allocation3 + $0x168] sm:$0xff] }
 0x144   : >> { %1327 = vst.msk [vmem:[#allocation3 + $0x158] sm:$0xff] %vm245_vm0, %v1295_v44  ;;  %v899_v39 = vmul.f32 %v6750_v40, %v6862_v19  ;;  %v5695_v23 = vpop.eup %5694  ;;  %v6939_v19 = vperm.slane %v1761_v32, 0  ;;  %v6944_v47 = vld [vmem:[%s6170_s13 + $0x88] sm:$0xff] }
 0x145   : >> { %v2852_v48 = vadd.f32 %v2848_v21, %v2843_v14  ;;  %1337 = vst.msk [vmem:[#allocation3 + $0x1f8] sm:$0xff] %vm245_vm0, %v1305_v29  ;;  %v901_v29 = vmul.f32 %v6750_v40, %v862_v42  ;;  %v8438_v55 = vperm.slane %v6944_v47, 0  ;;  %v944_v42 = vmul.f32 1.442695, %v900_v46 }
 0x146   : >> { %2506 = vst.msk [vmem:[#allocation3 + $0x58] sm:$0xff] %vm245_vm0, %v6924_v54  ;;  %v942_v21 = vmul.f32 1.442695, %v899_v39  ;;  %v8482_v46 = vperm.slane %v6156_v28, 5 }
 0x147   : >> { %2856 = vst.msk [vmem:[#allocation3 + $0x148] sm:$0xff] %vm245_vm0, %v2852_v48  ;;  %v2887_v44 = vmul.f32 %v2883_v60, %v2852_v48  ;;  %1203 = vperm.xlu2 %5492, %v1198_v22   ;;  %5491 = vset.pattern.permute.xlu1 %v6128_v16  ;;  %v946_v39 = vmul.f32 1.442695, %v901_v29  ;;  %v8481_v29 = vperm.slane %v6156_v28, 7 }
 0x148   : >> { %4236 = vperm.xlu0 %5520, %v8439_v30   ;;  %992 = vst.msk [vmem:[#allocation2 + $0x90] sm:$0xff] %vm245_vm0, %v5693_v61  ;;  %5700 = vpow2.f32 %v942_v21 }
 0x149   : >> { %v2896_v53 = vadd.f32 %v2892_v3, %v2887_v44  ;;  %v1035_v50 = vpop.permute.xlu1 %1034  ;;  %1314 = vst.msk [vmem:[#allocation3 + $0x90] sm:$0xff] %vm245_vm0, %v1282_v18  ;;  %v1087_v14 = vpop.permute.xlu2 %1086  ;;  %v863_v18 = vperm.slane %v845_v0, 0  ;;  %v2936_v3 = vld [vmem:[#allocation3 + $0x188] sm:$0xff]  ;;  %5702 = vpow2.f32 %v946_v39 }
 0x14a   : >> { %v1276_v60 = vmul.f32 %v6837_v7, %v1035_v50  ;;  %v1610_v32 = vpop.permute.xlu0 %1609  ;;  %994 = vst.msk [vmem:[#allocation2 + $0xb0] sm:$0xff] %vm245_vm0, %v5695_v23  ;;  %v1284_v58 = vmul.f32 %v6889_v38, %v1087_v14  ;;  %v2971_v44 = vld [vmem:[#allocation2 + $0x1a8] sm:$0xff]  ;;  %v5697_v7 = vpop.eup %5696  ;;  %v1765_v38 = vrot.slane %v6553_v52, 1  ;;  %v2444_v14 = vld [vmem:[#allocation2 + $0x30] sm:$0xff]  ;;  %5704 = vpow2.f32 %v944_v42 }
 0x14b   : >> { %2900 = vst.msk [vmem:[#allocation3 + $0x168] sm:$0xff] %vm245_vm0, %v2896_v53  ;;  %v2931_v61 = vmul.f32 %v2927_v26, %v2896_v53  ;;  %v1813_v48 = vmul.f32 %v6939_v19, %v1610_v32  ;;  %v903_v23 = vmul.f32 %v6750_v40, %v863_v18  ;;  %v5699_v26 = vpop.eup %5698  ;;  %v2980_v32 = vld [vmem:[#allocation3 + $0x1a8] sm:$0xff]  ;;  %v2448_v39 = vmul.f32 %v2444_v14, %v6795_v41 }
 0x14c   : >> { %1308 = vst.msk [vmem:[#allocation3 + $0x30] sm:$0xff] %vm245_vm0, %v1276_v60  ;;  %v864_v60 = vperm.slane %v6423_v31, 0  ;;  %v1233_v42 = vrot.slane %v6406_v56, 6  ;;  %v8437_v41 = vperm.slane %v6944_v47, 5 }
 0x14d   : >> { %v2940_v21 = vadd.f32 %v2936_v3, %v2931_v61  ;;  %1845 = vst.msk [vmem:[#allocation5 + $0x88] sm:$0xff] %vm245_vm0, %v1813_v48  ;;  %v950_v0 = vmul.f32 1.442695, %v903_v23  ;;  %v3015_v61 = vld [vmem:[#allocation2 + $0x1c8] sm:$0xff]  ;;  %v6969_v3 = vperm.slane %v1765_v38, 0 }
 0x14e   : >> { %1316 = vst.msk [vmem:[#allocation3 + $0xb0] sm:$0xff] %vm245_vm0, %v1284_v58  ;;  %v5701_v53 = vpop.eup %5700  ;;  %v905_v28 = vmul.f32 %v6750_v40, %v864_v60 }
 0x14f   : >> { %2944 = vst.msk [vmem:[#allocation3 + $0x188] sm:$0xff] %vm245_vm0, %v2940_v21  ;;  %v2975_v50 = vmul.f32 %v2971_v44, %v2940_v21  ;;  %1216 = vperm.xlu2 %5492, %v8481_v29   ;;  %1196 = vperm.xlu1 %5491, %v8482_v46   ;;  %5706 = vpow2.f32 %v950_v0  ;;  %v3059_v29 = vld [vmem:[#allocation2 + $0x1e8] sm:$0xff]  ;;  %v902_v0 = vmul.f32 %v6688_v27, %v863_v18  ;;  %v6999_v18 = vld [vmem:[%s6170_s13 + $0xc0] sm:$0xff] }
 0x150   : >> { %4301 = vperm.xlu0 %5520, %v8438_v55   ;;  %991 = vst.msk [vmem:[#allocation2 + $0x78] sm:$0xff] %vm245_vm0, %v5697_v7  ;;  %v8441_v55 = vperm.slane %v6999_v18, 7 }
 0x151   : >> { %v2984_v58 = vadd.f32 %v2980_v32, %v2975_v50  ;;  %v1048_v48 = vpop.permute.xlu1 %1047  ;;  %993 = vst.msk [vmem:[#allocation2 + $0x98] sm:$0xff] %vm245_vm0, %v5699_v26  ;;  %v954_v26 = vmul.f32 1.442695, %v905_v28  ;;  %v3024_v50 = vld [vmem:[#allocation3 + $0x1c8] sm:$0xff]  ;;  %v2488_v28 = vld [vmem:[#allocation2 + $0x50] sm:$0xff] }
 0x152   : >> { %v1278_v44 = vmul.f32 %v6848_v6, %v1048_v48  ;;  %v1675_v21 = vpop.permute.xlu0 %1674  ;;  %995 = vst.msk [vmem:[#allocation2 + $0xb8] sm:$0xff] %vm245_vm0, %v5701_v53  ;;  %v5703_v6 = vpop.eup %5702  ;;  %v1770_v53 = vrot.slane %v6553_v52, 6 }
 0x153   : >> { %2988 = vst.msk [vmem:[#allocation3 + $0x1a8] sm:$0xff] %vm245_vm0, %v2984_v58  ;;  %v3019_v7 = vmul.f32 %v3015_v61, %v2984_v58  ;;  %v2453_v38 = vld [vmem:[#allocation3 + $0x30] sm:$0xff]  ;;  %v1823_v23 = vmul.f32 %v6969_v3, %v1675_v21  ;;  %v5705_v32 = vpop.eup %5704  ;;  %v6987_v61 = vperm.slane %v1233_v42, 0  ;;  %5708 = vpow2.f32 %v954_v26 }
 0x154   : >> { %v2457_v46 = vadd.f32 %v2453_v38, %v2448_v39  ;;  %1310 = vst.msk [vmem:[#allocation3 + $0x50] sm:$0xff] %vm245_vm0, %v1278_v44  ;;  %v948_v39 = vmul.f32 1.442695, %v902_v0  ;;  %v3068_v44 = vld [vmem:[#allocation3 + $0x1e8] sm:$0xff]  ;;  %v7001_v21 = vperm.slane %v1770_v53, 0  ;;  %v8436_v0 = vperm.slane %v6999_v18, 2 }
 0x155   : >> { %v3028_v14 = vadd.f32 %v3024_v50, %v3019_v7  ;;  %1855 = vst.msk [vmem:[#allocation5 + $0x128] sm:$0xff] %vm245_vm0, %v1823_v23  ;;  %v5707_v58 = vpop.eup %5706  ;;  %v2532_v23 = vld [vmem:[#allocation2 + $0x70] sm:$0xff]  ;;  %v7009_v50 = vld [vmem:[%s6170_s13 + $0x80] sm:$0xff] }
 0x156   : >> { %2461 = vst.msk [vmem:[#allocation3 + $0x30] sm:$0xff] %vm245_vm0, %v2457_v46  ;;  %5710 = vpow2.f32 %v948_v39  ;;  %v2492_v13 = vmul.f32 %v2488_v28, %v2457_v46  ;;  %v846_v28 = vrot.slane %v6423_v31, 1  ;;  %v2629_v30 = vld [vmem:[#allocation3 + $0xb0] sm:$0xff] }
 0x157   : >> { %3032 = vst.msk [vmem:[#allocation3 + $0x1c8] sm:$0xff] %vm245_vm0, %v3028_v14  ;;  %v3063_v48 = vmul.f32 %v3059_v29, %v3028_v14  ;;  %5494 = vset.pattern.permute.xlu2 %v6128_v16  ;;  %1209 = vperm.xlu1 %5491, %v1198_v22   ;;  %v1546_v29 = vperm.slane %v7009_v50, 0  ;;  %v1234_v14 = vrot.slane %v6406_v56, 7 }
 0x158   : >> { %4366 = vperm.xlu0 %5520, %v8437_v41   ;;  %997 = vst.msk [vmem:[#allocation2 + $0xd8] sm:$0xff] %vm245_vm0, %v5703_v6 }
 0x159   : >> { %v6996_v7 = vadd.f32 %v3068_v44, %v3063_v48   ;;  %v1106_v42 = vpop.permute.xlu2 %1105  ;;  %999 = vst.msk [vmem:[#allocation2 + $0xf8] sm:$0xff] %vm245_vm0, %v5707_v58  ;;  %v5709_v53 = vpop.eup %5708  ;;  %v2291_v58 = vrot.slane %v6579_v9, 3  ;;  %v904_v48 = vmul.f32 %v6688_v27, %v864_v60  ;;  %v2576_v44 = vld [vmem:[#allocation2 + $0x90] sm:$0xff] }
 0x15a   : >> { %v1740_v22 = vpop.permute.xlu0 %1739  ;;  %v1287_v38 = vmul.f32 %v6987_v61, %v1106_v42  ;;  %996 = vst.msk [vmem:[#allocation2 + $0xd0] sm:$0xff] %vm245_vm0, %v5705_v32  ;;  %v2541_v32 = vld [vmem:[#allocation3 + $0x70] sm:$0xff]  ;;  %v7024_v42 = vperm.slane %v1234_v14, 0  ;;  %v847_v14 = vrot.slane %v6423_v31, 2 }
 0x15b   : >> { %8483 = vst [vmem:[#allocation16_spill] sm:$0xff] %v6996_v7  ;;  %v2497_v26 = vld [vmem:[#allocation3 + $0x50] sm:$0xff]  ;;  %v1833_v6 = vmul.f32 %v7001_v21, %v1740_v22  ;;  %v865_v22 = vperm.slane %v846_v28, 0 }
 0x15c   : >> { %3076 = vst.msk [vmem:[#allocation3 + $0x1e8] sm:$0xff] %vm245_vm0, %v6996_v7  ;;  %v2501_v46 = vadd.f32 %v2497_v26, %v2492_v13  ;;  %v5711_v39 = vpop.eup %5710  ;;  %v952_v13 = vmul.f32 1.442695, %v904_v48  ;;  %v2585_v60 = vld [vmem:[#allocation3 + $0x90] sm:$0xff]  ;;  %v7039_v41 = vperm.slane %v847_v14, 0 }
 0x15d   : >> { %1319 = vst.msk [vmem:[#allocation3 + $0xd8] sm:$0xff] %vm245_vm0, %v1287_v38 }
 0x15e   : >> { %1865 = vst.msk [vmem:[#allocation5 + $0x1c8] sm:$0xff] %vm245_vm0, %v1833_v6  ;;  %v2536_v56 = vmul.f32 %v2532_v23, %v2501_v46  ;;  %v7030_v23 = vperm.slane %v2291_v58, 0  ;;  %5712 = vpow2.f32 %v952_v13 }
 0x15f   : >> { %2505 = vst.msk [vmem:[#allocation3 + $0x50] sm:$0xff] %vm245_vm0, %v2501_v46  ;;  %5493 = vset.pattern.permute.xlu1 %v6110_v11  ;;  %1557 = vperm.xlu2 %5494, %v1546_v29   ;;  %v906_v46 = vmul.f32 %v6688_v27, %v865_v22 }
 0x160   : >> { %1001 = vst.msk [vmem:[#allocation2 + $0x118] sm:$0xff] %vm245_vm0, %v5709_v53  ;;  %v2545_v38 = vadd.f32 %v2541_v32, %v2536_v56  ;;  %4748 = vperm.xlu0 %5520, %v8436_v0   ;;  %v1559_v32 = vperm.slane %v7009_v50, 1  ;;  %v2620_v56 = vld [vmem:[#allocation2 + $0xb0] sm:$0xff] }
 0x161   : >> { %998 = vst.msk [vmem:[#allocation2 + $0xf0] sm:$0xff] %vm245_vm0, %v5711_v39  ;;  %v1067_v26 = vpop.permute.xlu1 %1066  ;;  %v1119_v6 = vpop.permute.xlu2 %1118  ;;  %v956_v0 = vmul.f32 1.442695, %v906_v46 }
 0x162   : >> { %2549 = vst.msk [vmem:[#allocation3 + $0x70] sm:$0xff] %vm245_vm0, %v2545_v38  ;;  %v2580_v48 = vmul.f32 %v2576_v44, %v2545_v38  ;;  %v1281_v53 = vmul.f32 %v6418_v33, %v1067_v26  ;;  %v2128_v28 = vpop.permute.xlu0 %2127  ;;  %v1289_v58 = vmul.f32 %v7024_v42, %v1119_v6  ;;  %v908_v33 = vmul.f32 %v6688_v27, %v7039_v41  ;;  %v2533_v6 = vld [vmem:[#allocation2 + $0x78] sm:$0xff] }
 0x163   : >> { %v2342_v39 = vmul.f32 %v7030_v23, %v2128_v28  ;;  %v848_v44 = vrot.slane %v6423_v31, 3  ;;  %5714 = vpow2.f32 %v956_v0  ;;  %v8445_v0 = vperm.slane %v6639_v25, 0 }
 0x164   : >> { %v2589_v13 = vadd.f32 %v2585_v60, %v2580_v48  ;;  %1313 = vst.msk [vmem:[#allocation3 + $0x78] sm:$0xff] %vm245_vm0, %v1281_v53  ;;  %v5713_v26 = vpop.eup %5712  ;;  %v960_v60 = vmul.f32 1.442695, %v908_v33  ;;  %v7057_v53 = vld [vmem:[%s6170_s13 + $0xc8] sm:$0xff] }
 0x165   : >> { %2374 = vst.msk [vmem:[#allocation5 + $0x78] sm:$0xff] %vm245_vm0, %v2342_v39  ;;  %v7049_v46 = vperm.slane %v848_v44, 0  ;;  %v1235_v39 = vrot.slane %v6430_v49, 1 }
 0x166   : >> { %2593 = vst.msk [vmem:[#allocation3 + $0x90] sm:$0xff] %vm245_vm0, %v2589_v13  ;;  %v2624_v38 = vmul.f32 %v2620_v56, %v2589_v13  ;;  %5716 = vpow2.f32 %v960_v60  ;;  %v2577_v60 = vld [vmem:[#allocation2 + $0x98] sm:$0xff] }
 0x167   : >> { %1570 = vperm.xlu2 %5494, %v1559_v32   ;;  %1551 = vperm.xlu1 %5493, %v1546_v29   ;;  %1321 = vst.msk [vmem:[#allocation3 + $0xf8] sm:$0xff] %vm245_vm0, %v1289_v58  ;;  %v910_v29 = vmul.f32 %v6688_v27, %v7049_v46  ;;  %v8440_v27 = vperm.slane %v7057_v53, 4 }
 0x168   : >> { %v7051_v14 = vadd.f32 %v2629_v30, %v2624_v38  ;;  %4813 = vperm.xlu0 %5520, %v8441_v55   ;;  %1000 = vst.msk [vmem:[#allocation2 + $0x110] sm:$0xff] %vm245_vm0, %v5713_v26  ;;  %v2537_v30 = vmul.f32 %v2533_v6, %v6924_v54  ;;  %v2300_v54 = vrot.slane %v6639_v25, 5  ;;  %v7075_v26 = vperm.slane %v1235_v39, 0  ;;  %v2621_v39 = vld [vmem:[#allocation2 + $0xb8] sm:$0xff] }
 0x169   : >> { %v1080_v48 = vpop.permute.xlu1 %1079  ;;  %v964_v33 = vmul.f32 1.442695, %v910_v29  ;;  %v5715_v44 = vpop.eup %5714 }
 0x16a   : >> { %2637 = vst.msk [vmem:[#allocation3 + $0xb0] sm:$0xff] %vm245_vm0, %v7051_v14  ;;  %v1283_v28 = vmul.f32 %v6916_v12, %v1080_v48  ;;  %v2193_v56 = vpop.permute.xlu0 %2192  ;;  %v907_v12 = vmul.f32 %v6750_v40, %v865_v22  ;;  %v7082_v29 = vperm.slane %v2300_v54, 0  ;;  %v2630_v54 = vld [vmem:[#allocation3 + $0xb8] sm:$0xff] }
 0x16b   : >> { %v2542_v58 = vld [vmem:[#allocation3 + $0x78] sm:$0xff]  ;;  %v2352_v13 = vmul.f32 %v8445_v0, %v2193_v56  ;;  %5718 = vpow2.f32 %v964_v33  ;;  %1002 = vst.msk [vmem:[#allocation2 + $0x130] sm:$0xff] %vm245_vm0, %v5715_v44 }
 0x16c   : >> { %v2546_v38 = vadd.f32 %v2542_v58, %v2537_v30  ;;  %1315 = vst.msk [vmem:[#allocation3 + $0x98] sm:$0xff] %vm245_vm0, %v1283_v28  ;;  %v5717_v6 = vpop.eup %5716  ;;  %v958_v48 = vmul.f32 1.442695, %v907_v12  ;;  %v7088_v12 = vadd.s32 88, %v6104_v10 }
 0x16d   : >> { %2384 = vst.msk [vmem:[#allocation5 + $0x118] sm:$0xff] %vm245_vm0, %v2352_v13 }
 0x16e   : >> { %2550 = vst.msk [vmem:[#allocation3 + $0x78] sm:$0xff] %vm245_vm0, %v2546_v38  ;;  %5720 = vpow2.f32 %v958_v48  ;;  %v2581_v30 = vmul.f32 %v2577_v60, %v2546_v38  ;;  %v909_v38 = vmul.f32 %v6750_v40, %v7039_v41  ;;  %v2665_v48 = vld [vmem:[#allocation2 + $0xd8] sm:$0xff] }
 0x16f   : >> { %5496 = vset.pattern.permute.xlu2 %v6110_v11  ;;  %1564 = vperm.xlu1 %5493, %v1559_v32   ;;  %1004 = vst.msk [vmem:[#allocation2 + $0x150] sm:$0xff] %vm245_vm0, %v5717_v6  ;;  %v1585_v32 = vperm.slane %v7009_v50, 3  ;;  %v2674_v41 = vld [vmem:[#allocation3 + $0xd8] sm:$0xff] }
 0x170   : >> { %4878 = vperm.xlu0 %5520, %v8440_v27   ;;  %v962_v10 = vmul.f32 1.442695, %v909_v38 }
 0x171   : >> { %v1139_v22 = vpop.permute.xlu2 %1138  ;;  %v5719_v33 = vpop.eup %5718 }
 0x172   : >> { %v2258_v28 = vpop.permute.xlu0 %2257  ;;  %v1292_v56 = vmul.f32 %v7075_v26, %v1139_v22  ;;  %1006 = vst.msk [vmem:[#allocation2 + $0x170] sm:$0xff] %vm245_vm0, %v5719_v33  ;;  %5722 = vpow2.f32 %v962_v10  ;;  %v2796_v55 = vld [vmem:[#allocation2 + $0x130] sm:$0xff] }
 0x173   : >> { %v2586_v58 = vld [vmem:[#allocation3 + $0x98] sm:$0xff]  ;;  %v2362_v13 = vmul.f32 %v7082_v29, %v2258_v28 }
 0x174   : >> { %v2590_v44 = vadd.f32 %v2586_v58, %v2581_v30  ;;  %1324 = vst.msk [vmem:[#allocation3 + $0x130] sm:$0xff] %vm245_vm0, %v1292_v56  ;;  %v5721_v60 = vpop.eup %5720  ;;  %v911_v56 = vmul.f32 %v6750_v40, %v7049_v46  ;;  %v2718_v46 = vld [vmem:[#allocation3 + $0xf8] sm:$0xff] }
 0x175   : >> { %2394 = vst.msk [vmem:[#allocation5 + $0x1b8] sm:$0xff] %vm245_vm0, %v2362_v13 }
 0x176   : >> { %2594 = vst.msk [vmem:[#allocation3 + $0x98] sm:$0xff] %vm245_vm0, %v2590_v44  ;;  %v2625_v6 = vmul.f32 %v2621_v39, %v2590_v44  ;;  %v849_v39 = vrot.slane %v6423_v31, 4  ;;  %v2709_v44 = vld [vmem:[#allocation2 + $0xf8] sm:$0xff] }
 0x177   : >> { %1590 = vperm.xlu2 %5496, %v1585_v32   ;;  %5495 = vset.pattern.permute.xlu1 %v6128_v16  ;;  %1003 = vst.msk [vmem:[#allocation2 + $0x138] sm:$0xff] %vm245_vm0, %v5721_v60  ;;  %v7109_v60 = vld [vmem:[%s6114_s8] sm:$0xff] }
 0x178   : >> { %v2634_v22 = vadd.f32 %v2630_v54, %v2625_v6  ;;  %5569 = vset.pattern.permute.xlu0 %v7088_v12  ;;  %v966_v54 = vmul.f32 1.442695, %v911_v56  ;;  %v868_v38 = vperm.slane %v849_v39, 0  ;;  %v8443_v10 = vperm.slane %v7109_v60, 2 }
 0x179   : >> { %v1100_v30 = vpop.permute.xlu1 %1099  ;;  %v1152_v28 = vpop.permute.xlu2 %1151 }
 0x17a   : >> { %2638 = vst.msk [vmem:[#allocation3 + $0xb8] sm:$0xff] %vm245_vm0, %v2634_v22  ;;  %v2669_v58 = vmul.f32 %v2665_v48, %v2634_v22  ;;  %v1286_v13 = vmul.f32 %v6987_v61, %v1100_v30  ;;  %v1294_v33 = vmul.f32 %v6892_v5, %v1152_v28  ;;  %5724 = vpow2.f32 %v966_v54  ;;  %v5723_v22 = vpop.eup %5722  ;;  %v2664_v30 = vld [vmem:[#allocation2 + $0xd0] sm:$0xff] }
 0x17b   : >> { %v913_v48 = vmul.f32 %v6750_v40, %v868_v38  ;;  %v850_v61 = vrot.slane %v6423_v31, 5  ;;  %v8485_v28 = vperm.slane %v6177_v36, 2  ;;  %1005 = vst.msk [vmem:[#allocation2 + $0x158] sm:$0xff] %vm245_vm0, %v5723_v22  ;;  %v8442_v22 = vperm.slane %v7109_v60, 7 }
 0x17c   : >> { %v2678_v6 = vadd.f32 %v2674_v41, %v2669_v58  ;;  %1318 = vst.msk [vmem:[#allocation3 + $0xd0] sm:$0xff] %vm245_vm0, %v1286_v13  ;;  %v8484_v41 = vperm.slane %v6177_v36, 4  ;;  %v7128_v13 = vld [vmem:[%s8394_s2 + $0x18] sm:$0xff] }
 0x17d   : >> { %1326 = vst.msk [vmem:[#allocation3 + $0x150] sm:$0xff] %vm245_vm0, %v1294_v33  ;;  %v970_v56 = vmul.f32 1.442695, %v913_v48  ;;  %v869_v39 = vperm.slane %v850_v61, 0 }
 0x17e   : >> { %2682 = vst.msk [vmem:[#allocation3 + $0xd8] sm:$0xff] %vm245_vm0, %v2678_v6  ;;  %v2713_v5 = vmul.f32 %v2709_v44, %v2678_v6  ;;  %v2668_v44 = vmul.f32 %v2664_v30, %v7051_v14  ;;  %v1237_v6 = vrot.slane %v6430_v49, 3  ;;  %v2708_v30 = vld [vmem:[#allocation2 + $0xf0] sm:$0xff] }
 0x17f   : >> { %1603 = vperm.xlu2 %5496, %v8484_v41   ;;  %1583 = vperm.xlu1 %5495, %v8485_v28   ;;  %5726 = vpow2.f32 %v970_v56  ;;  %v915_v33 = vmul.f32 %v7128_v13, %v869_v39  ;;  %v5876_v41 = vld [vmem:[%s8394_s2 + $0x10] sm:$0xff] }
 0x180   : >> { %v7120_v58 = vadd.f32 %v2718_v46, %v2713_v5  ;;  %3172 = vperm.xlu0 %5569, %v8443_v10   ;;  %v5725_v46 = vpop.eup %5724  ;;  %v912_v28 = vmul.f32 %v5876_v41, %v868_v38  ;;  %v914_v27 = vmul.f32 %v5876_v41, %v869_v39  ;;  %v2805_v39 = vld [vmem:[#allocation3 + $0x130] sm:$0xff]  ;;  %v8486_v10 = vperm.slane %v6430_v49, 0 }
 0x181   : >> { %v1113_v40 = vpop.permute.xlu1 %1112  ;;  %v974_v61 = vmul.f32 1.442695, %v915_v33  ;;  %1007 = vst.msk [vmem:[#allocation2 + $0x178] sm:$0xff] %vm245_vm0, %v5725_v46 }
 0x182   : >> { %2726 = vst.msk [vmem:[#allocation3 + $0xf8] sm:$0xff] %vm245_vm0, %v7120_v58  ;;  %v1288_v54 = vmul.f32 %v7024_v42, %v1113_v40  ;;  %v7143_v42 = vperm.slane %v1237_v6, 0  ;;  %v968_v56 = vmul.f32 1.442695, %v912_v28  ;;  %v2752_v6 = vld [vmem:[#allocation2 + $0x110] sm:$0xff] }
 0x183   : >> { %v2673_v48 = vld [vmem:[#allocation3 + $0xd0] sm:$0xff]  ;;  %5728 = vpow2.f32 %v974_v61 }
 0x184   : >> { %v2677_v5 = vadd.f32 %v2673_v48, %v2668_v44  ;;  %1320 = vst.msk [vmem:[#allocation3 + $0xf0] sm:$0xff] %vm245_vm0, %v1288_v54  ;;  %5730 = vpow2.f32 %v968_v56  ;;  %v1238_v44 = vrot.slane %v6430_v49, 4  ;;  %v1611_v48 = vperm.slane %v7009_v50, 5  ;;  %v2849_v45 = vld [vmem:[#allocation3 + $0x150] sm:$0xff] }
 0x185   : >> { %v5727_v14 = vpop.eup %5726 }
 0x186   : >> { %2681 = vst.msk [vmem:[#allocation3 + $0xd0] sm:$0xff] %vm245_vm0, %v2677_v5  ;;  %v2712_v40 = vmul.f32 %v2708_v30, %v2677_v5  ;;  %v851_v5 = vrot.slane %v6423_v31, 6  ;;  %v7162_v56 = vperm.slane %v1238_v44, 0  ;;  %v852_v44 = vrot.slane %v6423_v31, 7 }
 0x187   : >> { %5498 = vset.pattern.permute.xlu2 %v6128_v16  ;;  %1596 = vperm.xlu1 %5495, %v1585_v32   ;;  %1009 = vst.msk [vmem:[#allocation2 + $0x198] sm:$0xff] %vm245_vm0, %v5727_v14  ;;  %v7155_v32 = vld [vmem:[%s6114_s8 + $0x8] sm:$0xff]  ;;  %v2761_v14 = vld [vmem:[#allocation3 + $0x110] sm:$0xff] }
 0x188   : >> { %3237 = vperm.xlu0 %5569, %v8442_v22   ;;  %v8444_v28 = vperm.slane %v7155_v32, 4 }
 0x189   : >> { %v1171_v38 = vpop.permute.xlu2 %1170  ;;  %v5729_v54 = vpop.eup %5728 }
 0x18a   : >> { %v1297_v33 = vmul.f32 %v7143_v42, %v1171_v38  ;;  %1011 = vst.msk [vmem:[#allocation2 + $0x1b8] sm:$0xff] %vm245_vm0, %v5729_v54  ;;  %v5731_v38 = vpop.eup %5730 }
 0x18b   : >> { %v2717_v46 = vld [vmem:[#allocation3 + $0xf0] sm:$0xff]  ;;  %1008 = vst.msk [vmem:[#allocation2 + $0x190] sm:$0xff] %vm245_vm0, %v5731_v38  ;;  %v871_v38 = vperm.slane %v852_v44, 0 }
 0x18c   : >> { %v2721_v61 = vadd.f32 %v2717_v46, %v2712_v40  ;;  %1329 = vst.msk [vmem:[#allocation3 + $0x178] sm:$0xff] %vm245_vm0, %v1297_v33  ;;  %v972_v40 = vmul.f32 1.442695, %v914_v27  ;;  %v870_v46 = vperm.slane %v851_v5, 0  ;;  %v2840_v5 = vld [vmem:[#allocation2 + $0x150] sm:$0xff] }
 0x18d   : >> { %v918_v31 = vmul.f32 %v5876_v41, %v871_v38 }
 0x18e   : >> { %2725 = vst.msk [vmem:[#allocation3 + $0xf0] sm:$0xff] %vm245_vm0, %v2721_v61  ;;  %v2756_v30 = vmul.f32 %v2752_v6, %v2721_v61  ;;  %5732 = vpow2.f32 %v972_v40  ;;  %v916_v6 = vmul.f32 %v5876_v41, %v870_v46  ;;  %v8456_v40 = vperm.slane %v6805_v2, 1 }
 0x18f   : >> { %1622 = vperm.xlu2 %5498, %v1611_v48   ;;  %5497 = vset.pattern.permute.xlu1 %v6110_v11 }
 0x190   : >> { %v2765_v22 = vadd.f32 %v2761_v14, %v2756_v30  ;;  %3302 = vperm.xlu0 %5569, %v8444_v28   ;;  %v1624_v30 = vperm.slane %v7009_v50, 6  ;;  %v976_v28 = vmul.f32 1.442695, %v916_v6  ;;  %v980_v50 = vmul.f32 1.442695, %v918_v31  ;;  %v7190_v6 = vld [vmem:[%s6114_s8 + $0x40] sm:$0xff] }
 0x191   : >> { %v1132_v33 = vpop.permute.xlu1 %1131  ;;  %v1184_v54 = vpop.permute.xlu2 %1183  ;;  %v8455_v44 = vperm.slane %v7190_v6, 6  ;;  %v2841_v31 = vld [vmem:[#allocation2 + $0x158] sm:$0xff] }
 0x192   : >> { %2769 = vst.msk [vmem:[#allocation3 + $0x110] sm:$0xff] %vm245_vm0, %v2765_v22  ;;  %v2800_v61 = vmul.f32 %v2796_v55, %v2765_v22  ;;  %v1291_v27 = vmul.f32 %v8486_v10, %v1132_v33  ;;  %v1299_v14 = vmul.f32 %v7162_v56, %v1184_v54  ;;  %5734 = vpow2.f32 %v976_v28  ;;  %v2753_v22 = vld [vmem:[#allocation2 + $0x118] sm:$0xff] }
 0x193   : >> { %5736 = vpow2.f32 %v980_v50  ;;  %v1240_v28 = vrot.slane %v6430_v49, 6  ;;  %v2797_v49 = vld [vmem:[#allocation2 + $0x138] sm:$0xff] }
 0x194   : >> { %v2809_v0 = vadd.f32 %v2805_v39, %v2800_v61  ;;  %1323 = vst.msk [vmem:[#allocation3 + $0x118] sm:$0xff] %vm245_vm0, %v1291_v27  ;;  %v5733_v10 = vpop.eup %5732  ;;  %v917_v61 = vmul.f32 %v7128_v13, %v870_v46 }
 0x195   : >> { %1331 = vst.msk [vmem:[#allocation3 + $0x198] sm:$0xff] %vm245_vm0, %v1299_v14 }
 0x196   : >> { %2813 = vst.msk [vmem:[#allocation3 + $0x130] sm:$0xff] %vm245_vm0, %v2809_v0  ;;  %v2844_v55 = vmul.f32 %v2840_v5, %v2809_v0  ;;  %v2757_v0 = vmul.f32 %v2753_v22, %v7120_v58  ;;  %v7196_v58 = vperm.slane %v1240_v28, 0  ;;  %v978_v27 = vmul.f32 1.442695, %v917_v61  ;;  %v2894_v61 = vld [vmem:[#allocation3 + $0x178] sm:$0xff] }
 0x197   : >> { %1635 = vperm.xlu2 %5498, %v1624_v30   ;;  %1616 = vperm.xlu1 %5497, %v1611_v48   ;;  %1010 = vst.msk [vmem:[#allocation2 + $0x1b0] sm:$0xff] %vm245_vm0, %v5733_v10  ;;  %v7204_v10 = vld [vmem:[%s6170_s13 + $0x88] sm:$0xff] }
 0x198   : >> { %v7178_v33 = vadd.f32 %v2849_v45, %v2844_v55  ;;  %3691 = vperm.xlu0 %5569, %v8456_v40   ;;  %v5735_v48 = vpop.eup %5734  ;;  %5738 = vpow2.f32 %v978_v27  ;;  %v1650_v22 = vperm.slane %v7204_v10, 0 }
 0x199   : >> { %v1145_v39 = vpop.permute.xlu1 %1144  ;;  %1012 = vst.msk [vmem:[#allocation2 + $0x1d0] sm:$0xff] %vm245_vm0, %v5735_v48  ;;  %v2885_v48 = vld [vmem:[#allocation2 + $0x178] sm:$0xff] }
 0x19a   : >> { %2857 = vst.msk [vmem:[#allocation3 + $0x150] sm:$0xff] %vm245_vm0, %v7178_v33  ;;  %v1293_v41 = vmul.f32 %v7075_v26, %v1145_v39  ;;  %v5737_v26 = vpop.eup %5736  ;;  %v2850_v39 = vld [vmem:[#allocation3 + $0x158] sm:$0xff] }
 0x19b   : >> { %v2762_v54 = vld [vmem:[#allocation3 + $0x118] sm:$0xff]  ;;  %1014 = vst.msk [vmem:[#allocation2 + $0x1f0] sm:$0xff] %vm245_vm0, %v5737_v26 }
 0x19c   : >> { %v2766_v45 = vadd.f32 %v2762_v54, %v2757_v0  ;;  %1325 = vst.msk [vmem:[#allocation3 + $0x138] sm:$0xff] %vm245_vm0, %v1293_v41  ;;  %v919_v0 = vmul.f32 %v7128_v13, %v871_v38 }
 0x19e   : >> { %2770 = vst.msk [vmem:[#allocation3 + $0x118] sm:$0xff] %vm245_vm0, %v2766_v45  ;;  %v2801_v5 = vmul.f32 %v2797_v49, %v2766_v45  ;;  %v5739_v28 = vpop.eup %5738  ;;  %v982_v54 = vmul.f32 1.442695, %v919_v0  ;;  %v8488_v0 = vperm.slane %v6177_v36, 7 }
 0x19f   : >> { %5500 = vset.pattern.permute.xlu2 %v6110_v11  ;;  %1629 = vperm.xlu1 %5497, %v1624_v30   ;;  %v8454_v30 = vperm.slane %v6841_v63, 3  ;;  %1013 = vst.msk [vmem:[#allocation2 + $0x1d8] sm:$0xff] %vm245_vm0, %v5739_v28 }
 0x1a0   : >> { %3756 = vperm.xlu0 %5569, %v8455_v44   ;;  %5740 = vpow2.f32 %v982_v54 }
 0x1a1   : >> { %v1204_v14 = vpop.permute.xlu2 %1203 }
 0x1a2   : >> { %v1302_v46 = vmul.f32 %v7196_v58, %v1204_v14  ;;  %v2929_v14 = vld [vmem:[#allocation2 + $0x198] sm:$0xff] }
 0x1a3   : >> { %v2806_v55 = vld [vmem:[#allocation3 + $0x138] sm:$0xff] }
 0x1a4   : >> { %v2810_v50 = vadd.f32 %v2806_v55, %v2801_v5  ;;  %1334 = vst.msk [vmem:[#allocation3 + $0x1d0] sm:$0xff] %vm245_vm0, %v1302_v46  ;;  %v2938_v46 = vld [vmem:[#allocation3 + $0x198] sm:$0xff] }
 0x1a6   : >> { %2814 = vst.msk [vmem:[#allocation3 + $0x138] sm:$0xff] %vm245_vm0, %v2810_v50  ;;  %v2845_v41 = vmul.f32 %v2841_v31, %v2810_v50  ;;  %v5741_v55 = vpop.eup %5740  ;;  %v2884_v50 = vld [vmem:[#allocation2 + $0x170] sm:$0xff] }
 0x1a7   : >> { %1655 = vperm.xlu2 %5500, %v1650_v22   ;;  %5499 = vset.pattern.permute.xlu1 %v6128_v16  ;;  %1015 = vst.msk [vmem:[#allocation2 + $0x1f8] sm:$0xff] %vm245_vm0, %v5741_v55 }
 0x1a8   : >> { %v2854_v45 = vadd.f32 %v2850_v39, %v2845_v41  ;;  %3821 = vperm.xlu0 %5569, %v8454_v30   ;;  %v8487_v39 = vperm.slane %v6189_v43, 1  ;;  %v2888_v41 = vmul.f32 %v2884_v50, %v7178_v33 }
 0x1a9   : >> { %v1165_v26 = vpop.permute.xlu1 %1164  ;;  %v1217_v49 = vpop.permute.xlu2 %1216 }
 0x1aa   : >> { %2858 = vst.msk [vmem:[#allocation3 + $0x158] sm:$0xff] %vm245_vm0, %v2854_v45  ;;  %v2889_v13 = vmul.f32 %v2885_v48, %v2854_v45  ;;  %v1296_v38 = vmul.f32 %v7143_v42, %v1165_v26  ;;  %v1304_v27 = vmul.f32 %v6914_v17, %v1217_v49  ;;  %v2928_v45 = vld [vmem:[#allocation2 + $0x190] sm:$0xff]  ;;  %v1772_v26 = vperm.slane %v6494_v1, 0 }
 0x1ab   : >> { %v1758_v49 = vrot.slane %v6494_v1, 1  ;;  %v3025_v55 = vld [vmem:[#allocation3 + $0x1d0] sm:$0xff] }
 0x1ac   : >> { %v2898_v5 = vadd.f32 %v2894_v61, %v2889_v13  ;;  %1328 = vst.msk [vmem:[#allocation3 + $0x170] sm:$0xff] %vm245_vm0, %v1296_v38  ;;  %v2972_v13 = vld [vmem:[#allocation2 + $0x1b0] sm:$0xff] }
 0x1ad   : >> { %1336 = vst.msk [vmem:[#allocation3 + $0x1f0] sm:$0xff] %vm245_vm0, %v1304_v27 }
 0x1ae   : >> { %2902 = vst.msk [vmem:[#allocation3 + $0x178] sm:$0xff] %vm245_vm0, %v2898_v5  ;;  %v2933_v31 = vmul.f32 %v2929_v14, %v2898_v5  ;;  %v2981_v14 = vld [vmem:[#allocation3 + $0x1b0] sm:$0xff] }
 0x1af   : >> { %1668 = vperm.xlu2 %5500, %v8487_v39   ;;  %1648 = vperm.xlu1 %5499, %v8488_v0  }
 0x1b0   : >> { %v2942_v42 = vadd.f32 %v2938_v46, %v2933_v31  ;;  %v7238_v46 = vperm.slane %v1758_v49, 0 }
 0x1b1   : >> { %v1178_v17 = vpop.permute.xlu1 %1177 }
 0x1b2   : >> { %2946 = vst.msk [vmem:[#allocation3 + $0x198] sm:$0xff] %vm245_vm0, %v2942_v42  ;;  %v1298_v28 = vmul.f32 %v7162_v56, %v1178_v17  ;;  %v1676_v56 = vperm.slane %v7204_v10, 2 }
 0x1b3   : >> { %v2893_v48 = vld [vmem:[#allocation3 + $0x170] sm:$0xff] }
 0x1b4   : >> { %v2897_v54 = vadd.f32 %v2893_v48, %v2888_v41  ;;  %1330 = vst.msk [vmem:[#allocation3 + $0x190] sm:$0xff] %vm245_vm0, %v1298_v28  ;;  %v3060_v28 = vld [vmem:[#allocation2 + $0x1f0] sm:$0xff]  ;;  %v1689_v48 = vperm.slane %v7204_v10, 3 }
 0x1b6   : >> { %2901 = vst.msk [vmem:[#allocation3 + $0x170] sm:$0xff] %vm245_vm0, %v2897_v54  ;;  %v2932_v61 = vmul.f32 %v2928_v45, %v2897_v54  ;;  %v3069_v45 = vld [vmem:[#allocation3 + $0x1f0] sm:$0xff] }
 0x1b7   : >> { %5502 = vset.pattern.permute.xlu2 %v6128_v16  ;;  %1661 = vperm.xlu1 %5499, %v1650_v22   ;;  %v3016_v22 = vld [vmem:[#allocation2 + $0x1d0] sm:$0xff] }
 0x1b9   : >> { %v1558_v36 = vpop.permute.xlu2 %1557 }
 0x1ba   : >> { %v1805_v27 = vmul.f32 %v1772_v26, %v1558_v36 }
 0x1bb   : >> { %v2937_v33 = vld [vmem:[#allocation3 + $0x190] sm:$0xff] }
 0x1bc   : >> { %v2941_v38 = vadd.f32 %v2937_v33, %v2932_v61  ;;  %1837 = vst.msk [vmem:[#allocation5 + $0x8] sm:$0xff] %vm245_vm0, %v1805_v27  ;;  %v2973_v61 = vld [vmem:[#allocation2 + $0x1b8] sm:$0xff]  ;;  %v1760_v27 = vrot.slane %v6494_v1, 3 }
 0x1be   : >> { %2945 = vst.msk [vmem:[#allocation3 + $0x190] sm:$0xff] %vm245_vm0, %v2941_v38  ;;  %v2976_v5 = vmul.f32 %v2972_v13, %v2941_v38  ;;  %v2977_v13 = vmul.f32 %v2973_v61, %v2942_v42  ;;  %v3061_v42 = vld [vmem:[#allocation2 + $0x1f8] sm:$0xff] }
 0x1bf   : >> { %1687 = vperm.xlu2 %5502, %v1676_v56   ;;  %5501 = vset.pattern.permute.xlu1 %v6110_v11 }
 0x1c0   : >> { %v2985_v31 = vadd.f32 %v2981_v14, %v2976_v5  ;;  %v1775_v5 = vperm.slane %v1760_v27, 0  ;;  %v1762_v27 = vrot.slane %v6494_v1, 5 }
 0x1c1   : >> { %v1197_v50 = vpop.permute.xlu1 %1196  ;;  %v1571_v39 = vpop.permute.xlu2 %1570 }
 0x1c2   : >> { %2989 = vst.msk [vmem:[#allocation3 + $0x1b0] sm:$0xff] %vm245_vm0, %v2985_v31  ;;  %v3020_v0 = vmul.f32 %v3016_v22, %v2985_v31  ;;  %v1301_v17 = vmul.f32 %v6479_v59, %v1197_v50  ;;  %v1807_v41 = vmul.f32 %v7238_v46, %v1571_v39  ;;  %v7260_v39 = vld [vmem:[%s6170_s13 + $0x80] sm:$0xff] }
 0x1c4   : >> { %v3029_v54 = vadd.f32 %v3025_v55, %v3020_v0  ;;  %1333 = vst.msk [vmem:[#allocation3 + $0x1b8] sm:$0xff] %vm245_vm0, %v1301_v17  ;;  %v8453_v0 = vperm.slane %v7260_v39, 0 }
 0x1c5   : >> { %1839 = vst.msk [vmem:[#allocation5 + $0x28] sm:$0xff] %vm245_vm0, %v1807_v41  ;;  %v3070_v41 = vld [vmem:[#allocation3 + $0x1f8] sm:$0xff] }
 0x1c6   : >> { %3033 = vst.msk [vmem:[#allocation3 + $0x1d0] sm:$0xff] %vm245_vm0, %v3029_v54  ;;  %v3064_v36 = vmul.f32 %v3060_v28, %v3029_v54  ;;  %4203 = vperm.xlu0 %5569, %v8453_v0  }
 0x1c7   : >> { %1700 = vperm.xlu2 %5502, %v1689_v48   ;;  %1681 = vperm.xlu1 %5501, %v1676_v56   ;;  %v3017_v56 = vld [vmem:[#allocation2 + $0x1d8] sm:$0xff] }
 0x1c8   : >> { %v7249_v49 = vadd.f32 %v3069_v45, %v3064_v36  }
 0x1c9   : >> { %v1210_v59 = vpop.permute.xlu1 %1209 }
 0x1ca   : >> { %3077 = vst.msk [vmem:[#allocation3 + $0x1f0] sm:$0xff] %vm245_vm0, %v7249_v49  ;;  %v1303_v33 = vmul.f32 %v7196_v58, %v1210_v59  ;;  %v1715_v58 = vperm.slane %v7204_v10, 5  ;;  %v8452_v59 = vperm.slane %v7260_v39, 5 }
 0x1cb   : >> { %v2982_v38 = vld [vmem:[#allocation3 + $0x1b8] sm:$0xff] }
 0x1cc   : >> { %v2986_v14 = vadd.f32 %v2982_v38, %v2977_v13  ;;  %1335 = vst.msk [vmem:[#allocation3 + $0x1d8] sm:$0xff] %vm245_vm0, %v1303_v33  ;;  %v8489_v13 = vperm.slane %v6189_v43, 6  ;;  %v8490_v33 = vperm.slane %v6189_v43, 4 }
 0x1ce   : >> { %2990 = vst.msk [vmem:[#allocation3 + $0x1b8] sm:$0xff] %vm245_vm0, %v2986_v14  ;;  %v3021_v31 = vmul.f32 %v3017_v56, %v2986_v14  ;;  %4268 = vperm.xlu0 %5569, %v8452_v59   ;;  %v1777_v14 = vperm.slane %v1762_v27, 0 }
 0x1cf   : >> { %5504 = vset.pattern.permute.xlu2 %v6110_v11  ;;  %1694 = vperm.xlu1 %5501, %v1689_v48  }
 0x1d1   : >> { %v1591_v22 = vpop.permute.xlu2 %1590 }
 0x1d2   : >> { %v1810_v55 = vmul.f32 %v1775_v5, %v1591_v22  ;;  %v1763_v22 = vrot.slane %v6494_v1, 6 }
 0x1d3   : >> { %v3026_v50 = vld [vmem:[#allocation3 + $0x1d8] sm:$0xff] }
 0x1d4   : >> { %v3030_v17 = vadd.f32 %v3026_v50, %v3021_v31  ;;  %1842 = vst.msk [vmem:[#allocation5 + $0x60] sm:$0xff] %vm245_vm0, %v1810_v55  ;;  %v8447_v31 = vperm.slane %v6944_v47, 7  ;;  %v1778_v55 = vperm.slane %v1763_v22, 0 }
 0x1d6   : >> { %3034 = vst.msk [vmem:[#allocation3 + $0x1d8] sm:$0xff] %vm245_vm0, %v3030_v17  ;;  %v3065_v28 = vmul.f32 %v3061_v42, %v3030_v17 }
 0x1d7   : >> { %1720 = vperm.xlu2 %5504, %v1715_v58   ;;  %5503 = vset.pattern.permute.xlu1 %v6128_v16 }
 0x1d8   : >> { %v7268_v48 = vadd.f32 %v3070_v41, %v3065_v28   ;;  %v7300_v41 = vld [vmem:[%s6170_s13 + $0xc0] sm:$0xff] }
 0x1d9   : >> { %v1552_v54 = vpop.permute.xlu1 %1551  ;;  %v1604_v45 = vpop.permute.xlu2 %1603  ;;  %v2077_v1 = vperm.slane %v7300_v41, 0 }
 0x1da   : >> { %3078 = vst.msk [vmem:[#allocation3 + $0x1f8] sm:$0xff] %vm245_vm0, %v7268_v48  ;;  %v1804_v36 = vmul.f32 %v1772_v26, %v1552_v54  ;;  %v1812_v61 = vmul.f32 %v6939_v19, %v1604_v45  ;;  %v8448_v19 = vperm.slane %v6944_v47, 2  ;;  %v1780_v54 = vperm.slane %v6553_v52, 0 }
 0x1dc   : >> { %1836 = vst.msk [vmem:[#allocation5] sm:$0xff] %vm245_vm0, %v1804_v36  ;;  %4333 = vperm.xlu0 %5569, %v8448_v19   ;;  %v2103_v36 = vperm.slane %v7300_v41, 2 }
 0x1dd   : >> { %1844 = vst.msk [vmem:[#allocation5 + $0x80] sm:$0xff] %vm245_vm0, %v1812_v61 }
 0x1df   : >> { %1733 = vperm.xlu2 %5504, %v8489_v13   ;;  %1713 = vperm.xlu1 %5503, %v8490_v33  }
 0x1e1   : >> { %v1565_v38 = vpop.permute.xlu1 %1564 }
 0x1e2   : >> { %v1806_v26 = vmul.f32 %v7238_v46, %v1565_v38  ;;  %v1741_v46 = vperm.slane %v7204_v10, 7  ;;  %v8491_v38 = vperm.slane %v6208_v51, 3 }
 0x1e4   : >> { %1838 = vst.msk [vmem:[#allocation5 + $0x20] sm:$0xff] %vm245_vm0, %v1806_v26  ;;  %4398 = vperm.xlu0 %5569, %v8447_v31   ;;  %v8492_v26 = vperm.slane %v6208_v51, 1 }
 0x1e7   : >> { %5506 = vset.pattern.permute.xlu2 %v6128_v16  ;;  %1726 = vperm.xlu1 %5503, %v1715_v58  }
 0x1e9   : >> { %v1623_v56 = vpop.permute.xlu2 %1622 }
 0x1ea   : >> { %v1815_v43 = vmul.f32 %v1777_v14, %v1623_v56 }
 0x1ec   : >> { %1847 = vst.msk [vmem:[#allocation5 + $0xa8] sm:$0xff] %vm245_vm0, %v1815_v43  ;;  %v1766_v43 = vrot.slane %v6553_v52, 2 }
 0x1ee   : >> { %v7320_v22 = vperm.slane %v1766_v43, 0 }
 0x1ef   : >> { %1752 = vperm.xlu2 %5506, %v1741_v46   ;;  %5505 = vset.pattern.permute.xlu1 %v6110_v11 }
 0x1f1   : >> { %v1584_v42 = vpop.permute.xlu1 %1583  ;;  %v1636_v50 = vpop.permute.xlu2 %1635 }
 0x1f2   : >> { %v1809_v58 = vmul.f32 %v6520_v8, %v1584_v42  ;;  %v1817_v17 = vmul.f32 %v1778_v55, %v1636_v50  ;;  %v2129_v42 = vperm.slane %v7300_v41, 4 }
 0x1f4   : >> { %1841 = vst.msk [vmem:[#allocation5 + $0x48] sm:$0xff] %vm245_vm0, %v1809_v58 }
 0x1f5   : >> { %1849 = vst.msk [vmem:[#allocation5 + $0xc8] sm:$0xff] %vm245_vm0, %v1817_v17 }
 0x1f7   : >> { %2088 = vperm.xlu2 %5506, %v2077_v1   ;;  %1746 = vperm.xlu1 %5505, %v1741_v46   ;;  %v1767_v46 = vrot.slane %v6553_v52, 3 }
 0x1f9   : >> { %v1597_v10 = vpop.permute.xlu1 %1596  ;;  %v7327_v50 = vperm.slane %v1767_v46, 0 }
 0x1fa   : >> { %v1811_v28 = vmul.f32 %v1775_v5, %v1597_v10  ;;  %v2142_v10 = vperm.slane %v7300_v41, 5 }
 0x1fc   : >> { %1843 = vst.msk [vmem:[#allocation5 + $0x68] sm:$0xff] %vm245_vm0, %v1811_v28  ;;  %v1382_v28 = vrot.slane %v6537_v57, 7 }
 0x1ff   : >> { %5508 = vset.pattern.permute.xlu2 %v6110_v11  ;;  %2082 = vperm.xlu1 %5505, %v2077_v1  }
 0x201   : >> { %v1656_v8 = vpop.permute.xlu2 %1655 }
 0x202   : >> { %v1820_v45 = vmul.f32 %v1780_v54, %v1656_v8  ;;  %v7336_v8 = vperm.slane %v1382_v28, 0 }
 0x204   : >> { %1852 = vst.msk [vmem:[#allocation5 + $0x100] sm:$0xff] %vm245_vm0, %v1820_v45  ;;  %v7341_v45 = vld [vmem:[%s8394_s2 + $0x28] sm:$0xff] }
 0x207   : >> { %2108 = vperm.xlu2 %5508, %v2103_v36   ;;  %5507 = vset.pattern.permute.xlu1 %v6128_v16 }
 0x209   : >> { %v1617_v61 = vpop.permute.xlu1 %1616  ;;  %v1669_v13 = vpop.permute.xlu2 %1668 }
 0x20a   : >> { %v1814_v33 = vmul.f32 %v1777_v14, %v1617_v61  ;;  %v1822_v5 = vmul.f32 %v6969_v3, %v1669_v13  ;;  %v1449_v61 = vmul.f32 %v7341_v45, %v7336_v8 }
 0x20c   : >> { %1846 = vst.msk [vmem:[#allocation5 + $0xa0] sm:$0xff] %vm245_vm0, %v1814_v33  ;;  %v1769_v33 = vrot.slane %v6553_v52, 5 }
 0x20d   : >> { %1854 = vst.msk [vmem:[#allocation5 + $0x120] sm:$0xff] %vm245_vm0, %v1822_v5 }
 0x20f   : >> { %2121 = vperm.xlu2 %5508, %v8491_v38   ;;  %2101 = vperm.xlu1 %5507, %v8492_v26   ;;  %v1512_v38 = vmul.f32 1.442695, %v1449_v61  ;;  %v1377_v61 = vrot.slane %v6537_v57, 2 }
 0x211   : >> { %v1630_v27 = vpop.permute.xlu1 %1629  ;;  %5742 = vpow2.f32 %v1512_v38 }
 0x212   : >> { %v1816_v56 = vmul.f32 %v1778_v55, %v1630_v27  ;;  %v1380_v27 = vrot.slane %v6537_v57, 5 }
 0x214   : >> { %1848 = vst.msk [vmem:[#allocation5 + $0xc0] sm:$0xff] %vm245_vm0, %v1816_v56  ;;  %v7353_v56 = vperm.slane %v1769_v33, 0  ;;  %v7380_v33 = vld [vmem:[%s8394_s2 + $0x20] sm:$0xff] }
 0x217   : >> { %5510 = vset.pattern.permute.xlu2 %v6128_v16  ;;  %2114 = vperm.xlu1 %5507, %v2103_v36   ;;  %v1381_v36 = vrot.slane %v6537_v57, 6 }
 0x219   : >> { %v1688_v3 = vpop.permute.xlu2 %1687  ;;  %v7347_v5 = vperm.slane %v1381_v36, 0  ;;  %v1376_v36 = vrot.slane %v6537_v57, 1 }
 0x21a   : >> { %v1825_v14 = vmul.f32 %v7320_v22, %v1688_v3 }
 0x21b   : >> { %v1447_v26 = vmul.f32 %v7341_v45, %v7347_v5 }
 0x21c   : >> { %1857 = vst.msk [vmem:[#allocation5 + $0x148] sm:$0xff] %vm245_vm0, %v1825_v14  ;;  %v1379_v14 = vrot.slane %v6537_v57, 4 }
 0x21d   : >> { %v1508_v43 = vmul.f32 1.442695, %v1447_v26 }
 0x21f   : >> { %2140 = vperm.xlu2 %5510, %v2129_v42   ;;  %5509 = vset.pattern.permute.xlu1 %v6110_v11  ;;  %5744 = vpow2.f32 %v1508_v43 }
 0x221   : >> { %v1649_v55 = vpop.permute.xlu1 %1648  ;;  %v1701_v58 = vpop.permute.xlu2 %1700 }
 0x222   : >> { %v1819_v17 = vmul.f32 %v6544_v4, %v1649_v55  ;;  %v1827_v1 = vmul.f32 %v7327_v50, %v1701_v58  ;;  %v5743_v55 = vpop.eup %5742  ;;  %v2168_v58 = vperm.slane %v7300_v41, 7 }
 0x223   : >> { %1545 = vst.msk [vmem:[#allocation4 + $0x1e8] sm:$0xff] %vm245_vm0, %v5743_v55 }
 0x224   : >> { %1851 = vst.msk [vmem:[#allocation5 + $0xe8] sm:$0xff] %vm245_vm0, %v1819_v17  ;;  %v7363_v17 = vperm.slane %v1379_v14, 0  ;;  %v1396_v14 = vperm.slane %v1377_v61, 0 }
 0x225   : >> { %1859 = vst.msk [vmem:[#allocation5 + $0x168] sm:$0xff] %vm245_vm0, %v1827_v1 }
 0x226   : >> { %v1443_v28 = vmul.f32 %v7341_v45, %v7363_v17 }
 0x227   : >> { %2153 = vperm.xlu2 %5510, %v2142_v10   ;;  %2134 = vperm.xlu1 %5509, %v2129_v42  }
 0x228   : >> { %v1500_v26 = vmul.f32 1.442695, %v1443_v28  ;;  %v1439_v28 = vmul.f32 %v7341_v45, %v1396_v14 }
 0x229   : >> { %v1662_v4 = vpop.permute.xlu1 %1661 }
 0x22a   : >> { %v1821_v13 = vmul.f32 %v1780_v54, %v1662_v4  ;;  %v7356_v54 = vperm.slane %v1380_v27, 0  ;;  %v5745_v4 = vpop.eup %5744 }
 0x22b   : >> { %1543 = vst.msk [vmem:[#allocation4 + $0x1c8] sm:$0xff] %vm245_vm0, %v5745_v4 }
 0x22c   : >> { %1853 = vst.msk [vmem:[#allocation5 + $0x108] sm:$0xff] %vm245_vm0, %v1821_v13  ;;  %v1445_v46 = vmul.f32 %v7341_v45, %v7356_v54  ;;  %v1394_v13 = vperm.slane %v6537_v57, 0 }
 0x22e   : >> { %v1504_v1 = vmul.f32 1.442695, %v1445_v46  ;;  %v1434_v46 = vmul.f32 %v7380_v33, %v1394_v13 }
 0x22f   : >> { %5512 = vset.pattern.permute.xlu2 %v6110_v11  ;;  %2147 = vperm.xlu1 %5509, %v2142_v10   ;;  %v1378_v10 = vrot.slane %v6537_v57, 3 }
 0x230   : >> { %5746 = vpow2.f32 %v1504_v1  ;;  %v1482_v61 = vmul.f32 1.442695, %v1434_v46  ;;  %v1771_v46 = vrot.slane %v6553_v52, 7 }
 0x231   : >> { %v1721_v3 = vpop.permute.xlu2 %1720  ;;  %v1397_v38 = vperm.slane %v1378_v10, 0  ;;  %v1438_v10 = vmul.f32 %v7380_v33, %v1396_v14  ;;  %5748 = vpow2.f32 %v1500_v26  ;;  %v8494_v14 = vperm.slane %v6208_v51, 6 }
 0x232   : >> { %v1830_v42 = vmul.f32 %v7353_v56, %v1721_v3  ;;  %v1395_v3 = vperm.slane %v1376_v36, 0  ;;  %5750 = vpow2.f32 %v1482_v61  ;;  %v1492_v26 = vmul.f32 1.442695, %v1439_v28 }
 0x233   : >> { %v1440_v1 = vmul.f32 %v7380_v33, %v1397_v38  ;;  %v1375_v51 = vrot.slane %v6474_v20, 7 }
 0x234   : >> { %1862 = vst.msk [vmem:[#allocation5 + $0x1a0] sm:$0xff] %vm245_vm0, %v1830_v42  ;;  %v1435_v42 = vmul.f32 %v7341_v45, %v1394_v13  ;;  %v1436_v4 = vmul.f32 %v7380_v33, %v1395_v3  ;;  %v1437_v31 = vmul.f32 %v7341_v45, %v1395_v3  ;;  %v8493_v3 = vperm.slane %v6252_v35, 0 }
 0x236   : >> { %v5747_v36 = vpop.eup %5746  ;;  %v1484_v19 = vmul.f32 1.442695, %v1435_v42  ;;  %v1488_v13 = vmul.f32 1.442695, %v1437_v31  ;;  %v1494_v42 = vmul.f32 1.442695, %v1440_v1 }
 0x237   : >> { %2173 = vperm.xlu2 %5512, %v2168_v58   ;;  %5511 = vset.pattern.permute.xlu1 %v6128_v16  ;;  %1541 = vst.msk [vmem:[#allocation4 + $0x1a8] sm:$0xff] %vm245_vm0, %v5747_v36  ;;  %v1372_v31 = vrot.slane %v6474_v20, 4  ;;  %v5749_v61 = vpop.eup %5748  ;;  %v1393_v36 = vperm.slane %v1375_v51, 0 }
 0x238   : >> { %5752 = vpow2.f32 %v1484_v19  ;;  %1539 = vst.msk [vmem:[#allocation4 + $0x188] sm:$0xff] %vm245_vm0, %v5749_v61 }
 0x239   : >> { %v1682_v27 = vpop.permute.xlu1 %1681  ;;  %v1734_v43 = vpop.permute.xlu2 %1733  ;;  %v7406_v19 = vperm.slane %v1372_v31, 0  ;;  %v7421_v31 = vperm.slane %v1771_v46, 0  ;;  %v1442_v46 = vmul.f32 %v7380_v33, %v7363_v17 }
 0x23a   : >> { %v1824_v55 = vmul.f32 %v7320_v22, %v1682_v27  ;;  %v1832_v57 = vmul.f32 %v7001_v21, %v1734_v43  ;;  %v1441_v21 = vmul.f32 %v7341_v45, %v1397_v38  ;;  %v1486_v22 = vmul.f32 1.442695, %v1436_v4 }
 0x23b   : >> { %v1371_v27 = vrot.slane %v6474_v20, 3  ;;  %v1490_v43 = vmul.f32 1.442695, %v1438_v10  ;;  %v1373_v38 = vrot.slane %v6474_v20, 5 }
 0x23c   : >> { %1856 = vst.msk [vmem:[#allocation5 + $0x140] sm:$0xff] %vm245_vm0, %v1824_v55  ;;  %5754 = vpow2.f32 %v1486_v22  ;;  %v1374_v55 = vrot.slane %v6474_v20, 6  ;;  %v1496_v4 = vmul.f32 1.442695, %v1441_v21 }
 0x23d   : >> { %1864 = vst.msk [vmem:[#allocation5 + $0x1c0] sm:$0xff] %vm245_vm0, %v1832_v57  ;;  %5756 = vpow2.f32 %v1488_v13  ;;  %v1389_v10 = vperm.slane %v1371_v27, 0  ;;  %v7408_v1 = vperm.slane %v1373_v38, 0  ;;  %v5751_v13 = vpop.eup %5750 }
 0x23e   : >> { %5758 = vpow2.f32 %v1490_v43  ;;  %v1392_v28 = vperm.slane %v1374_v55, 0  ;;  %v5753_v27 = vpop.eup %5752  ;;  %1530 = vst.msk [vmem:[#allocation4 + $0x100] sm:$0xff] %vm245_vm0, %v5751_v13 }
 0x23f   : >> { %2186 = vperm.xlu2 %5512, %v8493_v3   ;;  %2166 = vperm.xlu1 %5511, %v8494_v14   ;;  %5760 = vpow2.f32 %v1492_v26  ;;  %v1424_v22 = vmul.f32 %v7380_v33, %v1389_v10  ;;  %v1425_v21 = vmul.f32 %v7341_v45, %v1389_v10  ;;  %v1429_v43 = vmul.f32 %v7341_v45, %v7408_v1 }
 0x240   : >> { %5762 = vpow2.f32 %v1494_v42  ;;  %v1430_v3 = vmul.f32 %v7380_v33, %v1392_v28  ;;  %v1431_v14 = vmul.f32 %v7341_v45, %v1392_v28  ;;  %1531 = vst.msk [vmem:[#allocation4 + $0x108] sm:$0xff] %vm245_vm0, %v5753_v27  ;;  %v1432_v42 = vmul.f32 %v7380_v33, %v1393_v36 }
 0x241   : >> { %v1695_v57 = vpop.permute.xlu1 %1694  ;;  %5764 = vpow2.f32 %v1496_v4  ;;  %v1462_v38 = vmul.f32 1.442695, %v1424_v22  ;;  %v1464_v4 = vmul.f32 1.442695, %v1425_v21  ;;  %v1472_v10 = vmul.f32 1.442695, %v1429_v43 }
 0x242   : >> { %v1826_v52 = vmul.f32 %v7327_v50, %v1695_v57  ;;  %v1427_v50 = vmul.f32 %v7341_v45, %v7406_v19  ;;  %v5755_v26 = vpop.eup %5754  ;;  %v1433_v57 = vmul.f32 %v7341_v45, %v1393_v36  ;;  %v1476_v13 = vmul.f32 1.442695, %v1431_v14  ;;  %v2421_v14 = vld [vmem:[#allocation4 + $0x1e8] sm:$0xff] }
 0x243   : >> { %v5757_v55 = vpop.eup %5756  ;;  %5766 = vpow2.f32 %v1462_v38  ;;  %1532 = vst.msk [vmem:[#allocation4 + $0x120] sm:$0xff] %vm245_vm0, %v5755_v26  ;;  %v1478_v36 = vmul.f32 1.442695, %v1432_v42  ;;  %v1498_v43 = vmul.f32 1.442695, %v1442_v46  ;;  %v1446_v26 = vmul.f32 %v7380_v33, %v7347_v5  ;;  %v8496_v46 = vld [vmem:[#allocation11_spill] sm:$0xff] }
 0x244   : >> { %1858 = vst.msk [vmem:[#allocation5 + $0x160] sm:$0xff] %vm245_vm0, %v1826_v52  ;;  %v1468_v51 = vmul.f32 1.442695, %v1427_v50  ;;  %v5759_v61 = vpop.eup %5758  ;;  %v1474_v52 = vmul.f32 1.442695, %v1430_v3  ;;  %5768 = vpow2.f32 %v1464_v4  ;;  %v7436_v50 = vld [vmem:[%s6170_s13 + $0xc8] sm:$0xff]  ;;  %v1444_v3 = vmul.f32 %v7380_v33, %v7356_v54 }
 0x245   : >> { %1533 = vst.msk [vmem:[#allocation4 + $0x128] sm:$0xff] %vm245_vm0, %v5757_v55  ;;  %v5761_v28 = vpop.eup %5760  ;;  %v2194_v17 = vperm.slane %v7436_v50, 1  ;;  %v1480_v27 = vmul.f32 1.442695, %v1433_v57  ;;  %v1448_v38 = vmul.f32 %v7380_v33, %v7336_v8  ;;  %v8495_v57 = vld [vmem:[#allocation8_spill] sm:$0xff] }
 0x246   : >> { %v5763_v41 = vpop.eup %5762  ;;  %1535 = vst.msk [vmem:[#allocation4 + $0x148] sm:$0xff] %vm245_vm0, %v5761_v28  ;;  %5770 = vpow2.f32 %v1468_v51  ;;  %v2425_v4 = vmul.f32 %v8495_v57, %v2421_v14  ;;  %v1502_v5 = vmul.f32 1.442695, %v1444_v3  ;;  %v2474_v14 = vld [vmem:[#allocation5 + $0x1c8] sm:$0xff]  ;;  %v1370_v57 = vrot.slane %v6474_v20, 2 }
 0x247   : >> { %5514 = vset.pattern.permute.xlu2 %v6128_v16  ;;  %2179 = vperm.xlu1 %5511, %v2168_v58   ;;  %v5765_v21 = vpop.eup %5764  ;;  %5772 = vpow2.f32 %v1472_v10  ;;  %1534 = vst.msk [vmem:[#allocation4 + $0x140] sm:$0xff] %vm245_vm0, %v5759_v61  ;;  %v1506_v61 = vmul.f32 1.442695, %v1446_v26  ;;  %v1510_v28 = vmul.f32 1.442695, %v1448_v38 }
 0x248   : >> { %5774 = vpow2.f32 %v1474_v52  ;;  %1537 = vst.msk [vmem:[#allocation4 + $0x168] sm:$0xff] %vm245_vm0, %v5765_v21 }
 0x249   : >> { %v1753_v22 = vpop.permute.xlu2 %1752  ;;  %5776 = vpow2.f32 %v1476_v13  ;;  %v5767_v42 = vpop.eup %5766  ;;  %1536 = vst.msk [vmem:[#allocation4 + $0x160] sm:$0xff] %vm245_vm0, %v5763_v41  ;;  %v2465_v13 = vld [vmem:[#allocation4 + $0x1c8] sm:$0xff] }
 0x24a   : >> { %v1835_v58 = vmul.f32 %v7421_v31, %v1753_v22  ;;  %5778 = vpow2.f32 %v1478_v36  ;;  %v5769_v55 = vpop.eup %5768  ;;  %1520 = vst.msk [vmem:[#allocation4 + $0x60] sm:$0xff] %vm245_vm0, %v5767_v42  ;;  %v2303_v36 = vperm.slane %v6579_v9, 0 }
 0x24b   : >> { %5780 = vpow2.f32 %v1480_v27  ;;  %1521 = vst.msk [vmem:[#allocation4 + $0x68] sm:$0xff] %vm245_vm0, %v5769_v55 }
 0x24c   : >> { %1867 = vst.msk [vmem:[#allocation5 + $0x1e8] sm:$0xff] %vm245_vm0, %v1835_v58  ;;  %v5771_v54 = vpop.eup %5770  ;;  %5782 = vpow2.f32 %v1498_v43  ;;  %v2207_v58 = vperm.slane %v7436_v50, 2 }
 0x24d   : >> { %v5773_v51 = vpop.eup %5772  ;;  %1523 = vst.msk [vmem:[#allocation4 + $0x88] sm:$0xff] %vm245_vm0, %v5771_v54  ;;  %5784 = vpow2.f32 %v1502_v5 }
 0x24e   : >> { %v5775_v8 = vpop.eup %5774  ;;  %1525 = vst.msk [vmem:[#allocation4 + $0xa8] sm:$0xff] %vm245_vm0, %v5773_v51  ;;  %5786 = vpow2.f32 %v1506_v61  ;;  %v2509_v61 = vld [vmem:[#allocation4 + $0x1a8] sm:$0xff] }
 0x24f   : >> { %2205 = vperm.xlu2 %5514, %v2194_v17   ;;  %5513 = vset.pattern.permute.xlu1 %v6110_v11  ;;  %v5777_v22 = vpop.eup %5776  ;;  %1526 = vst.msk [vmem:[#allocation4 + $0xc0] sm:$0xff] %vm245_vm0, %v5775_v8  ;;  %5788 = vpow2.f32 %v1510_v28  ;;  %v1369_v8 = vrot.slane %v6474_v20, 1 }
 0x250   : >> { %v5779_v21 = vpop.eup %5778  ;;  %1527 = vst.msk [vmem:[#allocation4 + $0xc8] sm:$0xff] %vm245_vm0, %v5777_v22  ;;  %v2290_v22 = vrot.slane %v6579_v9, 2 }
 0x251   : >> { %v1714_v10 = vpop.permute.xlu1 %1713  ;;  %v2089_v43 = vpop.permute.xlu2 %2088  ;;  %1528 = vst.msk [vmem:[#allocation4 + $0xe0] sm:$0xff] %vm245_vm0, %v5779_v21 }
 0x252   : >> { %v1829_v52 = vmul.f32 %v8496_v46, %v1714_v10  ;;  %v5781_v3 = vpop.eup %5780  ;;  %v2336_v38 = vmul.f32 %v2303_v36, %v2089_v43  ;;  %v7486_v21 = vperm.slane %v2290_v22, 0 }
 0x253   : >> { %v2430_v41 = vld [vmem:[#allocation5 + $0x1e8] sm:$0xff]  ;;  %v5783_v26 = vpop.eup %5782  ;;  %1529 = vst.msk [vmem:[#allocation4 + $0xe8] sm:$0xff] %vm245_vm0, %v5781_v3  ;;  %v1386_v3 = vperm.slane %v6474_v20, 0  ;;  %v2649_v20 = vld [vmem:[#allocation5 + $0x140] sm:$0xff] }
 0x254   : >> { %v2434_v27 = vadd.f32 %v2430_v41, %v2425_v4  ;;  %1861 = vst.msk [vmem:[#allocation5 + $0x188] sm:$0xff] %vm245_vm0, %v1829_v52  ;;  %v5785_v4 = vpop.eup %5784 }
 0x255   : >> { %1538 = vst.msk [vmem:[#allocation4 + $0x180] sm:$0xff] %vm245_vm0, %v5783_v26  ;;  %v5787_v51 = vpop.eup %5786 }
 0x256   : >> { %2438 = vst.msk [vmem:[#allocation5 + $0x1e8] sm:$0xff] %vm245_vm0, %v2434_v27  ;;  %v2469_v42 = vmul.f32 %v2465_v13, %v2434_v27  ;;  %v5789_v10 = vpop.eup %5788  ;;  %v2553_v27 = vld [vmem:[#allocation4 + $0x188] sm:$0xff] }
 0x257   : >> { %2218 = vperm.xlu2 %5514, %v2207_v58   ;;  %2199 = vperm.xlu1 %5513, %v2194_v17   ;;  %v7470_v17 = vperm.slane %v1370_v57, 0  ;;  %2368 = vst.msk [vmem:[#allocation5 + $0x18] sm:$0xff] %vm245_vm0, %v2336_v38  ;;  %v1419_v38 = vmul.f32 %v7341_v45, %v1386_v3 }
 0x258   : >> { %v2478_v55 = vadd.f32 %v2474_v14, %v2469_v42  ;;  %1540 = vst.msk [vmem:[#allocation4 + $0x1a0] sm:$0xff] %vm245_vm0, %v5785_v4  ;;  %v2233_v14 = vperm.slane %v7436_v50, 4  ;;  %v2597_v4 = vld [vmem:[#allocation4 + $0x168] sm:$0xff] }
 0x259   : >> { %v1727_v54 = vpop.permute.xlu1 %1726  ;;  %v1423_v46 = vmul.f32 %v7341_v45, %v7470_v17  ;;  %1542 = vst.msk [vmem:[#allocation4 + $0x1c0] sm:$0xff] %vm245_vm0, %v5787_v51  ;;  %v1452_v51 = vmul.f32 1.442695, %v1419_v38  ;;  %v2685_v38 = vld [vmem:[#allocation4 + $0x128] sm:$0xff] }
 0x25a   : >> { %v1831_v5 = vmul.f32 %v7353_v56, %v1727_v54  ;;  %2482 = vst.msk [vmem:[#allocation5 + $0x1c8] sm:$0xff] %vm245_vm0, %v2478_v55  ;;  %v7480_v56 = vperm.slane %v1369_v8, 0  ;;  %v2513_v28 = vmul.f32 %v2509_v61, %v2478_v55 }
 0x25b   : >> { %v1460_v52 = vmul.f32 1.442695, %v1423_v46  ;;  %1544 = vst.msk [vmem:[#allocation4 + $0x1e0] sm:$0xff] %vm245_vm0, %v5789_v10  ;;  %v2562_v57 = vld [vmem:[#allocation5 + $0x188] sm:$0xff] }
 0x25c   : >> { %1863 = vst.msk [vmem:[#allocation5 + $0x1a8] sm:$0xff] %vm245_vm0, %v1831_v5  ;;  %v1421_v13 = vmul.f32 %v7341_v45, %v7480_v56  ;;  %v1428_v5 = vmul.f32 %v7380_v33, %v7408_v1 }
 0x25d   : >> { %5790 = vpow2.f32 %v1460_v52  ;;  %v2606_v52 = vld [vmem:[#allocation5 + $0x168] sm:$0xff] }
 0x25e   : >> { %v1470_v22 = vmul.f32 1.442695, %v1428_v5  ;;  %v8499_v5 = vld [vmem:[#allocation9_spill] sm:$0xff] }
 0x25f   : >> { %5517 = vset.pattern.permute.xlu2 %v6110_v11  ;;  %2212 = vperm.xlu1 %5513, %v2207_v58   ;;  %v1456_v58 = vmul.f32 1.442695, %v1421_v13 }
 0x261   : >> { %v2109_v41 = vpop.permute.xlu2 %2108  ;;  %5792 = vpow2.f32 %v1456_v58  ;;  %v1426_v58 = vmul.f32 %v7380_v33, %v7406_v19  ;;  %v8498_v19 = vperm.slane %v6252_v35, 3 }
 0x262   : >> { %v2339_v42 = vmul.f32 %v7486_v21, %v2109_v41  ;;  %5794 = vpow2.f32 %v1452_v51  ;;  %v7506_v41 = vld [vmem:[%s6170_s13 + $0xc0] sm:$0xff] }
 0x263   : >> { %v2518_v43 = vld [vmem:[#allocation5 + $0x1a8] sm:$0xff]  ;;  %v5791_v54 = vpop.eup %5790  ;;  %5796 = vpow2.f32 %v1470_v22 }
 0x264   : >> { %v2522_v26 = vadd.f32 %v2518_v43, %v2513_v28  ;;  %2371 = vst.msk [vmem:[#allocation5 + $0x50] sm:$0xff] %vm245_vm0, %v2339_v42  ;;  %v2641_v28 = vld [vmem:[#allocation4 + $0x148] sm:$0xff] }
 0x265   : >> { %1519 = vst.msk [vmem:[#allocation4 + $0x48] sm:$0xff] %vm245_vm0, %v5791_v54  ;;  %v2650_v42 = vld [vmem:[#allocation5 + $0x148] sm:$0xff]  ;;  %v8497_v54 = vperm.slane %v6252_v35, 5 }
 0x266   : >> { %2526 = vst.msk [vmem:[#allocation5 + $0x1a8] sm:$0xff] %vm245_vm0, %v2522_v26  ;;  %v2557_v55 = vmul.f32 %v2553_v27, %v2522_v26  ;;  %v8451_v27 = vperm.slane %v7506_v41, 4  ;;  %v7527_v35 = vld [vmem:[%s6170_s13 + $0xc8] sm:$0xff] }
 0x267   : >> { %2238 = vperm.xlu2 %5517, %v2233_v14   ;;  %5516 = vset.pattern.permute.xlu1 %v6128_v16  ;;  %v5793_v46 = vpop.eup %5792 }
 0x268   : >> { %v2566_v45 = vadd.f32 %v2562_v57, %v2557_v55  ;;  %1517 = vst.msk [vmem:[#allocation4 + $0x28] sm:$0xff] %vm245_vm0, %v5793_v46  ;;  %4780 = vperm.xlu0 %5569, %v8451_v27   ;;  %v5795_v26 = vpop.eup %5794  ;;  %v1466_v55 = vmul.f32 1.442695, %v1426_v58  ;;  %v8450_v46 = vperm.slane %v7527_v35, 1  ;;  %v2738_v58 = vld [vmem:[#allocation5 + $0x108] sm:$0xff] }
 0x269   : >> { %v1747_v10 = vpop.permute.xlu1 %1746  ;;  %v2122_v61 = vpop.permute.xlu2 %2121  ;;  %1515 = vst.msk [vmem:[#allocation4 + $0x8] sm:$0xff] %vm245_vm0, %v5795_v26 }
 0x26a   : >> { %2570 = vst.msk [vmem:[#allocation5 + $0x188] sm:$0xff] %vm245_vm0, %v2566_v45  ;;  %v2601_v8 = vmul.f32 %v2597_v4, %v2566_v45  ;;  %v1834_v1 = vmul.f32 %v7421_v31, %v1747_v10  ;;  %v2341_v13 = vmul.f32 %v7030_v23, %v2122_v61  ;;  %v2420_v23 = vld [vmem:[#allocation4 + $0x1e0] sm:$0xff]  ;;  %v2694_v4 = vld [vmem:[#allocation5 + $0x128] sm:$0xff]  ;;  %5798 = vpow2.f32 %v1466_v55 }
 0x26b   : >> { %v2424_v51 = vmul.f32 %v8499_v5, %v2420_v23  ;;  %v2292_v55 = vrot.slane %v6579_v9, 4  ;;  %v2293_v5 = vrot.slane %v6579_v9, 5 }
 0x26c   : >> { %v2610_v43 = vadd.f32 %v2606_v52, %v2601_v8  ;;  %1866 = vst.msk [vmem:[#allocation5 + $0x1e0] sm:$0xff] %vm245_vm0, %v1834_v1  ;;  %v5797_v8 = vpop.eup %5796  ;;  %v2729_v1 = vld [vmem:[#allocation4 + $0x108] sm:$0xff] }
 0x26d   : >> { %2373 = vst.msk [vmem:[#allocation5 + $0x70] sm:$0xff] %vm245_vm0, %v2341_v13 }
 0x26e   : >> { %2614 = vst.msk [vmem:[#allocation5 + $0x168] sm:$0xff] %vm245_vm0, %v2610_v43  ;;  %v2645_v31 = vmul.f32 %v2641_v28, %v2610_v43  ;;  %v2464_v28 = vld [vmem:[#allocation4 + $0x1c0] sm:$0xff] }
 0x26f   : >> { %2251 = vperm.xlu2 %5517, %v8497_v54   ;;  %2231 = vperm.xlu1 %5516, %v8498_v19   ;;  %1524 = vst.msk [vmem:[#allocation4 + $0xa0] sm:$0xff] %vm245_vm0, %v5797_v8  ;;  %v2517_v8 = vld [vmem:[#allocation5 + $0x1a0] sm:$0xff] }
 0x270   : >> { %v2654_v57 = vadd.f32 %v2650_v42, %v2645_v31  ;;  %4845 = vperm.xlu0 %5569, %v8450_v46   ;;  %v5799_v43 = vpop.eup %5798  ;;  %v2773_v31 = vld [vmem:[#allocation4 + $0xe8] sm:$0xff]  ;;  %v2473_v42 = vld [vmem:[#allocation5 + $0x1c0] sm:$0xff] }
 0x271   : >> { %v2083_v45 = vpop.permute.xlu1 %2082  ;;  %1522 = vst.msk [vmem:[#allocation4 + $0x80] sm:$0xff] %vm245_vm0, %v5799_v43  ;;  %v7554_v43 = vperm.slane %v2293_v5, 0  ;;  %v8500_v5 = vld [vmem:[#allocation12_spill] sm:$0xff] }
 0x272   : >> { %2658 = vst.msk [vmem:[#allocation5 + $0x148] sm:$0xff] %vm245_vm0, %v2654_v57  ;;  %v2689_v10 = vmul.f32 %v2685_v38, %v2654_v57  ;;  %v2335_v61 = vmul.f32 %v2303_v36, %v2083_v45  ;;  %v2508_v38 = vld [vmem:[#allocation4 + $0x1a0] sm:$0xff]  ;;  %v2259_v45 = vperm.slane %v7436_v50, 6 }
 0x273   : >> { %v2429_v22 = vld [vmem:[#allocation5 + $0x1e0] sm:$0xff] }
 0x274   : >> { %v2698_v52 = vadd.f32 %v2694_v4, %v2689_v10  ;;  %v2433_v13 = vadd.f32 %v2429_v22, %v2424_v51  ;;  %2367 = vst.msk [vmem:[#allocation5 + $0x10] sm:$0xff] %vm245_vm0, %v2335_v61  ;;  %v7542_v4 = vperm.slane %v2292_v55, 0  ;;  %v2817_v51 = vld [vmem:[#allocation4 + $0xc8] sm:$0xff]  ;;  %v8449_v10 = vperm.slane %v7527_v35, 6 }
 0x276   : >> { %2702 = vst.msk [vmem:[#allocation5 + $0x128] sm:$0xff] %vm245_vm0, %v2698_v52  ;;  %v2733_v36 = vmul.f32 %v2729_v1, %v2698_v52  ;;  %v2468_v23 = vmul.f32 %v2464_v28, %v2433_v13  ;;  %v2552_v1 = vld [vmem:[#allocation4 + $0x180] sm:$0xff]  ;;  %v1422_v28 = vmul.f32 %v7380_v33, %v7470_v17 }
 0x277   : >> { %2437 = vst.msk [vmem:[#allocation5 + $0x1e0] sm:$0xff] %vm245_vm0, %v2433_v13  ;;  %5519 = vset.pattern.permute.xlu2 %v6128_v16  ;;  %2244 = vperm.xlu1 %5516, %v2233_v14   ;;  %v2782_v16 = vld [vmem:[#allocation5 + $0xe8] sm:$0xff] }
 0x278   : >> { %v2742_v26 = vadd.f32 %v2738_v58, %v2733_v36  ;;  %v2477_v54 = vadd.f32 %v2473_v42, %v2468_v23  ;;  %4910 = vperm.xlu0 %5569, %v8449_v10   ;;  %v2561_v36 = vld [vmem:[#allocation5 + $0x180] sm:$0xff]  ;;  %v1458_v58 = vmul.f32 1.442695, %v1422_v28  ;;  %v2861_v23 = vld [vmem:[#allocation4 + $0xa8] sm:$0xff] }
 0x279   : >> { %v2141_v19 = vpop.permute.xlu2 %2140  ;;  %v2596_v42 = vld [vmem:[#allocation4 + $0x160] sm:$0xff] }
 0x27a   : >> { %2746 = vst.msk [vmem:[#allocation5 + $0x108] sm:$0xff] %vm245_vm0, %v2742_v26  ;;  %v2777_v57 = vmul.f32 %v2773_v31, %v2742_v26  ;;  %v2512_v14 = vmul.f32 %v2508_v38, %v2477_v54  ;;  %v2344_v52 = vmul.f32 %v7542_v4, %v2141_v19  ;;  %v2826_v31 = vld [vmem:[#allocation5 + $0xc8] sm:$0xff]  ;;  %v1420_v38 = vmul.f32 %v7380_v33, %v7480_v56  ;;  %v2640_v28 = vld [vmem:[#allocation4 + $0x140] sm:$0xff] }
 0x27b   : >> { %2481 = vst.msk [vmem:[#allocation5 + $0x1c0] sm:$0xff] %vm245_vm0, %v2477_v54  ;;  %5800 = vpow2.f32 %v1458_v58 }
 0x27c   : >> { %v2786_v61 = vadd.f32 %v2782_v16, %v2777_v57  ;;  %v2521_v22 = vadd.f32 %v2517_v8, %v2512_v14  ;;  %2376 = vst.msk [vmem:[#allocation5 + $0x98] sm:$0xff] %vm245_vm0, %v2344_v52  ;;  %v1454_v14 = vmul.f32 1.442695, %v1420_v38  ;;  %v2605_v52 = vld [vmem:[#allocation5 + $0x160] sm:$0xff] }
 0x27e   : >> { %v2821_v13 = vmul.f32 %v2817_v51, %v2786_v61  ;;  %2790 = vst.msk [vmem:[#allocation5 + $0xe8] sm:$0xff] %vm245_vm0, %v2786_v61  ;;  %v2556_v26 = vmul.f32 %v2552_v1, %v2521_v22  ;;  %v2905_v61 = vld [vmem:[#allocation4 + $0x88] sm:$0xff]  ;;  %v2272_v1 = vperm.slane %v7436_v50, 7  ;;  %5802 = vpow2.f32 %v1454_v14  ;;  %v2728_v14 = vld [vmem:[#allocation4 + $0x100] sm:$0xff] }
 0x27f   : >> { %2525 = vst.msk [vmem:[#allocation5 + $0x1a0] sm:$0xff] %vm245_vm0, %v2521_v22  ;;  %2270 = vperm.xlu2 %5519, %v2259_v45   ;;  %5518 = vset.pattern.permute.xlu1 %v6110_v11  ;;  %v2870_v11 = vld [vmem:[#allocation5 + $0xa8] sm:$0xff]  ;;  %v1418_v22 = vmul.f32 %v7380_v33, %v1386_v3 }
 0x280   : >> { %v2830_v17 = vadd.f32 %v2826_v31, %v2821_v13  ;;  %v2565_v55 = vadd.f32 %v2561_v36, %v2556_v26  ;;  %v2914_v13 = vld [vmem:[#allocation5 + $0x88] sm:$0xff] }
 0x281   : >> { %v2102_v54 = vpop.permute.xlu1 %2101  ;;  %v2154_v19 = vpop.permute.xlu2 %2153  ;;  %v2949_v50 = vld [vmem:[#allocation4 + $0x68] sm:$0xff] }
 0x282   : >> { %v2865_v57 = vmul.f32 %v2861_v23, %v2830_v17  ;;  %2834 = vst.msk [vmem:[#allocation5 + $0xc8] sm:$0xff] %vm245_vm0, %v2830_v17  ;;  %v2338_v16 = vmul.f32 %v8500_v5, %v2102_v54  ;;  %v2346_v51 = vmul.f32 %v7554_v43, %v2154_v19  ;;  %v2600_v8 = vmul.f32 %v2596_v42, %v2565_v55  ;;  %v5801_v58 = vpop.eup %5800  ;;  %v2684_v42 = vld [vmem:[#allocation4 + $0x120] sm:$0xff]  ;;  %v2958_v19 = vld [vmem:[#allocation5 + $0x68] sm:$0xff] }
 0x283   : >> { %2569 = vst.msk [vmem:[#allocation5 + $0x180] sm:$0xff] %vm245_vm0, %v2565_v55  ;;  %v1450_v23 = vmul.f32 1.442695, %v1418_v22 }
 0x284   : >> { %v2874_v56 = vadd.f32 %v2870_v11, %v2865_v57  ;;  %2370 = vst.msk [vmem:[#allocation5 + $0x38] sm:$0xff] %vm245_vm0, %v2338_v16  ;;  %v2609_v36 = vadd.f32 %v2605_v52, %v2600_v8  ;;  %v5803_v38 = vpop.eup %5802  ;;  %v2993_v57 = vld [vmem:[#allocation4 + $0x48] sm:$0xff] }
 0x285   : >> { %2378 = vst.msk [vmem:[#allocation5 + $0xb8] sm:$0xff] %vm245_vm0, %v2346_v51  ;;  %5804 = vpow2.f32 %v1450_v23  ;;  %v2693_v51 = vld [vmem:[#allocation5 + $0x120] sm:$0xff]  ;;  %v3037_v52 = vld [vmem:[#allocation4 + $0x28] sm:$0xff] }
 0x286   : >> { %v2909_v31 = vmul.f32 %v2905_v61, %v2874_v56  ;;  %2878 = vst.msk [vmem:[#allocation5 + $0xa8] sm:$0xff] %vm245_vm0, %v2874_v56  ;;  %v2644_v26 = vmul.f32 %v2640_v28, %v2609_v36  ;;  %v3002_v56 = vld [vmem:[#allocation5 + $0x48] sm:$0xff] }
 0x287   : >> { %2613 = vst.msk [vmem:[#allocation5 + $0x160] sm:$0xff] %vm245_vm0, %v2609_v36  ;;  %2283 = vperm.xlu2 %5519, %v2272_v1   ;;  %2264 = vperm.xlu1 %5518, %v2259_v45   ;;  %v2295_v45 = vrot.slane %v6579_v9, 7  ;;  %v2737_v9 = vld [vmem:[#allocation5 + $0x100] sm:$0xff] }
 0x288   : >> { %v2918_v17 = vadd.f32 %v2914_v13, %v2909_v31  ;;  %1518 = vst.msk [vmem:[#allocation4 + $0x40] sm:$0xff] %vm245_vm0, %v5801_v58  ;;  %v2653_v33 = vadd.f32 %v2649_v20, %v2644_v26  ;;  %v2772_v13 = vld [vmem:[#allocation4 + $0xe0] sm:$0xff]  ;;  %v3046_v26 = vld [vmem:[#allocation5 + $0x28] sm:$0xff] }
 0x289   : >> { %v2115_v3 = vpop.permute.xlu1 %2114  ;;  %1516 = vst.msk [vmem:[#allocation4 + $0x20] sm:$0xff] %vm245_vm0, %v5803_v38  ;;  %v2781_v31 = vld [vmem:[#allocation5 + $0xe0] sm:$0xff] }
 0x28a   : >> { %v2953_v55 = vmul.f32 %v2949_v50, %v2918_v17  ;;  %2922 = vst.msk [vmem:[#allocation5 + $0x88] sm:$0xff] %vm245_vm0, %v2918_v17  ;;  %v2340_v54 = vmul.f32 %v7486_v21, %v2115_v3  ;;  %v2688_v5 = vmul.f32 %v2684_v42, %v2653_v33  ;;  %v7581_v21 = vperm.slane %v2295_v45, 0  ;;  %v3080_v17 = vld [vmem:[#allocation4 + $0x8] sm:$0xff]  ;;  %v7590_v42 = vld [vmem:[%s6114_s8] sm:$0xff] }
 0x28b   : >> { %2657 = vst.msk [vmem:[#allocation5 + $0x140] sm:$0xff] %vm245_vm0, %v2653_v33  ;;  %v5805_v61 = vpop.eup %5804  ;;  %v2816_v3 = vld [vmem:[#allocation4 + $0xc0] sm:$0xff] }
 0x28c   : >> { %v2962_v16 = vadd.f32 %v2958_v19, %v2953_v55  ;;  %2372 = vst.msk [vmem:[#allocation5 + $0x58] sm:$0xff] %vm245_vm0, %v2340_v54  ;;  %v2697_v11 = vadd.f32 %v2693_v51, %v2688_v5  ;;  %v3088_v54 = vld [vmem:[#allocation5 + $0x8] sm:$0xff]  ;;  %v2860_v5 = vld [vmem:[#allocation4 + $0xa0] sm:$0xff] }
 0x28d   : >> { %1514 = vst.msk [vmem:[#allocation4] sm:$0xff] %vm245_vm0, %v5805_v61 }
 0x28e   : >> { %2966 = vst.msk [vmem:[#allocation5 + $0x68] sm:$0xff] %vm245_vm0, %v2962_v16  ;;  %v2997_v8 = vmul.f32 %v2993_v57, %v2962_v16  ;;  %v2732_v28 = vmul.f32 %v2728_v14, %v2697_v11  ;;  %v2825_v57 = vld [vmem:[#allocation5 + $0xc0] sm:$0xff] }
 0x28f   : >> { %2701 = vst.msk [vmem:[#allocation5 + $0x120] sm:$0xff] %vm245_vm0, %v2697_v11  ;;  %5522 = vset.pattern.permute.xlu2 %v6675_v15  ;;  %2277 = vperm.xlu1 %5518, %v2272_v1   ;;  %v3148_v1 = vperm.slane %v7590_v42, 1  ;;  %v8501_v11 = vperm.slane %v6639_v25, 0 }
 0x290   : >> { %v3006_v22 = vadd.f32 %v3002_v56, %v2997_v8  ;;  %v2741_v36 = vadd.f32 %v2737_v9, %v2732_v28  ;;  %v2869_v56 = vld [vmem:[#allocation5 + $0xa0] sm:$0xff] }
 0x291   : >> { %v2174_v58 = vpop.permute.xlu2 %2173 }
 0x292   : >> { %v3041_v23 = vmul.f32 %v3037_v52, %v3006_v22  ;;  %3010 = vst.msk [vmem:[#allocation5 + $0x48] sm:$0xff] %vm245_vm0, %v3006_v22  ;;  %v2349_v50 = vmul.f32 %v7581_v21, %v2174_v58  ;;  %v2776_v20 = vmul.f32 %v2772_v13, %v2741_v36  ;;  %v2904_v52 = vld [vmem:[#allocation4 + $0x80] sm:$0xff]  ;;  %v8502_v22 = vperm.slane %v7109_v60, 2 }
 0x293   : >> { %2745 = vst.msk [vmem:[#allocation5 + $0x100] sm:$0xff] %vm245_vm0, %v2741_v36  ;;  %v2913_v13 = vld [vmem:[#allocation5 + $0x80] sm:$0xff] }
 0x294   : >> { %v3050_v33 = vadd.f32 %v3046_v26, %v3041_v23  ;;  %2381 = vst.msk [vmem:[#allocation5 + $0xf0] sm:$0xff] %vm245_vm0, %v2349_v50  ;;  %v2785_v38 = vadd.f32 %v2781_v31, %v2776_v20  ;;  %v2948_v36 = vld [vmem:[#allocation4 + $0x60] sm:$0xff]  ;;  %v2296_v50 = vrot.slane %v6639_v25, 1 }
 0x295   : >> { %v2992_v20 = vld [vmem:[#allocation4 + $0x40] sm:$0xff] }
 0x296   : >> { %v3084_v55 = vmul.f32 %v3080_v17, %v3050_v33  ;;  %3054 = vst.msk [vmem:[#allocation5 + $0x28] sm:$0xff] %vm245_vm0, %v3050_v33  ;;  %v2820_v19 = vmul.f32 %v2816_v3, %v2785_v38  ;;  %v2957_v17 = vld [vmem:[#allocation5 + $0x60] sm:$0xff] }
 0x297   : >> { %2789 = vst.msk [vmem:[#allocation5 + $0xe0] sm:$0xff] %vm245_vm0, %v2785_v38  ;;  %3153 = vperm.xlu2 %5522, %v3148_v1   ;;  %5521 = vset.pattern.permute.xlu1 %v7088_v12  ;;  %v3001_v38 = vld [vmem:[#allocation5 + $0x40] sm:$0xff] }
 0x298   : >> { %v7597_v3 = vadd.f32 %v3088_v54, %v3084_v55   ;;  %v2829_v45 = vadd.f32 %v2825_v57, %v2820_v19  ;;  %v7616_v55 = vpop.permute.xlu0 %3140  ;;  %v7618_v54 = vperm.slane %v2296_v50, 0 }
 0x299   : >> { %v2135_v16 = vpop.permute.xlu1 %2134  ;;  %v2187_v51 = vpop.permute.xlu2 %2186 }
 0x29a   : >> { %3096 = vst.msk [vmem:[#allocation5 + $0x8] sm:$0xff] %vm245_vm0, %v7597_v3  ;;  %v2343_v14 = vmul.f32 %v7542_v4, %v2135_v16  ;;  %v2351_v61 = vmul.f32 %v8501_v11, %v2187_v51  ;;  %v2864_v8 = vmul.f32 %v2860_v5, %v2829_v45  ;;  %v8503_v4 = vperm.slane %v6701_v34, 0  ;;  %v3045_v11 = vld [vmem:[#allocation5 + $0x20] sm:$0xff] }
 0x29b   : >> { %2833 = vst.msk [vmem:[#allocation5 + $0xc0] sm:$0xff] %vm245_vm0, %v2829_v45  ;;  %v2297_v16 = vrot.slane %v6639_v25, 2  ;;  %v3174_v51 = vperm.slane %v7590_v42, 3 }
 0x29c   : >> { %2375 = vst.msk [vmem:[#allocation5 + $0x90] sm:$0xff] %vm245_vm0, %v2343_v14  ;;  %v2873_v28 = vadd.f32 %v2869_v56, %v2864_v8 }
 0x29d   : >> { %2383 = vst.msk [vmem:[#allocation5 + $0x110] sm:$0xff] %vm245_vm0, %v2351_v61  ;;  %v3079_v61 = vld [vmem:[#allocation4] sm:$0xff]  ;;  %v7627_v8 = vperm.slane %v2297_v16, 0 }
 0x29e   : >> { %v2908_v9 = vmul.f32 %v2904_v52, %v2873_v28  ;;  %2877 = vst.msk [vmem:[#allocation5 + $0xa0] sm:$0xff] %vm245_vm0, %v2873_v28  ;;  %v3087_v28 = vld [vmem:[#allocation5] sm:$0xff] }
 0x29f   : >> { %3166 = vperm.xlu2 %5522, %v8502_v22   ;;  %3146 = vperm.xlu1 %5521, %v8503_v4  }
 0x2a0   : >> { %v2917_v58 = vadd.f32 %v2913_v13, %v2908_v9  ;;  %v7631_v52 = vpop.permute.xlu0 %3205  ;;  %v8504_v13 = vld [vmem:[#allocation14_spill] sm:$0xff] }
 0x2a1   : >> { %v2148_v31 = vpop.permute.xlu1 %2147 }
 0x2a2   : >> { %v2345_v23 = vmul.f32 %v7554_v43, %v2148_v31  ;;  %2921 = vst.msk [vmem:[#allocation5 + $0x80] sm:$0xff] %vm245_vm0, %v2917_v58  ;;  %v2952_v26 = vmul.f32 %v2948_v36, %v2917_v58  ;;  %v3036_v43 = vld [vmem:[#allocation4 + $0x20] sm:$0xff]  ;;  %v3187_v31 = vperm.slane %v7590_v42, 4 }
 0x2a4   : >> { %2377 = vst.msk [vmem:[#allocation5 + $0xb0] sm:$0xff] %vm245_vm0, %v2345_v23  ;;  %v2961_v33 = vadd.f32 %v2957_v17, %v2952_v26  ;;  %v8505_v23 = vld [vmem:[#allocation13_spill] sm:$0xff]  ;;  %v7648_v17 = vld [vmem:[%s8394_s2 + $0x38] sm:$0xff] }
 0x2a5   : >> { %v1913_v50 = vrot.slane %v8505_v23, 7  ;;  %v1925_v46 = vperm.slane %v8505_v23, 0 }
 0x2a6   : >> { %v2996_v19 = vmul.f32 %v2992_v20, %v2961_v33  ;;  %2965 = vst.msk [vmem:[#allocation5 + $0x60] sm:$0xff] %vm245_vm0, %v2961_v33  ;;  %v1912_v33 = vrot.slane %v8505_v23, 6 }
 0x2a7   : >> { %5524 = vset.pattern.permute.xlu2 %v7088_v12  ;;  %3159 = vperm.xlu1 %5521, %v3148_v1   ;;  %v7643_v26 = vperm.slane %v1913_v50, 0 }
 0x2a8   : >> { %v3005_v5 = vadd.f32 %v3001_v38, %v2996_v19  ;;  %v7653_v19 = vpop.permute.xlu0 %3270 }
 0x2a9   : >> { %v2206_v57 = vpop.permute.xlu2 %2205  ;;  %v1980_v38 = vmul.f32 %v7648_v17, %v7643_v26 }
 0x2aa   : >> { %v2354_v45 = vmul.f32 %v7618_v54, %v2206_v57  ;;  %v3040_v14 = vmul.f32 %v3036_v43, %v3005_v5  ;;  %3009 = vst.msk [vmem:[#allocation5 + $0x40] sm:$0xff] %vm245_vm0, %v3005_v5  ;;  %v2299_v57 = vrot.slane %v6639_v25, 4  ;;  %v7657_v5 = vperm.slane %v1912_v33, 0 }
 0x2ac   : >> { %2386 = vst.msk [vmem:[#allocation5 + $0x138] sm:$0xff] %vm245_vm0, %v2354_v45  ;;  %v3049_v1 = vadd.f32 %v3045_v11, %v3040_v14  ;;  %v2043_v45 = vmul.f32 1.442695, %v1980_v38  ;;  %v1978_v16 = vmul.f32 %v7648_v17, %v7657_v5  ;;  %v7663_v14 = vperm.slane %v2299_v57, 0 }
 0x2ad   : >> { %v1908_v57 = vrot.slane %v8505_v23, 2 }
 0x2ae   : >> { %v3083_v56 = vmul.f32 %v3079_v61, %v3049_v1  ;;  %3053 = vst.msk [vmem:[#allocation5 + $0x20] sm:$0xff] %vm245_vm0, %v3049_v1  ;;  %5806 = vpow2.f32 %v2043_v45  ;;  %v2039_v11 = vmul.f32 1.442695, %v1978_v16  ;;  %v1910_v1 = vrot.slane %v8505_v23, 4 }
 0x2af   : >> { %3185 = vperm.xlu2 %5524, %v3174_v51   ;;  %5523 = vset.pattern.permute.xlu1 %v6675_v15 }
 0x2b0   : >> { %v7633_v4 = vadd.f32 %v3087_v28, %v3083_v56   ;;  %5808 = vpow2.f32 %v2039_v11 }
 0x2b1   : >> { %v2167_v9 = vpop.permute.xlu1 %2166  ;;  %v2219_v22 = vpop.permute.xlu2 %2218 }
 0x2b2   : >> { %v2348_v36 = vmul.f32 %v8504_v13, %v2167_v9  ;;  %v2356_v58 = vmul.f32 %v7627_v8, %v2219_v22  ;;  %3095 = vst.msk [vmem:[#allocation5] sm:$0xff] %vm245_vm0, %v7633_v4  ;;  %v3213_v22 = vperm.slane %v7590_v42, 6  ;;  %v7673_v13 = vperm.slane %v1910_v1, 0 }
 0x2b4   : >> { %2380 = vst.msk [vmem:[#allocation5 + $0xd8] sm:$0xff] %vm245_vm0, %v2348_v36  ;;  %v5807_v9 = vpop.eup %5806  ;;  %v1974_v50 = vmul.f32 %v7648_v17, %v7673_v13 }
 0x2b5   : >> { %2388 = vst.msk [vmem:[#allocation5 + $0x158] sm:$0xff] %vm245_vm0, %v2356_v58  ;;  %v7675_v58 = vpop.permute.xlu0 %3335 }
 0x2b6   : >> { %2076 = vst.msk [vmem:[#allocation4 + $0x1f8] sm:$0xff] %vm245_vm0, %v5807_v9  ;;  %v2031_v33 = vmul.f32 1.442695, %v1974_v50  ;;  %v2301_v50 = vrot.slane %v6639_v25, 6 }
 0x2b7   : >> { %3198 = vperm.xlu2 %5524, %v3187_v31   ;;  %3179 = vperm.xlu1 %5523, %v3174_v51   ;;  %v1911_v51 = vrot.slane %v8505_v23, 5 }
 0x2b9   : >> { %v2180_v20 = vpop.permute.xlu1 %2179 }
 0x2ba   : >> { %v2350_v43 = vmul.f32 %v7581_v21, %v2180_v20  ;;  %v7666_v21 = vperm.slane %v1911_v51, 0  ;;  %v5809_v20 = vpop.eup %5808 }
 0x2bb   : >> { %2074 = vst.msk [vmem:[#allocation4 + $0x1d8] sm:$0xff] %vm245_vm0, %v5809_v20 }
 0x2bc   : >> { %2382 = vst.msk [vmem:[#allocation5 + $0xf8] sm:$0xff] %vm245_vm0, %v2350_v43  ;;  %v1976_v56 = vmul.f32 %v7648_v17, %v7666_v21 }
 0x2be   : >> { %v2035_v36 = vmul.f32 1.442695, %v1976_v56 }
 0x2bf   : >> { %5526 = vset.pattern.permute.xlu2 %v6675_v15  ;;  %3192 = vperm.xlu1 %5523, %v3187_v31   ;;  %v1909_v31 = vrot.slane %v8505_v23, 3 }
 0x2c0   : >> { %5810 = vpow2.f32 %v2035_v36 }
 0x2c1   : >> { %v2239_v61 = vpop.permute.xlu2 %2238  ;;  %v7683_v42 = vperm.slane %v1909_v31, 0  ;;  %5812 = vpow2.f32 %v2031_v33  ;;  %v8508_v33 = vld [vmem:[#allocation10_spill] sm:$0xff] }
 0x2c2   : >> { %v2359_v28 = vmul.f32 %v7663_v14, %v2239_v61  ;;  %v7691_v61 = vperm.slane %v1908_v57, 0  ;;  %v1903_v57 = vrot.slane %v8508_v33, 4 }
 0x2c3   : >> { %v1972_v45 = vmul.f32 %v7648_v17, %v7683_v42 }
 0x2c4   : >> { %2391 = vst.msk [vmem:[#allocation5 + $0x190] sm:$0xff] %vm245_vm0, %v2359_v28  ;;  %v1970_v56 = vmul.f32 %v7648_v17, %v7691_v61  ;;  %v7697_v28 = vpop.permute.xlu0 %3724 }
 0x2c5   : >> { %v2027_v1 = vmul.f32 1.442695, %v1972_v45  ;;  %v1904_v45 = vrot.slane %v8508_v33, 5 }
 0x2c6   : >> { %v5811_v11 = vpop.eup %5810  ;;  %v2023_v36 = vmul.f32 1.442695, %v1970_v56 }
 0x2c7   : >> { %3218 = vperm.xlu2 %5526, %v3213_v22   ;;  %5525 = vset.pattern.permute.xlu1 %v7088_v12  ;;  %5814 = vpow2.f32 %v2027_v1  ;;  %2072 = vst.msk [vmem:[#allocation4 + $0x1b8] sm:$0xff] %vm245_vm0, %v5811_v11  ;;  %v5813_v9 = vpop.eup %5812  ;;  %v1922_v1 = vperm.slane %v1904_v45, 0  ;;  %v1907_v45 = vrot.slane %v8505_v23, 1 }
 0x2c8   : >> { %2070 = vst.msk [vmem:[#allocation4 + $0x198] sm:$0xff] %vm245_vm0, %v5813_v9  ;;  %5816 = vpow2.f32 %v2023_v36  ;;  %v7721_v9 = vperm.slane %v2301_v50, 0 }
 0x2c9   : >> { %v2200_v38 = vpop.permute.xlu1 %2199  ;;  %v2252_v43 = vpop.permute.xlu2 %2251  ;;  %v1926_v23 = vperm.slane %v1907_v45, 0 }
 0x2ca   : >> { %v2353_v16 = vmul.f32 %v7618_v54, %v2200_v38  ;;  %v2361_v51 = vmul.f32 %v7082_v29, %v2252_v43  ;;  %v8506_v54 = vperm.slane %v7109_v60, 7  ;;  %v8507_v29 = vperm.slane %v6701_v34, 5 }
 0x2cb   : >> { %v1901_v38 = vrot.slane %v8508_v33, 2  ;;  %v1902_v43 = vrot.slane %v8508_v33, 3  ;;  %v1905_v34 = vrot.slane %v8508_v33, 6 }
 0x2cc   : >> { %2385 = vst.msk [vmem:[#allocation5 + $0x130] sm:$0xff] %vm245_vm0, %v2353_v16  ;;  %v1906_v16 = vrot.slane %v8508_v33, 7 }
 0x2cd   : >> { %2393 = vst.msk [vmem:[#allocation5 + $0x1b0] sm:$0xff] %vm245_vm0, %v2361_v51  ;;  %v5815_v60 = vpop.eup %5814  ;;  %v7714_v51 = vperm.slane %v1901_v38, 0  ;;  %v7716_v11 = vperm.slane %v1902_v43, 0  ;;  %v1923_v56 = vperm.slane %v1905_v34, 0  ;;  %v1960_v43 = vmul.f32 %v7648_v17, %v1922_v1 }
 0x2ce   : >> { %2068 = vst.msk [vmem:[#allocation4 + $0x178] sm:$0xff] %vm245_vm0, %v5815_v60  ;;  %v1924_v50 = vperm.slane %v1906_v16, 0  ;;  %v2302_v60 = vrot.slane %v6639_v25, 7  ;;  %v7748_v25 = vld [vmem:[%s6114_s8 + $0x8] sm:$0xff] }
 0x2cf   : >> { %3231 = vperm.xlu2 %5526, %v8506_v54   ;;  %3211 = vperm.xlu1 %5525, %v8507_v29   ;;  %v7726_v54 = vld [vmem:[%s8394_s2 + $0x30] sm:$0xff]  ;;  %v1954_v29 = vmul.f32 %v7648_v17, %v7714_v51  ;;  %v1956_v36 = vmul.f32 %v7648_v17, %v7716_v11  ;;  %v3239_v44 = vperm.slane %v7748_v25, 0 }
 0x2d0   : >> { %v1959_v38 = vmul.f32 %v7726_v54, %v1922_v1  ;;  %v1961_v34 = vmul.f32 %v7726_v54, %v1923_v56  ;;  %v1963_v16 = vmul.f32 %v7726_v54, %v1924_v50  ;;  %v1964_v40 = vmul.f32 %v7648_v17, %v1924_v50 }
 0x2d1   : >> { %v2213_v31 = vpop.permute.xlu1 %2212  ;;  %v1991_v27 = vmul.f32 1.442695, %v1954_v29  ;;  %v1995_v59 = vmul.f32 1.442695, %v1956_v36  ;;  %v7754_v36 = vperm.slane %v2302_v60, 0 }
 0x2d2   : >> { %v2355_v20 = vmul.f32 %v7627_v8, %v2213_v31  ;;  %v7718_v8 = vperm.slane %v1903_v57, 0  ;;  %v7737_v57 = vpop.permute.xlu0 %3789  ;;  %v2001_v30 = vmul.f32 1.442695, %v1959_v38  ;;  %v2005_v29 = vmul.f32 1.442695, %v1961_v34 }
 0x2d3   : >> { %5818 = vpow2.f32 %v1991_v27  ;;  %v2009_v38 = vmul.f32 1.442695, %v1963_v16  ;;  %v1967_v27 = vmul.f32 %v7726_v54, %v1926_v23  ;;  %v2011_v50 = vmul.f32 1.442695, %v1964_v40 }
 0x2d4   : >> { %2387 = vst.msk [vmem:[#allocation5 + $0x150] sm:$0xff] %vm245_vm0, %v2355_v20  ;;  %v1958_v31 = vmul.f32 %v7648_v17, %v7718_v8  ;;  %v5817_v20 = vpop.eup %5816  ;;  %5820 = vpow2.f32 %v1995_v59  ;;  %v1968_v59 = vmul.f32 %v7648_v17, %v1926_v23  ;;  %v1971_v23 = vmul.f32 %v7726_v54, %v7683_v42 }
 0x2d5   : >> { %2066 = vst.msk [vmem:[#allocation4 + $0x158] sm:$0xff] %vm245_vm0, %v5817_v20  ;;  %v2003_v20 = vmul.f32 1.442695, %v1960_v43 }
 0x2d6   : >> { %v1999_v0 = vmul.f32 1.442695, %v1958_v31  ;;  %v1966_v31 = vmul.f32 %v7648_v17, %v1925_v46 }
 0x2d7   : >> { %5528 = vset.pattern.permute.xlu2 %v7088_v12  ;;  %3224 = vperm.xlu1 %5525, %v3213_v22   ;;  %v1962_v22 = vmul.f32 %v7648_v17, %v1923_v56  ;;  %v1965_v56 = vmul.f32 %v7726_v54, %v1925_v46 }
 0x2d8   : >> { %5822 = vpow2.f32 %v1999_v0  ;;  %v2015_v40 = vmul.f32 1.442695, %v1966_v31 }
 0x2d9   : >> { %v2271_v10 = vpop.permute.xlu2 %2270  ;;  %5824 = vpow2.f32 %v2001_v30  ;;  %v2013_v0 = vmul.f32 1.442695, %v1965_v56  ;;  %v5819_v45 = vpop.eup %5818  ;;  %v1969_v30 = vmul.f32 %v7726_v54, %v7691_v61  ;;  %v2017_v56 = vmul.f32 1.442695, %v1967_v27 }
 0x2da   : >> { %v2364_v1 = vmul.f32 %v7721_v9, %v2271_v10  ;;  %v2007_v10 = vmul.f32 1.442695, %v1962_v22  ;;  %5826 = vpow2.f32 %v2003_v20  ;;  %v7759_v43 = vpop.permute.xlu0 %3854  ;;  %v5821_v46 = vpop.eup %5820  ;;  %2050 = vst.msk [vmem:[#allocation4 + $0x58] sm:$0xff] %vm245_vm0, %v5819_v45  ;;  %v3252_v20 = vperm.slane %v7748_v25, 1 }
 0x2db   : >> { %5828 = vpow2.f32 %v2005_v29  ;;  %2052 = vst.msk [vmem:[#allocation4 + $0x78] sm:$0xff] %vm245_vm0, %v5821_v46  ;;  %v2019_v29 = vmul.f32 1.442695, %v1968_v59  ;;  %v2021_v45 = vmul.f32 1.442695, %v1969_v30  ;;  %v8509_v59 = vld [vmem:[#allocation6_spill] sm:$0xff] }
 0x2dc   : >> { %2396 = vst.msk [vmem:[#allocation5 + $0x1d8] sm:$0xff] %vm245_vm0, %v2364_v1  ;;  %5830 = vpow2.f32 %v2007_v10  ;;  %v2423_v10 = vld [vmem:[#allocation4 + $0x1f8] sm:$0xff]  ;;  %v2025_v27 = vmul.f32 1.442695, %v1971_v23 }
 0x2dd   : >> { %5832 = vpow2.f32 %v2009_v38  ;;  %v1973_v38 = vmul.f32 %v7726_v54, %v7673_v13  ;;  %v1975_v13 = vmul.f32 %v7726_v54, %v7666_v21 }
 0x2de   : >> { %v5823_v1 = vpop.eup %5822  ;;  %5834 = vpow2.f32 %v2011_v50 }
 0x2df   : >> { %3250 = vperm.xlu2 %5528, %v3239_v44   ;;  %5527 = vset.pattern.permute.xlu1 %v6675_v15  ;;  %v5825_v61 = vpop.eup %5824  ;;  %5836 = vpow2.f32 %v2013_v0  ;;  %2054 = vst.msk [vmem:[#allocation4 + $0x98] sm:$0xff] %vm245_vm0, %v5823_v1  ;;  %v2427_v0 = vmul.f32 %v8509_v59, %v2423_v10  ;;  %v2033_v21 = vmul.f32 1.442695, %v1975_v13 }
 0x2e0   : >> { %5838 = vpow2.f32 %v2015_v40  ;;  %2055 = vst.msk [vmem:[#allocation4 + $0xb0] sm:$0xff] %vm245_vm0, %v5825_v61 }
 0x2e1   : >> { %v2284_v60 = vpop.permute.xlu2 %2283  ;;  %v2232_v34 = vpop.permute.xlu1 %2231  ;;  %5840 = vpow2.f32 %v2017_v56 }
 0x2e2   : >> { %v2366_v22 = vmul.f32 %v7754_v36, %v2284_v60  ;;  %v2358_v16 = vmul.f32 %v6666_v24, %v2232_v34  ;;  %v5827_v24 = vpop.eup %5826  ;;  %5842 = vpow2.f32 %v2019_v29  ;;  %v1977_v60 = vmul.f32 %v7726_v54, %v7657_v5  ;;  %v7786_v46 = vpop.permute.xlu0 %4236 }
 0x2e3   : >> { %v5829_v31 = vpop.eup %5828  ;;  %2056 = vst.msk [vmem:[#allocation4 + $0xb8] sm:$0xff] %vm245_vm0, %v5827_v24  ;;  %5844 = vpow2.f32 %v2021_v45 }
 0x2e4   : >> { %2398 = vst.msk [vmem:[#allocation5 + $0x1f8] sm:$0xff] %vm245_vm0, %v2366_v22  ;;  %v5831_v42 = vpop.eup %5830  ;;  %v2029_v22 = vmul.f32 1.442695, %v1973_v38  ;;  %5846 = vpow2.f32 %v2025_v27  ;;  %v2037_v23 = vmul.f32 1.442695, %v1977_v60  ;;  %v2520_v27 = vld [vmem:[#allocation5 + $0x1b8] sm:$0xff] }
 0x2e5   : >> { %2390 = vst.msk [vmem:[#allocation5 + $0x178] sm:$0xff] %vm245_vm0, %v2358_v16  ;;  %v5833_v50 = vpop.eup %5832  ;;  %v2467_v16 = vld [vmem:[#allocation4 + $0x1d8] sm:$0xff] }
 0x2e6   : >> { %v5835_v34 = vpop.eup %5834  ;;  %2057 = vst.msk [vmem:[#allocation4 + $0xd0] sm:$0xff] %vm245_vm0, %v5829_v31  ;;  %5848 = vpow2.f32 %v2029_v22  ;;  %v2511_v31 = vld [vmem:[#allocation4 + $0x1b8] sm:$0xff] }
 0x2e7   : >> { %3263 = vperm.xlu2 %5528, %v3252_v20   ;;  %3244 = vperm.xlu1 %5527, %v3239_v44   ;;  %v1979_v44 = vmul.f32 %v7726_v54, %v7643_v26  ;;  %v5837_v30 = vpop.eup %5836  ;;  %2058 = vst.msk [vmem:[#allocation4 + $0xd8] sm:$0xff] %vm245_vm0, %v5831_v42  ;;  %v2476_v26 = vld [vmem:[#allocation5 + $0x1d8] sm:$0xff]  ;;  %5850 = vpow2.f32 %v2033_v21 }
 0x2e8   : >> { %2059 = vst.msk [vmem:[#allocation4 + $0xf0] sm:$0xff] %vm245_vm0, %v5833_v50  ;;  %v5839_v5 = vpop.eup %5838  ;;  %5852 = vpow2.f32 %v2037_v23  ;;  %v1917_v23 = vperm.slane %v8508_v33, 0 }
 0x2e9   : >> { %2060 = vst.msk [vmem:[#allocation4 + $0xf8] sm:$0xff] %vm245_vm0, %v5835_v34  ;;  %v5841_v56 = vpop.eup %5840  ;;  %v2041_v61 = vmul.f32 1.442695, %v1979_v44  ;;  %v2245_v10 = vpop.permute.xlu1 %2244  ;;  %v1900_v34 = vrot.slane %v8508_v33, 1  ;;  %v2995_v33 = vld [vmem:[#allocation4 + $0x58] sm:$0xff] }
 0x2ea   : >> { %2061 = vst.msk [vmem:[#allocation4 + $0x110] sm:$0xff] %vm245_vm0, %v5837_v30  ;;  %v5843_v29 = vpop.eup %5842  ;;  %v2360_v50 = vmul.f32 %v7663_v14, %v2245_v10  ;;  %v7801_v13 = vpop.permute.xlu0 %4301  ;;  %v2555_v30 = vld [vmem:[#allocation4 + $0x198] sm:$0xff] }
 0x2eb   : >> { %v2432_v40 = vld [vmem:[#allocation5 + $0x1f8] sm:$0xff]  ;;  %2062 = vst.msk [vmem:[#allocation4 + $0x118] sm:$0xff] %vm245_vm0, %v5839_v5  ;;  %v5845_v38 = vpop.eup %5844  ;;  %5854 = vpow2.f32 %v2041_v61  ;;  %v7807_v22 = vperm.slane %v1900_v34, 0 }
 0x2ec   : >> { %v2436_v1 = vadd.f32 %v2432_v40, %v2427_v0  ;;  %2063 = vst.msk [vmem:[#allocation4 + $0x130] sm:$0xff] %vm245_vm0, %v5841_v56  ;;  %v5847_v42 = vpop.eup %5846  ;;  %v2652_v34 = vld [vmem:[#allocation5 + $0x158] sm:$0xff] }
 0x2ed   : >> { %2064 = vst.msk [vmem:[#allocation4 + $0x138] sm:$0xff] %vm245_vm0, %v5843_v29  ;;  %v5849_v0 = vpop.eup %5848  ;;  %v1952_v40 = vmul.f32 %v7648_v17, %v7807_v22  ;;  %v1950_v29 = vmul.f32 %v7648_v17, %v1917_v23 }
 0x2ee   : >> { %2440 = vst.msk [vmem:[#allocation5 + $0x1f8] sm:$0xff] %vm245_vm0, %v2436_v1  ;;  %v2471_v24 = vmul.f32 %v2467_v16, %v2436_v1  ;;  %v5851_v44 = vpop.eup %5850 }
 0x2ef   : >> { %5530 = vset.pattern.permute.xlu2 %v6675_v15  ;;  %3257 = vperm.xlu1 %5527, %v3252_v20   ;;  %2065 = vst.msk [vmem:[#allocation4 + $0x150] sm:$0xff] %vm245_vm0, %v5845_v38  ;;  %v3278_v20 = vperm.slane %v7748_v25, 3  ;;  %v5853_v14 = vpop.eup %5852  ;;  %v1987_v56 = vmul.f32 1.442695, %v1952_v40  ;;  %v8510_v38 = vperm.slane %v7155_v32, 4 }
 0x2f0   : >> { %v2480_v45 = vadd.f32 %v2476_v26, %v2471_v24  ;;  %2067 = vst.msk [vmem:[#allocation4 + $0x170] sm:$0xff] %vm245_vm0, %v5847_v42  ;;  %v2599_v26 = vld [vmem:[#allocation4 + $0x178] sm:$0xff] }
 0x2f1   : >> { %2392 = vst.msk [vmem:[#allocation5 + $0x198] sm:$0xff] %vm245_vm0, %v2360_v50  ;;  %v5855_v16 = vpop.eup %5854  ;;  %5856 = vpow2.f32 %v1987_v56  ;;  %v2608_v42 = vld [vmem:[#allocation5 + $0x178] sm:$0xff] }
 0x2f2   : >> { %2484 = vst.msk [vmem:[#allocation5 + $0x1d8] sm:$0xff] %vm245_vm0, %v2480_v45  ;;  %v2515_v59 = vmul.f32 %v2511_v31, %v2480_v45  ;;  %v7822_v10 = vpop.permute.xlu0 %4366  ;;  %v1983_v31 = vmul.f32 1.442695, %v1950_v29  ;;  %v8511_v45 = vperm.slane %v6755_v62, 2  ;;  %v2740_v29 = vld [vmem:[#allocation5 + $0x118] sm:$0xff] }
 0x2f3   : >> { %2069 = vst.msk [vmem:[#allocation4 + $0x190] sm:$0xff] %vm245_vm0, %v5849_v0 }
 0x2f4   : >> { %v2524_v60 = vadd.f32 %v2520_v27, %v2515_v59  ;;  %2071 = vst.msk [vmem:[#allocation4 + $0x1b0] sm:$0xff] %vm245_vm0, %v5851_v44  ;;  %v2643_v27 = vld [vmem:[#allocation4 + $0x158] sm:$0xff]  ;;  %5858 = vpow2.f32 %v1983_v31 }
 0x2f5   : >> { %2073 = vst.msk [vmem:[#allocation4 + $0x1d0] sm:$0xff] %vm245_vm0, %v5853_v14  ;;  %v2687_v44 = vld [vmem:[#allocation4 + $0x138] sm:$0xff] }
 0x2f6   : >> { %2528 = vst.msk [vmem:[#allocation5 + $0x1b8] sm:$0xff] %vm245_vm0, %v2524_v60  ;;  %v2559_v21 = vmul.f32 %v2555_v30, %v2524_v60 }
 0x2f7   : >> { %3283 = vperm.xlu2 %5530, %v3278_v20   ;;  %5529 = vset.pattern.permute.xlu1 %v7088_v12  ;;  %2075 = vst.msk [vmem:[#allocation4 + $0x1f0] sm:$0xff] %vm245_vm0, %v5855_v16  ;;  %v5857_v0 = vpop.eup %5856  ;;  %v7833_v16 = vpop.permute.xlu2 %3153 }
 0x2f8   : >> { %v2564_v61 = vld [vmem:[#allocation5 + $0x198] sm:$0xff]  ;;  %2048 = vst.msk [vmem:[#allocation4 + $0x38] sm:$0xff] %vm245_vm0, %v5857_v0 }
 0x2f9   : >> { %v2265_v5 = vpop.permute.xlu1 %2264  ;;  %v2568_v24 = vadd.f32 %v2564_v61, %v2559_v21  ;;  %v2696_v21 = vld [vmem:[#allocation5 + $0x138] sm:$0xff]  ;;  %v1957_v61 = vmul.f32 %v7726_v54, %v7718_v8 }
 0x2fa   : >> { %v2363_v1 = vmul.f32 %v7721_v9, %v2265_v5  ;;  %v5859_v30 = vpop.eup %5858  ;;  %v2731_v5 = vld [vmem:[#allocation4 + $0x118] sm:$0xff] }
 0x2fb   : >> { %2572 = vst.msk [vmem:[#allocation5 + $0x198] sm:$0xff] %vm245_vm0, %v2568_v24  ;;  %v2603_v9 = vmul.f32 %v2599_v26, %v2568_v24  ;;  %v2510_v8 = vld [vmem:[#allocation4 + $0x1b0] sm:$0xff]  ;;  %v2784_v0 = vld [vmem:[#allocation5 + $0xf8] sm:$0xff] }
 0x2fc   : >> { %2395 = vst.msk [vmem:[#allocation5 + $0x1d0] sm:$0xff] %vm245_vm0, %v2363_v1  ;;  %v8512_v1 = vld [vmem:[#allocation7_spill] sm:$0xff]  ;;  %v2466_v31 = vld [vmem:[#allocation4 + $0x1d0] sm:$0xff] }
 0x2fd   : >> { %v2612_v50 = vadd.f32 %v2608_v42, %v2603_v9  ;;  %2046 = vst.msk [vmem:[#allocation4 + $0x18] sm:$0xff] %vm245_vm0, %v5859_v30 }
 0x2fe   : >> { %v2422_v14 = vld [vmem:[#allocation4 + $0x1f0] sm:$0xff] }
 0x2ff   : >> { %3296 = vperm.xlu2 %5530, %v8510_v38   ;;  %3276 = vperm.xlu1 %5529, %v8511_v45   ;;  %2616 = vst.msk [vmem:[#allocation5 + $0x178] sm:$0xff] %vm245_vm0, %v2612_v50  ;;  %v2647_v60 = vmul.f32 %v2643_v27, %v2612_v50  ;;  %v2426_v56 = vmul.f32 %v8512_v1, %v2422_v14  ;;  %v2775_v38 = vld [vmem:[#allocation4 + $0xf8] sm:$0xff]  ;;  %v1997_v50 = vmul.f32 1.442695, %v1957_v61  ;;  %v2554_v1 = vld [vmem:[#allocation4 + $0x190] sm:$0xff] }
 0x300   : >> { %v1955_v14 = vmul.f32 %v7726_v54, %v7716_v11  ;;  %v2863_v61 = vld [vmem:[#allocation4 + $0xb8] sm:$0xff] }
 0x301   : >> { %v2278_v59 = vpop.permute.xlu1 %2277  ;;  %v2656_v32 = vadd.f32 %v2652_v34, %v2647_v60  ;;  %v2819_v60 = vld [vmem:[#allocation4 + $0xd8] sm:$0xff]  ;;  %v7848_v34 = vpop.permute.xlu2 %3166  ;;  %5860 = vpow2.f32 %v1997_v50  ;;  %v2598_v50 = vld [vmem:[#allocation4 + $0x170] sm:$0xff] }
 0x302   : >> { %v2365_v17 = vmul.f32 %v7754_v36, %v2278_v59  ;;  %v7837_v36 = vpop.permute.xlu0 %4748  ;;  %v1993_v11 = vmul.f32 1.442695, %v1955_v14 }
 0x303   : >> { %2660 = vst.msk [vmem:[#allocation5 + $0x158] sm:$0xff] %vm245_vm0, %v2656_v32  ;;  %v2691_v40 = vmul.f32 %v2687_v44, %v2656_v32 }
 0x304   : >> { %2397 = vst.msk [vmem:[#allocation5 + $0x1f0] sm:$0xff] %vm245_vm0, %v2365_v17  ;;  %v2475_v17 = vld [vmem:[#allocation5 + $0x1d0] sm:$0xff]  ;;  %5862 = vpow2.f32 %v1993_v11 }
 0x305   : >> { %v2700_v26 = vadd.f32 %v2696_v21, %v2691_v40 }
 0x307   : >> { %5532 = vset.pattern.permute.xlu2 %v7088_v12  ;;  %3289 = vperm.xlu1 %5529, %v3278_v20   ;;  %2704 = vst.msk [vmem:[#allocation5 + $0x138] sm:$0xff] %vm245_vm0, %v2700_v26  ;;  %v2735_v24 = vmul.f32 %v2731_v5, %v2700_v26  ;;  %v3304_v20 = vperm.slane %v7748_v25, 5  ;;  %v2519_v5 = vld [vmem:[#allocation5 + $0x1b0] sm:$0xff]  ;;  %v2828_v26 = vld [vmem:[#allocation5 + $0xd8] sm:$0xff] }
 0x309   : >> { %v2744_v42 = vadd.f32 %v2740_v29, %v2735_v24  ;;  %v1953_v24 = vmul.f32 %v7726_v54, %v7714_v51 }
 0x30a   : >> { %v7852_v30 = vpop.permute.xlu0 %4813 }
 0x30b   : >> { %v2431_v9 = vld [vmem:[#allocation5 + $0x1f0] sm:$0xff]  ;;  %2748 = vst.msk [vmem:[#allocation5 + $0x118] sm:$0xff] %vm245_vm0, %v2744_v42  ;;  %v2779_v59 = vmul.f32 %v2775_v38, %v2744_v42 }
 0x30c   : >> { %v2435_v45 = vadd.f32 %v2431_v9, %v2426_v56  ;;  %v3317_v56 = vperm.slane %v7748_v25, 6  ;;  %v5861_v9 = vpop.eup %5860  ;;  %v2872_v25 = vld [vmem:[#allocation5 + $0xb8] sm:$0xff] }
 0x30d   : >> { %v2788_v32 = vadd.f32 %v2784_v0, %v2779_v59  ;;  %2053 = vst.msk [vmem:[#allocation4 + $0x90] sm:$0xff] %vm245_vm0, %v5861_v9  ;;  %v1951_v0 = vmul.f32 %v7726_v54, %v7807_v22  ;;  %v5863_v22 = vpop.eup %5862 }
 0x30e   : >> { %2439 = vst.msk [vmem:[#allocation5 + $0x1f0] sm:$0xff] %vm245_vm0, %v2435_v45  ;;  %v2470_v27 = vmul.f32 %v2466_v31, %v2435_v45  ;;  %v1989_v45 = vmul.f32 1.442695, %v1953_v24 }
 0x30f   : >> { %3315 = vperm.xlu2 %5532, %v3304_v20   ;;  %5531 = vset.pattern.permute.xlu1 %v6675_v15  ;;  %2792 = vst.msk [vmem:[#allocation5 + $0xf8] sm:$0xff] %vm245_vm0, %v2788_v32  ;;  %v2823_v21 = vmul.f32 %v2819_v60, %v2788_v32  ;;  %v1985_v14 = vmul.f32 1.442695, %v1951_v0  ;;  %v2730_v0 = vld [vmem:[#allocation4 + $0x110] sm:$0xff] }
 0x310   : >> { %v2479_v44 = vadd.f32 %v2475_v17, %v2470_v27  ;;  %v2563_v27 = vld [vmem:[#allocation5 + $0x190] sm:$0xff]  ;;  %v2907_v17 = vld [vmem:[#allocation4 + $0x98] sm:$0xff]  ;;  %5864 = vpow2.f32 %v1989_v45  ;;  %2051 = vst.msk [vmem:[#allocation4 + $0x70] sm:$0xff] %vm245_vm0, %v5863_v22  ;;  %v3107_v22 = vld [vmem:[#allocation3 + $0x40] sm:$0xff] }
 0x311   : >> { %v2832_v31 = vadd.f32 %v2828_v26, %v2823_v21  ;;  %v7861_v59 = vpop.permute.xlu1 %3146  ;;  %5866 = vpow2.f32 %v1985_v14  ;;  %v2651_v45 = vld [vmem:[#allocation5 + $0x150] sm:$0xff] }
 0x312   : >> { %2483 = vst.msk [vmem:[#allocation5 + $0x1d0] sm:$0xff] %vm245_vm0, %v2479_v44  ;;  %v2514_v40 = vmul.f32 %v2510_v8, %v2479_v44  ;;  %v7863_v8 = vpop.permute.xlu2 %3185  ;;  %v2607_v44 = vld [vmem:[#allocation5 + $0x170] sm:$0xff]  ;;  %v7870_v21 = vpop.permute.xlu0 %4878 }
 0x313   : >> { %v2867_v42 = vmul.f32 %v2863_v61, %v2832_v31  ;;  %2836 = vst.msk [vmem:[#allocation5 + $0xd8] sm:$0xff] %vm245_vm0, %v2832_v31  ;;  %v1949_v61 = vmul.f32 %v7726_v54, %v1917_v23  ;;  %v2960_v31 = vld [vmem:[#allocation5 + $0x78] sm:$0xff] }
 0x314   : >> { %v2523_v29 = vadd.f32 %v2519_v5, %v2514_v40  ;;  %v2916_v5 = vld [vmem:[#allocation5 + $0x98] sm:$0xff] }
 0x315   : >> { %v2876_v60 = vadd.f32 %v2872_v25, %v2867_v42  ;;  %v1981_v9 = vmul.f32 1.442695, %v1949_v61  ;;  %v2686_v42 = vld [vmem:[#allocation4 + $0x130] sm:$0xff]  ;;  %v3105_v61 = vld [vmem:[#allocation3 + $0x20] sm:$0xff] }
 0x316   : >> { %2527 = vst.msk [vmem:[#allocation5 + $0x1b0] sm:$0xff] %vm245_vm0, %v2523_v29  ;;  %v2558_v38 = vmul.f32 %v2554_v1, %v2523_v29  ;;  %v2951_v1 = vld [vmem:[#allocation4 + $0x78] sm:$0xff]  ;;  %v5865_v24 = vpop.eup %5864 }
 0x317   : >> { %3328 = vperm.xlu2 %5532, %v3317_v56   ;;  %3309 = vperm.xlu1 %5531, %v3304_v20   ;;  %v2911_v40 = vmul.f32 %v2907_v17, %v2876_v60  ;;  %2880 = vst.msk [vmem:[#allocation5 + $0xb8] sm:$0xff] %vm245_vm0, %v2876_v60  ;;  %v2642_v20 = vld [vmem:[#allocation4 + $0x150] sm:$0xff]  ;;  %5868 = vpow2.f32 %v1981_v9  ;;  %v7885_v60 = vld [vmem:[%s6114_s8 + $0x40] sm:$0xff]  ;;  %v3347_v9 = vmul.f32 %v7848_v34, %v3107_v22  ;;  %v3082_v34 = vld [vmem:[#allocation4 + $0x18] sm:$0xff] }
 0x318   : >> { %v2567_v51 = vadd.f32 %v2563_v27, %v2558_v38  ;;  %2049 = vst.msk [vmem:[#allocation4 + $0x50] sm:$0xff] %vm245_vm0, %v5865_v24 }
 0x319   : >> { %v2920_v29 = vadd.f32 %v2916_v5, %v2911_v40  ;;  %v3160_v27 = vpop.permute.xlu1 %3159  ;;  %v3106_v40 = vld [vmem:[#allocation3 + $0x28] sm:$0xff] }
 0x31a   : >> { %2571 = vst.msk [vmem:[#allocation5 + $0x190] sm:$0xff] %vm245_vm0, %v2567_v51  ;;  %v2602_v32 = vmul.f32 %v2598_v50, %v2567_v51  ;;  %v5867_v50 = vpop.eup %5866  ;;  %v7881_v17 = vpop.permute.xlu2 %3198  ;;  %v3346_v24 = vmul.f32 %v3160_v27, %v3106_v40 }
 0x31b   : >> { %v2955_v38 = vmul.f32 %v2951_v1, %v2920_v29  ;;  %2924 = vst.msk [vmem:[#allocation5 + $0x98] sm:$0xff] %vm245_vm0, %v2920_v29 }
 0x31c   : >> { %v2611_v26 = vadd.f32 %v2607_v44, %v2602_v32  ;;  %v3667_v44 = vperm.slane %v7885_v60, 0  ;;  %v3004_v32 = vld [vmem:[#allocation5 + $0x58] sm:$0xff]  ;;  %2047 = vst.msk [vmem:[#allocation4 + $0x30] sm:$0xff] %vm245_vm0, %v5867_v50 }
 0x31d   : >> { %v2964_v23 = vadd.f32 %v2960_v31, %v2955_v38  ;;  %v5869_v1 = vpop.eup %5868  ;;  %v2739_v31 = vld [vmem:[#allocation5 + $0x110] sm:$0xff]  ;;  %v3048_v50 = vld [vmem:[#allocation5 + $0x38] sm:$0xff] }
 0x31e   : >> { %2615 = vst.msk [vmem:[#allocation5 + $0x170] sm:$0xff] %vm245_vm0, %v2611_v26  ;;  %v2646_v11 = vmul.f32 %v2642_v20, %v2611_v26  ;;  %v3039_v20 = vld [vmem:[#allocation4 + $0x38] sm:$0xff]  ;;  %v3173_v26 = vpop.permute.xlu0 %3172  ;;  %v2774_v38 = vld [vmem:[#allocation4 + $0xf0] sm:$0xff] }
 0x31f   : >> { %5534 = vset.pattern.permute.xlu2 %v6675_v15  ;;  %3322 = vperm.xlu1 %5531, %v3317_v56   ;;  %v2999_v51 = vmul.f32 %v2995_v33, %v2964_v23  ;;  %2968 = vst.msk [vmem:[#allocation5 + $0x78] sm:$0xff] %vm245_vm0, %v2964_v23  ;;  %v2695_v56 = vld [vmem:[#allocation5 + $0x130] sm:$0xff] }
 0x320   : >> { %v2655_v54 = vadd.f32 %v2651_v45, %v2646_v11  ;;  %v3345_v11 = vmul.f32 %v7833_v16, %v3105_v61  ;;  %v3103_v45 = vld [vmem:[#allocation3] sm:$0xff]  ;;  %2045 = vst.msk [vmem:[#allocation4 + $0x10] sm:$0xff] %vm245_vm0, %v5869_v1  ;;  %v3104_v16 = vld [vmem:[#allocation3 + $0x8] sm:$0xff]  ;;  %v2783_v61 = vld [vmem:[#allocation5 + $0xf0] sm:$0xff] }
 0x321   : >> { %v3008_v5 = vadd.f32 %v3004_v32, %v2999_v51  ;;  %v3343_v40 = vmul.f32 %v7616_v55, %v3103_v45  ;;  %v2818_v1 = vld [vmem:[#allocation4 + $0xd0] sm:$0xff] }
 0x322   : >> { %2659 = vst.msk [vmem:[#allocation5 + $0x150] sm:$0xff] %vm245_vm0, %v2655_v54  ;;  %v2690_v25 = vmul.f32 %v2686_v42, %v2655_v54  ;;  %v3108_v42 = vld [vmem:[#allocation3 + $0x48] sm:$0xff]  ;;  %v3109_v54 = vld [vmem:[#allocation3 + $0x60] sm:$0xff] }
 0x323   : >> { %3012 = vst.msk [vmem:[#allocation5 + $0x58] sm:$0xff] %vm245_vm0, %v3008_v5  ;;  %v3043_v23 = vmul.f32 %v3039_v20, %v3008_v5  ;;  %v3348_v27 = vmul.f32 %v3173_v26, %v3108_v42  ;;  %v3384_v20 = vsel %vm245_vm0, %v3345_v11, 0.0  ;;  %v3393_v5 = vsel %vm245_vm0, %v3347_v9, 0.0  ;;  %v3110_v26 = vld [vmem:[#allocation3 + $0x68] sm:$0xff]  ;;  %v3090_v42 = vld [vmem:[#allocation5 + $0x18] sm:$0xff] }
 0x324   : >> { %v2699_v14 = vadd.f32 %v2695_v56, %v2690_v25  ;;  %v3385_v56 = vsel %vm245_vm0, %v3346_v24, 0.0  ;;  %v2827_v24 = vld [vmem:[#allocation5 + $0xd0] sm:$0xff]  ;;  %v3375_v9 = vsel %vm245_vm0, %v3343_v40, 0.0 }
 0x325   : >> { %v3394_v55 = vsel %vm245_vm0, %v3348_v27, 0.0 }
 0x326   : >> { %v2734_v29 = vmul.f32 %v2730_v0, %v2699_v14  ;;  %2703 = vst.msk [vmem:[#allocation5 + $0x130] sm:$0xff] %vm245_vm0, %v2699_v14  ;;  %v7899_v0 = vpop.permute.xlu2 %3218  ;;  %v3052_v14 = vadd.f32 %v3048_v50, %v3043_v23  ;;  %v8513_v23 = vperm.slane %v6805_v2, 1  ;;  %v8514_v50 = vperm.slane %v6755_v62, 7  ;;  %v2871_v62 = vld [vmem:[#allocation5 + $0xb0] sm:$0xff] }
 0x327   : >> { %3672 = vperm.xlu2 %5534, %v3667_v44   ;;  %5533 = vset.pattern.permute.xlu1 %v7088_v12 }
 0x328   : >> { %v2743_v33 = vadd.f32 %v2739_v31, %v2734_v29  ;;  %v3350_v29 = vmul.f32 %v7863_v8, %v3110_v26  ;;  %v3344_v31 = vmul.f32 %v7861_v59, %v3104_v16  ;;  %3056 = vst.msk [vmem:[#allocation5 + $0x38] sm:$0xff] %vm245_vm0, %v3052_v14  ;;  %v3395_v8 = vadd.f32 %v3394_v55, %v3393_v5  ;;  %v3112_v59 = vld [vmem:[#allocation3 + $0x88] sm:$0xff]  ;;  %v2906_v5 = vld [vmem:[#allocation4 + $0x90] sm:$0xff]  ;;  %v3238_v55 = vpop.permute.xlu0 %3237 }
 0x329   : >> { %v3180_v25 = vpop.permute.xlu1 %3179 }
 0x32a   : >> { %v2778_v51 = vmul.f32 %v2774_v38, %v2743_v33  ;;  %2747 = vst.msk [vmem:[#allocation5 + $0x110] sm:$0xff] %vm245_vm0, %v2743_v33  ;;  %v3349_v32 = vmul.f32 %v3180_v25, %v3109_v54  ;;  %v3086_v38 = vmul.f32 %v3082_v34, %v3052_v14  ;;  %v3386_v33 = vadd.f32 %v3385_v56, %v3384_v20  ;;  %v2862_v54 = vld [vmem:[#allocation4 + $0xb0] sm:$0xff]  ;;  %v3111_v14 = vld [vmem:[#allocation3 + $0x80] sm:$0xff] }
 0x32b   : >> { %v3403_v27 = vsel %vm245_vm0, %v3350_v29, 0.0  ;;  %v3352_v25 = vmul.f32 %v7881_v17, %v3112_v59  ;;  %v3376_v34 = vsel %vm245_vm0, %v3344_v31, 0.0  ;;  %v3396_v26 = vrot.slane %v3395_v8, 4 }
 0x32c   : >> { %v2787_v22 = vadd.f32 %v2783_v61, %v2778_v51  ;;  %v3402_v11 = vsel %vm245_vm0, %v3349_v32, 0.0  ;;  %v3387_v51 = vrot.slane %v3386_v33, 4  ;;  %v3377_v20 = vadd.f32 %v3376_v34, %v3375_v9 }
 0x32d   : >> { %v3404_v56 = vadd.f32 %v3403_v27, %v3402_v11  ;;  %v3397_v27 = vadd.f32 %v3396_v26, %v3395_v8 }
 0x32e   : >> { %v2822_v45 = vmul.f32 %v2818_v1, %v2787_v22  ;;  %2791 = vst.msk [vmem:[#allocation5 + $0xf0] sm:$0xff] %vm245_vm0, %v2787_v22  ;;  %v7910_v1 = vadd.f32 %v3090_v42, %v3086_v38   ;;  %v3412_v22 = vsel %vm245_vm0, %v3352_v25, 0.0  ;;  %v3232_v17 = vpop.permute.xlu2 %3231  ;;  %v3388_v38 = vadd.f32 %v3387_v51, %v3386_v33 }
 0x32f   : >> { %3685 = vperm.xlu2 %5534, %v8513_v23   ;;  %3341 = vperm.xlu1 %5533, %v8514_v50   ;;  %v3378_v59 = vrot.slane %v3377_v20, 4  ;;  %v2950_v50 = vld [vmem:[#allocation4 + $0x70] sm:$0xff] }
 0x330   : >> { %v2831_v16 = vadd.f32 %v2827_v24, %v2822_v45  ;;  %3098 = vst.msk [vmem:[#allocation5 + $0x18] sm:$0xff] %vm245_vm0, %v7910_v1  ;;  %v3405_v24 = vrot.slane %v3404_v56, 4  ;;  %v3117_v45 = vld [vmem:[#allocation3 + $0xe0] sm:$0xff]  ;;  %v3389_v34 = vrot.slane %v3388_v38, 2 }
 0x331   : >> { %v3193_v32 = vpop.permute.xlu1 %3192  ;;  %v3357_v23 = vmul.f32 %v3232_v17, %v3117_v45  ;;  %v3398_v17 = vrot.slane %v3397_v27, 2 }
 0x332   : >> { %v2866_v40 = vmul.f32 %v2862_v54, %v2831_v16  ;;  %2835 = vst.msk [vmem:[#allocation5 + $0xd0] sm:$0xff] %vm245_vm0, %v2831_v16  ;;  %v3351_v61 = vmul.f32 %v3193_v32, %v3111_v14  ;;  %v2915_v54 = vld [vmem:[#allocation5 + $0x90] sm:$0xff]  ;;  %v3118_v16 = vld [vmem:[#allocation3 + $0xe8] sm:$0xff]  ;;  %v3406_v51 = vadd.f32 %v3405_v24, %v3404_v56  ;;  %v3390_v26 = vadd.f32 %v3389_v34, %v3388_v38 }
 0x333   : >> { %v3358_v25 = vmul.f32 %v3238_v55, %v3118_v16  ;;  %v3003_v55 = vld [vmem:[#allocation5 + $0x50] sm:$0xff] }
 0x334   : >> { %v3411_v29 = vsel %vm245_vm0, %v3351_v61, 0.0  ;;  %v2875_v31 = vadd.f32 %v2871_v62, %v2866_v40  ;;  %v2959_v40 = vld [vmem:[#allocation5 + $0x70] sm:$0xff]  ;;  %v3379_v61 = vadd.f32 %v3378_v59, %v3377_v20  ;;  %v3438_v62 = vsel %vm245_vm0, %v3357_v23, 0.0  ;;  %v7937_v20 = vld [vmem:[%s8395_s3] ss:$0 sm:$0xff] }
 0x335   : >> { %v3413_v42 = vadd.f32 %v3412_v22, %v3411_v29  ;;  %v2994_v22 = vld [vmem:[#allocation4 + $0x50] sm:$0xff]  ;;  %v3439_v8 = vsel %vm245_vm0, %v3358_v25, 0.0  ;;  %v3407_v29 = vrot.slane %v3406_v51, 2  ;;  %v3399_v59 = vadd.f32 %v3398_v17, %v3397_v27  ;;  %v3114_v25 = vld [vmem:[#allocation3 + $0xa8] sm:$0xff] }
 0x336   : >> { %v2910_v11 = vmul.f32 %v2906_v5, %v2875_v31  ;;  %2879 = vst.msk [vmem:[#allocation5 + $0xb0] sm:$0xff] %vm245_vm0, %v2875_v31  ;;  %v3693_v5 = vperm.slane %v7885_v60, 2  ;;  %v3113_v31 = vld [vmem:[#allocation3 + $0xa0] sm:$0xff]  ;;  %v3440_v56 = vadd.f32 %v3439_v8, %v3438_v62  ;;  %v3380_v45 = vrot.slane %v3379_v61, 2  ;;  %v3081_v8 = vld [vmem:[#allocation4 + $0x10] sm:$0xff] }
 0x337   : >> { %v3414_v9 = vrot.slane %v3413_v42, 4  ;;  %5536 = vset.pattern.permute.xlu2 %v7088_v12  ;;  %3678 = vperm.xlu1 %5533, %v3667_v44   ;;  %v3353_v38 = vmul.f32 %v7631_v52, %v3113_v31  ;;  %v3408_v16 = vadd.f32 %v3407_v29, %v3406_v51  ;;  %v3706_v52 = vperm.slane %v7885_v60, 3 }
 0x338   : >> { %v2919_v33 = vadd.f32 %v2915_v54, %v2910_v11  ;;  %v3038_v11 = vld [vmem:[#allocation4 + $0x30] sm:$0xff]  ;;  %v3101_v54 = vld [vmem:[%s6224_s16] sm:$0xff]  ;;  %v3441_v34 = vrot.slane %v3440_v56, 4  ;;  %v3400_v17 = vrot.slane %v3399_v59, 1 }
 0x339   : >> { %v3415_v32 = vadd.f32 %v3414_v9, %v3413_v42  ;;  %v3047_v9 = vld [vmem:[#allocation5 + $0x30] sm:$0xff]  ;;  %v3420_v27 = vsel %vm245_vm0, %v3353_v38, 0.0 }
 0x33a   : >> { %v2954_v14 = vmul.f32 %v2950_v50, %v2919_v33  ;;  %2923 = vst.msk [vmem:[#allocation5 + $0x90] sm:$0xff] %vm245_vm0, %v2919_v33  ;;  %v3391_v50 = vrot.slane %v3390_v26, 1 }
 0x33b   : >> { %v3416_v24 = vrot.slane %v3415_v32, 2 }
 0x33c   : >> { %v2963_v44 = vadd.f32 %v2959_v40, %v2954_v14 }
 0x33d   : >> { %v3417_v14 = vadd.f32 %v3416_v24, %v3415_v32  ;;  %v3392_v32 = vadd.f32 %v3391_v50, %v3390_v26  ;;  %v3409_v24 = vrot.slane %v3408_v16, 1 }
 0x33e   : >> { %2967 = vst.msk [vmem:[#allocation5 + $0x70] sm:$0xff] %vm245_vm0, %v2963_v44  ;;  %v2998_v42 = vmul.f32 %v2994_v22, %v2963_v44  ;;  %v7944_v22 = vmul.f32 %v7937_v20, %v3101_v54  ;;  %v3381_v44 = vadd.f32 %v3380_v45, %v3379_v61  ;;  %v3089_v61 = vld [vmem:[#allocation5 + $0x10] sm:$0xff]  ;;  %v3115_v54 = vld [vmem:[#allocation3 + $0xc0] sm:$0xff] }
 0x33f   : >> { %3704 = vperm.xlu2 %5536, %v3693_v5   ;;  %5535 = vset.pattern.permute.xlu1 %v6675_v15  ;;  %v3410_v50 = vadd.f32 %v3409_v24, %v3408_v16 }
 0x340   : >> { %v3007_v23 = vadd.f32 %v3003_v55, %v2998_v42  ;;  %v3525_v31 = vrot.slane %v7944_v22, 1  ;;  %v3442_v55 = vadd.f32 %v3441_v34, %v3440_v56  ;;  %v3382_v45 = vrot.slane %v3381_v44, 1 }
 0x341   : >> { %v3212_v33 = vpop.permute.xlu1 %3211  ;;  %v3526_v38 = vrot.slane %v7944_v22, 2  ;;  %v3527_v56 = vrot.slane %v7944_v22, 3 }
 0x342   : >> { %v3354_v40 = vmul.f32 %v3212_v33, %v3114_v25  ;;  %3011 = vst.msk [vmem:[#allocation5 + $0x50] sm:$0xff] %vm245_vm0, %v3007_v23  ;;  %v3042_v62 = vmul.f32 %v3038_v11, %v3007_v23  ;;  %v3418_v11 = vrot.slane %v3417_v14, 1  ;;  %v3401_v25 = vadd.f32 %v3400_v17, %v3399_v59 }
 0x343   : >> { %v3556_v26 = vadd.f32 %v3525_v31, %v3392_v32  ;;  %v3558_v32 = vadd.f32 %v3527_v56, %v3410_v50  ;;  %v3732_v50 = vperm.slane %v7885_v60, 5 }
 0x344   : >> { %v3421_v51 = vsel %vm245_vm0, %v3354_v40, 0.0  ;;  %v3051_v29 = vadd.f32 %v3047_v9, %v3042_v62  ;;  %v3355_v9 = vmul.f32 %v7899_v0, %v3115_v54 }
 0x345   : >> { %v3422_v42 = vadd.f32 %v3421_v51, %v3420_v27  ;;  %v3443_v27 = vrot.slane %v3442_v55, 2  ;;  %v3528_v51 = vrot.slane %v7944_v22, 4  ;;  %v3590_v31 = vrot.slane %v3556_v26, 7 }
 0x346   : >> { %v3085_v23 = vmul.f32 %v3081_v8, %v3051_v29  ;;  %3055 = vst.msk [vmem:[#allocation5 + $0x30] sm:$0xff] %vm245_vm0, %v3051_v29  ;;  %v3116_v8 = vld [vmem:[#allocation3 + $0xc8] sm:$0xff]  ;;  %v3419_v29 = vadd.f32 %v3418_v11, %v3417_v14  ;;  %v3429_v0 = vsel %vm245_vm0, %v3355_v9, 0.0  ;;  %v3529_v11 = vrot.slane %v7944_v22, 5 }
 0x347   : >> { %v3423_v33 = vrot.slane %v3422_v42, 4  ;;  %3717 = vperm.xlu2 %5536, %v3706_v52   ;;  %3698 = vperm.xlu1 %5535, %v3693_v5   ;;  %v3383_v5 = vadd.f32 %v3382_v45, %v3381_v44  ;;  %v3596_v44 = vrot.slane %v3558_v32, 5 }
 0x348   : >> { %v7953_v40 = vadd.f32 %v3089_v61, %v3085_v23   ;;  %v3444_v23 = vadd.f32 %v3443_v27, %v3442_v55  ;;  %v3559_v61 = vadd.f32 %v3528_v51, %v3419_v29  ;;  %v3531_v27 = vrot.slane %v7944_v22, 7 }
 0x349   : >> { %v3424_v34 = vadd.f32 %v3423_v33, %v3422_v42  ;;  %v3225_v62 = vpop.permute.xlu1 %3224  ;;  %v3557_v42 = vadd.f32 %v3526_v38, %v3401_v25  ;;  %v3555_v14 = vadd.f32 %v7944_v22, %v3383_v5 }
 0x34a   : >> { %v3356_v7 = vmul.f32 %v3225_v62, %v3116_v8  ;;  %3097 = vst.msk [vmem:[#allocation5 + $0x10] sm:$0xff] %vm245_vm0, %v7953_v40  ;;  %v3445_v38 = vrot.slane %v3444_v23, 1  ;;  %v3599_v55 = vrot.slane %v3559_v61, 4  ;;  %v8515_v61 = vperm.slane %v7190_v6, 6 }
 0x34b   : >> { %v3425_v59 = vrot.slane %v3424_v34, 2  ;;  %v3593_v26 = vrot.slane %v3557_v42, 6  ;;  %v3572_v42 = vld [vmem:[%s7975_s17] sm:$0xff] }
 0x34c   : >> { %v3430_v17 = vsel %vm245_vm0, %v3356_v7, 0.0  ;;  %v3592_v7 = vsel %vm3591_vm1, %v3590_v31, %v3555_v14  ;;  %v3446_v51 = vadd.f32 %v3445_v38, %v3444_v23  ;;  %v3251_v23 = vpop.permute.xlu2 %3250  ;;  %v8516_v14 = vperm.slane %v6805_v2, 4 }
 0x34d   : >> { %v3426_v16 = vadd.f32 %v3425_v59, %v3424_v34  ;;  %v3431_v24 = vadd.f32 %v3430_v17, %v3429_v0  ;;  %v3595_v34 = vsel %vm3594_vm2, %v3593_v26, %v3592_v7  ;;  %v3530_v59 = vrot.slane %v7944_v22, 6 }
 0x34e   : >> { %v3562_v31 = vadd.f32 %v3531_v27, %v3446_v51  ;;  %v3123_v27 = vld [vmem:[#allocation3 + $0x140] sm:$0xff] }
 0x34f   : >> { %v3427_v54 = vrot.slane %v3426_v16, 1  ;;  %v3432_v33 = vrot.slane %v3431_v24, 4  ;;  %5538 = vset.pattern.permute.xlu2 %v6675_v15  ;;  %3711 = vperm.xlu1 %5535, %v3706_v52   ;;  %v3598_v52 = vsel %vm3597_vm3, %v3596_v44, %v3595_v34  ;;  %v3758_v44 = vperm.slane %v7885_v60, 7  ;;  %v3124_v34 = vld [vmem:[#allocation3 + $0x148] sm:$0xff] }
 0x350   : >> { %v3601_v29 = vsel %vm3600_vm4, %v3599_v55, %v3598_v52  ;;  %v3122_v52 = vld [vmem:[#allocation3 + $0x128] sm:$0xff] }
 0x351   : >> { %v3428_v45 = vadd.f32 %v3427_v54, %v3426_v16  ;;  %v3433_v9 = vadd.f32 %v3432_v33, %v3431_v24  ;;  %v3608_v24 = vrot.slane %v3562_v31, 1 }
 0x353   : >> { %v3560_v25 = vadd.f32 %v3529_v11, %v3428_v45  ;;  %v3434_v56 = vrot.slane %v3433_v9, 2 }
 0x354   : >> { %v3264_v7 = vpop.permute.xlu2 %3263 }
 0x355   : >> { %v3602_v62 = vrot.slane %v3560_v25, 3  ;;  %v3435_v8 = vadd.f32 %v3434_v56, %v3433_v9  ;;  %v7990_v9 = vld [vmem:[%s6114_s8 + $0x48] sm:$0xff]  ;;  %v3121_v25 = vld [vmem:[#allocation3 + $0x120] sm:$0xff]  ;;  %v3362_v51 = vmul.f32 %v3264_v7, %v3122_v52 }
 0x356   : >> { %v3771_v2 = vperm.slane %v7990_v9, 0  ;;  %v3797_v60 = vperm.slane %v7990_v9, 2 }
 0x357   : >> { %v3604_v5 = vsel %vm3603_vm5, %v3602_v62, %v3601_v29  ;;  %v3436_v0 = vrot.slane %v3435_v8, 1  ;;  %3737 = vperm.xlu2 %5538, %v3732_v50   ;;  %5537 = vset.pattern.permute.xlu1 %v7088_v12 }
 0x359   : >> { %v3437_v17 = vadd.f32 %v3436_v0, %v3435_v8  ;;  %v3245_v33 = vpop.permute.xlu1 %3244  ;;  %v3126_v8 = vld [vmem:[#allocation3 + $0x168] sm:$0xff] }
 0x35b   : >> { %v3561_v32 = vadd.f32 %v3530_v59, %v3437_v17  ;;  %v3125_v59 = vld [vmem:[#allocation3 + $0x160] sm:$0xff] }
 0x35c   : >> { %v3284_v6 = vpop.permute.xlu2 %3283  ;;  %v3119_v17 = vld [vmem:[#allocation3 + $0x100] sm:$0xff] }
 0x35d   : >> { %v3605_v16 = vrot.slane %v3561_v32, 2  ;;  %v3365_v0 = vmul.f32 %v3284_v6, %v3125_v59  ;;  %v3359_v32 = vmul.f32 %v3245_v33, %v3119_v17 }
 0x35f   : >> { %v3607_v22 = vsel %vm3606_vm6, %v3605_v16, %v3604_v5  ;;  %3750 = vperm.xlu2 %5538, %v8515_v61   ;;  %3730 = vperm.xlu1 %5537, %v8516_v14   ;;  %v3363_v5 = vmul.f32 %v7653_v19, %v3123_v27  ;;  %v3120_v61 = vld [vmem:[#allocation3 + $0x108] sm:$0xff]  ;;  %v3457_v14 = vsel %vm245_vm0, %v3362_v51, 0.0  ;;  %v3127_v19 = vld [vmem:[#allocation3 + $0x180] sm:$0xff]  ;;  %v3474_v33 = vsel %vm245_vm0, %v3365_v0, 0.0 }
 0x360   : >> { %v3610_v11 = vsel %vm3609_vm7, %v3608_v24, %v3607_v22  ;;  %v3303_v22 = vpop.permute.xlu0 %3302 }
 0x361   : >> { %v3627_v54 = vadd.f32 %v3610_v11, %v3572_v42  ;;  %v3258_v45 = vpop.permute.xlu1 %3257  ;;  %v3129_v42 = vld [vmem:[#allocation3 + $0x1a0] sm:$0xff]  ;;  %v3465_v7 = vsel %vm245_vm0, %v3363_v5, 0.0  ;;  %v8518_v5 = vperm.slane %v6841_v63, 1 }
 0x363   : >> { %3629 = vst.msk [vmem:[%s7975_s17] sm:$0xff] %vm245_vm0, %v3627_v54 }
 0x364   : >> { %v3297_v38 = vpop.permute.xlu2 %3296 }
 0x367   : >> { %5540 = vset.pattern.permute.xlu2 %v7088_v12  ;;  %3743 = vperm.xlu1 %5537, %v3732_v50   ;;  %v3361_v50 = vmul.f32 %v3258_v45, %v3121_v25  ;;  %v3367_v45 = vmul.f32 %v3297_v38, %v3127_v19  ;;  %v3132_v38 = vld [vmem:[#allocation3 + $0x1c8] sm:$0xff] }
 0x369   : >> { %v3456_v31 = vsel %vm245_vm0, %v3361_v50, 0.0  ;;  %v3483_v51 = vsel %vm245_vm0, %v3367_v45, 0.0 }
 0x36a   : >> { %v3458_v6 = vadd.f32 %v3457_v14, %v3456_v31 }
 0x36c   : >> { %v3316_v56 = vpop.permute.xlu2 %3315 }
 0x36f   : >> { %3769 = vperm.xlu2 %5540, %v3758_v44   ;;  %5539 = vset.pattern.permute.xlu1 %v6675_v15 }
 0x371   : >> { %v3277_v26 = vpop.permute.xlu1 %3276 }
 0x372   : >> { %v3364_v62 = vmul.f32 %v3277_v26, %v3124_v34  ;;  %v3128_v26 = vld [vmem:[#allocation3 + $0x188] sm:$0xff]  ;;  %v3447_v34 = vsel %vm245_vm0, %v3359_v32, 0.0 }
 0x373   : >> { %v3368_v50 = vmul.f32 %v3303_v22, %v3128_v26 }
 0x374   : >> { %v3466_v16 = vsel %vm245_vm0, %v3364_v62, 0.0  ;;  %v3329_v52 = vpop.permute.xlu2 %3328 }
 0x375   : >> { %v3467_v25 = vadd.f32 %v3466_v16, %v3465_v7  ;;  %v3372_v0 = vmul.f32 %v3329_v52, %v3132_v38  ;;  %v3484_v31 = vsel %vm245_vm0, %v3368_v50, 0.0 }
 0x376   : >> { %v3485_v22 = vadd.f32 %v3484_v31, %v3483_v51 }
 0x377   : >> { %3782 = vperm.xlu2 %5540, %v3771_v2   ;;  %3763 = vperm.xlu1 %5539, %v3758_v44   ;;  %v3360_v44 = vmul.f32 %v3251_v23, %v3120_v61  ;;  %v3459_v23 = vrot.slane %v3458_v6, 4  ;;  %v3468_v17 = vrot.slane %v3467_v25, 4 }
 0x378   : >> { %v3486_v26 = vrot.slane %v3485_v22, 4 }
 0x379   : >> { %v3290_v55 = vpop.permute.xlu1 %3289  ;;  %v3448_v27 = vsel %vm245_vm0, %v3360_v44, 0.0  ;;  %v3460_v14 = vadd.f32 %v3459_v23, %v3458_v6 }
 0x37a   : >> { %v3366_v29 = vmul.f32 %v3290_v55, %v3126_v8 }
 0x37c   : >> { %v3475_v11 = vsel %vm245_vm0, %v3366_v29, 0.0  ;;  %v8517_v29 = vperm.slane %v6841_v63, 3 }
 0x37d   : >> { %v3476_v62 = vadd.f32 %v3475_v11, %v3474_v33  ;;  %v3502_v11 = vsel %vm245_vm0, %v3372_v0, 0.0  ;;  %v3461_v33 = vrot.slane %v3460_v14, 2 }
 0x37f   : >> { %5542 = vset.pattern.permute.xlu2 %v6675_v15  ;;  %3776 = vperm.xlu1 %5539, %v3771_v2   ;;  %v3130_v2 = vld [vmem:[#allocation3 + $0x1a8] sm:$0xff]  ;;  %v3477_v32 = vrot.slane %v3476_v62, 4 }
 0x380   : >> { %v3370_v55 = vmul.f32 %v3316_v56, %v3130_v2  ;;  %v3449_v56 = vadd.f32 %v3448_v27, %v3447_v34  ;;  %v3462_v27 = vadd.f32 %v3461_v33, %v3460_v14 }
 0x381   : >> { %v3478_v44 = vadd.f32 %v3477_v32, %v3476_v62  ;;  %v3823_v62 = vperm.slane %v7990_v9, 4  ;;  %v8027_v33 = vpop.permute.xlu2 %3672 }
 0x382   : >> { %v3493_v59 = vsel %vm245_vm0, %v3370_v55, 0.0  ;;  %v3450_v19 = vrot.slane %v3449_v56, 4 }
 0x383   : >> { %v3479_v34 = vrot.slane %v3478_v44, 2 }
 0x384   : >> { %v3451_v50 = vadd.f32 %v3450_v19, %v3449_v56 }
 0x385   : >> { %v3480_v38 = vadd.f32 %v3479_v34, %v3478_v44 }
 0x386   : >> { %v3452_v51 = vrot.slane %v3451_v50, 2 }
 0x387   : >> { %3802 = vperm.xlu2 %5542, %v3797_v60   ;;  %5541 = vset.pattern.permute.xlu1 %v7088_v12 }
 0x388   : >> { %v3453_v56 = vadd.f32 %v3452_v51, %v3451_v50 }
 0x389   : >> { %v3310_v24 = vpop.permute.xlu1 %3309 }
 0x38a   : >> { %v3369_v54 = vmul.f32 %v3310_v24, %v3129_v42  ;;  %v3131_v42 = vld [vmem:[#allocation3 + $0x1c0] sm:$0xff] }
 0x38c   : >> { %v3492_v8 = vsel %vm245_vm0, %v3369_v54, 0.0  ;;  %v3469_v54 = vadd.f32 %v3468_v17, %v3467_v25 }
 0x38d   : >> { %v3494_v16 = vadd.f32 %v3493_v59, %v3492_v8  ;;  %v3487_v8 = vadd.f32 %v3486_v26, %v3485_v22  ;;  %v3102_v59 = vld [vmem:[%s6224_s16 + $0x8] sm:$0xff] }
 0x38e   : >> { %v3470_v6 = vrot.slane %v3469_v54, 2 }
 0x38f   : >> { %3815 = vperm.xlu2 %5542, %v8517_v29   ;;  %3795 = vperm.xlu1 %5541, %v8518_v5   ;;  %v3495_v45 = vrot.slane %v3494_v16, 4  ;;  %v3133_v5 = vld [vmem:[#allocation3 + $0x1e0] sm:$0xff]  ;;  %v3488_v0 = vrot.slane %v3487_v8, 2 }
 0x390   : >> { %v3471_v23 = vadd.f32 %v3470_v6, %v3469_v54  ;;  %v3373_v31 = vmul.f32 %v7675_v58, %v3133_v5  ;;  %v3836_v58 = vperm.slane %v7990_v9, 5 }
 0x391   : >> { %v3323_v24 = vpop.permute.xlu1 %3322  ;;  %v3496_v52 = vadd.f32 %v3495_v45, %v3494_v16  ;;  %v3522_v16 = vmul.f32 %v7937_v20, %v3102_v59  ;;  %v3489_v14 = vadd.f32 %v3488_v0, %v3487_v8  ;;  %v3454_v45 = vrot.slane %v3453_v56, 1 }
 0x392   : >> { %v3371_v61 = vmul.f32 %v3323_v24, %v3131_v42  ;;  %v3472_v32 = vrot.slane %v3471_v23, 1  ;;  %v3481_v24 = vrot.slane %v3480_v38, 1  ;;  %v3510_v54 = vsel %vm245_vm0, %v3373_v31, 0.0 }
 0x393   : >> { %v3497_v29 = vrot.slane %v3496_v52, 2  ;;  %v3536_v59 = vrot.slane %v3522_v16, 5 }
 0x394   : >> { %v3501_v7 = vsel %vm245_vm0, %v3371_v61, 0.0  ;;  %v3134_v61 = vld [vmem:[#allocation3 + $0x1e8] sm:$0xff]  ;;  %v3473_v26 = vadd.f32 %v3472_v32, %v3471_v23  ;;  %v3482_v50 = vadd.f32 %v3481_v24, %v3480_v38 }
 0x395   : >> { %v3503_v2 = vadd.f32 %v3502_v11, %v3501_v7  ;;  %v3498_v42 = vadd.f32 %v3497_v29, %v3496_v52  ;;  %v3532_v7 = vrot.slane %v3522_v16, 1  ;;  %v3490_v52 = vrot.slane %v3489_v14, 1 }
 0x397   : >> { %v3504_v55 = vrot.slane %v3503_v2, 4  ;;  %5544 = vset.pattern.permute.xlu2 %v7088_v12  ;;  %3808 = vperm.xlu1 %5541, %v3797_v60   ;;  %v3463_v60 = vrot.slane %v3462_v27, 1  ;;  %v3499_v6 = vrot.slane %v3498_v42, 1  ;;  %v3491_v31 = vadd.f32 %v3490_v52, %v3489_v14 }
 0x399   : >> { %v3505_v25 = vadd.f32 %v3504_v55, %v3503_v2  ;;  %v3464_v44 = vadd.f32 %v3463_v60, %v3462_v27  ;;  %v3533_v2 = vrot.slane %v3522_v16, 2  ;;  %v3534_v55 = vrot.slane %v3522_v16, 3 }
 0x39a   : >> { %v3455_v27 = vadd.f32 %v3454_v45, %v3453_v56  ;;  %v3500_v0 = vadd.f32 %v3499_v6, %v3498_v42  ;;  %v3537_v60 = vrot.slane %v3522_v16, 6  ;;  %v3538_v45 = vrot.slane %v3522_v16, 7 }
 0x39b   : >> { %v3506_v17 = vrot.slane %v3505_v25, 2  ;;  %v3565_v29 = vadd.f32 %v3533_v2, %v3473_v26  ;;  %v3566_v5 = vadd.f32 %v3534_v55, %v3482_v50 }
 0x39d   : >> { %v3507_v19 = vadd.f32 %v3506_v17, %v3505_v25  ;;  %v3564_v25 = vadd.f32 %v3532_v7, %v3464_v44  ;;  %v3535_v17 = vrot.slane %v3522_v16, 4  ;;  %v3613_v24 = vrot.slane %v3565_v29, 6 }
 0x39f   : >> { %3834 = vperm.xlu2 %5544, %v3823_v62   ;;  %5543 = vset.pattern.permute.xlu1 %v6675_v15  ;;  %v3508_v8 = vrot.slane %v3507_v19, 1  ;;  %v3567_v44 = vadd.f32 %v3535_v17, %v3491_v31 }
 0x3a1   : >> { %v3342_v22 = vpop.permute.xlu1 %3341  ;;  %v3509_v32 = vadd.f32 %v3508_v8, %v3507_v19  ;;  %v3617_v55 = vrot.slane %v3567_v44, 4  ;;  %v3573_v8 = vld [vmem:[%s7975_s17 + $0x8] sm:$0xff] }
 0x3a2   : >> { %v3374_v11 = vmul.f32 %v3342_v22, %v3134_v61  ;;  %v3611_v22 = vrot.slane %v3564_v25, 7  ;;  %v3563_v61 = vadd.f32 %v3522_v16, %v3455_v27 }
 0x3a4   : >> { %v3511_v20 = vsel %vm245_vm0, %v3374_v11, 0.0  ;;  %v3615_v11 = vrot.slane %v3566_v5, 5  ;;  %v3612_v56 = vsel %vm3591_vm1, %v3611_v22, %v3563_v61  ;;  %v3636_v61 = vld [vmem:[#allocation3 + $0x18] sm:$0xff] }
 0x3a5   : >> { %v3512_v34 = vadd.f32 %v3511_v20, %v3510_v54  ;;  %v3568_v54 = vadd.f32 %v3536_v59, %v3500_v0  ;;  %v3686_v20 = vpop.permute.xlu2 %3685  ;;  %v3614_v14 = vsel %vm3594_vm2, %v3613_v24, %v3612_v56  ;;  %v8519_v59 = vperm.slane %v7260_v39, 0  ;;  %v3637_v24 = vld [vmem:[#allocation3 + $0x30] sm:$0xff] }
 0x3a6   : >> { %v3616_v19 = vsel %vm3597_vm3, %v3615_v11, %v3614_v14  ;;  %v8520_v0 = vperm.slane %v6841_v63, 6  ;;  %v3877_v44 = vmul.f32 %v3686_v20, %v3637_v24  ;;  %v3640_v63 = vld [vmem:[#allocation3 + $0x58] sm:$0xff]  ;;  %v3643_v14 = vld [vmem:[#allocation3 + $0x90] sm:$0xff] }
 0x3a7   : >> { %v3513_v51 = vrot.slane %v3512_v34, 4  ;;  %3847 = vperm.xlu2 %5544, %v3836_v58   ;;  %3828 = vperm.xlu1 %5543, %v3823_v62   ;;  %v3569_v62 = vadd.f32 %v3537_v60, %v3509_v32  ;;  %v3619_v2 = vrot.slane %v3568_v54, 3  ;;  %v3618_v52 = vsel %vm3600_vm4, %v3617_v55, %v3616_v19  ;;  %v3692_v60 = vpop.permute.xlu0 %3691  ;;  %v8049_v32 = vld [vmem:[%s6170_s13 + $0x80] sm:$0xff]  ;;  %v3641_v54 = vld [vmem:[#allocation3 + $0x70] sm:$0xff] }
 0x3a8   : >> { %v4205_v22 = vperm.slane %v8049_v32, 1  ;;  %v3635_v55 = vld [vmem:[#allocation3 + $0x10] sm:$0xff] }
 0x3a9   : >> { %v3514_v23 = vadd.f32 %v3513_v51, %v3512_v34  ;;  %v3621_v50 = vrot.slane %v3569_v62, 2  ;;  %v3862_v34 = vperm.slane %v7990_v9, 7  ;;  %v3620_v16 = vsel %vm3603_vm5, %v3619_v2, %v3618_v52  ;;  %v3679_v29 = vpop.permute.xlu1 %3678 }
 0x3aa   : >> { %v3876_v2 = vmul.f32 %v3679_v29, %v3636_v61  ;;  %v3875_v20 = vmul.f32 %v8027_v33, %v3635_v55  ;;  %v3916_v52 = vsel %vm245_vm0, %v3877_v44, 0.0 }
 0x3ab   : >> { %v3515_v38 = vrot.slane %v3514_v23, 2 }
 0x3ac   : >> { %v3907_v24 = vsel %vm245_vm0, %v3875_v20, 0.0 }
 0x3ad   : >> { %v3516_v7 = vadd.f32 %v3515_v38, %v3514_v23  ;;  %v3705_v51 = vpop.permute.xlu2 %3704  ;;  %v3639_v38 = vld [vmem:[#allocation3 + $0x50] sm:$0xff] }
 0x3af   : >> { %v3517_v42 = vrot.slane %v3516_v7, 1  ;;  %5546 = vset.pattern.permute.xlu2 %v6675_v15  ;;  %3841 = vperm.xlu1 %5543, %v3836_v58   ;;  %v3622_v58 = vsel %vm3606_vm6, %v3621_v50, %v3620_v16 }
 0x3b1   : >> { %v3518_v26 = vadd.f32 %v3517_v42, %v3516_v7  ;;  %v3638_v7 = vld [vmem:[#allocation3 + $0x38] sm:$0xff] }
 0x3b2   : >> { %v3878_v56 = vmul.f32 %v3692_v60, %v3638_v7  ;;  %v3642_v42 = vld [vmem:[#allocation3 + $0x78] sm:$0xff]  ;;  %v3645_v7 = vld [vmem:[#allocation3 + $0xb0] sm:$0xff] }
 0x3b3   : >> { %v3570_v6 = vadd.f32 %v3538_v45, %v3518_v26  ;;  %v3880_v45 = vmul.f32 %v3705_v51, %v3640_v63  ;;  %v3883_v26 = vmul.f32 %v7697_v28, %v3643_v14  ;;  %v3757_v28 = vpop.permute.xlu0 %3756  ;;  %v3646_v14 = vld [vmem:[#allocation3 + $0xb8] sm:$0xff] }
 0x3b5   : >> { %v3623_v25 = vrot.slane %v3570_v6, 1  ;;  %v3718_v23 = vpop.permute.xlu2 %3717  ;;  %v3926_v51 = vsel %vm245_vm0, %v3880_v45, 0.0 }
 0x3b6   : >> { %v3882_v19 = vmul.f32 %v3718_v23, %v3642_v42 }
 0x3b7   : >> { %v3624_v27 = vsel %vm3609_vm7, %v3623_v25, %v3622_v58  ;;  %3867 = vperm.xlu2 %5546, %v3862_v34   ;;  %5545 = vset.pattern.permute.xlu1 %v7088_v12  ;;  %v3917_v58 = vsel %vm245_vm0, %v3878_v56, 0.0 }
 0x3b8   : >> { %v3628_v5 = vadd.f32 %v3624_v27, %v3573_v8  ;;  %v4218_v27 = vperm.slane %v8049_v32, 2  ;;  %v3935_v29 = vsel %vm245_vm0, %v3882_v19, 0.0  ;;  %v3918_v23 = vadd.f32 %v3917_v58, %v3916_v52 }
 0x3b9   : >> { %v3699_v9 = vpop.permute.xlu1 %3698 }
 0x3ba   : >> { %3630 = vst.msk [vmem:[%s7975_s17 + $0x8] sm:$0xff] %vm245_vm0, %v3628_v5  ;;  %v3879_v11 = vmul.f32 %v3699_v9, %v3639_v38  ;;  %v3908_v5 = vsel %vm245_vm0, %v3876_v2, 0.0  ;;  %v3647_v9 = vld [vmem:[#allocation3 + $0xd0] sm:$0xff]  ;;  %v3648_v38 = vld [vmem:[#allocation3 + $0xd8] sm:$0xff] }
 0x3bc   : >> { %v3925_v50 = vsel %vm245_vm0, %v3879_v11, 0.0  ;;  %v3888_v11 = vmul.f32 %v3757_v28, %v3648_v38 }
 0x3bd   : >> { %v3738_v17 = vpop.permute.xlu2 %3737 }
 0x3be   : >> { %v3885_v44 = vmul.f32 %v3738_v17, %v3645_v7 }
 0x3bf   : >> { %4197 = vperm.xlu2 %5546, %v8519_v59   ;;  %3860 = vperm.xlu1 %5545, %v8520_v0   ;;  %v3927_v59 = vadd.f32 %v3926_v51, %v3925_v50  ;;  %v3943_v0 = vsel %vm245_vm0, %v3883_v26, 0.0  ;;  %v3962_v26 = vsel %vm245_vm0, %v3888_v11, 0.0 }
 0x3c0   : >> { %v3952_v50 = vsel %vm245_vm0, %v3885_v44, 0.0  ;;  %v3650_v44 = vld [vmem:[#allocation3 + $0xf8] sm:$0xff] }
 0x3c1   : >> { %v3712_v31 = vpop.permute.xlu1 %3711  ;;  %v3928_v63 = vrot.slane %v3927_v59, 4 }
 0x3c2   : >> { %v3881_v62 = vmul.f32 %v3712_v31, %v3641_v54  ;;  %v3909_v54 = vadd.f32 %v3908_v5, %v3907_v24 }
 0x3c4   : >> { %v3934_v8 = vsel %vm245_vm0, %v3881_v62, 0.0  ;;  %v3919_v62 = vrot.slane %v3918_v23, 4  ;;  %v3910_v55 = vrot.slane %v3909_v54, 4 }
 0x3c5   : >> { %v3751_v16 = vpop.permute.xlu2 %3750  ;;  %v3936_v60 = vadd.f32 %v3935_v29, %v3934_v8 }
 0x3c6   : >> { %v3887_v31 = vmul.f32 %v3751_v16, %v3647_v9  ;;  %v3911_v8 = vadd.f32 %v3910_v55, %v3909_v54 }
 0x3c7   : >> { %5548 = vset.pattern.permute.xlu2 %v7088_v12  ;;  %3873 = vperm.xlu1 %5545, %v3862_v34   ;;  %v3644_v34 = vld [vmem:[#allocation3 + $0x98] sm:$0xff]  ;;  %v3937_v45 = vrot.slane %v3936_v60, 4 }
 0x3c8   : >> { %v3961_v56 = vsel %vm245_vm0, %v3887_v31, 0.0  ;;  %v5360_v31 = vld [vmem:[%s6224_s16 + $0x40] sm:$0xff] }
 0x3c9   : >> { %v3938_v17 = vadd.f32 %v3937_v45, %v3936_v60 }
 0x3cb   : >> { %v3939_v29 = vrot.slane %v3938_v17, 2 }
 0x3cf   : >> { %4216 = vperm.xlu2 %5548, %v4205_v22   ;;  %5547 = vset.pattern.permute.xlu1 %v6675_v15 }
 0x3d1   : >> { %v3731_v6 = vpop.permute.xlu1 %3730 }
 0x3d2   : >> { %v3884_v25 = vmul.f32 %v3731_v6, %v3644_v34  ;;  %v3963_v6 = vadd.f32 %v3962_v26, %v3961_v56  ;;  %v3929_v34 = vadd.f32 %v3928_v63, %v3927_v59  ;;  %v8074_v59 = vld [vmem:[%s8395_s3 + $0x1] ss:$0 sm:$0xff] }
 0x3d3   : >> { %v8079_v54 = vmul.f32 %v8074_v59, %v5360_v31  ;;  %v8521_v31 = vperm.slane %v7260_v39, 5 }
 0x3d4   : >> { %v3944_v33 = vsel %vm245_vm0, %v3884_v25, 0.0  ;;  %v3964_v58 = vrot.slane %v3963_v6, 4  ;;  %v3930_v51 = vrot.slane %v3929_v34, 2 }
 0x3d5   : >> { %v3945_v61 = vadd.f32 %v3944_v33, %v3943_v0  ;;  %v3912_v33 = vrot.slane %v3911_v8, 2 }
 0x3d6   : >> { %v3965_v60 = vadd.f32 %v3964_v58, %v3963_v6  ;;  %v3931_v38 = vadd.f32 %v3930_v51, %v3929_v34  ;;  %v4058_v34 = vrot.slane %v8079_v54, 2 }
 0x3d7   : >> { %4229 = vperm.xlu2 %5548, %v4218_v27   ;;  %4210 = vperm.xlu1 %5547, %v4205_v22   ;;  %v3946_v19 = vrot.slane %v3945_v61, 4  ;;  %v3920_v22 = vadd.f32 %v3919_v62, %v3918_v23  ;;  %v4244_v23 = vperm.slane %v8049_v32, 4  ;;  %v3913_v7 = vadd.f32 %v3912_v33, %v3911_v8 }
 0x3d8   : >> { %v3966_v62 = vrot.slane %v3965_v60, 2  ;;  %v3932_v56 = vrot.slane %v3931_v38, 1 }
 0x3d9   : >> { %v3744_v42 = vpop.permute.xlu1 %3743  ;;  %v3947_v16 = vadd.f32 %v3946_v19, %v3945_v61  ;;  %v3921_v28 = vrot.slane %v3920_v22, 2  ;;  %v3770_v61 = vpop.permute.xlu2 %3769  ;;  %v3914_v6 = vrot.slane %v3913_v7, 1 }
 0x3da   : >> { %v3886_v2 = vmul.f32 %v3744_v42, %v3646_v14  ;;  %v3890_v45 = vmul.f32 %v3770_v61, %v3650_v44 }
 0x3db   : >> { %v3948_v9 = vrot.slane %v3947_v16, 2  ;;  %v3922_v24 = vadd.f32 %v3921_v28, %v3920_v22  ;;  %v3967_v22 = vadd.f32 %v3966_v62, %v3965_v60  ;;  %v4060_v28 = vrot.slane %v8079_v54, 4 }
 0x3dc   : >> { %v3953_v20 = vsel %vm245_vm0, %v3886_v2, 0.0  ;;  %v3649_v2 = vld [vmem:[#allocation3 + $0xf0] sm:$0xff]  ;;  %v8522_v60 = vperm.slane %v6907_v37, 3 }
 0x3dd   : >> { %v3954_v52 = vadd.f32 %v3953_v20, %v3952_v50  ;;  %v3949_v11 = vadd.f32 %v3948_v9, %v3947_v16  ;;  %v3923_v42 = vrot.slane %v3922_v24, 1  ;;  %v4057_v50 = vrot.slane %v8079_v54, 1 }
 0x3de   : >> { %v4061_v9 = vrot.slane %v8079_v54, 5 }
 0x3df   : >> { %v3955_v25 = vrot.slane %v3954_v52, 4  ;;  %5550 = vset.pattern.permute.xlu2 %v6675_v15  ;;  %4223 = vperm.xlu1 %5547, %v4218_v27   ;;  %v3940_v27 = vadd.f32 %v3939_v29, %v3938_v17  ;;  %v3950_v26 = vrot.slane %v3949_v11, 1  ;;  %v3933_v17 = vadd.f32 %v3932_v56, %v3931_v38 }
 0x3e0   : >> { %v3924_v8 = vadd.f32 %v3923_v42, %v3922_v24  ;;  %v3968_v38 = vrot.slane %v3967_v22, 1 }
 0x3e1   : >> { %v3956_v5 = vadd.f32 %v3955_v25, %v3954_v52  ;;  %v3941_v14 = vrot.slane %v3940_v27, 1  ;;  %v3971_v52 = vsel %vm245_vm0, %v3890_v45, 0.0  ;;  %v4059_v25 = vrot.slane %v8079_v54, 3 }
 0x3e2   : >> { %v3951_v29 = vadd.f32 %v3950_v26, %v3949_v11  ;;  %v4089_v24 = vadd.f32 %v4058_v34, %v3933_v17  ;;  %v4088_v61 = vadd.f32 %v4057_v50, %v3924_v8  ;;  %v4062_v45 = vrot.slane %v8079_v54, 6 }
 0x3e3   : >> { %v3957_v0 = vrot.slane %v3956_v5, 2  ;;  %v3942_v58 = vadd.f32 %v3941_v14, %v3940_v27 }
 0x3e4   : >> { %v4091_v62 = vadd.f32 %v4060_v28, %v3951_v29  ;;  %v4124_v42 = vrot.slane %v4089_v24, 6  ;;  %v4122_v14 = vrot.slane %v4088_v61, 7  ;;  %v8116_v24 = vld [vmem:[%s6170_s13 + $0x88] sm:$0xff] }
 0x3e5   : >> { %v3958_v63 = vadd.f32 %v3957_v0, %v3956_v5  ;;  %v3915_v5 = vadd.f32 %v3914_v6, %v3913_v7  ;;  %v4090_v44 = vadd.f32 %v4059_v25, %v3942_v58  ;;  %v5363_v58 = vld [vmem:[%s7975_s17 + $0x40] sm:$0xff]  ;;  %v4309_v61 = vperm.slane %v8116_v24, 1 }
 0x3e7   : >> { %4249 = vperm.xlu2 %5550, %v4244_v23   ;;  %5549 = vset.pattern.permute.xlu1 %v7088_v12  ;;  %v3959_v20 = vrot.slane %v3958_v63, 1  ;;  %v4087_v56 = vadd.f32 %v8079_v54, %v3915_v5  ;;  %v4126_v39 = vrot.slane %v4090_v44, 5  ;;  %v3654_v44 = vld [vmem:[#allocation3 + $0x138] sm:$0xff] }
 0x3e9   : >> { %v3764_v19 = vpop.permute.xlu1 %3763  ;;  %v3960_v33 = vadd.f32 %v3959_v20, %v3958_v63  ;;  %v3969_v63 = vadd.f32 %v3968_v38, %v3967_v22  ;;  %v4123_v37 = vsel %vm3591_vm1, %v4122_v14, %v4087_v56  ;;  %v3783_v22 = vpop.permute.xlu2 %3782  ;;  %v3653_v56 = vld [vmem:[#allocation3 + $0x130] sm:$0xff] }
 0x3ea   : >> { %v3889_v55 = vmul.f32 %v3764_v19, %v3649_v2  ;;  %v4128_v2 = vrot.slane %v4091_v62, 4  ;;  %v4125_v34 = vsel %vm3594_vm2, %v4124_v42, %v4123_v37  ;;  %v3656_v62 = vld [vmem:[#allocation3 + $0x158] sm:$0xff]  ;;  %v3657_v42 = vld [vmem:[#allocation3 + $0x170] sm:$0xff] }
 0x3eb   : >> { %v4092_v11 = vadd.f32 %v4061_v9, %v3960_v33  ;;  %v4093_v6 = vadd.f32 %v4062_v45, %v3969_v63  ;;  %v4127_v20 = vsel %vm3597_vm3, %v4126_v39, %v4125_v34  ;;  %v4283_v33 = vperm.slane %v8049_v32, 7  ;;  %v3822_v45 = vpop.permute.xlu0 %3821  ;;  %v3658_v37 = vld [vmem:[#allocation3 + $0x178] sm:$0xff] }
 0x3ec   : >> { %v3970_v16 = vsel %vm245_vm0, %v3889_v55, 0.0  ;;  %v4063_v55 = vrot.slane %v8079_v54, 7  ;;  %v4270_v54 = vperm.slane %v8049_v32, 6  ;;  %v3893_v32 = vmul.f32 %v7737_v57, %v3653_v56  ;;  %v3661_v56 = vld [vmem:[#allocation3 + $0x1b0] sm:$0xff] }
 0x3ed   : >> { %v3972_v51 = vadd.f32 %v3971_v52, %v3970_v16  ;;  %v4130_v26 = vrot.slane %v4092_v11, 3  ;;  %v4129_v52 = vsel %vm3600_vm4, %v4128_v2, %v4127_v20  ;;  %v4132_v25 = vrot.slane %v4093_v6, 2  ;;  %v3659_v2 = vld [vmem:[#allocation3 + $0x190] sm:$0xff]  ;;  %v3660_v20 = vld [vmem:[#allocation3 + $0x198] sm:$0xff] }
 0x3ee   : >> { %v3988_v6 = vsel %vm245_vm0, %v3893_v32, 0.0  ;;  %v3898_v57 = vmul.f32 %v3822_v45, %v3658_v37 }
 0x3ef   : >> { %v3973_v0 = vrot.slane %v3972_v51, 4  ;;  %4262 = vperm.xlu2 %5550, %v8521_v31   ;;  %4242 = vperm.xlu1 %5549, %v8522_v60   ;;  %v4131_v16 = vsel %vm3603_vm5, %v4130_v26, %v4129_v52  ;;  %v3651_v26 = vld [vmem:[#allocation3 + $0x110] sm:$0xff] }
 0x3f1   : >> { %v3974_v27 = vadd.f32 %v3973_v0, %v3972_v51  ;;  %v3777_v29 = vpop.permute.xlu1 %3776  ;;  %v3803_v9 = vpop.permute.xlu2 %3802 }
 0x3f2   : >> { %v3891_v34 = vmul.f32 %v3777_v29, %v3651_v26  ;;  %v8523_v29 = vperm.slane %v6944_v47, 2 }
 0x3f3   : >> { %v3975_v7 = vrot.slane %v3974_v27, 2 }
 0x3f5   : >> { %v3976_v19 = vadd.f32 %v3975_v7, %v3974_v27  ;;  %v3655_v7 = vld [vmem:[#allocation3 + $0x150] sm:$0xff] }
 0x3f6   : >> { %v3895_v63 = vmul.f32 %v3803_v9, %v3655_v7  ;;  %v3662_v9 = vld [vmem:[#allocation3 + $0x1b8] sm:$0xff] }
 0x3f7   : >> { %v3977_v50 = vrot.slane %v3976_v19, 1  ;;  %5552 = vset.pattern.permute.xlu2 %v7088_v12  ;;  %4255 = vperm.xlu1 %5549, %v4244_v23   ;;  %v4133_v23 = vsel %vm3606_vm6, %v4132_v25, %v4131_v16 }
 0x3f8   : >> { %v3997_v52 = vsel %vm245_vm0, %v3895_v63, 0.0 }
 0x3f9   : >> { %v3978_v17 = vadd.f32 %v3977_v50, %v3976_v19  ;;  %v3816_v31 = vpop.permute.xlu2 %3815 }
 0x3fa   : >> { %v3897_v14 = vmul.f32 %v3816_v31, %v3657_v42 }
 0x3fb   : >> { %v4094_v8 = vadd.f32 %v4063_v55, %v3978_v17  ;;  %v3652_v17 = vld [vmem:[#allocation3 + $0x118] sm:$0xff] }
 0x3fc   : >> { %v4006_v25 = vsel %vm245_vm0, %v3897_v14, 0.0 }
 0x3fd   : >> { %v4134_v51 = vrot.slane %v4094_v8, 1 }
 0x3ff   : >> { %v4135_v28 = vsel %vm3609_vm7, %v4134_v51, %v4133_v23  ;;  %4281 = vperm.xlu2 %5552, %v4270_v54   ;;  %5551 = vset.pattern.permute.xlu1 %v6675_v15 }
 0x400   : >> { %v4152_v5 = vadd.f32 %v5363_v58, %v4135_v28  ;;  %v4007_v28 = vsel %vm245_vm0, %v3898_v57, 0.0 }
 0x401   : >> { %v3796_v0 = vpop.permute.xlu1 %3795  ;;  %v3835_v38 = vpop.permute.xlu2 %3834 }
 0x402   : >> { %5365 = vst.msk [vmem:[%s7975_s17 + $0x40] sm:$0xff] %vm245_vm0, %v4152_v5  ;;  %v3894_v27 = vmul.f32 %v3796_v0, %v3654_v44  ;;  %v3900_v16 = vmul.f32 %v3835_v38, %v3660_v20  ;;  %v3979_v5 = vsel %vm245_vm0, %v3891_v34, 0.0  ;;  %v4008_v0 = vadd.f32 %v4007_v28, %v4006_v25 }
 0x403   : >> { %v4335_v20 = vperm.slane %v8116_v24, 3 }
 0x404   : >> { %v3989_v39 = vsel %vm245_vm0, %v3894_v27, 0.0  ;;  %v4009_v7 = vrot.slane %v4008_v0, 4 }
 0x405   : >> { %v3990_v8 = vadd.f32 %v3989_v39, %v3988_v6 }
 0x406   : >> { %v4010_v26 = vadd.f32 %v4009_v7, %v4008_v0 }
 0x407   : >> { %4294 = vperm.xlu2 %5552, %v4283_v33   ;;  %4275 = vperm.xlu1 %5551, %v4270_v54   ;;  %v3892_v54 = vmul.f32 %v3783_v22, %v3652_v17  ;;  %v4016_v22 = vsel %vm245_vm0, %v3900_v16, 0.0  ;;  %v3663_v17 = vld [vmem:[#allocation3 + $0x1d0] sm:$0xff] }
 0x409   : >> { %v3809_v60 = vpop.permute.xlu1 %3808  ;;  %v3848_v58 = vpop.permute.xlu2 %3847  ;;  %v3980_v38 = vsel %vm245_vm0, %v3892_v54, 0.0 }
 0x40a   : >> { %v3896_v11 = vmul.f32 %v3809_v60, %v3656_v62  ;;  %v3902_v31 = vmul.f32 %v3848_v58, %v3662_v9  ;;  %v3991_v60 = vrot.slane %v3990_v8, 4 }
 0x40c   : >> { %v3998_v55 = vsel %vm245_vm0, %v3896_v11, 0.0  ;;  %v3981_v11 = vadd.f32 %v3980_v38, %v3979_v5  ;;  %v4025_v45 = vsel %vm245_vm0, %v3902_v31, 0.0  ;;  %v3992_v63 = vadd.f32 %v3991_v60, %v3990_v8 }
 0x40d   : >> { %v3999_v51 = vadd.f32 %v3998_v55, %v3997_v52  ;;  %v4011_v52 = vrot.slane %v4010_v26, 2 }
 0x40e   : >> { %v3993_v55 = vrot.slane %v3992_v63, 2 }
 0x40f   : >> { %5554 = vset.pattern.permute.xlu2 %v6675_v15  ;;  %4288 = vperm.xlu1 %5551, %v4283_v33   ;;  %v8524_v33 = vperm.slane %v6944_v47, 0  ;;  %v4000_v44 = vrot.slane %v3999_v51, 4 }
 0x410   : >> { %v3994_v16 = vadd.f32 %v3993_v55, %v3992_v63 }
 0x411   : >> { %v4001_v14 = vadd.f32 %v4000_v44, %v3999_v51  ;;  %v3903_v51 = vmul.f32 %v7759_v43, %v3663_v17  ;;  %v4348_v43 = vperm.slane %v8116_v24, 4  ;;  %v3868_v7 = vpop.permute.xlu2 %3867  ;;  %v3666_v17 = vld [vmem:[#allocation3 + $0x1f8] sm:$0xff] }
 0x412   : >> { %v3995_v28 = vrot.slane %v3994_v16, 1 }
 0x413   : >> { %v4033_v38 = vsel %vm245_vm0, %v3903_v51, 0.0 }
 0x417   : >> { %4314 = vperm.xlu2 %5554, %v4309_v61   ;;  %5553 = vset.pattern.permute.xlu1 %v7088_v12 }
 0x419   : >> { %v3829_v19 = vpop.permute.xlu1 %3828 }
 0x41a   : >> { %v3899_v50 = vmul.f32 %v3829_v19, %v3659_v2  ;;  %v3982_v2 = vrot.slane %v3981_v11, 4 }
 0x41c   : >> { %v4015_v23 = vsel %vm245_vm0, %v3899_v50, 0.0  ;;  %v4002_v50 = vrot.slane %v4001_v14, 2  ;;  %v3983_v57 = vadd.f32 %v3982_v2, %v3981_v11 }
 0x41d   : >> { %v4017_v27 = vadd.f32 %v4016_v22, %v4015_v23  ;;  %v5361_v23 = vld [vmem:[%s6224_s16 + $0x48] sm:$0xff] }
 0x41e   : >> { %v4003_v8 = vadd.f32 %v4002_v50, %v4001_v14  ;;  %v3984_v25 = vrot.slane %v3983_v57, 2  ;;  %v8143_v0 = vmul.f32 %v8074_v59, %v5361_v23  ;;  %v3665_v14 = vld [vmem:[#allocation3 + $0x1f0] sm:$0xff] }
 0x41f   : >> { %4327 = vperm.xlu2 %5554, %v8523_v29   ;;  %4307 = vperm.xlu1 %5553, %v8524_v33   ;;  %v4018_v39 = vrot.slane %v4017_v27, 4  ;;  %v3664_v33 = vld [vmem:[#allocation3 + $0x1d8] sm:$0xff] }
 0x420   : >> { %v4004_v5 = vrot.slane %v4003_v8, 1  ;;  %v3985_v22 = vadd.f32 %v3984_v25, %v3983_v57  ;;  %v4065_v11 = vrot.slane %v8143_v0, 2  ;;  %v4067_v50 = vrot.slane %v8143_v0, 4 }
 0x421   : >> { %v3842_v62 = vpop.permute.xlu1 %3841  ;;  %v4019_v6 = vadd.f32 %v4018_v39, %v4017_v27  ;;  %v4064_v27 = vrot.slane %v8143_v0, 1 }
 0x422   : >> { %v3901_v32 = vmul.f32 %v3842_v62, %v3661_v56  ;;  %v3996_v62 = vadd.f32 %v3995_v28, %v3994_v16  ;;  %v3986_v63 = vrot.slane %v3985_v22, 1  ;;  %v4068_v16 = vrot.slane %v8143_v0, 5 }
 0x423   : >> { %v4020_v54 = vrot.slane %v4019_v6, 2 }
 0x424   : >> { %v4024_v42 = vsel %vm245_vm0, %v3901_v32, 0.0  ;;  %v4005_v32 = vadd.f32 %v4004_v5, %v4003_v8 }
 0x425   : >> { %v4026_v19 = vadd.f32 %v4025_v45, %v4024_v42  ;;  %v4021_v9 = vadd.f32 %v4020_v54, %v4019_v6 }
 0x426   : >> { %v4097_v55 = vadd.f32 %v4065_v11, %v4005_v32 }
 0x427   : >> { %v4027_v37 = vrot.slane %v4026_v19, 4  ;;  %5556 = vset.pattern.permute.xlu2 %v7088_v12  ;;  %4320 = vperm.xlu1 %5553, %v4309_v61   ;;  %v4012_v61 = vadd.f32 %v4011_v52, %v4010_v26  ;;  %v4022_v45 = vrot.slane %v4021_v9, 1  ;;  %v3905_v26 = vmul.f32 %v3868_v7, %v3665_v14 }
 0x428   : >> { %v3987_v52 = vadd.f32 %v3986_v63, %v3985_v22  ;;  %v4138_v23 = vrot.slane %v4097_v55, 6  ;;  %v4069_v22 = vrot.slane %v8143_v0, 6 }
 0x429   : >> { %v4028_v34 = vadd.f32 %v4027_v37, %v4026_v19  ;;  %v4013_v44 = vrot.slane %v4012_v61, 1  ;;  %v4066_v19 = vrot.slane %v8143_v0, 3  ;;  %v4096_v37 = vadd.f32 %v4064_v27, %v3996_v62 }
 0x42a   : >> { %v4023_v6 = vadd.f32 %v4022_v45, %v4021_v9  ;;  %v4095_v9 = vadd.f32 %v8143_v0, %v3987_v52  ;;  %v8525_v52 = vperm.slane %v6944_v47, 7 }
 0x42b   : >> { %v4029_v58 = vrot.slane %v4028_v34, 2  ;;  %v4014_v2 = vadd.f32 %v4013_v44, %v4012_v61 }
 0x42c   : >> { %v4099_v61 = vadd.f32 %v4067_v50, %v4023_v6  ;;  %v5364_v6 = vld [vmem:[%s7975_s17 + $0x48] sm:$0xff] }
 0x42d   : >> { %v4030_v31 = vadd.f32 %v4029_v58, %v4028_v34  ;;  %v4136_v58 = vrot.slane %v4096_v37, 7  ;;  %v4070_v37 = vrot.slane %v8143_v0, 7 }
 0x42e   : >> { %v4142_v27 = vrot.slane %v4099_v61, 4 }
 0x42f   : >> { %4346 = vperm.xlu2 %5556, %v4335_v20   ;;  %5555 = vset.pattern.permute.xlu1 %v6675_v15  ;;  %v4031_v42 = vrot.slane %v4030_v31, 1 }
 0x431   : >> { %v3861_v29 = vpop.permute.xlu1 %3860  ;;  %v4032_v8 = vadd.f32 %v4031_v42, %v4030_v31  ;;  %v4137_v31 = vsel %vm3591_vm1, %v4136_v58, %v4095_v9  ;;  %v4198_v42 = vpop.permute.xlu2 %4197 }
 0x432   : >> { %v3904_v60 = vmul.f32 %v3861_v29, %v3664_v33  ;;  %v4098_v29 = vadd.f32 %v4066_v19, %v4014_v2  ;;  %v4139_v44 = vsel %vm3594_vm2, %v4138_v23, %v4137_v31  ;;  %v4204_v23 = vpop.permute.xlu0 %4203 }
 0x433   : >> { %v4100_v33 = vadd.f32 %v4068_v16, %v4032_v8  ;;  %v8526_v16 = vperm.slane %v6944_v47, 5  ;;  %v4162_v47 = vld [vmem:[#allocation5 + $0x20] sm:$0xff] }
 0x434   : >> { %v4034_v56 = vsel %vm245_vm0, %v3904_v60, 0.0  ;;  %v4140_v11 = vrot.slane %v4098_v29, 5  ;;  %v4163_v29 = vld [vmem:[#allocation5 + $0x28] sm:$0xff] }
 0x435   : >> { %v4035_v59 = vadd.f32 %v4034_v56, %v4033_v38  ;;  %v4144_v32 = vrot.slane %v4100_v33, 3  ;;  %v4166_v33 = vld [vmem:[#allocation5 + $0x60] sm:$0xff] }
 0x436   : >> { %v4141_v63 = vsel %vm3597_vm3, %v4140_v11, %v4139_v44  ;;  %v4165_v44 = vld [vmem:[#allocation5 + $0x48] sm:$0xff]  ;;  %v4168_v11 = vld [vmem:[#allocation5 + $0x80] sm:$0xff] }
 0x437   : >> { %v4036_v39 = vrot.slane %v4035_v59, 4  ;;  %4359 = vperm.xlu2 %5556, %v4348_v43   ;;  %4340 = vperm.xlu1 %5555, %v4335_v20   ;;  %v4042_v20 = vsel %vm245_vm0, %v3905_v26, 0.0  ;;  %v4143_v14 = vsel %vm3600_vm4, %v4142_v27, %v4141_v63 }
 0x438   : >> { %v4145_v19 = vsel %vm3603_vm5, %v4144_v32, %v4143_v14 }
 0x439   : >> { %v4037_v57 = vadd.f32 %v4036_v39, %v4035_v59  ;;  %v3874_v34 = vpop.permute.xlu1 %3873  ;;  %v4374_v59 = vperm.slane %v8116_v24, 6  ;;  %v4217_v50 = vpop.permute.xlu2 %4216 }
 0x43a   : >> { %v3906_v54 = vmul.f32 %v3874_v34, %v3666_v17  ;;  %v4403_v31 = vmul.f32 %v4217_v50, %v4163_v29 }
 0x43b   : >> { %v4038_v25 = vrot.slane %v4037_v57, 2 }
 0x43c   : >> { %v4043_v51 = vsel %vm245_vm0, %v3906_v54, 0.0 }
 0x43d   : >> { %v4039_v28 = vadd.f32 %v4038_v25, %v4037_v57  ;;  %v4044_v5 = vadd.f32 %v4043_v51, %v4042_v20  ;;  %v8177_v25 = vld [vmem:[%s6170_s13 + $0xc0] sm:$0xff] }
 0x43e   : >> { %v4717_v58 = vperm.slane %v8177_v25, 0  ;;  %v4730_v61 = vperm.slane %v8177_v25, 1 }
 0x43f   : >> { %v4040_v60 = vrot.slane %v4039_v28, 1  ;;  %v4045_v38 = vrot.slane %v4044_v5, 4  ;;  %5558 = vset.pattern.permute.xlu2 %v6675_v15  ;;  %4353 = vperm.xlu1 %5555, %v4348_v43  }
 0x441   : >> { %v4041_v62 = vadd.f32 %v4040_v60, %v4039_v28  ;;  %v4046_v56 = vadd.f32 %v4045_v38, %v4044_v5  ;;  %v4230_v8 = vpop.permute.xlu2 %4229  ;;  %v4164_v5 = vld [vmem:[#allocation5 + $0x40] sm:$0xff]  ;;  %v4161_v60 = vld [vmem:[#allocation5 + $0x8] sm:$0xff] }
 0x442   : >> { %v4160_v38 = vld [vmem:[#allocation5] sm:$0xff] }
 0x443   : >> { %v4101_v7 = vadd.f32 %v4069_v22, %v4041_v62  ;;  %v4047_v45 = vrot.slane %v4046_v56, 2  ;;  %v4167_v22 = vld [vmem:[#allocation5 + $0x68] sm:$0xff]  ;;  %v4400_v62 = vmul.f32 %v4198_v42, %v4160_v38 }
 0x445   : >> { %v4146_v43 = vrot.slane %v4101_v7, 2  ;;  %v4048_v39 = vadd.f32 %v4047_v45, %v4046_v56  ;;  %v4405_v56 = vmul.f32 %v4230_v8, %v4165_v44  ;;  %v4406_v7 = vmul.f32 %v7786_v46, %v4166_v33 }
 0x446   : >> { %v4401_v45 = vmul.f32 %v4204_v23, %v4161_v60  ;;  %v4756_v60 = vperm.slane %v8177_v25, 3 }
 0x447   : >> { %v4147_v2 = vsel %vm3606_vm6, %v4146_v43, %v4145_v19  ;;  %v4049_v26 = vrot.slane %v4048_v39, 1  ;;  %4379 = vperm.xlu2 %5558, %v4374_v59   ;;  %5557 = vset.pattern.permute.xlu1 %v7088_v12  ;;  %v4442_v19 = vsel %vm245_vm0, %v4403_v31, 0.0 }
 0x449   : >> { %v4050_v24 = vadd.f32 %v4049_v26, %v4048_v39  ;;  %v4211_v17 = vpop.permute.xlu1 %4210  ;;  %v4250_v20 = vpop.permute.xlu2 %4249  ;;  %v4169_v39 = vld [vmem:[#allocation5 + $0x88] sm:$0xff]  ;;  %v4432_v26 = vsel %vm245_vm0, %v4400_v62, 0.0 }
 0x44a   : >> { %v4402_v28 = vmul.f32 %v4211_v17, %v4162_v47  ;;  %v4433_v17 = vsel %vm245_vm0, %v4401_v45, 0.0 }
 0x44b   : >> { %v4102_v55 = vadd.f32 %v4070_v37, %v4050_v24  ;;  %v4171_v37 = vld [vmem:[#allocation5 + $0xa8] sm:$0xff]  ;;  %v4451_v24 = vsel %vm245_vm0, %v4405_v56, 0.0 }
 0x44c   : >> { %v4441_v32 = vsel %vm245_vm0, %v4402_v28, 0.0 }
 0x44d   : >> { %v4148_v57 = vrot.slane %v4102_v55, 1  ;;  %v4170_v55 = vld [vmem:[#allocation5 + $0xa0] sm:$0xff]  ;;  %v4443_v50 = vadd.f32 %v4442_v19, %v4441_v32 }
 0x44f   : >> { %v4149_v34 = vsel %vm3609_vm7, %v4148_v57, %v4147_v2  ;;  %4392 = vperm.xlu2 %5558, %v8525_v52   ;;  %4372 = vperm.xlu1 %5557, %v8526_v16   ;;  %v4459_v57 = vsel %vm245_vm0, %v4406_v7, 0.0  ;;  %v4269_v52 = vpop.permute.xlu0 %4268 }
 0x450   : >> { %v4153_v0 = vadd.f32 %v5364_v6, %v4149_v34  ;;  %v4411_v8 = vmul.f32 %v4269_v52, %v4171_v37  ;;  %v4175_v52 = vld [vmem:[#allocation5 + $0xe8] sm:$0xff] }
 0x451   : >> { %v4224_v54 = vpop.permute.xlu1 %4223  ;;  %v4263_v63 = vpop.permute.xlu2 %4262 }
 0x452   : >> { %5366 = vst.msk [vmem:[%s7975_s17 + $0x48] sm:$0xff] %vm245_vm0, %v4153_v0  ;;  %v4404_v9 = vmul.f32 %v4224_v54, %v4164_v5  ;;  %v4410_v46 = vmul.f32 %v4263_v63, %v4170_v55  ;;  %v4434_v54 = vadd.f32 %v4433_v17, %v4432_v26  ;;  %v4478_v28 = vsel %vm245_vm0, %v4411_v8, 0.0  ;;  %v8205_v26 = vld [vmem:[%s8395_s3 + $0x2] ss:$0 sm:$0xff] }
 0x453   : >> { %v8528_v8 = vperm.slane %v6999_v18, 2 }
 0x454   : >> { %v4450_v14 = vsel %vm245_vm0, %v4404_v9, 0.0  ;;  %v4435_v5 = vrot.slane %v4434_v54, 4 }
 0x455   : >> { %v4452_v6 = vadd.f32 %v4451_v24, %v4450_v14 }
 0x456   : >> { %v4436_v44 = vadd.f32 %v4435_v5, %v4434_v54 }
 0x457   : >> { %5560 = vset.pattern.permute.xlu2 %v7088_v12  ;;  %4385 = vperm.xlu1 %5557, %v4374_v59   ;;  %v4408_v59 = vmul.f32 %v4250_v20, %v4168_v11  ;;  %v4444_v20 = vrot.slane %v4443_v50, 4  ;;  %v4453_v23 = vrot.slane %v4452_v6, 4 }
 0x458   : >> { %v4437_v63 = vrot.slane %v4436_v44, 2 }
 0x459   : >> { %v4468_v16 = vsel %vm245_vm0, %v4408_v59, 0.0  ;;  %v4445_v33 = vadd.f32 %v4444_v20, %v4443_v50  ;;  %v4454_v38 = vadd.f32 %v4453_v23, %v4452_v6  ;;  %v4172_v59 = vld [vmem:[#allocation5 + $0xc0] sm:$0xff] }
 0x45a   : >> { %v4438_v6 = vadd.f32 %v4437_v63, %v4436_v44 }
 0x45b   : >> { %v4446_v56 = vrot.slane %v4445_v33, 2  ;;  %v4455_v11 = vrot.slane %v4454_v38, 2 }
 0x45c   : >> { %v4439_v5 = vrot.slane %v4438_v6, 1 }
 0x45d   : >> { %v4447_v19 = vadd.f32 %v4446_v56, %v4445_v33 }
 0x45f   : >> { %4728 = vperm.xlu2 %5560, %v4717_v58   ;;  %5559 = vset.pattern.permute.xlu1 %v6675_v15  ;;  %v4448_v17 = vrot.slane %v4447_v19, 1 }
 0x461   : >> { %v4243_v51 = vpop.permute.xlu1 %4242 }
 0x462   : >> { %v4407_v27 = vmul.f32 %v4243_v51, %v4167_v22  ;;  %v4477_v51 = vsel %vm245_vm0, %v4410_v46, 0.0  ;;  %v4282_v22 = vpop.permute.xlu2 %4281  ;;  %v4158_v46 = vld [vmem:[%s6467_s28] sm:$0xff] }
 0x463   : >> { %v4479_v9 = vadd.f32 %v4478_v28, %v4477_v51  ;;  %v4578_v20 = vmul.f32 %v8205_v26, %v4158_v46  ;;  %v4174_v28 = vld [vmem:[#allocation5 + $0xe0] sm:$0xff] }
 0x464   : >> { %v4460_v2 = vsel %vm245_vm0, %v4407_v27, 0.0 }
 0x465   : >> { %v4461_v0 = vadd.f32 %v4460_v2, %v4459_v57  ;;  %v4480_v62 = vrot.slane %v4479_v9, 4  ;;  %v4456_v2 = vadd.f32 %v4455_v11, %v4454_v38  ;;  %v4449_v38 = vadd.f32 %v4448_v17, %v4447_v19 }
 0x466   : >> { %v4584_v56 = vrot.slane %v4578_v20, 3 }
 0x467   : >> { %4741 = vperm.xlu2 %5560, %v4730_v61   ;;  %4722 = vperm.xlu1 %5559, %v4717_v58   ;;  %v4462_v47 = vrot.slane %v4461_v0, 4  ;;  %v4457_v54 = vrot.slane %v4456_v2, 1 }
 0x469   : >> { %v4256_v43 = vpop.permute.xlu1 %4255  ;;  %v4463_v31 = vadd.f32 %v4462_v47, %v4461_v0  ;;  %v8527_v0 = vperm.slane %v7506_v41, 4  ;;  %v4583_v41 = vrot.slane %v4578_v20, 2  ;;  %v4458_v44 = vadd.f32 %v4457_v54, %v4456_v2 }
 0x46a   : >> { %v4409_v42 = vmul.f32 %v4256_v43, %v4169_v39  ;;  %v4481_v39 = vadd.f32 %v4480_v62, %v4479_v9  ;;  %v4295_v24 = vpop.permute.xlu2 %4294  ;;  %v4440_v2 = vadd.f32 %v4439_v5, %v4438_v6 }
 0x46b   : >> { %v4464_v7 = vrot.slane %v4463_v31, 2  ;;  %v4614_v19 = vadd.f32 %v4583_v41, %v4458_v44  ;;  %v4795_v41 = vperm.slane %v8177_v25, 6 }
 0x46c   : >> { %v4469_v34 = vsel %vm245_vm0, %v4409_v42, 0.0 }
 0x46d   : >> { %v4470_v58 = vadd.f32 %v4469_v34, %v4468_v16  ;;  %v4465_v55 = vadd.f32 %v4464_v7, %v4463_v31  ;;  %v4482_v34 = vrot.slane %v4481_v39, 2  ;;  %v4585_v7 = vrot.slane %v4578_v20, 4 }
 0x46f   : >> { %5562 = vset.pattern.permute.xlu2 %v6675_v15  ;;  %4735 = vperm.xlu1 %5559, %v4730_v61   ;;  %v4471_v29 = vrot.slane %v4470_v58, 4  ;;  %v4173_v61 = vld [vmem:[#allocation5 + $0xc8] sm:$0xff]  ;;  %v4466_v51 = vrot.slane %v4465_v55, 1  ;;  %v4483_v33 = vadd.f32 %v4482_v34, %v4481_v39 }
 0x470   : >> { %v4413_v32 = vmul.f32 %v4282_v22, %v4173_v61  ;;  %v4582_v22 = vrot.slane %v4578_v20, 1 }
 0x471   : >> { %v4472_v27 = vadd.f32 %v4471_v29, %v4470_v58  ;;  %v4415_v58 = vmul.f32 %v4295_v24, %v4175_v52  ;;  %v4467_v61 = vadd.f32 %v4466_v51, %v4465_v55  ;;  %v4484_v63 = vrot.slane %v4483_v33, 1 }
 0x472   : >> { %v4487_v42 = vsel %vm245_vm0, %v4413_v32, 0.0  ;;  %v4586_v24 = vrot.slane %v4578_v20, 5  ;;  %v4782_v52 = vperm.slane %v8177_v25, 5 }
 0x473   : >> { %v4473_v14 = vrot.slane %v4472_v27, 2 }
 0x475   : >> { %v4474_v57 = vadd.f32 %v4473_v14, %v4472_v27  ;;  %v4496_v27 = vsel %vm245_vm0, %v4415_v58, 0.0  ;;  %v4613_v14 = vadd.f32 %v4582_v22, %v4449_v38 }
 0x477   : >> { %4761 = vperm.xlu2 %5562, %v4756_v60   ;;  %5561 = vset.pattern.permute.xlu1 %v7088_v12  ;;  %v4475_v29 = vrot.slane %v4474_v57, 1  ;;  %v4647_v34 = vrot.slane %v4613_v14, 7 }
 0x479   : >> { %v4276_v45 = vpop.permute.xlu1 %4275 }
 0x47a   : >> { %v4412_v43 = vmul.f32 %v4276_v45, %v4172_v59  ;;  %v4476_v45 = vadd.f32 %v4475_v29, %v4474_v57  ;;  %v8215_v59 = vpop.permute.xlu2 %4314  ;;  %v4485_v57 = vadd.f32 %v4484_v63, %v4483_v33 }
 0x47c   : >> { %v4486_v37 = vsel %vm245_vm0, %v4412_v43, 0.0  ;;  %v4616_v55 = vadd.f32 %v4585_v7, %v4476_v45  ;;  %v8239_v45 = vld [vmem:[%s6170_s13 + $0xc8] sm:$0xff] }
 0x47d   : >> { %v4488_v50 = vadd.f32 %v4487_v42, %v4486_v37  ;;  %v4615_v42 = vadd.f32 %v4584_v56, %v4467_v61  ;;  %v4821_v63 = vperm.slane %v8239_v45, 0 }
 0x47e   : >> { %v4653_v58 = vrot.slane %v4616_v55, 4  ;;  %v8530_v55 = vperm.slane %v6999_v18, 7 }
 0x47f   : >> { %v4489_v16 = vrot.slane %v4488_v50, 4  ;;  %4774 = vperm.xlu2 %5562, %v8527_v0   ;;  %4754 = vperm.xlu1 %5561, %v8528_v8   ;;  %v4612_v0 = vadd.f32 %v4578_v20, %v4440_v2  ;;  %v4651_v8 = vrot.slane %v4615_v42, 5  ;;  %v4178_v42 = vld [vmem:[#allocation5 + $0x120] sm:$0xff] }
 0x481   : >> { %v4490_v23 = vadd.f32 %v4489_v16, %v4488_v50  ;;  %v4289_v47 = vpop.permute.xlu1 %4288  ;;  %v4587_v50 = vrot.slane %v4578_v20, 6  ;;  %v4649_v16 = vrot.slane %v4614_v19, 6  ;;  %v4648_v6 = vsel %vm3591_vm1, %v4647_v34, %v4612_v0  ;;  %v4179_v19 = vld [vmem:[#allocation5 + $0x128] sm:$0xff] }
 0x482   : >> { %v4414_v9 = vmul.f32 %v4289_v47, %v4174_v28  ;;  %v4328_v5 = vpop.permute.xlu2 %4327 }
 0x483   : >> { %v4491_v31 = vrot.slane %v4490_v23, 2  ;;  %v4650_v28 = vsel %vm3594_vm2, %v4649_v16, %v4648_v6  ;;  %v4184_v16 = vld [vmem:[#allocation5 + $0x180] sm:$0xff]  ;;  %v4185_v6 = vld [vmem:[#allocation5 + $0x188] sm:$0xff] }
 0x484   : >> { %v4495_v62 = vsel %vm245_vm0, %v4414_v9, 0.0  ;;  %v4652_v29 = vsel %vm3597_vm3, %v4651_v8, %v4650_v28  ;;  %v4183_v8 = vld [vmem:[#allocation5 + $0x168] sm:$0xff] }
 0x485   : >> { %v4492_v11 = vadd.f32 %v4491_v31, %v4490_v23  ;;  %v4497_v32 = vadd.f32 %v4496_v27, %v4495_v62  ;;  %v4588_v23 = vrot.slane %v4578_v20, 7  ;;  %v4654_v33 = vsel %vm3600_vm4, %v4653_v58, %v4652_v29  ;;  %v4629_v62 = vld [vmem:[%s8229_s20] sm:$0xff]  ;;  %v4177_v58 = vld [vmem:[#allocation5 + $0x108] sm:$0xff] }
 0x487   : >> { %v4493_v43 = vrot.slane %v4492_v11, 1  ;;  %v4498_v39 = vrot.slane %v4497_v32, 4  ;;  %5564 = vset.pattern.permute.xlu2 %v7088_v12  ;;  %4767 = vperm.xlu1 %5561, %v4756_v60   ;;  %v4617_v60 = vadd.f32 %v4586_v24, %v4485_v57  ;;  %v8529_v24 = vperm.slane %v7527_v35, 1  ;;  %v4180_v57 = vld [vmem:[#allocation5 + $0x140] sm:$0xff] }
 0x488   : >> { %v4420_v0 = vmul.f32 %v4328_v5, %v4180_v57 }
 0x489   : >> { %v4499_v37 = vadd.f32 %v4498_v39, %v4497_v32  ;;  %v4494_v46 = vadd.f32 %v4493_v43, %v4492_v11  ;;  %v4655_v38 = vrot.slane %v4617_v60, 3  ;;  %v4334_v39 = vpop.permute.xlu0 %4333 }
 0x48a   : >> { %v4347_v32 = vpop.permute.xlu2 %4346  ;;  %v4522_v5 = vsel %vm245_vm0, %v4420_v0, 0.0 }
 0x48b   : >> { %v4500_v17 = vrot.slane %v4499_v37, 2  ;;  %v4618_v51 = vadd.f32 %v4587_v50, %v4494_v46  ;;  %v4656_v20 = vsel %vm3603_vm5, %v4655_v38, %v4654_v33  ;;  %v4182_v50 = vld [vmem:[#allocation5 + $0x160] sm:$0xff]  ;;  %v4181_v46 = vld [vmem:[#allocation5 + $0x148] sm:$0xff]  ;;  %v4423_v60 = vmul.f32 %v4347_v32, %v4183_v8 }
 0x48c   : >> { %v4421_v18 = vmul.f32 %v4334_v39, %v4181_v46  ;;  %v4191_v38 = vld [vmem:[#allocation5 + $0x1e8] sm:$0xff] }
 0x48d   : >> { %v4501_v54 = vadd.f32 %v4500_v17, %v4499_v37  ;;  %v4657_v22 = vrot.slane %v4618_v51, 2  ;;  %v4418_v37 = vmul.f32 %v8215_v59, %v4178_v42  ;;  %v4187_v8 = vld [vmem:[#allocation5 + $0x1a8] sm:$0xff] }
 0x48f   : >> { %v4502_v47 = vrot.slane %v4501_v54, 1  ;;  %4793 = vperm.xlu2 %5564, %v4782_v52   ;;  %5563 = vset.pattern.permute.xlu1 %v6675_v15  ;;  %v4658_v27 = vsel %vm3606_vm6, %v4657_v22, %v4656_v20  ;;  %v4513_v59 = vsel %vm245_vm0, %v4418_v37, 0.0  ;;  %v4532_v20 = vsel %vm245_vm0, %v4423_v60, 0.0 }
 0x491   : >> { %v4503_v9 = vadd.f32 %v4502_v47, %v4501_v54  ;;  %v4308_v61 = vpop.permute.xlu1 %4307  ;;  %v4176_v54 = vld [vmem:[#allocation5 + $0x100] sm:$0xff]  ;;  %v4399_v22 = vpop.permute.xlu0 %4398 }
 0x492   : >> { %v4360_v7 = vpop.permute.xlu2 %4359 }
 0x493   : >> { %v4619_v31 = vadd.f32 %v4588_v23, %v4503_v9  ;;  %v4417_v23 = vmul.f32 %v4308_v61, %v4177_v58  ;;  %v4425_v47 = vmul.f32 %v4360_v7, %v4185_v6  ;;  %v4416_v9 = vmul.f32 %v7801_v13, %v4176_v54 }
 0x495   : >> { %v4659_v44 = vrot.slane %v4619_v31, 1  ;;  %v4190_v31 = vld [vmem:[#allocation5 + $0x1e0] sm:$0xff]  ;;  %v4541_v13 = vsel %vm245_vm0, %v4425_v47, 0.0 }
 0x497   : >> { %v4660_v56 = vsel %vm3609_vm7, %v4659_v44, %v4658_v27  ;;  %4806 = vperm.xlu2 %5564, %v4795_v41   ;;  %4787 = vperm.xlu1 %5563, %v4782_v52   ;;  %v4505_v44 = vsel %vm245_vm0, %v4417_v23, 0.0 }
 0x498   : >> { %v4677_v11 = vadd.f32 %v4660_v56, %v4629_v62  ;;  %v4523_v62 = vsel %vm245_vm0, %v4421_v18, 0.0 }
 0x499   : >> { %v4321_v25 = vpop.permute.xlu1 %4320  ;;  %v4524_v32 = vadd.f32 %v4523_v62, %v4522_v5 }
 0x49a   : >> { %4679 = vst.msk [vmem:[%s8229_s20] sm:$0xff] %vm245_vm0, %v4677_v11  ;;  %v4419_v2 = vmul.f32 %v4321_v25, %v4179_v19  ;;  %v4431_v11 = vmul.f32 %v4399_v22, %v4191_v38  ;;  %v4504_v25 = vsel %vm245_vm0, %v4416_v9, 0.0  ;;  %v4847_v19 = vperm.slane %v8239_v45, 2  ;;  %v4188_v22 = vld [vmem:[#allocation5 + $0x1c0] sm:$0xff] }
 0x49b   : >> { %v4525_v37 = vrot.slane %v4524_v32, 4 }
 0x49c   : >> { %v4514_v34 = vsel %vm245_vm0, %v4419_v2, 0.0 }
 0x49d   : >> { %v4515_v28 = vadd.f32 %v4514_v34, %v4513_v59  ;;  %v4860_v59 = vperm.slane %v8239_v45, 3 }
 0x49f   : >> { %5566 = vset.pattern.permute.xlu2 %v6675_v15  ;;  %4800 = vperm.xlu1 %5563, %v4795_v41   ;;  %v4516_v56 = vrot.slane %v4515_v28, 4 }
 0x4a1   : >> { %v8243_v43 = vpop.permute.xlu2 %4379  ;;  %v4517_v2 = vadd.f32 %v4516_v56, %v4515_v28  ;;  %v4189_v56 = vld [vmem:[#allocation5 + $0x1c8] sm:$0xff] }
 0x4a3   : >> { %v4518_v57 = vrot.slane %v4517_v2, 2 }
 0x4a5   : >> { %v4519_v60 = vadd.f32 %v4518_v57, %v4517_v2 }
 0x4a7   : >> { %4826 = vperm.xlu2 %5566, %v4821_v63   ;;  %5565 = vset.pattern.permute.xlu1 %v7088_v12  ;;  %v4520_v5 = vrot.slane %v4519_v60, 1 }
 0x4a9   : >> { %v4341_v14 = vpop.permute.xlu1 %4340  ;;  %v4393_v29 = vpop.permute.xlu2 %4392 }
 0x4aa   : >> { %v4422_v17 = vmul.f32 %v4341_v14, %v4182_v50  ;;  %v4430_v27 = vmul.f32 %v4393_v29, %v4190_v31  ;;  %v4506_v14 = vadd.f32 %v4505_v44, %v4504_v25  ;;  %v4428_v31 = vmul.f32 %v8243_v43, %v4188_v22 }
 0x4ac   : >> { %v4531_v33 = vsel %vm245_vm0, %v4422_v17, 0.0  ;;  %v4567_v39 = vsel %vm245_vm0, %v4430_v27, 0.0  ;;  %v4507_v50 = vrot.slane %v4506_v14, 4 }
 0x4ad   : >> { %v4533_v61 = vadd.f32 %v4532_v20, %v4531_v33 }
 0x4ae   : >> { %v4508_v54 = vadd.f32 %v4507_v50, %v4506_v14  ;;  %v4521_v14 = vadd.f32 %v4520_v5, %v4519_v60 }
 0x4af   : >> { %4839 = vperm.xlu2 %5566, %v8529_v24   ;;  %4819 = vperm.xlu1 %5565, %v8530_v55   ;;  %v4534_v42 = vrot.slane %v4533_v61, 4  ;;  %v4186_v55 = vld [vmem:[#allocation5 + $0x1a0] sm:$0xff] }
 0x4b0   : >> { %v4426_v17 = vmul.f32 %v7822_v10, %v4186_v55  ;;  %v4159_v10 = vld [vmem:[%s6467_s28 + $0x8] sm:$0xff]  ;;  %v4509_v9 = vrot.slane %v4508_v54, 2 }
 0x4b1   : >> { %v4354_v52 = vpop.permute.xlu1 %4353  ;;  %v4535_v34 = vadd.f32 %v4534_v42, %v4533_v61  ;;  %v4579_v20 = vmul.f32 %v8205_v26, %v4159_v10 }
 0x4b2   : >> { %v4424_v51 = vmul.f32 %v4354_v52, %v4184_v16  ;;  %v4526_v52 = vadd.f32 %v4525_v37, %v4524_v32  ;;  %v4549_v23 = vsel %vm245_vm0, %v4426_v17, 0.0  ;;  %v4510_v61 = vadd.f32 %v4509_v9, %v4508_v54 }
 0x4b3   : >> { %v4536_v6 = vrot.slane %v4535_v34, 2  ;;  %v4589_v25 = vrot.slane %v4579_v20, 1  ;;  %v4595_v9 = vrot.slane %v4579_v20, 7 }
 0x4b4   : >> { %v4540_v41 = vsel %vm245_vm0, %v4424_v51, 0.0  ;;  %v4527_v47 = vrot.slane %v4526_v52, 2  ;;  %v4511_v37 = vrot.slane %v4510_v61, 1 }
 0x4b5   : >> { %v4542_v7 = vadd.f32 %v4541_v13, %v4540_v41  ;;  %v4537_v41 = vadd.f32 %v4536_v6, %v4535_v34  ;;  %v4621_v57 = vadd.f32 %v4589_v25, %v4521_v14  ;;  %v4591_v34 = vrot.slane %v4579_v20, 3 }
 0x4b6   : >> { %v4528_v44 = vadd.f32 %v4527_v47, %v4526_v52  ;;  %v4512_v54 = vadd.f32 %v4511_v37, %v4510_v61 }
 0x4b7   : >> { %5568 = vset.pattern.permute.xlu2 %v7088_v12  ;;  %4832 = vperm.xlu1 %5565, %v4821_v63   ;;  %v4568_v63 = vsel %vm245_vm0, %v4431_v11, 0.0  ;;  %v4543_v24 = vrot.slane %v4542_v7, 4 }
 0x4b8   : >> { %v4569_v46 = vadd.f32 %v4568_v63, %v4567_v39  ;;  %v4558_v39 = vsel %vm245_vm0, %v4428_v31, 0.0  ;;  %v4529_v43 = vrot.slane %v4528_v44, 1  ;;  %v4620_v10 = vadd.f32 %v4579_v20, %v4512_v54  ;;  %v4692_v54 = vld [vmem:[#allocation5 + $0x78] sm:$0xff] }
 0x4b9   : >> { %v4544_v16 = vadd.f32 %v4543_v24, %v4542_v7 }
 0x4ba   : >> { %v4570_v58 = vrot.slane %v4569_v46, 4  ;;  %v4530_v52 = vadd.f32 %v4529_v43, %v4528_v44  ;;  %v8532_v43 = vperm.slane %v7057_v53, 4 }
 0x4bb   : >> { %v4545_v28 = vrot.slane %v4544_v16, 2 }
 0x4bc   : >> { %v4571_v33 = vadd.f32 %v4570_v58, %v4569_v46  ;;  %v4590_v46 = vrot.slane %v4579_v20, 2 }
 0x4bd   : >> { %v4546_v27 = vadd.f32 %v4545_v28, %v4544_v16  ;;  %v4592_v16 = vrot.slane %v4579_v20, 4 }
 0x4be   : >> { %v4572_v11 = vrot.slane %v4571_v33, 2  ;;  %v4622_v28 = vadd.f32 %v4590_v46, %v4530_v52 }
 0x4bf   : >> { %4858 = vperm.xlu2 %5568, %v4847_v19   ;;  %5567 = vset.pattern.permute.xlu1 %v6675_v15  ;;  %v4547_v42 = vrot.slane %v4546_v27, 1 }
 0x4c0   : >> { %v4573_v24 = vadd.f32 %v4572_v11, %v4571_v33  ;;  %v4663_v44 = vrot.slane %v4622_v28, 6 }
 0x4c1   : >> { %v4373_v0 = vpop.permute.xlu1 %4372 }
 0x4c2   : >> { %v4427_v51 = vmul.f32 %v4373_v0, %v4187_v8  ;;  %v4548_v0 = vadd.f32 %v4547_v42, %v4546_v27  ;;  %v4574_v58 = vrot.slane %v4573_v24, 1  ;;  %v4630_v42 = vld [vmem:[%s8229_s20 + $0x8] sm:$0xff] }
 0x4c4   : >> { %v4550_v18 = vsel %vm245_vm0, %v4427_v51, 0.0  ;;  %v4593_v51 = vrot.slane %v4579_v20, 5  ;;  %v4575_v33 = vadd.f32 %v4574_v58, %v4573_v24 }
 0x4c5   : >> { %v4551_v29 = vadd.f32 %v4550_v18, %v4549_v23  ;;  %v4886_v23 = vperm.slane %v8239_v45, 5  ;;  %v4661_v18 = vrot.slane %v4621_v57, 7 }
 0x4c7   : >> { %v4552_v38 = vrot.slane %v4551_v29, 4  ;;  %4871 = vperm.xlu2 %5568, %v4860_v59   ;;  %4852 = vperm.xlu1 %5567, %v4847_v19   ;;  %v4538_v19 = vrot.slane %v4537_v41, 1  ;;  %v4662_v31 = vsel %vm3591_vm1, %v4661_v18, %v4620_v10  ;;  %v4686_v10 = vld [vmem:[#allocation5 + $0x18] sm:$0xff] }
 0x4c8   : >> { %v4664_v61 = vsel %vm3594_vm2, %v4663_v44, %v4662_v31 }
 0x4c9   : >> { %v4553_v62 = vadd.f32 %v4552_v38, %v4551_v29  ;;  %v4386_v13 = vpop.permute.xlu1 %4385  ;;  %v4539_v17 = vadd.f32 %v4538_v19, %v4537_v41  ;;  %v4624_v29 = vadd.f32 %v4592_v16, %v4548_v0  ;;  %v4594_v38 = vrot.slane %v4579_v20, 6  ;;  %v4689_v16 = vld [vmem:[#allocation5 + $0x50] sm:$0xff]  ;;  %v4690_v0 = vld [vmem:[#allocation5 + $0x58] sm:$0xff] }
 0x4ca   : >> { %v4429_v32 = vmul.f32 %v4386_v13, %v4189_v56  ;;  %v4627_v13 = vadd.f32 %v4595_v9, %v4575_v33  ;;  %v4693_v33 = vld [vmem:[#allocation5 + $0x90] sm:$0xff] }
 0x4cb   : >> { %v4554_v7 = vrot.slane %v4553_v62, 2  ;;  %v4623_v47 = vadd.f32 %v4591_v34, %v4539_v17  ;;  %v4667_v27 = vrot.slane %v4624_v29, 4  ;;  %v4687_v34 = vld [vmem:[#allocation5 + $0x30] sm:$0xff] }
 0x4cc   : >> { %v4559_v2 = vsel %vm245_vm0, %v4429_v32, 0.0  ;;  %v4695_v29 = vld [vmem:[#allocation5 + $0xb0] sm:$0xff] }
 0x4cd   : >> { %v4555_v63 = vadd.f32 %v4554_v7, %v4553_v62  ;;  %v4560_v26 = vadd.f32 %v4559_v2, %v4558_v39  ;;  %v4665_v41 = vrot.slane %v4623_v47, 5  ;;  %v4673_v7 = vrot.slane %v4627_v13, 1  ;;  %v4729_v39 = vpop.permute.xlu2 %4728 }
 0x4ce   : >> { %v8531_v2 = vperm.slane %v7527_v35, 6 }
 0x4cf   : >> { %v4556_v55 = vrot.slane %v4555_v63, 1  ;;  %v4561_v50 = vrot.slane %v4560_v26, 4  ;;  %5571 = vset.pattern.permute.xlu2 %v6675_v15  ;;  %4865 = vperm.xlu1 %5567, %v4860_v59   ;;  %v4666_v32 = vsel %vm3597_vm3, %v4665_v41, %v4664_v61  ;;  %v4696_v41 = vld [vmem:[#allocation5 + $0xb8] sm:$0xff] }
 0x4d0   : >> { %v4668_v20 = vsel %vm3600_vm4, %v4667_v27, %v4666_v32  ;;  %v4781_v27 = vpop.permute.xlu0 %4780 }
 0x4d1   : >> { %v4562_v8 = vadd.f32 %v4561_v50, %v4560_v26  ;;  %v4557_v60 = vadd.f32 %v4556_v55, %v4555_v63  ;;  %v4912_v55 = vperm.slane %v8239_v45, 7  ;;  %v4691_v45 = vld [vmem:[#allocation5 + $0x70] sm:$0xff] }
 0x4d3   : >> { %v4563_v6 = vrot.slane %v4562_v8, 2  ;;  %v4625_v22 = vadd.f32 %v4593_v51, %v4557_v60  ;;  %v4929_v60 = vmul.f32 %v7837_v36, %v4689_v16 }
 0x4d5   : >> { %v4564_v59 = vadd.f32 %v4563_v6, %v4562_v8  ;;  %v4669_v56 = vrot.slane %v4625_v22, 3  ;;  %v4742_v24 = vpop.permute.xlu2 %4741  ;;  %v4688_v8 = vld [vmem:[#allocation5 + $0x38] sm:$0xff]  ;;  %v4975_v44 = vsel %vm245_vm0, %v4929_v60, 0.0 }
 0x4d6   : >> { %v4928_v58 = vmul.f32 %v4742_v24, %v4688_v8 }
 0x4d7   : >> { %v4565_v5 = vrot.slane %v4564_v59, 1  ;;  %4891 = vperm.xlu2 %5571, %v4886_v23   ;;  %5570 = vset.pattern.permute.xlu1 %v7088_v12  ;;  %v4670_v14 = vsel %vm3603_vm5, %v4669_v56, %v4668_v20 }
 0x4d8   : >> { %v4967_v9 = vsel %vm245_vm0, %v4928_v58, 0.0 }
 0x4d9   : >> { %v4566_v62 = vadd.f32 %v4565_v5, %v4564_v59  ;;  %v4723_v37 = vpop.permute.xlu1 %4722  ;;  %v4694_v59 = vld [vmem:[#allocation5 + $0x98] sm:$0xff]  ;;  %v4926_v5 = vmul.f32 %v4729_v39, %v4686_v10 }
 0x4da   : >> { %v4934_v61 = vmul.f32 %v4781_v27, %v4694_v59  ;;  %v8313_v59 = vld [vmem:[%s8395_s3 + $0x3] ss:$0 sm:$0xff] }
 0x4db   : >> { %v4626_v11 = vadd.f32 %v4594_v38, %v4566_v62 }
 0x4dd   : >> { %v4671_v25 = vrot.slane %v4626_v11, 2  ;;  %v4762_v35 = vpop.permute.xlu2 %4761 }
 0x4de   : >> { %v4931_v6 = vmul.f32 %v4762_v35, %v4691_v45 }
 0x4df   : >> { %v4672_v19 = vsel %vm3606_vm6, %v4671_v25, %v4670_v14  ;;  %4904 = vperm.xlu2 %5571, %v8531_v2   ;;  %4884 = vperm.xlu1 %5570, %v8532_v43  }
 0x4e0   : >> { %v4674_v63 = vsel %vm3609_vm7, %v4673_v7, %v4672_v19  ;;  %v4984_v62 = vsel %vm245_vm0, %v4931_v6, 0.0  ;;  %v4958_v7 = vsel %vm245_vm0, %v4926_v5, 0.0  ;;  %v4698_v19 = vld [vmem:[#allocation5 + $0xd8] sm:$0xff] }
 0x4e1   : >> { %v4678_v26 = vadd.f32 %v4674_v63, %v4630_v42  ;;  %v4736_v50 = vpop.permute.xlu1 %4735 }
 0x4e2   : >> { %v4927_v52 = vmul.f32 %v4736_v50, %v4687_v34  ;;  %v4697_v50 = vld [vmem:[#allocation5 + $0xd0] sm:$0xff] }
 0x4e3   : >> { %4680 = vst.msk [vmem:[%s8229_s20 + $0x8] sm:$0xff] %vm245_vm0, %v4678_v26  ;;  %v4994_v26 = vsel %vm245_vm0, %v4934_v61, 0.0 }
 0x4e5   : >> { %v4775_v46 = vpop.permute.xlu2 %4774 }
 0x4e6   : >> { %v4933_v31 = vmul.f32 %v4775_v46, %v4693_v33  ;;  %v5371_v33 = vld [vmem:[%s6467_s28 + $0x40] sm:$0xff] }
 0x4e7   : >> { %5573 = vset.pattern.permute.xlu2 %v7088_v12  ;;  %4897 = vperm.xlu1 %5570, %v4886_v23   ;;  %v4966_v23 = vsel %vm245_vm0, %v4927_v52, 0.0 }
 0x4e8   : >> { %v4968_v36 = vadd.f32 %v4967_v9, %v4966_v23  ;;  %v4993_v14 = vsel %vm245_vm0, %v4933_v31, 0.0 }
 0x4e9   : >> { %v4995_v35 = vadd.f32 %v4994_v26, %v4993_v14 }
 0x4ea   : >> { %v4969_v39 = vrot.slane %v4968_v36, 4 }
 0x4ec   : >> { %v4970_v46 = vadd.f32 %v4969_v39, %v4968_v36 }
 0x4ed   : >> { %v4794_v17 = vpop.permute.xlu2 %4793 }
 0x4ee   : >> { %v4936_v13 = vmul.f32 %v4794_v17, %v4696_v41 }
 0x4ef   : >> { %4923 = vperm.xlu2 %5573, %v4912_v55   ;;  %5572 = vset.pattern.permute.xlu1 %v6675_v15  ;;  %v4685_v15 = vld [vmem:[#allocation5 + $0x10] sm:$0xff] }
 0x4f0   : >> { %v4925_v18 = vmul.f32 %v4723_v37, %v4685_v15  ;;  %v5003_v43 = vsel %vm245_vm0, %v4936_v13, 0.0 }
 0x4f1   : >> { %v4755_v53 = vpop.permute.xlu1 %4754 }
 0x4f2   : >> { %v4930_v12 = vmul.f32 %v4755_v53, %v4690_v0  ;;  %v4957_v11 = vsel %vm245_vm0, %v4925_v18, 0.0 }
 0x4f3   : >> { %v4959_v2 = vadd.f32 %v4958_v7, %v4957_v11 }
 0x4f4   : >> { %v4976_v47 = vsel %vm245_vm0, %v4930_v12, 0.0  ;;  %v4996_v12 = vrot.slane %v4995_v35, 4 }
 0x4f5   : >> { %v4977_v56 = vadd.f32 %v4976_v47, %v4975_v44  ;;  %v4807_v32 = vpop.permute.xlu2 %4806  ;;  %v5103_v44 = vmul.f32 %v8313_v59, %v5371_v33 }
 0x4f6   : >> { %v4938_v42 = vmul.f32 %v4807_v32, %v4698_v19  ;;  %v4997_v15 = vadd.f32 %v4996_v12, %v4995_v35 }
 0x4f7   : >> { %4917 = vperm.xlu1 %5572, %v4912_v55   ;;  %v4978_v63 = vrot.slane %v4977_v56, 4  ;;  %v5108_v39 = vrot.slane %v5103_v44, 2 }
 0x4f8   : >> { %v5012_v34 = vsel %vm245_vm0, %v4938_v42, 0.0 }
 0x4f9   : >> { %v4768_v57 = vpop.permute.xlu1 %4767  ;;  %v4979_v17 = vadd.f32 %v4978_v63, %v4977_v56  ;;  %v4700_v56 = vld [vmem:[#allocation5 + $0xf8] sm:$0xff] }
 0x4fa   : >> { %v4932_v51 = vmul.f32 %v4768_v57, %v4692_v54  ;;  %v4960_v57 = vrot.slane %v4959_v2, 4  ;;  %v4971_v54 = vrot.slane %v4970_v46, 2 }
 0x4fb   : >> { %v4980_v45 = vrot.slane %v4979_v17, 2 }
 0x4fc   : >> { %v4985_v22 = vsel %vm245_vm0, %v4932_v51, 0.0  ;;  %v4961_v51 = vadd.f32 %v4960_v57, %v4959_v2  ;;  %v4972_v18 = vadd.f32 %v4971_v54, %v4970_v46  ;;  %v5111_v57 = vrot.slane %v5103_v44, 5 }
 0x4fd   : >> { %v4986_v20 = vadd.f32 %v4985_v22, %v4984_v62  ;;  %v4998_v22 = vrot.slane %v4997_v15, 2 }
 0x4fe   : >> { %v4962_v47 = vrot.slane %v4961_v51, 2  ;;  %v4973_v5 = vrot.slane %v4972_v18, 1 }
 0x4ff   : >> { %v4987_v37 = vrot.slane %v4986_v20, 4  ;;  %v4999_v61 = vadd.f32 %v4998_v22, %v4997_v15 }
 0x500   : >> { %v4963_v36 = vadd.f32 %v4962_v47, %v4961_v51 }
 0x501   : >> { %v4988_v16 = vadd.f32 %v4987_v37, %v4986_v20  ;;  %v5107_v20 = vrot.slane %v5103_v44, 1  ;;  %v8319_v2 = vpop.permute.xlu2 %4826  ;;  %v5000_v37 = vrot.slane %v4999_v61, 1 }
 0x502   : >> { %v4964_v14 = vrot.slane %v4963_v36, 1 }
 0x503   : >> { %v4989_v60 = vrot.slane %v4988_v16, 2 }
 0x504   : >> { %v4965_v35 = vadd.f32 %v4964_v14, %v4963_v36  ;;  %v4846_v14 = vpop.permute.xlu0 %4845 }
 0x505   : >> { %v4990_v10 = vadd.f32 %v4989_v60, %v4988_v16  ;;  %v5001_v16 = vadd.f32 %v5000_v37, %v4999_v61 }
 0x506   : >> { %v5137_v51 = vadd.f32 %v5103_v44, %v4965_v35  ;;  %v4708_v35 = vld [vmem:[#allocation5 + $0x178] sm:$0xff] }
 0x507   : >> { %v4991_v27 = vrot.slane %v4990_v10, 1 }
 0x509   : >> { %v4788_v28 = vpop.permute.xlu1 %4787  ;;  %v4992_v42 = vadd.f32 %v4991_v27, %v4990_v10 }
 0x50a   : >> { %v4935_v38 = vmul.f32 %v4788_v28, %v4695_v29  ;;  %v4981_v28 = vadd.f32 %v4980_v45, %v4979_v17  ;;  %v4699_v29 = vld [vmem:[#allocation5 + $0xf0] sm:$0xff] }
 0x50b   : >> { %v4939_v31 = vmul.f32 %v7852_v30, %v4699_v29 }
 0x50c   : >> { %v5002_v25 = vsel %vm245_vm0, %v4935_v38, 0.0  ;;  %v4982_v41 = vrot.slane %v4981_v28, 1 }
 0x50d   : >> { %v5004_v24 = vadd.f32 %v5003_v43, %v5002_v25  ;;  %v4974_v25 = vadd.f32 %v4973_v5, %v4972_v18  ;;  %v5020_v7 = vsel %vm245_vm0, %v4939_v31, 0.0  ;;  %v5109_v43 = vrot.slane %v5103_v44, 3 }
 0x50e   : >> { %v4983_v19 = vadd.f32 %v4982_v41, %v4981_v28  ;;  %v5113_v28 = vrot.slane %v5103_v44, 7 }
 0x50f   : >> { %v5005_v0 = vrot.slane %v5004_v24, 4  ;;  %v5140_v46 = vadd.f32 %v5109_v43, %v4992_v42  ;;  %v4707_v42 = vld [vmem:[#allocation5 + $0x170] sm:$0xff] }
 0x511   : >> { %v4801_v55 = vpop.permute.xlu1 %4800  ;;  %v5006_v6 = vadd.f32 %v5005_v0, %v5004_v24  ;;  %v5112_v0 = vrot.slane %v5103_v44, 6  ;;  %v5176_v45 = vrot.slane %v5140_v46, 5 }
 0x512   : >> { %v4937_v53 = vmul.f32 %v4801_v55, %v4697_v50  ;;  %v5138_v55 = vadd.f32 %v5107_v20, %v4974_v25 }
 0x513   : >> { %v5007_v9 = vrot.slane %v5006_v6, 2 }
 0x514   : >> { %v5011_v52 = vsel %vm245_vm0, %v4937_v53, 0.0  ;;  %v5139_v53 = vadd.f32 %v5108_v39, %v4983_v19  ;;  %v5172_v12 = vrot.slane %v5138_v55, 7  ;;  %v4704_v39 = vld [vmem:[#allocation5 + $0x138] sm:$0xff]  ;;  %v4705_v19 = vld [vmem:[#allocation5 + $0x150] sm:$0xff] }
 0x515   : >> { %v5013_v8 = vadd.f32 %v5012_v34, %v5011_v52  ;;  %v5008_v62 = vadd.f32 %v5007_v9, %v5006_v6  ;;  %v5110_v52 = vrot.slane %v5103_v44, 4  ;;  %v5373_v44 = vld [vmem:[%s8229_s20 + $0x40] sm:$0xff]  ;;  %v4944_v55 = vmul.f32 %v4846_v14, %v4704_v39 }
 0x516   : >> { %v5173_v47 = vsel %vm3591_vm1, %v5172_v12, %v5137_v51 }
 0x517   : >> { %v5014_v58 = vrot.slane %v5013_v8, 4  ;;  %v5009_v63 = vrot.slane %v5008_v62, 1  ;;  %v5141_v15 = vadd.f32 %v5110_v52, %v5001_v16  ;;  %v4710_v16 = vld [vmem:[#allocation5 + $0x198] sm:$0xff] }
 0x519   : >> { %v5015_v23 = vadd.f32 %v5014_v58, %v5013_v8  ;;  %v5010_v34 = vadd.f32 %v5009_v63, %v5008_v62  ;;  %v5174_v58 = vrot.slane %v5139_v53, 6  ;;  %v4702_v53 = vld [vmem:[#allocation5 + $0x118] sm:$0xff] }
 0x51b   : >> { %v5016_v38 = vrot.slane %v5015_v23, 2  ;;  %v5142_v60 = vadd.f32 %v5111_v57, %v5010_v34  ;;  %v5175_v10 = vsel %vm3594_vm2, %v5174_v58, %v5173_v47  ;;  %v4701_v34 = vld [vmem:[#allocation5 + $0x110] sm:$0xff] }
 0x51c   : >> { %v5177_v9 = vsel %vm3597_vm3, %v5176_v45, %v5175_v10  ;;  %v5039_v45 = vsel %vm245_vm0, %v4944_v55, 0.0  ;;  %v4713_v47 = vld [vmem:[#allocation5 + $0x1d0] sm:$0xff] }
 0x51d   : >> { %v5017_v11 = vadd.f32 %v5016_v38, %v5015_v23  ;;  %v4840_v23 = vpop.permute.xlu2 %4839  ;;  %v5180_v33 = vrot.slane %v5142_v60, 3  ;;  %v5178_v38 = vrot.slane %v5141_v15, 4  ;;  %v4714_v15 = vld [vmem:[#allocation5 + $0x1d8] sm:$0xff] }
 0x51f   : >> { %v5018_v24 = vrot.slane %v5017_v11, 1  ;;  %v5179_v36 = vsel %vm3600_vm4, %v5178_v38, %v5177_v9 }
 0x520   : >> { %v5181_v41 = vsel %vm3603_vm5, %v5180_v33, %v5179_v36 }
 0x521   : >> { %v4820_v13 = vpop.permute.xlu1 %4819  ;;  %v5019_v8 = vadd.f32 %v5018_v24, %v5017_v11  ;;  %v4709_v24 = vld [vmem:[#allocation5 + $0x190] sm:$0xff] }
 0x522   : >> { %v4940_v32 = vmul.f32 %v4820_v13, %v4700_v56 }
 0x523   : >> { %v5143_v18 = vadd.f32 %v5112_v0, %v5019_v8  ;;  %v4949_v0 = vmul.f32 %v7870_v21, %v4709_v24  ;;  %v4941_v8 = vmul.f32 %v8319_v2, %v4701_v34  ;;  %v5372_v34 = vld [vmem:[%s6467_s28 + $0x48] sm:$0xff] }
 0x524   : >> { %v5021_v30 = vsel %vm245_vm0, %v4940_v32, 0.0 }
 0x525   : >> { %v5022_v26 = vadd.f32 %v5021_v30, %v5020_v7  ;;  %v5182_v5 = vrot.slane %v5143_v18, 2  ;;  %v4859_v13 = vpop.permute.xlu2 %4858  ;;  %v4703_v30 = vld [vmem:[#allocation5 + $0x130] sm:$0xff]  ;;  %v5065_v9 = vsel %vm245_vm0, %v4949_v0, 0.0  ;;  %v5029_v33 = vsel %vm245_vm0, %v4941_v8, 0.0 }
 0x526   : >> { %v4943_v63 = vmul.f32 %v4840_v23, %v4703_v30 }
 0x527   : >> { %v5023_v50 = vrot.slane %v5022_v26, 4  ;;  %v5183_v62 = vsel %vm3606_vm6, %v5182_v5, %v5181_v41 }
 0x528   : >> { %v5038_v12 = vsel %vm245_vm0, %v4943_v63, 0.0 }
 0x529   : >> { %v5024_v17 = vadd.f32 %v5023_v50, %v5022_v26  ;;  %v4833_v61 = vpop.permute.xlu1 %4832  ;;  %v4706_v26 = vld [vmem:[#allocation5 + $0x158] sm:$0xff] }
 0x52a   : >> { %v4946_v50 = vmul.f32 %v4859_v13, %v4706_v26  ;;  %v4942_v57 = vmul.f32 %v4833_v61, %v4702_v53 }
 0x52b   : >> { %v5025_v54 = vrot.slane %v5024_v17, 2 }
 0x52c   : >> { %v5048_v60 = vsel %vm245_vm0, %v4946_v50, 0.0  ;;  %v5030_v18 = vsel %vm245_vm0, %v4942_v57, 0.0 }
 0x52d   : >> { %v5026_v6 = vadd.f32 %v5025_v54, %v5024_v17  ;;  %v4872_v20 = vpop.permute.xlu2 %4871  ;;  %v5031_v5 = vadd.f32 %v5030_v18, %v5029_v33 }
 0x52e   : >> { %v4948_v46 = vmul.f32 %v4872_v20, %v4708_v35 }
 0x52f   : >> { %v5027_v29 = vrot.slane %v5026_v6, 1  ;;  %v5032_v20 = vrot.slane %v5031_v5, 4 }
 0x530   : >> { %v5057_v23 = vsel %vm245_vm0, %v4948_v46, 0.0 }
 0x531   : >> { %v5028_v22 = vadd.f32 %v5027_v29, %v5026_v6  ;;  %v4911_v6 = vpop.permute.xlu0 %4910  ;;  %v5033_v63 = vadd.f32 %v5032_v20, %v5031_v5 }
 0x532   : >> { %v4954_v38 = vmul.f32 %v4911_v6, %v4714_v15 }
 0x533   : >> { %v5144_v31 = vadd.f32 %v5113_v28, %v5028_v22  ;;  %v5040_v28 = vadd.f32 %v5039_v45, %v5038_v12  ;;  %v5034_v46 = vrot.slane %v5033_v63, 2 }
 0x535   : >> { %v5184_v27 = vrot.slane %v5144_v31, 1  ;;  %v4892_v25 = vpop.permute.xlu2 %4891  ;;  %v4711_v31 = vld [vmem:[#allocation5 + $0x1b0] sm:$0xff] }
 0x536   : >> { %v4951_v36 = vmul.f32 %v4892_v25, %v4711_v31 }
 0x537   : >> { %v5185_v56 = vsel %vm3609_vm7, %v5184_v27, %v5183_v62  ;;  %v5041_v27 = vrot.slane %v5040_v28, 4 }
 0x538   : >> { %v5202_v11 = vadd.f32 %v5373_v44, %v5185_v56  ;;  %v4712_v56 = vld [vmem:[#allocation5 + $0x1b8] sm:$0xff] }
 0x539   : >> { %v4853_v32 = vpop.permute.xlu1 %4852  ;;  %v5042_v25 = vadd.f32 %v5041_v27, %v5040_v28 }
 0x53a   : >> { %5375 = vst.msk [vmem:[%s8229_s20 + $0x40] sm:$0xff] %vm245_vm0, %v5202_v11  ;;  %v4945_v43 = vmul.f32 %v4853_v32, %v4705_v19  ;;  %v5084_v32 = vsel %vm245_vm0, %v4954_v38, 0.0 }
 0x53b   : >> { %v5043_v55 = vrot.slane %v5042_v25, 2 }
 0x53c   : >> { %v5047_v17 = vsel %vm245_vm0, %v4945_v43, 0.0 }
 0x53d   : >> { %v4905_v54 = vpop.permute.xlu2 %4904  ;;  %v5049_v21 = vadd.f32 %v5048_v60, %v5047_v17 }
 0x53e   : >> { %v4953_v29 = vmul.f32 %v4905_v54, %v4713_v47  ;;  %v5104_v54 = vmul.f32 %v8313_v59, %v5372_v34 }
 0x53f   : >> { %v5050_v41 = vrot.slane %v5049_v21, 4 }
 0x540   : >> { %v5083_v62 = vsel %vm245_vm0, %v4953_v29, 0.0  ;;  %v5114_v29 = vrot.slane %v5104_v54, 1 }
 0x541   : >> { %v4866_v7 = vpop.permute.xlu1 %4865  ;;  %v5085_v14 = vadd.f32 %v5084_v32, %v5083_v62  ;;  %v5051_v39 = vadd.f32 %v5050_v41, %v5049_v21  ;;  %v4715_v21 = vld [vmem:[#allocation5 + $0x1f0] sm:$0xff]  ;;  %v5117_v62 = vrot.slane %v5104_v54, 4 }
 0x542   : >> { %v4947_v37 = vmul.f32 %v4866_v7, %v4707_v42  ;;  %v5074_v7 = vsel %vm245_vm0, %v4951_v36, 0.0  ;;  %v5116_v36 = vrot.slane %v5104_v54, 3 }
 0x543   : >> { %v5052_v24 = vrot.slane %v5051_v39, 2 }
 0x544   : >> { %v5056_v58 = vsel %vm245_vm0, %v4947_v37, 0.0  ;;  %v5086_v37 = vrot.slane %v5085_v14, 4 }
 0x545   : >> { %v5058_v10 = vadd.f32 %v5057_v23, %v5056_v58  ;;  %v5035_v58 = vadd.f32 %v5034_v46, %v5033_v63  ;;  %v5120_v46 = vrot.slane %v5104_v54, 7 }
 0x546   : >> { %v5087_v17 = vadd.f32 %v5086_v37, %v5085_v14 }
 0x547   : >> { %v5059_v13 = vrot.slane %v5058_v10, 4 }
 0x548   : >> { %v5088_v60 = vrot.slane %v5087_v17, 2 }
 0x549   : >> { %v5060_v30 = vadd.f32 %v5059_v13, %v5058_v10  ;;  %v4924_v8 = vpop.permute.xlu2 %4923  ;;  %v5036_v10 = vrot.slane %v5035_v58, 1 }
 0x54b   : >> { %v5061_v50 = vrot.slane %v5060_v30, 2 }
 0x54d   : >> { %v5062_v0 = vadd.f32 %v5061_v50, %v5060_v30 }
 0x54f   : >> { %v5063_v18 = vrot.slane %v5062_v0, 1 }
 0x551   : >> { %v4885_v52 = vpop.permute.xlu1 %4884  ;;  %v5064_v41 = vadd.f32 %v5063_v18, %v5062_v0 }
 0x552   : >> { %v4950_v51 = vmul.f32 %v4885_v52, %v4710_v16  ;;  %v5053_v52 = vadd.f32 %v5052_v24, %v5051_v39  ;;  %v5044_v16 = vadd.f32 %v5043_v55, %v5042_v25 }
 0x553   : >> { %v5148_v14 = vadd.f32 %v5116_v36, %v5064_v41 }
 0x554   : >> { %v5066_v2 = vsel %vm245_vm0, %v4950_v51, 0.0  ;;  %v4716_v51 = vld [vmem:[#allocation5 + $0x1f8] sm:$0xff]  ;;  %v5054_v6 = vrot.slane %v5053_v52, 1  ;;  %v5045_v23 = vrot.slane %v5044_v16, 1 }
 0x555   : >> { %v5067_v22 = vadd.f32 %v5066_v2, %v5065_v9  ;;  %v4956_v15 = vmul.f32 %v4924_v8, %v4716_v51  ;;  %v5115_v9 = vrot.slane %v5104_v54, 2  ;;  %v5190_v24 = vrot.slane %v5148_v14, 5 }
 0x556   : >> { %v5055_v38 = vadd.f32 %v5054_v6, %v5053_v52  ;;  %v5046_v31 = vadd.f32 %v5045_v23, %v5044_v16 }
 0x557   : >> { %v5068_v61 = vrot.slane %v5067_v22, 4  ;;  %v5093_v59 = vsel %vm245_vm0, %v4956_v15, 0.0 }
 0x558   : >> { %v5147_v20 = vadd.f32 %v5115_v9, %v5055_v38 }
 0x559   : >> { %v4898_v44 = vpop.permute.xlu1 %4897  ;;  %v5069_v42 = vadd.f32 %v5068_v61, %v5067_v22  ;;  %v5089_v22 = vadd.f32 %v5088_v60, %v5087_v17  ;;  %v5374_v60 = vld [vmem:[%s8229_s20 + $0x48] sm:$0xff] }
 0x55a   : >> { %v4952_v11 = vmul.f32 %v4898_v44, %v4712_v56  ;;  %v5037_v44 = vadd.f32 %v5036_v10, %v5035_v58  ;;  %v5118_v56 = vrot.slane %v5104_v54, 5 }
 0x55b   : >> { %v5070_v53 = vrot.slane %v5069_v42, 2  ;;  %v5090_v32 = vrot.slane %v5089_v22, 1 }
 0x55c   : >> { %v5075_v19 = vsel %vm245_vm0, %v4952_v11, 0.0  ;;  %v5145_v25 = vadd.f32 %v5104_v54, %v5037_v44 }
 0x55d   : >> { %v5076_v43 = vadd.f32 %v5075_v19, %v5074_v7  ;;  %v5071_v12 = vadd.f32 %v5070_v53, %v5069_v42  ;;  %v5146_v7 = vadd.f32 %v5114_v29, %v5046_v31  ;;  %v5119_v42 = vrot.slane %v5104_v54, 6 }
 0x55e   : >> { %v5091_v63 = vadd.f32 %v5090_v32, %v5089_v22 }
 0x55f   : >> { %v5077_v26 = vrot.slane %v5076_v43, 4  ;;  %v5072_v2 = vrot.slane %v5071_v12, 1  ;;  %v5186_v37 = vrot.slane %v5146_v7, 7  ;;  %v8536_v7 = vld [vmem:[#allocation16_spill] sm:$0xff] }
 0x560   : >> { %v5151_v34 = vadd.f32 %v5119_v42, %v5091_v63 }
 0x561   : >> { %v5078_v35 = vadd.f32 %v5077_v26, %v5076_v43  ;;  %v5073_v13 = vadd.f32 %v5072_v2, %v5071_v12  ;;  %v5188_v26 = vrot.slane %v5147_v20, 6  ;;  %v8533_v2 = vmov %v7953_v40 }
 0x562   : >> { %v5196_v58 = vrot.slane %v5151_v34, 2 }
 0x563   : >> { %v5079_v57 = vrot.slane %v5078_v35, 2  ;;  %v5149_v19 = vadd.f32 %v5117_v62, %v5073_v13 }
 0x565   : >> { %v5080_v45 = vadd.f32 %v5079_v57, %v5078_v35  ;;  %v5192_v50 = vrot.slane %v5149_v19, 4  ;;  %v5187_v35 = vsel %vm3591_vm1, %v5186_v37, %v5145_v25 }
 0x566   : >> { %v5189_v17 = vsel %vm3594_vm2, %v5188_v26, %v5187_v35 }
 0x567   : >> { %v5081_v33 = vrot.slane %v5080_v45, 1  ;;  %v5191_v52 = vsel %vm3597_vm3, %v5190_v24, %v5189_v17 }
 0x568   : >> { %v5193_v0 = vsel %vm3600_vm4, %v5192_v50, %v5191_v52 }
 0x569   : >> { %v4918_v47 = vpop.permute.xlu1 %4917  ;;  %v5082_v61 = vadd.f32 %v5081_v33, %v5080_v45 }
 0x56a   : >> { %v4955_v28 = vmul.f32 %v4918_v47, %v4715_v21 }
 0x56b   : >> { %v5150_v30 = vadd.f32 %v5118_v56, %v5082_v61 }
 0x56c   : >> { %v5092_v5 = vsel %vm245_vm0, %v4955_v28, 0.0 }
 0x56d   : >> { %v5094_v27 = vadd.f32 %v5093_v59, %v5092_v5  ;;  %v5194_v53 = vrot.slane %v5150_v30, 3  ;;  %v8534_v5 = vmov %v7268_v48 }
 0x56f   : >> { %v5095_v11 = vrot.slane %v5094_v27, 4  ;;  %v5195_v8 = vsel %vm3603_vm5, %v5194_v53, %v5193_v0 }
 0x570   : >> { %v5197_v45 = vsel %vm3606_vm6, %v5196_v58, %v5195_v8  ;;  %v8537_v8 = vld [vmem:[#allocation15_spill] sm:$0xff] }
 0x571   : >> { %v5096_v39 = vadd.f32 %v5095_v11, %v5094_v27 }
 0x573   : >> { %v5097_v43 = vrot.slane %v5096_v39, 2 }
 0x575   : >> { %v5098_v55 = vadd.f32 %v5097_v43, %v5096_v39 }
 0x577   : >> { %v5099_v57 = vrot.slane %v5098_v55, 1 }
 0x579   : >> { %v5100_v16 = vadd.f32 %v5099_v57, %v5098_v55 }
 0x57b   : >> { %v5152_v12 = vadd.f32 %v5120_v46, %v5100_v16 }
 0x57d   : >> { %v5198_v51 = vrot.slane %v5152_v12, 1 }
 0x57e   : > { %266 = sbr.rel (!%p264_p4) target bundleno = 33 (0x21), region = 155 }
 0x57f   : >> { %v5199_v6 = vsel %vm3609_vm7, %v5198_v51, %v5197_v45 }
 0x580   : >> { %v5203_v54 = vadd.f32 %v5374_v60, %v5199_v6  ;;  %v8535_v6 = vmov %v7249_v49 }
 0x582   : >> { %5376 = vst.msk [vmem:[%s8229_s20 + $0x48] sm:$0xff] %vm245_vm0, %v5203_v54 }
 0x583 PF: > { %s15_s18 = sadd.s32 1, %s5935_s18  }
 0x584   : > { %p12_p5 = scmp.ge.s32.totalorder %s15_s18, 4  }
 0x586   :  { %14 = sbr.rel (!%p12_p5) target bundleno = 1 (0x1), region = 166 }

</bundles_post_ra>
